<compile_context>
chip_gen: v6e
topology: v6e:2x2x1
jax: 0.10.0
libtpu: 0.0.40
codegen_flags: <defaults>
</compile_context>

<pallas_src>
from functools import partial

import numpy as np
import jax
import jax.numpy as jnp
from jax.experimental import pallas as pl
from jax.experimental.pallas import tpu as pltpu

KSIZE = 7
PAD = KSIZE // 2            # 3
LANE = 128                  # lane width: HBM-facing channel dim padded to this
LEFT = 8                    # sublane-aligned left W pad of the hidden scratch
RIGHT = 8                   # right W pad (only PAD=3 of these columns are read)


def _make_mask_b(k):
    # PixelCNN type-"B" mask: rows above center, left-of-center on the center
    # row, plus the center pixel.
    m = np.zeros((k, k), dtype=np.float32)
    m[: k // 2, :] = 1.0
    m[k // 2, : k // 2] = 1.0
    m[k // 2, k // 2] = 1.0
    return m


MASK_B = _make_mask_b(KSIZE)
# The 25 live taps of the masked 7x7, in (kh, kw) order (shared by
# prepare_params and the kernel so weight slot t <-> tap (kh, kw) match).
TAPS = [(kh, kw) for kh in range(KSIZE) for kw in range(KSIZE)
        if MASK_B[kh, kw] != 0.0]


def _round_up(n, m):
    return ((n + m - 1) // m) * m


# ---------------- fused Pallas kernel ----------------

def _residual_block_kernel(x_ref, w1_ref, b1_ref, w2t_ref, b2_ref, w3_ref,
                           b3_ref, o_ref, hp_ref):
    # x_ref  : [TH, W, Cp]        fp32 input tile (batch dim squeezed)
    # w1_ref : [Cp, Cm]     bf16  1x1 conv,  C   -> C/2
    # w2t_ref: [25, Cm, Cm] bf16  the 25 unmasked 7x7 taps, TAPS order
    # w3_ref : [Cm, Cp]     bf16  1x1 conv,  C/2 -> C
    # b*_ref : [1, .]       fp32  biases
    # o_ref  : [TH, W, Cp]
    # hp_ref : VMEM scratch [PAD+TH, LEFT+W+RIGHT, Cm] bf16.  Rows [0, PAD)
    #          hold the 3 hidden rows above this tile (zero at the image top,
    #          otherwise carried from the previous H step); rows [PAD, PAD+TH)
    #          hold this tile's hidden activation; the W halo columns are zero.
    TH, W, Cp = x_ref.shape
    Cm = hp_ref.shape[-1]
    Wp = hp_ref.shape[1]
    N = TH * W
    ht = pl.program_id(1)

    # Image top: zero only the halos (top rows + left/right column strips).
    # The interior is overwritten below and the column strips are never
    # written afterwards, so this runs once per image, not per grid step.
    # (Runs for every image, so it is safe under megacore batch sharding.)
    @pl.when(ht == 0)
    def _():
        hp_ref[0:PAD, :, :] = jnp.zeros((PAD, Wp, Cm), jnp.bfloat16)
        hp_ref[:, 0:LEFT, :] = jnp.zeros((PAD + TH, LEFT, Cm), jnp.bfloat16)
        hp_ref[:, LEFT + W:LEFT + W + RIGHT, :] = jnp.zeros(
            (PAD + TH, RIGHT, Cm), jnp.bfloat16)

    # --- ReLU -> 1x1 conv (C -> C/2) -> ReLU, staged into the sublane-aligned
    #     interior of the scratch (fp32 accumulation, bf16 storage).
    a1 = jnp.maximum(x_ref[...].reshape(N, Cp), 0.0).astype(jnp.bfloat16)
    h1 = jnp.dot(a1, w1_ref[...], preferred_element_type=jnp.float32) + b1_ref[...]
    hp_ref[PAD:PAD + TH, LEFT:LEFT + W, :] = (
        jnp.maximum(h1, 0.0).astype(jnp.bfloat16).reshape(TH, W, Cm))

    # --- masked 7x7 conv: 25 per-tap matmuls (K = Cm) accumulated in fp32.
    #     The 3 masked center-row taps are skipped; no concat temporaries.
    acc = jnp.zeros((N, Cm), dtype=jnp.float32)
    for t, (kh, kw) in enumerate(TAPS):        # static unroll (25 taps)
        c0 = LEFT - PAD + kw                   # shifted window start column
        win = hp_ref[kh:kh + TH, c0:c0 + W, :]
        acc = acc + jnp.dot(win.reshape(N, Cm), w2t_ref[t],
                            preferred_element_type=jnp.float32)
    a3 = jnp.maximum(acc + b2_ref[...], 0.0).astype(jnp.bfloat16)

    # --- final 1x1 conv (C/2 -> C) + residual add (x re-read here so its fp32
    #     block is not live across the matmul stages).
    y = jnp.dot(a3, w3_ref[...], preferred_element_type=jnp.float32) + b3_ref[...]
    o_ref[...] = (y.reshape(TH, W, Cp) + x_ref[...]).astype(o_ref.dtype)

    # Carry the last PAD hidden rows into the top halo for the next H tile.
    @pl.when(ht + 1 < pl.num_programs(1))
    def _():
        hp_ref[0:PAD, :, :] = hp_ref[TH:TH + PAD, :, :]


# ---------------- wrappers ----------------

def prepare_params(params, in_channels):
    """Pad the HBM-facing channel dim to lane width, gather the 25 unmasked
    7x7 taps, cast matmul operands to bf16.  Call once per block."""
    w1, b1, w2m, b2, w3, b3 = params
    c = in_channels
    cm = c // 2                       # hidden channels stay UNPADDED
    cp = _round_up(c, LANE)

    w1p = jnp.zeros((cp, cm), jnp.float32).at[:c, :].set(w1)
    b1p = jnp.asarray(b1, jnp.float32).reshape(1, cm)
    # Only the 25 unmasked taps; order must match the kernel's TAPS list.
    w2t = jnp.stack([w2m[kh, kw] for (kh, kw) in TAPS], axis=0)   # [25, cm, cm]
    b2p = jnp.asarray(b2, jnp.float32).reshape(1, cm)
    w3p = jnp.zeros((cm, cp), jnp.float32).at[:, :c].set(w3)
    b3p = jnp.zeros((1, cp), jnp.float32).at[:, :c].set(b3)
    return (w1p.astype(jnp.bfloat16), b1p, w2t.astype(jnp.bfloat16), b2p,
            w3p.astype(jnp.bfloat16), b3p)


def _pick_tile_h(H, W, Cp, target_bytes=2 << 20):
    """Largest divisor of H whose fp32 input tile is <= ~target_bytes."""
    max_th = max(1, target_bytes // max(1, W * Cp * 4))
    if H <= max_th:
        return H
    for th in range(int(min(max_th, H)), 0, -1):
        if H % th == 0:
            return th
    return H


def residual_block_forward_nhwc(x_nhwc, kparams, tile_h=None):
    # x_nhwc: [B, H, W, C] fp32.  W a multiple of 8 avoids extra relayouts
    # (non-multiples remain correct).
    w1p, b1p, w2t, b2p, w3p, b3p = kparams
    B, H, W, C = x_nhwc.shape
    Cp, Cm = w1p.shape
    xpad = x_nhwc if C == Cp else jnp.pad(
        x_nhwc, ((0, 0), (0, 0), (0, 0), (0, Cp - C)))

    TH = _pick_tile_h(H, W, Cp) if tile_h is None else int(tile_h)
    TH = max(1, min(TH, H))
    nh = pl.cdiv(H, TH)
    Wp = LEFT + W + RIGHT

    img_spec = pl.BlockSpec((None, TH, W, Cp), lambda b, h: (b, h, 0, 0))

    def resident(shape):   # constant index_map -> fetched once, kept resident
        return pl.BlockSpec(shape, lambda b, h: (0,) * len(shape))

    # VMEM budget: double-buffered in/out tiles + scratch + (double-buffered)
    # weights + headroom for matmul-operand materialization; clamped to a range
    # that is safe on every generation (v7x physical VMEM is 64 MiB).
    tile_bytes = TH * W * Cp * 4
    weight_bytes = sum(int(np.prod(a.shape)) * a.dtype.itemsize
                       for a in (w1p, b1p, w2t, b2p, w3p, b3p))
    est = (4 * tile_bytes                       # in + out, double-buffered
           + (PAD + TH) * Wp * Cm * 2           # hidden scratch (bf16)
           + 2 * weight_bytes                   # resident weights (2 buffers)
           + 4 * tile_bytes + 8 * TH * W * Cm * 4)   # temporaries headroom
    vmem_limit = int(min(max(2 * est, 32 * 1024 * 1024), 48 * 1024 * 1024))

    y = pl.pallas_call(
        _residual_block_kernel,
        out_shape=jax.ShapeDtypeStruct((B, H, W, Cp), x_nhwc.dtype),
        grid_spec=pltpu.PrefetchScalarGridSpec(
            num_scalar_prefetch=0,
            grid=(B, nh),
            in_specs=[
                img_spec,
                resident(w1p.shape), resident(b1p.shape),
                resident(w2t.shape), resident(b2p.shape),
                resident(w3p.shape), resident(b3p.shape),
            ],
            out_specs=img_spec,
            scratch_shapes=[pltpu.VMEM((PAD + TH, Wp, Cm), jnp.bfloat16)],
        ),
        compiler_params=pltpu.CompilerParams(
            dimension_semantics=("parallel", "arbitrary"),
            vmem_limit_bytes=vmem_limit),
    )(xpad, w1p, b1p, w2t, b2p, w3p, b3p)
    return y if C == Cp else y[..., :C]


@partial(jax.jit, static_argnames=("tile_h",))
def residual_block_forward(x_nchw, kparams, tile_h=None):
    # NCHW <-> NHWC kept at the block boundary for the PyTorch-style interface.
    # TODO(synk): in a stacked PixelCNN keep the whole model NHWC and
    # channel-padded (optionally bf16 in HBM) so these transpose/pad/slice
    # passes happen once per network, not once per block.
    x = jnp.transpose(x_nchw, (0, 2, 3, 1))
    y = residual_block_forward_nhwc(x, kparams, tile_h=tile_h)
    return jnp.transpose(y, (0, 3, 1, 2))


# ---------------- params & reference ----------------

def init_params(key, in_channels):
    c = in_channels
    cm = c // 2
    ks = jax.random.split(key, 6)
    w1 = jax.random.normal(ks[0], (c, cm), jnp.float32) * 0.2
    b1 = jax.random.normal(ks[1], (cm,), jnp.float32) * 0.1
    w2 = jax.random.normal(ks[2], (KSIZE, KSIZE, cm, cm), jnp.float32) * 0.1
    b2 = jax.random.normal(ks[3], (cm,), jnp.float32) * 0.1
    w3 = jax.random.normal(ks[4], (cm, c), jnp.float32) * 0.2
    b3 = jax.random.normal(ks[5], (c,), jnp.float32) * 0.1
    w2m = w2 * jnp.asarray(MASK_B)[:, :, None, None]     # apply causal type-B mask
    return (w1, b1, w2m, b2, w3, b3)


def ref_forward(x_nchw, params):
    # Pure-JAX reference (lax conv, NHWC/HWIO).  Conv operands are quantized to
    # bf16 with fp32 accumulation exactly like the kernel, so the comparison
    # isolates kernel bugs rather than bf16 rounding.
    w1, b1, w2m, b2, w3, b3 = params
    x = jnp.transpose(x_nchw, (0, 2, 3, 1))

    def relu_conv(h, w, b, pad):
        y = jax.lax.conv_general_dilated(
            jnp.maximum(h, 0.0).astype(jnp.bfloat16), w.astype(jnp.bfloat16),
            (1, 1), [(pad, pad), (pad, pad)],
            dimension_numbers=("NHWC", "HWIO", "NHWC"),
            preferred_element_type=jnp.float32)
        return y + b.reshape(1, 1, 1, -1)

    h = relu_conv(x, w1.reshape(1, 1, *w1.shape), b1, 0)
    h = relu_conv(h, w2m, b2, PAD)
    h = relu_conv(h, w3.reshape(1, 1, *w3.shape), b3, 0)
    y = h + x
    return jnp.transpose(y, (0, 3, 1, 2))


if __name__ == "__main__":
    B, C, H, W = 2, 16, 16, 16     # in_channels=16 -> hidden C/2 = 8
    key = jax.random.PRNGKey(0)
    kx, kp = jax.random.split(key)
    x = jax.random.normal(kx, (B, C, H, W), jnp.float32)   # NCHW, like PyTorch
    params = init_params(kp, C)
    kparams = prepare_params(params, C)

    # tile_h=8 -> 2 H tiles per image, exercising the carried-halo path.
    y = residual_block_forward(x, kparams, tile_h=8)
    y = jax.block_until_ready(y)

    y_ref = ref_forward(x, params)
    assert y.shape == (B, C, H, W)
    if not jnp.allclose(y, y_ref, atol=1e-2, rtol=1e-2):
        err = float(jnp.max(jnp.abs(y - y_ref)))
        raise AssertionError(f"Pallas result mismatches reference (max abs err {err})")
    print("KERNEL_OK")
</pallas_src>

<mosaic_0001>
module attributes {stable_mosaic.version = 11 : i64} {
  func.func @_residual_block_kernel(%arg0: i32, %arg1: i32, %arg2: memref<1x8x16x128xf32, #tpu.memory_space<vmem>>, %arg3: memref<128x8xbf16, #tpu.memory_space<vmem>>, %arg4: memref<1x8xf32, #tpu.memory_space<vmem>>, %arg5: memref<25x8x8xbf16, #tpu.memory_space<vmem>>, %arg6: memref<1x8xf32, #tpu.memory_space<vmem>>, %arg7: memref<8x128xbf16, #tpu.memory_space<vmem>>, %arg8: memref<1x128xf32, #tpu.memory_space<vmem>>, %arg9: memref<1x8x16x128xf32, #tpu.memory_space<vmem>>, %arg10: memref<11x32x8xbf16, #tpu.memory_space<vmem>>) attributes {dimension_semantics = [#tpu.dimension_semantics<parallel>, #tpu.dimension_semantics<arbitrary>], iteration_bounds = array<i64: 2, 2>, scalar_prefetch = 0 : i64, scratch_operands = 1 : i64, tpu.core_type = #tpu.core_type<tc>, window_params = [{transform_indices = @transform_0, window_bounds = array<i64: 1, 8, 16, 128>}, {pipeline_mode = #tpu.pipeline_mode<synchronous>, transform_indices = @transform_1, window_bounds = array<i64: 128, 8>}, {pipeline_mode = #tpu.pipeline_mode<synchronous>, transform_indices = @transform_2, window_bounds = array<i64: 1, 8>}, {pipeline_mode = #tpu.pipeline_mode<synchronous>, transform_indices = @transform_3, window_bounds = array<i64: 25, 8, 8>}, {pipeline_mode = #tpu.pipeline_mode<synchronous>, transform_indices = @transform_4, window_bounds = array<i64: 1, 8>}, {pipeline_mode = #tpu.pipeline_mode<synchronous>, transform_indices = @transform_5, window_bounds = array<i64: 8, 128>}, {pipeline_mode = #tpu.pipeline_mode<synchronous>, transform_indices = @transform_6, window_bounds = array<i64: 1, 128>}, {transform_indices = @transform_7, window_bounds = array<i64: 1, 8, 16, 128>}]} {
    %c0_i32 = arith.constant 0 : i32
    %0 = arith.cmpi eq, %arg1, %c0_i32 : i32
    %1 = arith.extui %0 : i1 to i32
    %c0_i32_0 = arith.constant 0 : i32
    %2 = arith.cmpi ne, %1, %c0_i32_0 : i32
    scf.if %2 {
      %cst_182 = arith.constant 0.000000e+00 : bf16
      %192 = vector.broadcast %cst_182 : bf16 to vector<3x32x8xbf16>
      %c0_183 = arith.constant 0 : index
      %c0_184 = arith.constant 0 : index
      %c0_185 = arith.constant 0 : index
      %193 = vector.load %arg10[%c0_183, %c0_184, %c0_185] : memref<11x32x8xbf16, #tpu.memory_space<vmem>>, vector<3x32x8xbf16>
      tpu.vector_store %arg10[%c0_183, %c0_184, %c0_185], %192 {strides = array<i32>} : memref<11x32x8xbf16, #tpu.memory_space<vmem>>, vector<3x32x8xbf16>,
      %cst_186 = arith.constant 0.000000e+00 : bf16
      %194 = vector.broadcast %cst_186 : bf16 to vector<11x8x8xbf16>
      %c0_187 = arith.constant 0 : index
      %c0_188 = arith.constant 0 : index
      %c0_189 = arith.constant 0 : index
      %195 = vector.load %arg10[%c0_187, %c0_188, %c0_189] : memref<11x32x8xbf16, #tpu.memory_space<vmem>>, vector<11x8x8xbf16>
      tpu.vector_store %arg10[%c0_187, %c0_188, %c0_189], %194 {strides = array<i32>} : memref<11x32x8xbf16, #tpu.memory_space<vmem>>, vector<11x8x8xbf16>,
      %cst_190 = arith.constant 0.000000e+00 : bf16
      %196 = vector.broadcast %cst_190 : bf16 to vector<11x8x8xbf16>
      %c0_191 = arith.constant 0 : index
      %c24_192 = arith.constant 24 : index
      %c0_193 = arith.constant 0 : index
      %197 = vector.load %arg10[%c0_191, %c24_192, %c0_193] : memref<11x32x8xbf16, #tpu.memory_space<vmem>>, vector<11x8x8xbf16>
      tpu.vector_store %arg10[%c0_191, %c24_192, %c0_193], %196 {strides = array<i32>} : memref<11x32x8xbf16, #tpu.memory_space<vmem>>, vector<11x8x8xbf16>,
    } else {
    }
    %c0 = arith.constant 0 : index
    %c0_1 = arith.constant 0 : index
    %c0_2 = arith.constant 0 : index
    %c0_3 = arith.constant 0 : index
    %3 = vector.load %arg2[%c0, %c0_1, %c0_2, %c0_3] : memref<1x8x16x128xf32, #tpu.memory_space<vmem>>, vector<1x8x16x128xf32>
    %4 = vector.shape_cast %3 : vector<1x8x16x128xf32> to vector<8x16x128xf32>
    %5 = vector.shape_cast %4 : vector<8x16x128xf32> to vector<128x128xf32>
    %cst = arith.constant 0.000000e+00 : f32
    %6 = vector.broadcast %cst : f32 to vector<128x128xf32>
    %7 = arith.maximumf %5, %6 : vector<128x128xf32>
    %8 = arith.truncf %7 : vector<128x128xf32> to vector<128x128xbf16>
    %c0_4 = arith.constant 0 : index
    %c0_5 = arith.constant 0 : index
    %9 = vector.load %arg3[%c0_4, %c0_5] : memref<128x8xbf16, #tpu.memory_space<vmem>>, vector<128x8xbf16>
    %cst_6 = arith.constant dense<0.000000e+00> : vector<128x8xf32>
    %10 = tpu.matmul %8, %9, %cst_6 {dimension_numbers = #tpu.dot_dimension_numbers<[1], [0], [0], [1], [0, 0, 1, 1], [], []>} : vector<128x128xbf16>, vector<128x8xbf16>, vector<128x8xf32> -> vector<128x8xf32>
    %c0_7 = arith.constant 0 : index
    %c0_8 = arith.constant 0 : index
    %11 = vector.load %arg4[%c0_7, %c0_8] : memref<1x8xf32, #tpu.memory_space<vmem>>, vector<1x8xf32>
    %12 = vector.broadcast %11 : vector<1x8xf32> to vector<128x8xf32>
    %13 = arith.addf %10, %12 : vector<128x8xf32>
    %cst_9 = arith.constant 0.000000e+00 : f32
    %14 = vector.broadcast %cst_9 : f32 to vector<128x8xf32>
    %15 = arith.maximumf %13, %14 : vector<128x8xf32>
    %16 = arith.truncf %15 : vector<128x8xf32> to vector<128x8xbf16>
    %17 = vector.shape_cast %16 : vector<128x8xbf16> to vector<8x16x8xbf16>
    %c3 = arith.constant 3 : index
    %c8 = arith.constant 8 : index
    %c0_10 = arith.constant 0 : index
    %18 = vector.load %arg10[%c3, %c8, %c0_10] : memref<11x32x8xbf16, #tpu.memory_space<vmem>>, vector<8x16x8xbf16>
    tpu.vector_store %arg10[%c3, %c8, %c0_10], %17 {strides = array<i32>} : memref<11x32x8xbf16, #tpu.memory_space<vmem>>, vector<8x16x8xbf16>,
    %cst_11 = arith.constant 0.000000e+00 : f32
    %19 = vector.broadcast %cst_11 : f32 to vector<128x8xf32>
    %c0_12 = arith.constant 0 : index
    %c5 = arith.constant 5 : index
    %c0_13 = arith.constant 0 : index
    %20 = vector.load %arg10[%c0_12, %c5, %c0_13] : memref<11x32x8xbf16, #tpu.memory_space<vmem>>, vector<8x16x8xbf16>
    %21 = vector.shape_cast %20 : vector<8x16x8xbf16> to vector<128x8xbf16>
    %c0_14 = arith.constant 0 : index
    %c0_15 = arith.constant 0 : index
    %c0_16 = arith.constant 0 : index
    %22 = vector.load %arg5[%c0_14, %c0_15, %c0_16] : memref<25x8x8xbf16, #tpu.memory_space<vmem>>, vector<1x8x8xbf16>
    %23 = vector.shape_cast %22 : vector<1x8x8xbf16> to vector<8x8xbf16>
    %cst_17 = arith.constant dense<0.000000e+00> : vector<128x8xf32>
    %24 = tpu.matmul %21, %23, %cst_17 {dimension_numbers = #tpu.dot_dimension_numbers<[1], [0], [0], [1], [0, 0, 1, 1], [], []>} : vector<128x8xbf16>, vector<8x8xbf16>, vector<128x8xf32> -> vector<128x8xf32>
    %25 = arith.addf %19, %24 : vector<128x8xf32>
    %c0_18 = arith.constant 0 : index
    %c6 = arith.constant 6 : index
    %c0_19 = arith.constant 0 : index
    %26 = vector.load %arg10[%c0_18, %c6, %c0_19] : memref<11x32x8xbf16, #tpu.memory_space<vmem>>, vector<8x16x8xbf16>
    %27 = vector.shape_cast %26 : vector<8x16x8xbf16> to vector<128x8xbf16>
    %c1 = arith.constant 1 : index
    %c0_20 = arith.constant 0 : index
    %c0_21 = arith.constant 0 : index
    %28 = vector.load %arg5[%c1, %c0_20, %c0_21] : memref<25x8x8xbf16, #tpu.memory_space<vmem>>, vector<1x8x8xbf16>
    %29 = vector.shape_cast %28 : vector<1x8x8xbf16> to vector<8x8xbf16>
    %cst_22 = arith.constant dense<0.000000e+00> : vector<128x8xf32>
    %30 = tpu.matmul %27, %29, %cst_22 {dimension_numbers = #tpu.dot_dimension_numbers<[1], [0], [0], [1], [0, 0, 1, 1], [], []>} : vector<128x8xbf16>, vector<8x8xbf16>, vector<128x8xf32> -> vector<128x8xf32>
    %31 = arith.addf %25, %30 : vector<128x8xf32>
    %c0_23 = arith.constant 0 : index
    %c7 = arith.constant 7 : index
    %c0_24 = arith.constant 0 : index
    %32 = vector.load %arg10[%c0_23, %c7, %c0_24] : memref<11x32x8xbf16, #tpu.memory_space<vmem>>, vector<8x16x8xbf16>
    %33 = vector.shape_cast %32 : vector<8x16x8xbf16> to vector<128x8xbf16>
    %c2 = arith.constant 2 : index
    %c0_25 = arith.constant 0 : index
    %c0_26 = arith.constant 0 : index
    %34 = vector.load %arg5[%c2, %c0_25, %c0_26] : memref<25x8x8xbf16, #tpu.memory_space<vmem>>, vector<1x8x8xbf16>
    %35 = vector.shape_cast %34 : vector<1x8x8xbf16> to vector<8x8xbf16>
    %cst_27 = arith.constant dense<0.000000e+00> : vector<128x8xf32>
    %36 = tpu.matmul %33, %35, %cst_27 {dimension_numbers = #tpu.dot_dimension_numbers<[1], [0], [0], [1], [0, 0, 1, 1], [], []>} : vector<128x8xbf16>, vector<8x8xbf16>, vector<128x8xf32> -> vector<128x8xf32>
    %37 = arith.addf %31, %36 : vector<128x8xf32>
    %c0_28 = arith.constant 0 : index
    %c8_29 = arith.constant 8 : index
    %c0_30 = arith.constant 0 : index
    %38 = vector.load %arg10[%c0_28, %c8_29, %c0_30] : memref<11x32x8xbf16, #tpu.memory_space<vmem>>, vector<8x16x8xbf16>
    %39 = vector.shape_cast %38 : vector<8x16x8xbf16> to vector<128x8xbf16>
    %c3_31 = arith.constant 3 : index
    %c0_32 = arith.constant 0 : index
    %c0_33 = arith.constant 0 : index
    %40 = vector.load %arg5[%c3_31, %c0_32, %c0_33] : memref<25x8x8xbf16, #tpu.memory_space<vmem>>, vector<1x8x8xbf16>
    %41 = vector.shape_cast %40 : vector<1x8x8xbf16> to vector<8x8xbf16>
    %cst_34 = arith.constant dense<0.000000e+00> : vector<128x8xf32>
    %42 = tpu.matmul %39, %41, %cst_34 {dimension_numbers = #tpu.dot_dimension_numbers<[1], [0], [0], [1], [0, 0, 1, 1], [], []>} : vector<128x8xbf16>, vector<8x8xbf16>, vector<128x8xf32> -> vector<128x8xf32>
    %43 = arith.addf %37, %42 : vector<128x8xf32>
    %c0_35 = arith.constant 0 : index
    %c9 = arith.constant 9 : index
    %c0_36 = arith.constant 0 : index
    %44 = vector.load %arg10[%c0_35, %c9, %c0_36] : memref<11x32x8xbf16, #tpu.memory_space<vmem>>, vector<8x16x8xbf16>
    %45 = vector.shape_cast %44 : vector<8x16x8xbf16> to vector<128x8xbf16>
    %c4 = arith.constant 4 : index
    %c0_37 = arith.constant 0 : index
    %c0_38 = arith.constant 0 : index
    %46 = vector.load %arg5[%c4, %c0_37, %c0_38] : memref<25x8x8xbf16, #tpu.memory_space<vmem>>, vector<1x8x8xbf16>
    %47 = vector.shape_cast %46 : vector<1x8x8xbf16> to vector<8x8xbf16>
    %cst_39 = arith.constant dense<0.000000e+00> : vector<128x8xf32>
    %48 = tpu.matmul %45, %47, %cst_39 {dimension_numbers = #tpu.dot_dimension_numbers<[1], [0], [0], [1], [0, 0, 1, 1], [], []>} : vector<128x8xbf16>, vector<8x8xbf16>, vector<128x8xf32> -> vector<128x8xf32>
    %49 = arith.addf %43, %48 : vector<128x8xf32>
    %c0_40 = arith.constant 0 : index
    %c10 = arith.constant 10 : index
    %c0_41 = arith.constant 0 : index
    %50 = vector.load %arg10[%c0_40, %c10, %c0_41] : memref<11x32x8xbf16, #tpu.memory_space<vmem>>, vector<8x16x8xbf16>
    %51 = vector.shape_cast %50 : vector<8x16x8xbf16> to vector<128x8xbf16>
    %c5_42 = arith.constant 5 : index
    %c0_43 = arith.constant 0 : index
    %c0_44 = arith.constant 0 : index
    %52 = vector.load %arg5[%c5_42, %c0_43, %c0_44] : memref<25x8x8xbf16, #tpu.memory_space<vmem>>, vector<1x8x8xbf16>
    %53 = vector.shape_cast %52 : vector<1x8x8xbf16> to vector<8x8xbf16>
    %cst_45 = arith.constant dense<0.000000e+00> : vector<128x8xf32>
    %54 = tpu.matmul %51, %53, %cst_45 {dimension_numbers = #tpu.dot_dimension_numbers<[1], [0], [0], [1], [0, 0, 1, 1], [], []>} : vector<128x8xbf16>, vector<8x8xbf16>, vector<128x8xf32> -> vector<128x8xf32>
    %55 = arith.addf %49, %54 : vector<128x8xf32>
    %c0_46 = arith.constant 0 : index
    %c11 = arith.constant 11 : index
    %c0_47 = arith.constant 0 : index
    %56 = vector.load %arg10[%c0_46, %c11, %c0_47] : memref<11x32x8xbf16, #tpu.memory_space<vmem>>, vector<8x16x8xbf16>
    %57 = vector.shape_cast %56 : vector<8x16x8xbf16> to vector<128x8xbf16>
    %c6_48 = arith.constant 6 : index
    %c0_49 = arith.constant 0 : index
    %c0_50 = arith.constant 0 : index
    %58 = vector.load %arg5[%c6_48, %c0_49, %c0_50] : memref<25x8x8xbf16, #tpu.memory_space<vmem>>, vector<1x8x8xbf16>
    %59 = vector.shape_cast %58 : vector<1x8x8xbf16> to vector<8x8xbf16>
    %cst_51 = arith.constant dense<0.000000e+00> : vector<128x8xf32>
    %60 = tpu.matmul %57, %59, %cst_51 {dimension_numbers = #tpu.dot_dimension_numbers<[1], [0], [0], [1], [0, 0, 1, 1], [], []>} : vector<128x8xbf16>, vector<8x8xbf16>, vector<128x8xf32> -> vector<128x8xf32>
    %61 = arith.addf %55, %60 : vector<128x8xf32>
    %c1_52 = arith.constant 1 : index
    %c5_53 = arith.constant 5 : index
    %c0_54 = arith.constant 0 : index
    %62 = vector.load %arg10[%c1_52, %c5_53, %c0_54] : memref<11x32x8xbf16, #tpu.memory_space<vmem>>, vector<8x16x8xbf16>
    %63 = vector.shape_cast %62 : vector<8x16x8xbf16> to vector<128x8xbf16>
    %c7_55 = arith.constant 7 : index
    %c0_56 = arith.constant 0 : index
    %c0_57 = arith.constant 0 : index
    %64 = vector.load %arg5[%c7_55, %c0_56, %c0_57] : memref<25x8x8xbf16, #tpu.memory_space<vmem>>, vector<1x8x8xbf16>
    %65 = vector.shape_cast %64 : vector<1x8x8xbf16> to vector<8x8xbf16>
    %cst_58 = arith.constant dense<0.000000e+00> : vector<128x8xf32>
    %66 = tpu.matmul %63, %65, %cst_58 {dimension_numbers = #tpu.dot_dimension_numbers<[1], [0], [0], [1], [0, 0, 1, 1], [], []>} : vector<128x8xbf16>, vector<8x8xbf16>, vector<128x8xf32> -> vector<128x8xf32>
    %67 = arith.addf %61, %66 : vector<128x8xf32>
    %c1_59 = arith.constant 1 : index
    %c6_60 = arith.constant 6 : index
    %c0_61 = arith.constant 0 : index
    %68 = vector.load %arg10[%c1_59, %c6_60, %c0_61] : memref<11x32x8xbf16, #tpu.memory_space<vmem>>, vector<8x16x8xbf16>
    %69 = vector.shape_cast %68 : vector<8x16x8xbf16> to vector<128x8xbf16>
    %c8_62 = arith.constant 8 : index
    %c0_63 = arith.constant 0 : index
    %c0_64 = arith.constant 0 : index
    %70 = vector.load %arg5[%c8_62, %c0_63, %c0_64] : memref<25x8x8xbf16, #tpu.memory_space<vmem>>, vector<1x8x8xbf16>
    %71 = vector.shape_cast %70 : vector<1x8x8xbf16> to vector<8x8xbf16>
    %cst_65 = arith.constant dense<0.000000e+00> : vector<128x8xf32>
    %72 = tpu.matmul %69, %71, %cst_65 {dimension_numbers = #tpu.dot_dimension_numbers<[1], [0], [0], [1], [0, 0, 1, 1], [], []>} : vector<128x8xbf16>, vector<8x8xbf16>, vector<128x8xf32> -> vector<128x8xf32>
    %73 = arith.addf %67, %72 : vector<128x8xf32>
    %c1_66 = arith.constant 1 : index
    %c7_67 = arith.constant 7 : index
    %c0_68 = arith.constant 0 : index
    %74 = vector.load %arg10[%c1_66, %c7_67, %c0_68] : memref<11x32x8xbf16, #tpu.memory_space<vmem>>, vector<8x16x8xbf16>
    %75 = vector.shape_cast %74 : vector<8x16x8xbf16> to vector<128x8xbf16>
    %c9_69 = arith.constant 9 : index
    %c0_70 = arith.constant 0 : index
    %c0_71 = arith.constant 0 : index
    %76 = vector.load %arg5[%c9_69, %c0_70, %c0_71] : memref<25x8x8xbf16, #tpu.memory_space<vmem>>, vector<1x8x8xbf16>
    %77 = vector.shape_cast %76 : vector<1x8x8xbf16> to vector<8x8xbf16>
    %cst_72 = arith.constant dense<0.000000e+00> : vector<128x8xf32>
    %78 = tpu.matmul %75, %77, %cst_72 {dimension_numbers = #tpu.dot_dimension_numbers<[1], [0], [0], [1], [0, 0, 1, 1], [], []>} : vector<128x8xbf16>, vector<8x8xbf16>, vector<128x8xf32> -> vector<128x8xf32>
    %79 = arith.addf %73, %78 : vector<128x8xf32>
    %c1_73 = arith.constant 1 : index
    %c8_74 = arith.constant 8 : index
    %c0_75 = arith.constant 0 : index
    %80 = vector.load %arg10[%c1_73, %c8_74, %c0_75] : memref<11x32x8xbf16, #tpu.memory_space<vmem>>, vector<8x16x8xbf16>
    %81 = vector.shape_cast %80 : vector<8x16x8xbf16> to vector<128x8xbf16>
    %c10_76 = arith.constant 10 : index
    %c0_77 = arith.constant 0 : index
    %c0_78 = arith.constant 0 : index
    %82 = vector.load %arg5[%c10_76, %c0_77, %c0_78] : memref<25x8x8xbf16, #tpu.memory_space<vmem>>, vector<1x8x8xbf16>
    %83 = vector.shape_cast %82 : vector<1x8x8xbf16> to vector<8x8xbf16>
    %cst_79 = arith.constant dense<0.000000e+00> : vector<128x8xf32>
    %84 = tpu.matmul %81, %83, %cst_79 {dimension_numbers = #tpu.dot_dimension_numbers<[1], [0], [0], [1], [0, 0, 1, 1], [], []>} : vector<128x8xbf16>, vector<8x8xbf16>, vector<128x8xf32> -> vector<128x8xf32>
    %85 = arith.addf %79, %84 : vector<128x8xf32>
    %c1_80 = arith.constant 1 : index
    %c9_81 = arith.constant 9 : index
    %c0_82 = arith.constant 0 : index
    %86 = vector.load %arg10[%c1_80, %c9_81, %c0_82] : memref<11x32x8xbf16, #tpu.memory_space<vmem>>, vector<8x16x8xbf16>
    %87 = vector.shape_cast %86 : vector<8x16x8xbf16> to vector<128x8xbf16>
    %c11_83 = arith.constant 11 : index
    %c0_84 = arith.constant 0 : index
    %c0_85 = arith.constant 0 : index
    %88 = vector.load %arg5[%c11_83, %c0_84, %c0_85] : memref<25x8x8xbf16, #tpu.memory_space<vmem>>, vector<1x8x8xbf16>
    %89 = vector.shape_cast %88 : vector<1x8x8xbf16> to vector<8x8xbf16>
    %cst_86 = arith.constant dense<0.000000e+00> : vector<128x8xf32>
    %90 = tpu.matmul %87, %89, %cst_86 {dimension_numbers = #tpu.dot_dimension_numbers<[1], [0], [0], [1], [0, 0, 1, 1], [], []>} : vector<128x8xbf16>, vector<8x8xbf16>, vector<128x8xf32> -> vector<128x8xf32>
    %91 = arith.addf %85, %90 : vector<128x8xf32>
    %c1_87 = arith.constant 1 : index
    %c10_88 = arith.constant 10 : index
    %c0_89 = arith.constant 0 : index
    %92 = vector.load %arg10[%c1_87, %c10_88, %c0_89] : memref<11x32x8xbf16, #tpu.memory_space<vmem>>, vector<8x16x8xbf16>
    %93 = vector.shape_cast %92 : vector<8x16x8xbf16> to vector<128x8xbf16>
    %c12 = arith.constant 12 : index
    %c0_90 = arith.constant 0 : index
    %c0_91 = arith.constant 0 : index
    %94 = vector.load %arg5[%c12, %c0_90, %c0_91] : memref<25x8x8xbf16, #tpu.memory_space<vmem>>, vector<1x8x8xbf16>
    %95 = vector.shape_cast %94 : vector<1x8x8xbf16> to vector<8x8xbf16>
    %cst_92 = arith.constant dense<0.000000e+00> : vector<128x8xf32>
    %96 = tpu.matmul %93, %95, %cst_92 {dimension_numbers = #tpu.dot_dimension_numbers<[1], [0], [0], [1], [0, 0, 1, 1], [], []>} : vector<128x8xbf16>, vector<8x8xbf16>, vector<128x8xf32> -> vector<128x8xf32>
    %97 = arith.addf %91, %96 : vector<128x8xf32>
    %c1_93 = arith.constant 1 : index
    %c11_94 = arith.constant 11 : index
    %c0_95 = arith.constant 0 : index
    %98 = vector.load %arg10[%c1_93, %c11_94, %c0_95] : memref<11x32x8xbf16, #tpu.memory_space<vmem>>, vector<8x16x8xbf16>
    %99 = vector.shape_cast %98 : vector<8x16x8xbf16> to vector<128x8xbf16>
    %c13 = arith.constant 13 : index
    %c0_96 = arith.constant 0 : index
    %c0_97 = arith.constant 0 : index
    %100 = vector.load %arg5[%c13, %c0_96, %c0_97] : memref<25x8x8xbf16, #tpu.memory_space<vmem>>, vector<1x8x8xbf16>
    %101 = vector.shape_cast %100 : vector<1x8x8xbf16> to vector<8x8xbf16>
    %cst_98 = arith.constant dense<0.000000e+00> : vector<128x8xf32>
    %102 = tpu.matmul %99, %101, %cst_98 {dimension_numbers = #tpu.dot_dimension_numbers<[1], [0], [0], [1], [0, 0, 1, 1], [], []>} : vector<128x8xbf16>, vector<8x8xbf16>, vector<128x8xf32> -> vector<128x8xf32>
    %103 = arith.addf %97, %102 : vector<128x8xf32>
    %c2_99 = arith.constant 2 : index
    %c5_100 = arith.constant 5 : index
    %c0_101 = arith.constant 0 : index
    %104 = vector.load %arg10[%c2_99, %c5_100, %c0_101] : memref<11x32x8xbf16, #tpu.memory_space<vmem>>, vector<8x16x8xbf16>
    %105 = vector.shape_cast %104 : vector<8x16x8xbf16> to vector<128x8xbf16>
    %c14 = arith.constant 14 : index
    %c0_102 = arith.constant 0 : index
    %c0_103 = arith.constant 0 : index
    %106 = vector.load %arg5[%c14, %c0_102, %c0_103] : memref<25x8x8xbf16, #tpu.memory_space<vmem>>, vector<1x8x8xbf16>
    %107 = vector.shape_cast %106 : vector<1x8x8xbf16> to vector<8x8xbf16>
    %cst_104 = arith.constant dense<0.000000e+00> : vector<128x8xf32>
    %108 = tpu.matmul %105, %107, %cst_104 {dimension_numbers = #tpu.dot_dimension_numbers<[1], [0], [0], [1], [0, 0, 1, 1], [], []>} : vector<128x8xbf16>, vector<8x8xbf16>, vector<128x8xf32> -> vector<128x8xf32>
    %109 = arith.addf %103, %108 : vector<128x8xf32>
    %c2_105 = arith.constant 2 : index
    %c6_106 = arith.constant 6 : index
    %c0_107 = arith.constant 0 : index
    %110 = vector.load %arg10[%c2_105, %c6_106, %c0_107] : memref<11x32x8xbf16, #tpu.memory_space<vmem>>, vector<8x16x8xbf16>
    %111 = vector.shape_cast %110 : vector<8x16x8xbf16> to vector<128x8xbf16>
    %c15 = arith.constant 15 : index
    %c0_108 = arith.constant 0 : index
    %c0_109 = arith.constant 0 : index
    %112 = vector.load %arg5[%c15, %c0_108, %c0_109] : memref<25x8x8xbf16, #tpu.memory_space<vmem>>, vector<1x8x8xbf16>
    %113 = vector.shape_cast %112 : vector<1x8x8xbf16> to vector<8x8xbf16>
    %cst_110 = arith.constant dense<0.000000e+00> : vector<128x8xf32>
    %114 = tpu.matmul %111, %113, %cst_110 {dimension_numbers = #tpu.dot_dimension_numbers<[1], [0], [0], [1], [0, 0, 1, 1], [], []>} : vector<128x8xbf16>, vector<8x8xbf16>, vector<128x8xf32> -> vector<128x8xf32>
    %115 = arith.addf %109, %114 : vector<128x8xf32>
    %c2_111 = arith.constant 2 : index
    %c7_112 = arith.constant 7 : index
    %c0_113 = arith.constant 0 : index
    %116 = vector.load %arg10[%c2_111, %c7_112, %c0_113] : memref<11x32x8xbf16, #tpu.memory_space<vmem>>, vector<8x16x8xbf16>
    %117 = vector.shape_cast %116 : vector<8x16x8xbf16> to vector<128x8xbf16>
    %c16 = arith.constant 16 : index
    %c0_114 = arith.constant 0 : index
    %c0_115 = arith.constant 0 : index
    %118 = vector.load %arg5[%c16, %c0_114, %c0_115] : memref<25x8x8xbf16, #tpu.memory_space<vmem>>, vector<1x8x8xbf16>
    %119 = vector.shape_cast %118 : vector<1x8x8xbf16> to vector<8x8xbf16>
    %cst_116 = arith.constant dense<0.000000e+00> : vector<128x8xf32>
    %120 = tpu.matmul %117, %119, %cst_116 {dimension_numbers = #tpu.dot_dimension_numbers<[1], [0], [0], [1], [0, 0, 1, 1], [], []>} : vector<128x8xbf16>, vector<8x8xbf16>, vector<128x8xf32> -> vector<128x8xf32>
    %121 = arith.addf %115, %120 : vector<128x8xf32>
    %c2_117 = arith.constant 2 : index
    %c8_118 = arith.constant 8 : index
    %c0_119 = arith.constant 0 : index
    %122 = vector.load %arg10[%c2_117, %c8_118, %c0_119] : memref<11x32x8xbf16, #tpu.memory_space<vmem>>, vector<8x16x8xbf16>
    %123 = vector.shape_cast %122 : vector<8x16x8xbf16> to vector<128x8xbf16>
    %c17 = arith.constant 17 : index
    %c0_120 = arith.constant 0 : index
    %c0_121 = arith.constant 0 : index
    %124 = vector.load %arg5[%c17, %c0_120, %c0_121] : memref<25x8x8xbf16, #tpu.memory_space<vmem>>, vector<1x8x8xbf16>
    %125 = vector.shape_cast %124 : vector<1x8x8xbf16> to vector<8x8xbf16>
    %cst_122 = arith.constant dense<0.000000e+00> : vector<128x8xf32>
    %126 = tpu.matmul %123, %125, %cst_122 {dimension_numbers = #tpu.dot_dimension_numbers<[1], [0], [0], [1], [0, 0, 1, 1], [], []>} : vector<128x8xbf16>, vector<8x8xbf16>, vector<128x8xf32> -> vector<128x8xf32>
    %127 = arith.addf %121, %126 : vector<128x8xf32>
    %c2_123 = arith.constant 2 : index
    %c9_124 = arith.constant 9 : index
    %c0_125 = arith.constant 0 : index
    %128 = vector.load %arg10[%c2_123, %c9_124, %c0_125] : memref<11x32x8xbf16, #tpu.memory_space<vmem>>, vector<8x16x8xbf16>
    %129 = vector.shape_cast %128 : vector<8x16x8xbf16> to vector<128x8xbf16>
    %c18 = arith.constant 18 : index
    %c0_126 = arith.constant 0 : index
    %c0_127 = arith.constant 0 : index
    %130 = vector.load %arg5[%c18, %c0_126, %c0_127] : memref<25x8x8xbf16, #tpu.memory_space<vmem>>, vector<1x8x8xbf16>
    %131 = vector.shape_cast %130 : vector<1x8x8xbf16> to vector<8x8xbf16>
    %cst_128 = arith.constant dense<0.000000e+00> : vector<128x8xf32>
    %132 = tpu.matmul %129, %131, %cst_128 {dimension_numbers = #tpu.dot_dimension_numbers<[1], [0], [0], [1], [0, 0, 1, 1], [], []>} : vector<128x8xbf16>, vector<8x8xbf16>, vector<128x8xf32> -> vector<128x8xf32>
    %133 = arith.addf %127, %132 : vector<128x8xf32>
    %c2_129 = arith.constant 2 : index
    %c10_130 = arith.constant 10 : index
    %c0_131 = arith.constant 0 : index
    %134 = vector.load %arg10[%c2_129, %c10_130, %c0_131] : memref<11x32x8xbf16, #tpu.memory_space<vmem>>, vector<8x16x8xbf16>
    %135 = vector.shape_cast %134 : vector<8x16x8xbf16> to vector<128x8xbf16>
    %c19 = arith.constant 19 : index
    %c0_132 = arith.constant 0 : index
    %c0_133 = arith.constant 0 : index
    %136 = vector.load %arg5[%c19, %c0_132, %c0_133] : memref<25x8x8xbf16, #tpu.memory_space<vmem>>, vector<1x8x8xbf16>
    %137 = vector.shape_cast %136 : vector<1x8x8xbf16> to vector<8x8xbf16>
    %cst_134 = arith.constant dense<0.000000e+00> : vector<128x8xf32>
    %138 = tpu.matmul %135, %137, %cst_134 {dimension_numbers = #tpu.dot_dimension_numbers<[1], [0], [0], [1], [0, 0, 1, 1], [], []>} : vector<128x8xbf16>, vector<8x8xbf16>, vector<128x8xf32> -> vector<128x8xf32>
    %139 = arith.addf %133, %138 : vector<128x8xf32>
    %c2_135 = arith.constant 2 : index
    %c11_136 = arith.constant 11 : index
    %c0_137 = arith.constant 0 : index
    %140 = vector.load %arg10[%c2_135, %c11_136, %c0_137] : memref<11x32x8xbf16, #tpu.memory_space<vmem>>, vector<8x16x8xbf16>
    %141 = vector.shape_cast %140 : vector<8x16x8xbf16> to vector<128x8xbf16>
    %c20 = arith.constant 20 : index
    %c0_138 = arith.constant 0 : index
    %c0_139 = arith.constant 0 : index
    %142 = vector.load %arg5[%c20, %c0_138, %c0_139] : memref<25x8x8xbf16, #tpu.memory_space<vmem>>, vector<1x8x8xbf16>
    %143 = vector.shape_cast %142 : vector<1x8x8xbf16> to vector<8x8xbf16>
    %cst_140 = arith.constant dense<0.000000e+00> : vector<128x8xf32>
    %144 = tpu.matmul %141, %143, %cst_140 {dimension_numbers = #tpu.dot_dimension_numbers<[1], [0], [0], [1], [0, 0, 1, 1], [], []>} : vector<128x8xbf16>, vector<8x8xbf16>, vector<128x8xf32> -> vector<128x8xf32>
    %145 = arith.addf %139, %144 : vector<128x8xf32>
    %c3_141 = arith.constant 3 : index
    %c5_142 = arith.constant 5 : index
    %c0_143 = arith.constant 0 : index
    %146 = vector.load %arg10[%c3_141, %c5_142, %c0_143] : memref<11x32x8xbf16, #tpu.memory_space<vmem>>, vector<8x16x8xbf16>
    %147 = vector.shape_cast %146 : vector<8x16x8xbf16> to vector<128x8xbf16>
    %c21 = arith.constant 21 : index
    %c0_144 = arith.constant 0 : index
    %c0_145 = arith.constant 0 : index
    %148 = vector.load %arg5[%c21, %c0_144, %c0_145] : memref<25x8x8xbf16, #tpu.memory_space<vmem>>, vector<1x8x8xbf16>
    %149 = vector.shape_cast %148 : vector<1x8x8xbf16> to vector<8x8xbf16>
    %cst_146 = arith.constant dense<0.000000e+00> : vector<128x8xf32>
    %150 = tpu.matmul %147, %149, %cst_146 {dimension_numbers = #tpu.dot_dimension_numbers<[1], [0], [0], [1], [0, 0, 1, 1], [], []>} : vector<128x8xbf16>, vector<8x8xbf16>, vector<128x8xf32> -> vector<128x8xf32>
    %151 = arith.addf %145, %150 : vector<128x8xf32>
    %c3_147 = arith.constant 3 : index
    %c6_148 = arith.constant 6 : index
    %c0_149 = arith.constant 0 : index
    %152 = vector.load %arg10[%c3_147, %c6_148, %c0_149] : memref<11x32x8xbf16, #tpu.memory_space<vmem>>, vector<8x16x8xbf16>
    %153 = vector.shape_cast %152 : vector<8x16x8xbf16> to vector<128x8xbf16>
    %c22 = arith.constant 22 : index
    %c0_150 = arith.constant 0 : index
    %c0_151 = arith.constant 0 : index
    %154 = vector.load %arg5[%c22, %c0_150, %c0_151] : memref<25x8x8xbf16, #tpu.memory_space<vmem>>, vector<1x8x8xbf16>
    %155 = vector.shape_cast %154 : vector<1x8x8xbf16> to vector<8x8xbf16>
    %cst_152 = arith.constant dense<0.000000e+00> : vector<128x8xf32>
    %156 = tpu.matmul %153, %155, %cst_152 {dimension_numbers = #tpu.dot_dimension_numbers<[1], [0], [0], [1], [0, 0, 1, 1], [], []>} : vector<128x8xbf16>, vector<8x8xbf16>, vector<128x8xf32> -> vector<128x8xf32>
    %157 = arith.addf %151, %156 : vector<128x8xf32>
    %c3_153 = arith.constant 3 : index
    %c7_154 = arith.constant 7 : index
    %c0_155 = arith.constant 0 : index
    %158 = vector.load %arg10[%c3_153, %c7_154, %c0_155] : memref<11x32x8xbf16, #tpu.memory_space<vmem>>, vector<8x16x8xbf16>
    %159 = vector.shape_cast %158 : vector<8x16x8xbf16> to vector<128x8xbf16>
    %c23 = arith.constant 23 : index
    %c0_156 = arith.constant 0 : index
    %c0_157 = arith.constant 0 : index
    %160 = vector.load %arg5[%c23, %c0_156, %c0_157] : memref<25x8x8xbf16, #tpu.memory_space<vmem>>, vector<1x8x8xbf16>
    %161 = vector.shape_cast %160 : vector<1x8x8xbf16> to vector<8x8xbf16>
    %cst_158 = arith.constant dense<0.000000e+00> : vector<128x8xf32>
    %162 = tpu.matmul %159, %161, %cst_158 {dimension_numbers = #tpu.dot_dimension_numbers<[1], [0], [0], [1], [0, 0, 1, 1], [], []>} : vector<128x8xbf16>, vector<8x8xbf16>, vector<128x8xf32> -> vector<128x8xf32>
    %163 = arith.addf %157, %162 : vector<128x8xf32>
    %c3_159 = arith.constant 3 : index
    %c8_160 = arith.constant 8 : index
    %c0_161 = arith.constant 0 : index
    %164 = vector.load %arg10[%c3_159, %c8_160, %c0_161] : memref<11x32x8xbf16, #tpu.memory_space<vmem>>, vector<8x16x8xbf16>
    %165 = vector.shape_cast %164 : vector<8x16x8xbf16> to vector<128x8xbf16>
    %c24 = arith.constant 24 : index
    %c0_162 = arith.constant 0 : index
    %c0_163 = arith.constant 0 : index
    %166 = vector.load %arg5[%c24, %c0_162, %c0_163] : memref<25x8x8xbf16, #tpu.memory_space<vmem>>, vector<1x8x8xbf16>
    %167 = vector.shape_cast %166 : vector<1x8x8xbf16> to vector<8x8xbf16>
    %cst_164 = arith.constant dense<0.000000e+00> : vector<128x8xf32>
    %168 = tpu.matmul %165, %167, %cst_164 {dimension_numbers = #tpu.dot_dimension_numbers<[1], [0], [0], [1], [0, 0, 1, 1], [], []>} : vector<128x8xbf16>, vector<8x8xbf16>, vector<128x8xf32> -> vector<128x8xf32>
    %169 = arith.addf %163, %168 : vector<128x8xf32>
    %c0_165 = arith.constant 0 : index
    %c0_166 = arith.constant 0 : index
    %170 = vector.load %arg6[%c0_165, %c0_166] : memref<1x8xf32, #tpu.memory_space<vmem>>, vector<1x8xf32>
    %171 = vector.broadcast %170 : vector<1x8xf32> to vector<128x8xf32>
    %172 = arith.addf %169, %171 : vector<128x8xf32>
    %cst_167 = arith.constant 0.000000e+00 : f32
    %173 = vector.broadcast %cst_167 : f32 to vector<128x8xf32>
    %174 = arith.maximumf %172, %173 : vector<128x8xf32>
    %175 = arith.truncf %174 : vector<128x8xf32> to vector<128x8xbf16>
    %c0_168 = arith.constant 0 : index
    %c0_169 = arith.constant 0 : index
    %176 = vector.load %arg7[%c0_168, %c0_169] : memref<8x128xbf16, #tpu.memory_space<vmem>>, vector<8x128xbf16>
    %cst_170 = arith.constant dense<0.000000e+00> : vector<128x128xf32>
    %177 = tpu.matmul %175, %176, %cst_170 {dimension_numbers = #tpu.dot_dimension_numbers<[1], [0], [0], [1], [0, 0, 1, 1], [], []>} : vector<128x8xbf16>, vector<8x128xbf16>, vector<128x128xf32> -> vector<128x128xf32>
    %c0_171 = arith.constant 0 : index
    %c0_172 = arith.constant 0 : index
    %178 = vector.load %arg8[%c0_171, %c0_172] : memref<1x128xf32, #tpu.memory_space<vmem>>, vector<1x128xf32>
    %179 = vector.broadcast %178 : vector<1x128xf32> to vector<128x128xf32>
    %180 = arith.addf %177, %179 : vector<128x128xf32>
    %181 = vector.shape_cast %180 : vector<128x128xf32> to vector<8x16x128xf32>
    %c0_173 = arith.constant 0 : index
    %c0_174 = arith.constant 0 : index
    %c0_175 = arith.constant 0 : index
    %c0_176 = arith.constant 0 : index
    %182 = vector.load %arg2[%c0_173, %c0_174, %c0_175, %c0_176] : memref<1x8x16x128xf32, #tpu.memory_space<vmem>>, vector<1x8x16x128xf32>
    %183 = vector.shape_cast %182 : vector<1x8x16x128xf32> to vector<8x16x128xf32>
    %184 = arith.addf %181, %183 : vector<8x16x128xf32>
    %c0_177 = arith.constant 0 : index
    %c0_178 = arith.constant 0 : index
    %c0_179 = arith.constant 0 : index
    %c0_180 = arith.constant 0 : index
    %185 = vector.load %arg9[%c0_177, %c0_178, %c0_179, %c0_180] : memref<1x8x16x128xf32, #tpu.memory_space<vmem>>, vector<1x8x16x128xf32>
    %186 = vector.shape_cast %185 : vector<1x8x16x128xf32> to vector<8x16x128xf32>
    %187 = vector.shape_cast %184 : vector<8x16x128xf32> to vector<1x8x16x128xf32>
    tpu.vector_store %arg9[%c0_177, %c0_178, %c0_179, %c0_180], %187 {strides = array<i32>} : memref<1x8x16x128xf32, #tpu.memory_space<vmem>>, vector<1x8x16x128xf32>,
    %c1_i32 = arith.constant 1 : i32
    %188 = arith.addi %arg1, %c1_i32 : i32
    %c2_i32 = arith.constant 2 : i32
    %189 = arith.cmpi slt, %188, %c2_i32 : i32
    %190 = arith.extui %189 : i1 to i32
    %c0_i32_181 = arith.constant 0 : i32
    %191 = arith.cmpi ne, %190, %c0_i32_181 : i32
    scf.if %191 {
      %c8_182 = arith.constant 8 : index
      %c0_183 = arith.constant 0 : index
      %c0_184 = arith.constant 0 : index
      %192 = vector.load %arg10[%c8_182, %c0_183, %c0_184] : memref<11x32x8xbf16, #tpu.memory_space<vmem>>, vector<3x32x8xbf16>
      %c0_185 = arith.constant 0 : index
      %c0_186 = arith.constant 0 : index
      %c0_187 = arith.constant 0 : index
      %193 = vector.load %arg10[%c0_185, %c0_186, %c0_187] : memref<11x32x8xbf16, #tpu.memory_space<vmem>>, vector<3x32x8xbf16>
      tpu.vector_store %arg10[%c0_185, %c0_186, %c0_187], %192 {strides = array<i32>} : memref<11x32x8xbf16, #tpu.memory_space<vmem>>, vector<3x32x8xbf16>,
    } else {
    }
    return
  }
  func.func @transform_0(%arg0: i32, %arg1: i32) -> (i32, i32, i32, i32) {
    %c0_i32 = arith.constant 0 : i32
    %c0_i32_0 = arith.constant 0 : i32
    %c0_i32_1 = arith.constant 0 : i32
    return %arg0, %arg1, %c0_i32, %c0_i32_0 : i32, i32, i32, i32
  }
  func.func @transform_1(%arg0: i32, %arg1: i32) -> (i32, i32) {
    %c0_i32 = arith.constant 0 : i32
    %c0_i32_0 = arith.constant 0 : i32
    %c0_i32_1 = arith.constant 0 : i32
    return %c0_i32, %c0_i32_0 : i32, i32
  }
  func.func @transform_2(%arg0: i32, %arg1: i32) -> (i32, i32) {
    %c0_i32 = arith.constant 0 : i32
    %c0_i32_0 = arith.constant 0 : i32
    %c0_i32_1 = arith.constant 0 : i32
    return %c0_i32, %c0_i32_0 : i32, i32
  }
  func.func @transform_3(%arg0: i32, %arg1: i32) -> (i32, i32, i32) {
    %c0_i32 = arith.constant 0 : i32
    %c0_i32_0 = arith.constant 0 : i32
    %c0_i32_1 = arith.constant 0 : i32
    %c0_i32_2 = arith.constant 0 : i32
    return %c0_i32, %c0_i32_0, %c0_i32_1 : i32, i32, i32
  }
  func.func @transform_4(%arg0: i32, %arg1: i32) -> (i32, i32) {
    %c0_i32 = arith.constant 0 : i32
    %c0_i32_0 = arith.constant 0 : i32
    %c0_i32_1 = arith.constant 0 : i32
    return %c0_i32, %c0_i32_0 : i32, i32
  }
  func.func @transform_5(%arg0: i32, %arg1: i32) -> (i32, i32) {
    %c0_i32 = arith.constant 0 : i32
    %c0_i32_0 = arith.constant 0 : i32
    %c0_i32_1 = arith.constant 0 : i32
    return %c0_i32, %c0_i32_0 : i32, i32
  }
  func.func @transform_6(%arg0: i32, %arg1: i32) -> (i32, i32) {
    %c0_i32 = arith.constant 0 : i32
    %c0_i32_0 = arith.constant 0 : i32
    %c0_i32_1 = arith.constant 0 : i32
    return %c0_i32, %c0_i32_0 : i32, i32
  }
  func.func @transform_7(%arg0: i32, %arg1: i32) -> (i32, i32, i32, i32) {
    %c0_i32 = arith.constant 0 : i32
    %c0_i32_0 = arith.constant 0 : i32
    %c0_i32_1 = arith.constant 0 : i32
    return %arg0, %arg1, %c0_i32, %c0_i32_0 : i32, i32, i32, i32
  }
}

</mosaic_0001>

<bundles_post_ra>
// kernel: residual_block_forward.1
= control target key start
LH: loop header
LB: loop body
LE: loop exit
PB: predicated region body
PF: predicated region fallthrough
CT: control target
= control target key end

     0   :  { %s10169_s24 = smov 0   ;;  %s10171_s25 = smov 0   ;;  %s14818_s0 = inlined_call_operand.vmem [shape: f32[2,16,16,128], index: 0, kind: input, shape index: {}]   ;;  %s14819_s1 = inlined_call_operand.vmem [shape: bf16[128,8], index: 1, kind: input, shape index: {}]   ;;  %s14820_s2 = inlined_call_operand.vmem [shape: f32[1,8], index: 2, kind: input, shape index: {}]   ;;  %s14821_s3 = inlined_call_operand.vmem [shape: bf16[25,8,8], index: 3, kind: input, shape index: {}]   ;;  %s14822_s4 = inlined_call_operand.vmem [shape: f32[1,8], index: 4, kind: input, shape index: {}]   ;;  %s14823_s5 = inlined_call_operand.vmem [shape: bf16[8,128], index: 5, kind: input, shape index: {}]   ;;  %s14824_s6 = inlined_call_operand.vmem [shape: f32[1,128], index: 6, kind: input, shape index: {}]   ;;  %s14825_s7 = inlined_call_operand.vmem [shape: f32[2,16,16,128], index: 7, kind: output, shape index: {}]  }
   0x1   :  { %s10173_s26 = smov 0   ;;  %s10175_s27 = smov 0  }
   0x2   :  { %s10177_s28 = smov 0  }
   0x3 LB: > { %s26_s29 = sadd.s32 1, %s10118_s26  ;;  %s29_s30 = sadd.s32 1, %s10122_s27  ;;  %s10126_s28 = sphi %s10177_s28, %s17_s28   ;;  %s10122_s27 = sphi %s10175_s27, %s15841_s27   ;;  %s10118_s26 = sphi %s10173_s26, %s15840_s26   ;;  %s10114_s25 = sphi %s10171_s25, %s15839_s25   ;;  %s10110_s24 = sphi %s10169_s24, %s15838_s24  }
   0x4   : > { %p27_p0 = scmp.ge.s32.totalorder %s26_s29, 2  ;;  %p8608_p1 = scmp.ge.s32.totalorder %s10126_s28, 1 }
   0x5   : > { %p259_p2 = scmp.lt.s32.totalorder %s10126_s28, 5 }
   0x6   : > { %s15843_s29 = smov (%p27_p0, %s26_s29), 0  ;;  %s15845_s30 = smov (!%p27_p0, %s29_s30), %s10122_s27 }
   0x7   : > { %p260_p3 = pnand %p8608_p1, %p259_p2  ;;  %p31_p4 = scmp.ge.s32.totalorder %s15845_s30, 2 }
   0x9   : > { %s15847_s30 = smov (%p31_p4, %s15845_s30), 0  ;;  %263 = sbr.rel (%p260_p3) target bundleno = 1279 (0x4ff), region = 48 }
   0xe   : > { %s8609_s8 = sshll.u32 %s10110_s24, 3  ;;  %p302_p5 = scmp.lt.s32.totalorder %s10114_s25, 1 }
   0xf   : > { %p304_p6 = scmp.lt.s32.totalorder %s8609_s8, 15  ;;  %p8617_p7 = scmp.ne.s32.totalorder %s10110_s24, 0 }
  0x10   : > { %s15849_s25 = smov (!%p302_p5, %s10114_s25), 1 }
  0x11   : > { %s15851_s8 = smov (!%p304_p6, %s8609_s8), 15  ;;  %s8611_s9 = sshll.u32 %s15849_s25, 5 }
  0x12   : > { %s8610_s10 = sshll.u32 %s15851_s8, 1  ;;  %327 = sbr.rel (%p8617_p7) target bundleno = 41 (0x29), region = 52 }
  0x13   : > { %s308_s11 = sadd.s32 %s8611_s9, %s8610_s10 }
  0x14   : > { %s8612_s12 = sshll.u32 %s308_s11, 3 }
  0x15   : > { %s10205_s15 = scalar_lea.vmem %s14818_s0, %s8612_s12  ;;  %s10210_s18 = scalar_lea.vmem %s14825_s7, %s8612_s12 }
  0x17   : > { %vm328_vm0 = vcmask 60416   ;;  %v10128_v0 = vmov 0  }
  0x18   : > { %329 = vst.msk [vmem:[#allocation2] sm:$0xf] %vm328_vm0, %v10128_v0  ;;  %330 = vst.msk [vmem:[#allocation2 + $0x4] sm:$0xf] %vm328_vm0, %v10128_v0 }
  0x19   : > { %331 = vst.msk [vmem:[#allocation2 + $0x8] sm:$0xf] %vm328_vm0, %v10128_v0  ;;  %332 = vst.msk [vmem:[#allocation2 + $0xc] sm:$0xf] %vm328_vm0, %v10128_v0 }
  0x1a   : > { %333 = vst.msk [vmem:[#allocation2 + $0x10] sm:$0xf] %vm328_vm0, %v10128_v0  ;;  %334 = vst.msk [vmem:[#allocation2 + $0x14] sm:$0xf] %vm328_vm0, %v10128_v0 }
  0x1b   : > { %335 = vst.msk [vmem:[#allocation2 + $0x18] sm:$0xf] %vm328_vm0, %v10128_v0  ;;  %336 = vst.msk [vmem:[#allocation2 + $0x1c] sm:$0xf] %vm328_vm0, %v10128_v0 }
  0x1c   : > { %337 = vst.msk [vmem:[#allocation2 + $0x20] sm:$0xf] %vm328_vm0, %v10128_v0  ;;  %338 = vst.msk [vmem:[#allocation2 + $0x24] sm:$0xf] %vm328_vm0, %v10128_v0 }
  0x1d   : > { %339 = vst.msk [vmem:[#allocation2 + $0x28] sm:$0xf] %vm328_vm0, %v10128_v0  ;;  %340 = vst.msk [vmem:[#allocation2 + $0x2c] sm:$0xf] %vm328_vm0, %v10128_v0 }
  0x1e   : > { %344 = vst.msk [vmem:[#allocation2 + $0x30] sm:$0xf] %vm328_vm0, %v10128_v0  ;;  %345 = vst.msk [vmem:[#allocation2 + $0x40] sm:$0xf] %vm328_vm0, %v10128_v0 }
  0x1f   : > { %346 = vst.msk [vmem:[#allocation2 + $0x50] sm:$0xf] %vm328_vm0, %v10128_v0  ;;  %347 = vst.msk [vmem:[#allocation2 + $0x60] sm:$0xf] %vm328_vm0, %v10128_v0 }
  0x20   : > { %348 = vst.msk [vmem:[#allocation2 + $0x70] sm:$0xf] %vm328_vm0, %v10128_v0  ;;  %349 = vst.msk [vmem:[#allocation2 + $0x80] sm:$0xf] %vm328_vm0, %v10128_v0 }
  0x21   : > { %350 = vst.msk [vmem:[#allocation2 + $0x90] sm:$0xf] %vm328_vm0, %v10128_v0  ;;  %351 = vst.msk [vmem:[#allocation2 + $0xa0] sm:$0xf] %vm328_vm0, %v10128_v0 }
  0x22   : > { %355 = vst.msk [vmem:[#allocation2 + $0x3c] sm:$0xf] %vm328_vm0, %v10128_v0  ;;  %356 = vst.msk [vmem:[#allocation2 + $0x4c] sm:$0xf] %vm328_vm0, %v10128_v0 }
  0x23   : > { %357 = vst.msk [vmem:[#allocation2 + $0x5c] sm:$0xf] %vm328_vm0, %v10128_v0  ;;  %358 = vst.msk [vmem:[#allocation2 + $0x6c] sm:$0xf] %vm328_vm0, %v10128_v0 }
  0x24   : > { %359 = vst.msk [vmem:[#allocation2 + $0x7c] sm:$0xf] %vm328_vm0, %v10128_v0  ;;  %360 = vst.msk [vmem:[#allocation2 + $0x8c] sm:$0xf] %vm328_vm0, %v10128_v0 }
  0x25   : > { %361 = vst.msk [vmem:[#allocation2 + $0x9c] sm:$0xf] %vm328_vm0, %v10128_v0  ;;  %362 = vst.msk [vmem:[#allocation2 + $0xac] sm:$0xf] %vm328_vm0, %v10128_v0 }
  0x26   : > { %341 = vst.msk [vmem:[#allocation2] sm:$0xf] %vm328_vm0, %v10128_v0  ;;  %342 = vst.msk [vmem:[#allocation2 + $0x10] sm:$0xf] %vm328_vm0, %v10128_v0 }
  0x27   : > { %343 = vst.msk [vmem:[#allocation2 + $0x20] sm:$0xf] %vm328_vm0, %v10128_v0  ;;  %352 = vst.msk [vmem:[#allocation2 + $0xc] sm:$0xf] %vm328_vm0, %v10128_v0 }
  0x28   : > { %353 = vst.msk [vmem:[#allocation2 + $0x1c] sm:$0xf] %vm328_vm0, %v10128_v0  ;;  %354 = vst.msk [vmem:[#allocation2 + $0x2c] sm:$0xf] %vm328_vm0, %v10128_v0 }
  0x29 PF: > { %v10001_v1 = vld [vmem:[%s14819_s1 + $0x38] sm:$0xff]   ;;  %v10002_v2 = vld [vmem:[%s14819_s1 + $0x30] sm:$0xff]   ;;  %v10003_v3 = vld [vmem:[%s14819_s1 + $0x28] sm:$0xff]   ;;  %vm953_vm1 = vcmask 1040384   ;;  %vm954_vm2 = vcmask 1044484   ;;  %vm1063_vm3 = vcmask 1043456  }
  0x2a   : > { %9434 = vmatprep.subr.bf16.mxu0 %v10001_v1  ;;  %v10004_v4 = vld [vmem:[%s14819_s1 + $0x20] sm:$0xff]   ;;  %v364_v6 = vld [vmem:[%s10205_s15 + $0x8] sm:$0xff]  ;;  %v10005_v10 = vld [vmem:[%s14819_s1 + $0x18] sm:$0xff]   ;;  %v14994_v49 = vmov 0  ;;  %vm1038_vm5 = vcmask 64512   ;;  %s8475_s17 = sadd.s32 1, %s10110_s24 }
  0x2b   : > { %9435 = vmatpush3.bf16.msra.mxu0 %v10001_v1  ;;  %v363_v5 = vld [vmem:[%s10205_s15] sm:$0xff]  ;;  %v380_v8 = vmax.f32 %v364_v6, 0.0  ;;  %v10006_v11 = vld [vmem:[%s14819_s1 + $0x10] sm:$0xff]   ;;  %v10007_v12 = vld [vmem:[%s14819_s1 + $0x8] sm:$0xff]   ;;  %vm1320_vm6 = vsmask.f32 256 }
  0x2c   : > { %9436 = vmatprep.subr.bf16.mxu0 %v10002_v2  ;;  %v379_v7 = vmax.f32 %v363_v5, 0.0  ;;  %v365_v13 = vld [vmem:[%s10205_s15 + $0x10] sm:$0xff]  ;;  %v366_v14 = vld [vmem:[%s10205_s15 + $0x18] sm:$0xff]  ;;  %v10008_v15 = vld [vmem:[%s14819_s1] sm:$0xff]   ;;  %vm1321_vm7 = vsmask.f32 4368 }
  0x2d   : > { %v367_v16 = vld [vmem:[%s10205_s15 + $0x20] sm:$0xff]  ;;  %v368_v17 = vld [vmem:[%s10205_s15 + $0x28] sm:$0xff]  ;;  %v381_v18 = vmax.f32 %v365_v13, 0.0  ;;  %v382_v19 = vmax.f32 %v366_v14, 0.0  ;;  %v369_v24 = vld [vmem:[%s10205_s15 + $0x30] sm:$0xff]  ;;  %p9165_p8 = scmp.ge.s32.totalorder %s8475_s17, 2 }
  0x2e   : > { %v395_v9 = vpack.c.bf16 %v380_v8, %v379_v7  ;;  %v383_v20 = vmax.f32 %v367_v16, 0.0  ;;  %v384_v21 = vmax.f32 %v368_v17, 0.0  ;;  %v370_v25 = vld [vmem:[%s10205_s15 + $0x38] sm:$0xff]  ;;  %v371_v26 = vld [vmem:[%s10205_s15 + $0x40] sm:$0xff]  ;;  %v372_v27 = vld [vmem:[%s10205_s15 + $0x48] sm:$0xff]  ;;  %v385_v28 = vmax.f32 %v369_v24, 0.0 }
  0x2f   : > { %9437 = vmatpush3.bf16.msra.mxu0 %v10002_v2  ;;  %v396_v22 = vpack.c.bf16 %v382_v19, %v381_v18  ;;  %v386_v29 = vmax.f32 %v370_v25, 0.0  ;;  %v387_v30 = vmax.f32 %v371_v26, 0.0  ;;  %v388_v31 = vmax.f32 %v372_v27, 0.0  ;;  %v373_v34 = vld [vmem:[%s10205_s15 + $0x50] sm:$0xff]  ;;  %v374_v35 = vld [vmem:[%s10205_s15 + $0x58] sm:$0xff]  ;;  %vm10296_vm4 = vmor %vm953_vm1, %vm954_vm2 }
  0x30   : > { %9438 = vmatprep.subr.bf16.mxu0 %v10003_v3  ;;  %9450 = vmatprep.mubr.bf16.mxu0 %v395_v9  ;;  %v397_v23 = vpack.c.bf16 %v384_v21, %v383_v20  ;;  %v389_v36 = vmax.f32 %v373_v34, 0.0  ;;  %v390_v37 = vmax.f32 %v374_v35, 0.0  ;;  %v10283_v39 = vld [vmem:[#allocation2 + $0x4] sm:$0xf]  ;;  %v10286_v41 = vld [vmem:[#allocation2 + $0x14] sm:$0xf]  ;;  %vm10337_vm8 = vmor %vm1320_vm6, %vm1321_vm7 }
  0x31   : > { %v398_v32 = vpack.c.bf16 %v386_v29, %v385_v28  ;;  %v399_v33 = vpack.c.bf16 %v388_v31, %v387_v30  ;;  %14993 = vst [vmem:[#allocation3_spill] sm:$0xff] %v10283_v39  ;;  %v958_v40 = vrot.slane %v10283_v39, 7  ;;  %v10288_v42 = vld [vmem:[#allocation2 + $0x8] sm:$0x7]  ;;  %v921_v43 = vld [vmem:[#allocation2] sm:$0x8] }
  0x32   : > { %v400_v38 = vpack.c.bf16 %v390_v37, %v389_v36  ;;  %v965_v44 = vrot.slane %v10286_v41, 7  ;;  %v8643_v45 = vrot.slane %v921_v43, 11  ;;  %v10291_v47 = vld [vmem:[#allocation2 + $0x18] sm:$0x7]  ;;  %v8651_v48 = vld [vmem:[%s14821_s3 + $0x4] sm:$0xf] }
  0x33   : > { %9439 = vmatpush3.bf16.msra.mxu0 %v10003_v3  ;;  %v960_v46 = vrot.slane %v958_v40, 4  ;;  %v14995_v49 = vsel %vm10296_vm4, 4294967295, %v14994_v49  ;;  %v961_v50 = vrot.slane %v10288_v42, 7  ;;  %v922_v51 = vld [vmem:[#allocation2 + $0x10] sm:$0x8]  ;;  %9934 = vmatprep.subr.msk.bf16.mxu1 %vm1063_vm3, %v8651_v48  ;;  %v1065_v52 = vsel %vm1063_vm3, %v8651_v48, 0 }
  0x34   : > { %9440 = vmatprep.subr.bf16.mxu0 %v10004_v4  ;;  %14996 = vst [vmem:[#allocation4_spill] sm:$0xff] %v14995_v49  ;;  %v959_v53 = vsel %vm10296_vm4, %v8643_v45, %v958_v40  ;;  %v8644_v54 = vrot.slane %v922_v51, 11  ;;  %v967_v55 = vrot.slane %v965_v44, 4  ;;  %v375_v56 = vld [vmem:[%s10205_s15 + $0x60] sm:$0xff]  ;;  %v376_v57 = vld [vmem:[%s10205_s15 + $0x68] sm:$0xff]  ;;  %9467 = vmatpush3.bf16.msra.mxu1 %v1065_v52  ;;  %v968_v59 = vrot.slane %v10291_v47, 7 }
  0x35   : > { %v962_v58 = vsel %vm10296_vm4, %v960_v46, %v961_v50  ;;  %v391_v60 = vmax.f32 %v375_v56, 0.0  ;;  %v392_v61 = vmax.f32 %v376_v57, 0.0  ;;  %v377_v62 = vld [vmem:[%s10205_s15 + $0x70] sm:$0xff]  ;;  %v378_v63 = vld [vmem:[%s10205_s15 + $0x78] sm:$0xff]  ;;  %v10316_v6 = vld [vmem:[#allocation2 + $0x8] sm:$0xf] }
  0x36   : > { %v8652_v0 = vcombine.low %v959_v53, %v962_v58  ;;  %v966_v1 = vsel %vm10296_vm4, %v8644_v54, %v965_v44  ;;  %v393_v2 = vmax.f32 %v377_v62, 0.0  ;;  %v969_v3 = vsel %vm10296_vm4, %v967_v55, %v968_v59  ;;  %14997 = vst [vmem:[#allocation5_spill] sm:$0xff] %v10316_v6  ;;  %v10326_v16 = vld [vmem:[#allocation2 + $0x18] sm:$0xf]  ;;  %v10352_v34 = vld [vmem:[#allocation2 + $0x28] sm:$0x7] }
  0x37   : > { %9441 = vmatpush3.bf16.msra.mxu0 %v10004_v4  ;;  %v401_v4 = vpack.c.bf16 %v392_v61, %v391_v60  ;;  %v394_v5 = vmax.f32 %v378_v63, 0.0  ;;  %v706_v7 = vshrl.u32 %v10283_v39, 16  ;;  %v8653_v8 = vcombine.low %v966_v1, %v969_v3  ;;  %14998 = vst [vmem:[#allocation6_spill] sm:$0xff] %v10326_v16  ;;  %v923_v35 = vld [vmem:[#allocation2 + $0x20] sm:$0x8] }
  0x38   : > { %9442 = vmatprep.subr.bf16.mxu0 %v10005_v10  ;;  %9468 = vmatprep.mubr.msk.bf16.mxu1 %vm1038_vm5, %v8652_v0  ;;  %v1333_v9 = vshrl.u32 %v10316_v6, 16  ;;  %v709_v13 = vshll.u32 %v10283_v39, 16  ;;  %v737_v17 = vshll.u32 %v10286_v41, 16  ;;  %v1341_v18 = vshrl.u32 %v922_v51, 16  ;;  %v920_v45 = vld [vmem:[%s14821_s3] sm:$0xf] }
  0x39   : > { %9469 = vmatmul.mubr.msk.bf16.vlgmr.msra.gmra.mxu1 %vm1038_vm5, %v8653_v8  ;;  %v1328_v14 = vrot.slane %v706_v7, 7  ;;  %v1336_v20 = vshll.u32 %v10316_v6, 16  ;;  %v14999_v24 = vmov 0  ;;  %v1350_v26 = vshrl.u32 %v10326_v16, 16  ;;  %v10363_v51 = vld [vmem:[#allocation2 + $0x28] sm:$0xf]  ;;  %9935 = vmatprep.subr.msk.bf16.mxu1 %vm1063_vm3, %v920_v45 }
  0x3a   : > { %v15000_v24 = vsel %vm10337_vm8, 4294967295, %v14999_v24  ;;  %v8685_v30 = vrot.slane %v1341_v18, 11  ;;  %v1353_v40 = vshll.u32 %v10326_v16, 16  ;;  %v975_v50 = vrot.slane %v10352_v34, 7 }
  0x3b   : > { %9443 = vmatpush3.bf16.msra.mxu0 %v10005_v10  ;;  %v734_v10 = vshrl.u32 %v10286_v41, 16  ;;  %15001 = vst [vmem:[#allocation7_spill] sm:$0xff] %v15000_v24  ;;  %v1331_v25 = vrot.slane %v1328_v14, 4  ;;  %v1213_v55 = vsel %vm1063_vm3, %v920_v45, 0  ;;  %v1358_v58 = vshrl.u32 %v923_v35, 16 }
  0x3c   : > { %9444 = vmatprep.subr.bf16.mxu0 %v10006_v11  ;;  %9485 = vmatpush3.bf16.msra.mxu1 %v1213_v55  ;;  %v1367_v62 = vshrl.u32 %v10363_v51, 16  ;;  %v1370_v1 = vshll.u32 %v10363_v51, 16  ;;  %v719_v18 = vshll.u32 %v10288_v42, 16  ;;  %vm693_vm9 = vsmask.f32 1280 }
  0x3d   : > { %v1345_v19 = vrot.slane %v734_v10, 7  ;;  %v8686_v0 = vrot.slane %v1358_v58, 11  ;;  %vm694_vm10 = vsmask.f32 5392  ;;  %v8726_v45 = vld [vmem:[%s14821_s3 + $0x10] sm:$0xf] }
  0x3e   : > { %vm10407_vm11 = vmor %vm693_vm9, %vm694_vm10  ;;  %vm1823_vm12 = vsmask.f32 3328  ;;  %vm1824_vm13 = vsmask.f32 7440  ;;  %vm2449_vm15 = vsmask.f32 2304 }
  0x3f   : > { %9445 = vmatpush3.bf16.msra.mxu0 %v10006_v11  ;;  %v402_v11 = vpack.c.bf16 %v394_v5, %v393_v2  ;;  %v1346_v31 = vor.u32 %v1345_v19, %v737_v17  ;;  %v1348_v37 = vrot.slane %v1345_v19, 4  ;;  %vm10525_vm14 = vmor %vm1823_vm12, %vm1824_vm13  ;;  %vm2450_vm0 = vsmask.f32 6416 }
  0x40   : > { %9446 = vmatprep.subr.bf16.mxu0 %v10007_v12  ;;  %vm10646_vm1 = vmor %vm2449_vm15, %vm2450_vm0  ;;  %vm2216_vm2 = vcmask 1042432   ;;  %vm2217_vm6 = vcmask 1046532   ;;  %vm652_vm7 = vcmask 60416  }
  0x41   : > { %v1347_v46 = vsel %vm10337_vm8, %v8685_v30, %v1346_v31  ;;  %v10403_v30 = vld [vmem:[%s14821_s3 + $0xc] sm:$0xf]  ;;  %vm10742_vm9 = vmor %vm2216_vm2, %vm2217_vm6 }
  0x42   : > { %9937 = vmatprep.subr.msk.bf16.mxu1 %vm1063_vm3, %v10403_v30 }
  0x43   : > { %9447 = vmatpush3.bf16.msra.mxu0 %v10007_v12  ;;  %v1324_v12 = vshrl.u32 %v921_v43, 16  ;;  %v8645_v43 = vrot.slane %v923_v35, 11 }
  0x44   : > { %9448 = vmatprep.subr.bf16.mxu0 %v10008_v15 }
  0x45   : > { %v8684_v21 = vrot.slane %v1324_v12, 11  ;;  %v744_v12 = vshrl.u32 %v10291_v47, 16 }
  0x47   : > { %9449 = vmatpush3.bf16.msra.mxu0 %v10008_v15  ;;  %v1335_v15 = vrot.slane %v1333_v9, 7  ;;  %v746_v19 = vrot.slane %v744_v12, 6 }
  0x49   : > { %v1338_v29 = vor.u32 %v1336_v20, %v1335_v15  ;;  %v716_v15 = vshrl.u32 %v10288_v42, 16  ;;  %v711_v42 = vrot.slane %v709_v13, 7 }
  0x4a   : > { %9451 = vmatmul.mubr.bf16.vlgmr.msra.gmra.mxu0 %v396_v22  ;;  %v1329_v22 = vor.u32 %v1328_v14, %v709_v13  ;;  %v747_v14 = vshll.u32 %v10291_v47, 16  ;;  %v708_v47 = vrot.slane %v706_v7, 6  ;;  %v15002_v13 = vmov 0 }
  0x4b   : > { %9454 = vmatprep.mubr.bf16.mxu0 %v397_v23  ;;  %v8692_v23 = vld [vmem:[%s14821_s3 + $0x8] sm:$0xf]  ;;  %v15003_v13 = vsel %vm10407_vm11, 4294967295, %v15002_v13 }
  0x4c   : > { %9936 = vmatprep.subr.msk.bf16.mxu0 %vm1063_vm3, %v8692_v23  ;;  %v1510_v27 = vsel %vm1063_vm3, %v8692_v23, 0  ;;  %v1330_v28 = vsel %vm10337_vm8, %v8684_v21, %v1329_v22  ;;  %v749_v20 = vrot.slane %v747_v14, 7  ;;  %v718_v21 = vrot.slane %v716_v15, 6  ;;  %15004 = vst [vmem:[#allocation8_spill] sm:$0xff] %v15003_v13 }
  0x4d   : > { %9503 = vmatpush3.bf16.msra.mxu0 %v1510_v27  ;;  %v721_v22 = vrot.slane %v719_v18, 7  ;;  %v736_v23 = vrot.slane %v734_v10, 6  ;;  %v669_v27 = vld [vmem:[#allocation2] sm:$0xc]  ;;  %v775_v14 = vshll.u32 %v10352_v34, 16 }
  0x4e   : > { %9938 = vmatprep.subr.msk.bf16.mxu0 %vm1063_vm3, %v8726_v45 }
  0x4f   : > { %v722_v10 = vor.u32 %v721_v22, %v718_v21  ;;  %v10434_v21 = vld [vmem:[#allocation2 + $0x30] sm:$0x8] }
  0x52   : > { %9455 = vmatmul.mubr.bf16.gmra.mxu0 %v398_v32  ;;  %v10348_v32 = vld [vmem:[#allocation2 + $0x24] sm:$0xf] }
  0x53   : > { %9458 = vmatprep.mubr.bf16.mxu0 %v399_v33  ;;  %v1339_v33 = vsel %vm10337_vm8, %v1331_v25, %v1338_v29  ;;  %v972_v44 = vrot.slane %v10348_v32, 7  ;;  %v762_v54 = vshrl.u32 %v10348_v32, 16  ;;  %v765_v57 = vshll.u32 %v10348_v32, 16 }
  0x54   : > { %v8693_v36 = vcombine.low %v1330_v28, %v1339_v33  ;;  %v739_v25 = vrot.slane %v737_v17, 7  ;;  %v697_v28 = vshrl.u32 %v669_v27, 16  ;;  %v700_v29 = vshll.u32 %v669_v27, 16  ;;  %v672_v17 = vld [vmem:[#allocation2 + $0x10] sm:$0xc] }
  0x55   : > { %v973_v52 = vsel %vm10296_vm4, %v8645_v43, %v972_v44  ;;  %v974_v53 = vrot.slane %v972_v44, 4  ;;  %v1362_v61 = vrot.slane %v762_v54, 7  ;;  %v725_v7 = vshrl.u32 %v672_v17, 16 }
  0x56   : > { %v740_v31 = vor.u32 %v739_v25, %v736_v23  ;;  %v699_v33 = vrot.slane %v697_v28, 6  ;;  %v702_v35 = vrot.slane %v700_v29, 7  ;;  %v1375_v25 = vshrl.u32 %v10434_v21, 16  ;;  %v681_v29 = vld [vmem:[#allocation2 + $0x40] sm:$0xc] }
  0x57   : > { %v976_v60 = vsel %vm10296_vm4, %v974_v53, %v975_v50  ;;  %v1363_v2 = vor.u32 %v1362_v61, %v765_v57  ;;  %v1365_v3 = vrot.slane %v1362_v61, 4  ;;  %v727_v44 = vrot.slane %v725_v7, 6  ;;  %v10454_v7 = vld [vmem:[#allocation2 + $0x8] sm:$0xf] }
  0x58   : > { %v8654_v63 = vcombine.low %v973_v52, %v976_v60  ;;  %v2069_v50 = vsel %vm1063_vm3, %v8726_v45, 0  ;;  %v675_v60 = vld [vmem:[#allocation2 + $0x20] sm:$0xc] }
  0x59   : > { %v1364_v5 = vsel %vm10337_vm8, %v8686_v0, %v1363_v2  ;;  %v678_v0 = vld [vmem:[#allocation2 + $0x30] sm:$0xc]  ;;  %v764_v2 = vrot.slane %v762_v54, 6 }
  0x5a   : > { %9459 = vmatmul.mubr.bf16.gmra.mxu0 %v400_v38  ;;  %v1352_v38 = vrot.slane %v1350_v26, 7  ;;  %9472 = vmatprep.mubr.msk.bf16.mxu1 %vm1038_vm5, %v8654_v63  ;;  %v750_v26 = vor.u32 %v749_v20, %v746_v19  ;;  %v753_v63 = vshrl.u32 %v675_v60, 16  ;;  %v777_v20 = vrot.slane %v775_v14, 7 }
  0x5b   : > { %9462 = vmatprep.mubr.bf16.mxu0 %v401_v4  ;;  %v1369_v4 = vrot.slane %v1367_v62, 7 }
  0x5c   : > { %v1355_v48 = vor.u32 %v1353_v40, %v1352_v38  ;;  %v742_v38 = vrot.slane %v740_v31, 4  ;;  %v703_v40 = vor.u32 %v702_v35, %v699_v33  ;;  %v10452_v35 = vrot.slane %v1375_v25, 11 }
  0x5d   : > { %v1372_v8 = vor.u32 %v1370_v1, %v1369_v4  ;;  %v756_v1 = vshll.u32 %v675_v60, 16  ;;  %v767_v4 = vrot.slane %v765_v57, 7  ;;  %v14831_v60 = vshrl.u32 %v10454_v7, 16 }
  0x5e   : > { %v1356_v56 = vsel %vm10337_vm8, %v1348_v37, %v1355_v48  ;;  %v728_v37 = vshll.u32 %v672_v17, 16  ;;  %v751_v48 = vsel %vm10407_vm11, %v742_v38, %v750_v26  ;;  %v704_v52 = vrot.slane %v703_v40, 4  ;;  %v10437_v26 = vld [vmem:[#allocation2 + $0x40] sm:$0x8] }
  0x5f   : > { %v8694_v59 = vcombine.low %v1347_v46, %v1356_v56  ;;  %v1373_v9 = vsel %vm10337_vm8, %v1365_v3, %v1372_v8  ;;  %v755_v3 = vrot.slane %v753_v63, 6  ;;  %v772_v8 = vshrl.u32 %v10352_v34, 16 }
  0x60   : > { %v730_v46 = vrot.slane %v728_v37, 7  ;;  %v768_v12 = vor.u32 %v767_v4, %v764_v2  ;;  %v1392_v28 = vshrl.u32 %v10437_v26, 16  ;;  %v809_v37 = vshrl.u32 %v681_v29, 16 }
  0x61   : > { %v774_v18 = vrot.slane %v772_v8, 6  ;;  %v812_v38 = vshll.u32 %v681_v29, 16 }
  0x62   : > { %9463 = vmatmul.mubr.bf16.gmra.mxu0 %v402_v11  ;;  %v8695_v11 = vcombine.low %v1364_v5, %v1373_v9  ;;  %v731_v55 = vor.u32 %v730_v46, %v727_v44  ;;  %v758_v5 = vrot.slane %v756_v1, 7  ;;  %v781_v9 = vshrl.u32 %v678_v0, 16  ;;  %v1802_v46 = vld [vmem:[#allocation2 + $0x14] sm:$0xf]  ;;  %v690_v44 = vld [vmem:[#allocation2 + $0x70] sm:$0xc] }
  0x63   : > { %9504 = vmatprep.mubr.msk.bf16.mxu0 %vm1038_vm5, %v8693_v36  ;;  %v712_v36 = vor.u32 %v711_v42, %v708_v47  ;;  %v770_v19 = vrot.slane %v768_v12, 4  ;;  %v778_v57 = vor.u32 %v777_v20, %v774_v18  ;;  %v10444_v47 = vld [vmem:[#allocation2 + $0x50] sm:$0x8]  ;;  %v10446_v42 = vld [vmem:[#allocation2 + $0x60] sm:$0x8]  ;;  %v10456_v40 = vrot.slane %v1392_v28, 11 }
  0x64   : > { %v759_v15 = vor.u32 %v758_v5, %v755_v3  ;;  %v783_v54 = vrot.slane %v781_v9, 6  ;;  %v1409_v45 = vshrl.u32 %v10444_v47, 16  ;;  %v1851_v63 = vshrl.u32 %v1802_v46, 16 }
  0x65   : > { %v714_v43 = vrot.slane %v712_v36, 4  ;;  %v713_v56 = vsel %vm10407_vm11, %v704_v52, %v712_v36  ;;  %v779_v34 = vsel %vm10407_vm11, %v770_v19, %v778_v57  ;;  %v1799_v36 = vld [vmem:[#allocation2 + $0x4] sm:$0xf]  ;;  %v811_v1 = vrot.slane %v809_v37, 6 }
  0x66   : > { %v760_v22 = vrot.slane %v759_v15, 4  ;;  %v814_v2 = vrot.slane %v812_v38, 7  ;;  %v10472_v9 = vrot.slane %v1409_v45, 11  ;;  %v1842_v20 = vrot.slane %v14831_v60, 4  ;;  %v684_v45 = vld [vmem:[#allocation2 + $0x50] sm:$0xc] }
  0x67   : > { %v723_v53 = vsel %vm10407_vm11, %v714_v43, %v722_v10 }
  0x68   : > { %v10422_v58 = vcombine.low %v713_v56, %v723_v53  ;;  %v769_v27 = vsel %vm10407_vm11, %v760_v22, %v768_v12  ;;  %v1805_v53 = vld [vmem:[#allocation2 + $0x24] sm:$0xf]  ;;  %v1830_v56 = vshll.u32 %v1799_v36, 16  ;;  %v10484_v22 = vld [vmem:[#allocation2 + $0x70] sm:$0x8]  ;;  %v815_v57 = vor.u32 %v814_v2, %v811_v1 }
  0x69   : > { %v10448_v10 = vcombine.low %v769_v27, %v779_v34  ;;  %v1875_v5 = vshrl.u32 %v1805_v53, 16  ;;  %v1878_v8 = vshll.u32 %v1805_v53, 16  ;;  %15010 = vst [vmem:[#allocation14_spill] sm:$0xff] %v10484_v22  ;;  %v10488_v27 = vld [vmem:[#allocation2 + $0x1c] sm:$0x1] }
  0x6a   : > { %9505 = vmatmul.mubr.msk.bf16.vlgmr.msra.gmra.mxu0 %vm1038_vm5, %v8694_v59  ;;  %15005 = vst [vmem:[#allocation9_spill] sm:$0xff] %v10422_v58  ;;  %v732_v59 = vrot.slane %v731_v55, 4  ;;  %v1827_v55 = vshrl.u32 %v1799_v36, 16  ;;  %v1832_v18 = vrot.slane %v1830_v56, 5  ;;  %v10496_v36 = vld [vmem:[#allocation2 + $0x2c] sm:$0x1] }
  0x6b   : > { %9508 = vmatprep.mubr.msk.bf16.mxu0 %vm1038_vm5, %v8695_v11  ;;  %9539 = vmatpush3.bf16.msra.mxu0 %v2069_v50  ;;  %v784_v11 = vshll.u32 %v678_v0, 16  ;;  %15007 = vst [vmem:[#allocation11_spill] sm:$0xff] %v10448_v10  ;;  %v10462_v50 = vld [vmem:[#allocation2 + $0x18] sm:$0xf]  ;;  %v1854_v0 = vshll.u32 %v1802_v46, 16  ;;  %v1877_v29 = vrot.slane %v1875_v5, 4 }
  0x6c   : > { %v741_v61 = vsel %vm10407_vm11, %v732_v59, %v740_v31  ;;  %v14830_v59 = vshll.u32 %v10454_v7, 16  ;;  %v14828_v3 = vshll.u32 %v10462_v50, 16  ;;  %v14829_v4 = vshrl.u32 %v10462_v50, 16  ;;  %v687_v56 = vld [vmem:[#allocation2 + $0x60] sm:$0xc] }
  0x6d   : > { %v10426_v62 = vcombine.low %v741_v61, %v751_v48  ;;  %v786_v23 = vrot.slane %v784_v11, 7  ;;  %v1426_v48 = vshrl.u32 %v10446_v42, 16  ;;  %v10468_v61 = vld [vmem:[#allocation2 + $0x28] sm:$0xf]  ;;  %v1829_v15 = vrot.slane %v1827_v55, 4 }
  0x6e   : > { %v14826_v12 = vshll.u32 %v10468_v61, 16  ;;  %v14827_v14 = vshrl.u32 %v10468_v61, 16  ;;  %v10480_v19 = vrot.slane %v14830_v59, 5  ;;  %v1856_v25 = vrot.slane %v1854_v0, 5  ;;  %v10556_v10 = vld [vmem:[#allocation2 + $0x7c] sm:$0x1] }
  0x6f   : > { %15006 = vst [vmem:[#allocation10_spill] sm:$0xff] %v10426_v62  ;;  %v787_v17 = vor.u32 %v786_v23, %v783_v54  ;;  %v10474_v11 = vrot.slane %v1426_v48, 11  ;;  %v10486_v54 = vld [vmem:[#allocation2 + $0xc] sm:$0x1]  ;;  %v1853_v23 = vrot.slane %v1851_v63, 4  ;;  %v10492_v28 = vrot.slane %v14828_v3, 5 }
  0x70   : > { %v1866_v34 = vrot.slane %v14829_v4, 4  ;;  %v10500_v37 = vrot.slane %v14826_v12, 5  ;;  %v1890_v38 = vrot.slane %v14827_v14, 4  ;;  %v1443_v46 = vshrl.u32 %v10484_v22, 16  ;;  %v10510_v63 = vld [vmem:[%s14821_s3 + $0x18] sm:$0xf] }
  0x71   : > { %v10464_v52 = vrot.slane %v787_v17, 4  ;;  %15009 = vst [vmem:[#allocation13_spill] sm:$0xff] %v10474_v11  ;;  %v1880_v17 = vrot.slane %v1878_v8, 5  ;;  %v1833_v48 = vor.u32 %v1832_v18, %v1829_v15  ;;  %v1843_v53 = vor.u32 %v1842_v20, %v10480_v19  ;;  %9940 = vmatprep.subr.msk.bf16.mxu0 %vm1063_vm3, %v10510_v63  ;;  %15020 = vst [vmem:[#allocation22_spill] sm:$0xff] %v10556_v10 }
  0x72   : > { %v1846_v55 = vshll.u32 %v10486_v54, 16  ;;  %v1857_v1 = vor.u32 %v1856_v25, %v1853_v23  ;;  %v1870_v2 = vshll.u32 %v10488_v27, 16  ;;  %v10514_v5 = vrot.slane %v815_v57, 4 }
  0x73   : > { %15008 = vst [vmem:[#allocation12_spill] sm:$0xff] %v10464_v52  ;;  %v1867_v8 = vor.u32 %v1866_v34, %v10492_v28  ;;  %v1881_v15 = vor.u32 %v1880_v17, %v1877_v29  ;;  %v1894_v18 = vshll.u32 %v10496_v36, 16  ;;  %v837_v20 = vshrl.u32 %v684_v45, 16 }
  0x74   : > { %15011 = vst [vmem:[#allocation15_spill] sm:$0xff] %v10514_v5  ;;  %v1891_v43 = vor.u32 %v1890_v38, %v10500_v37  ;;  %v840_v31 = vshll.u32 %v684_v45, 16  ;;  %v865_v33 = vshrl.u32 %v687_v56, 16  ;;  %v868_v0 = vshll.u32 %v687_v56, 16 }
  0x75   : > { %v10521_v23 = vrot.slane %v1443_v46, 11  ;;  %v1834_v25 = vrot.slane %v1833_v48, 4  ;;  %v1844_v57 = vrot.slane %v1843_v53, 4  ;;  %v1848_v12 = vrot.slane %v1846_v55, 5  ;;  %v10529_v46 = vld [vmem:[#allocation2 + $0x3c] sm:$0x1] }
  0x76   : > { %v1858_v14 = vrot.slane %v1857_v1, 4  ;;  %v1872_v3 = vrot.slane %v1870_v2, 5  ;;  %v893_v4 = vshrl.u32 %v690_v44, 16  ;;  %v896_v59 = vshll.u32 %v690_v44, 16  ;;  %15016 = vst [vmem:[#allocation18_spill] sm:$0xff] %v10529_v46 }
  0x77   : > { %15012 = vst [vmem:[#allocation16_spill] sm:$0xff] %v10521_v23  ;;  %v1868_v34 = vrot.slane %v1867_v8, 4  ;;  %v1882_v29 = vrot.slane %v1881_v15, 4  ;;  %v1896_v17 = vrot.slane %v1894_v18, 5  ;;  %v839_v60 = vrot.slane %v837_v20, 6 }
  0x78   : > { %v15013_v38 = vmov 0  ;;  %v1892_v45 = vrot.slane %v1891_v43, 4  ;;  %v842_v48 = vrot.slane %v840_v31, 7  ;;  %v867_v53 = vrot.slane %v865_v33, 6  ;;  %v10536_v1 = vld [vmem:[#allocation2 + $0x4c] sm:$0x1] }
  0x79   : > { %v15014_v38 = vsel %vm10525_vm14, 4294967295, %v15013_v38  ;;  %v870_v55 = vrot.slane %v868_v0, 7  ;;  %v1839_v44 = vsel %vm10525_vm14, %v1834_v25, %v10480_v19  ;;  %v1849_v56 = vsel %vm10525_vm14, %v1844_v57, %v1848_v12  ;;  %15017 = vst [vmem:[#allocation19_spill] sm:$0xff] %v10536_v1  ;;  %v10538_v2 = vld [vmem:[#allocation2 + $0x5c] sm:$0x1] }
  0x7a   : > { %15015 = vst [vmem:[#allocation17_spill] sm:$0xff] %v15014_v38  ;;  %15018 = vst [vmem:[#allocation20_spill] sm:$0xff] %v10538_v2  ;;  %v10540_v8 = vld [vmem:[#allocation2 + $0x6c] sm:$0x1]  ;;  %v1918_v43 = vshll.u32 %v10529_v46, 16  ;;  %v1942_v15 = vshll.u32 %v10536_v1, 16  ;;  %v1863_v19 = vsel %vm10525_vm14, %v1858_v14, %v10492_v28  ;;  %v1873_v12 = vsel %vm10525_vm14, %v1868_v34, %v1872_v3 }
  0x7b   : > { %15019 = vst [vmem:[#allocation21_spill] sm:$0xff] %v10540_v8  ;;  %v895_v31 = vrot.slane %v893_v4, 6  ;;  %v898_v33 = vrot.slane %v896_v59, 7  ;;  %v2444_v0 = vld [vmem:[#allocation2 + $0x3c] sm:$0x3]  ;;  %v1966_v18 = vshll.u32 %v10538_v2, 16  ;;  %v1887_v25 = vsel %vm10525_vm14, %v1882_v29, %v10500_v37 }
  0x7c   : > { %v1990_v20 = vshll.u32 %v10540_v8, 16  ;;  %v1897_v4 = vsel %vm10525_vm14, %v1892_v45, %v1896_v17  ;;  %v843_v59 = vor.u32 %v842_v48, %v839_v60  ;;  %v871_v57 = vor.u32 %v870_v55, %v867_v53  ;;  %v10565_v34 = vld [vmem:[#allocation2 + $0x4] sm:$0xe]  ;;  %v10571_v60 = vld [vmem:[#allocation2 + $0x14] sm:$0xe] }
  0x7d   : > { %v10560_v14 = vsel %vm1063_vm3, %v10403_v30, 0  ;;  %v10562_v3 = vcombine.low %v1839_v44, %v1849_v56  ;;  %v2014_v28 = vshll.u32 %v10556_v10, 16  ;;  %v2536_v62 = vshrl.u32 %v2444_v0, 16  ;;  %v2445_v55 = vld [vmem:[#allocation2 + $0x4c] sm:$0x3] }
  0x7e   : > { %15021 = vst [vmem:[#allocation23_spill] sm:$0xff] %v10560_v14  ;;  %v10567_v5 = vrot.slane %v1918_v43, 5  ;;  %v10569_v37 = vrot.slane %v1942_v15, 5  ;;  %v899_v29 = vor.u32 %v898_v33, %v895_v31  ;;  %v2539_v17 = vshll.u32 %v2444_v0, 16  ;;  %v10581_v44 = vld [vmem:[#allocation2 + $0x30] sm:$0x8] }
  0x7f   : > { %15022 = vst [vmem:[#allocation24_spill] sm:$0xff] %v10562_v3  ;;  %v10573_v45 = vcombine.low %v1863_v19, %v1873_v12  ;;  %v10575_v48 = vcombine.low %v1887_v25, %v1897_v4  ;;  %v10577_v30 = vrot.slane %v1966_v18, 5  ;;  %v10579_v53 = vrot.slane %v1990_v20, 5  ;;  %15029 = vst [vmem:[#allocation31_spill] sm:$0xff] %v10581_v44  ;;  %v2441_v15 = vld [vmem:[#allocation2 + $0xc] sm:$0x3] }
  0x80   : > { %15023 = vst [vmem:[#allocation25_spill] sm:$0xff] %v10567_v5  ;;  %15024 = vst [vmem:[#allocation26_spill] sm:$0xff] %v10569_v37  ;;  %v10583_v56 = vrot.slane %v843_v59, 4  ;;  %v10585_v43 = vrot.slane %v871_v57, 4  ;;  %v2453_v31 = vshrl.u32 %v10565_v34, 16  ;;  %v2456_v33 = vshll.u32 %v10565_v34, 16 }
  0x81   : > { %15025 = vst [vmem:[#allocation27_spill] sm:$0xff] %v10573_v45  ;;  %15026 = vst [vmem:[#allocation28_spill] sm:$0xff] %v10575_v48  ;;  %v10589_v0 = vrot.slane %v2014_v28, 5  ;;  %v2476_v19 = vshrl.u32 %v10571_v60, 16  ;;  %v2479_v12 = vshll.u32 %v10571_v60, 16  ;;  %v10595_v20 = vrot.slane %v2536_v62, 5 }
  0x82   : > { %15027 = vst [vmem:[#allocation29_spill] sm:$0xff] %v10577_v30  ;;  %15028 = vst [vmem:[#allocation30_spill] sm:$0xff] %v10579_v53  ;;  %v10593_v18 = vld [vmem:[#allocation2 + $0x24] sm:$0xe]  ;;  %v10597_v25 = vrot.slane %v899_v29, 4  ;;  %v10599_v4 = vrot.slane %v2539_v17, 6 }
  0x83   : > { %15030 = vst [vmem:[#allocation32_spill] sm:$0xff] %v10583_v56  ;;  %15031 = vst [vmem:[#allocation33_spill] sm:$0xff] %v10585_v43  ;;  %v2559_v59 = vshrl.u32 %v2445_v55, 16  ;;  %v15034_v53 = vshrl.u32 %v10454_v7, 16  ;;  %v15035_v28 = vshll.u32 %v10454_v7, 16  ;;  %v2467_v43 = vshrl.u32 %v2441_v15, 16 }
  0x84   : > { %15032 = vst [vmem:[#allocation34_spill] sm:$0xff] %v10589_v0  ;;  %15033 = vst [vmem:[#allocation35_spill] sm:$0xff] %v10597_v25  ;;  %v2470_v37 = vshll.u32 %v2441_v15, 16  ;;  %v2442_v56 = vld [vmem:[#allocation2 + $0x1c] sm:$0x3]  ;;  %v2455_v48 = vrot.slane %v2453_v31, 5 }
  0x85   : > { %v2461_v30 = vrot.slane %v15034_v53, 5  ;;  %v2462_v0 = vrot.slane %v15035_v28, 6  ;;  %v2458_v5 = vrot.slane %v2456_v33, 6  ;;  %v2443_v62 = vld [vmem:[#allocation2 + $0x2c] sm:$0x3]  ;;  %v2499_v29 = vshrl.u32 %v10593_v18, 16 }
  0x86   : > { %v2502_v17 = vshll.u32 %v10593_v18, 16  ;;  %v2478_v25 = vrot.slane %v2476_v19, 5  ;;  %v2481_v57 = vrot.slane %v2479_v12, 6  ;;  %v15036_v44 = vshrl.u32 %v10462_v50, 16  ;;  %v10617_v14 = vld [vmem:[%s14821_s3 + $0x14] sm:$0xf] }
  0x87   : > { %v15037_v45 = vshll.u32 %v10462_v50, 16  ;;  %v2490_v31 = vshrl.u32 %v2442_v56, 16  ;;  %v2493_v33 = vshll.u32 %v2442_v56, 16  ;;  %v2562_v38 = vshll.u32 %v2445_v55, 16 }
  0x88   : > { %v2484_v53 = vrot.slane %v15036_v44, 5  ;;  %v15038_v19 = vshrl.u32 %v10468_v61, 16  ;;  %v15039_v3 = vshll.u32 %v10468_v61, 16  ;;  %v2513_v58 = vshrl.u32 %v2443_v62, 16 }
  0x89   : > { %v2485_v28 = vrot.slane %v15037_v45, 6  ;;  %v2516_v13 = vshll.u32 %v2443_v62, 16  ;;  %v10623_v45 = vor.u32 %v2462_v0, %v2461_v30  ;;  %v2469_v52 = vrot.slane %v2467_v43, 5 }
  0x8a   : > { %v2507_v12 = vrot.slane %v15038_v19, 5  ;;  %v2508_v44 = vrot.slane %v15039_v3, 6  ;;  %v2501_v15 = vrot.slane %v2499_v29, 5  ;;  %v2504_v6 = vrot.slane %v2502_v17, 6  ;;  %v2447_v17 = vld [vmem:[#allocation2 + $0x6c] sm:$0x3] }
  0x8b   : > { %v2459_v56 = vor.u32 %v2458_v5, %v2455_v48  ;;  %v2472_v55 = vrot.slane %v2470_v37, 6  ;;  %v2482_v39 = vor.u32 %v2481_v57, %v2478_v25  ;;  %v10625_v23 = vor.u32 %v2485_v28, %v2484_v53  ;;  %v2446_v37 = vld [vmem:[#allocation2 + $0x5c] sm:$0x3]  ;;  %v2809_v48 = vld [vmem:[#allocation2 + $0x30] sm:$0xc] }
  0x8c   : > { %v10631_v19 = vsel %vm1063_vm3, %v10617_v14, 0  ;;  %v2492_v3 = vrot.slane %v2490_v31, 5  ;;  %v2495_v22 = vrot.slane %v2493_v33, 6  ;;  %v10633_v62 = vor.u32 %v2508_v44, %v2507_v12 }
  0x8d   : > { %15040 = vst [vmem:[#allocation36_spill] sm:$0xff] %v10631_v19  ;;  %v2515_v30 = vrot.slane %v2513_v58, 5  ;;  %v2518_v43 = vrot.slane %v2516_v13, 6  ;;  %v2465_v0 = vrot.slane %v10623_v45, 4  ;;  %v2505_v25 = vor.u32 %v2504_v6, %v2501_v15  ;;  %v2448_v58 = vld [vmem:[#allocation2 + $0x7c] sm:$0x3] }
  0x8e   : > { %v10638_v57 = vrot.slane %v2559_v59, 5  ;;  %v10640_v29 = vrot.slane %v2562_v38, 6  ;;  %v2460_v53 = vrot.slane %v2459_v56, 4  ;;  %v2473_v28 = vor.u32 %v2472_v55, %v2469_v52 }
  0x8f   : > { %v2483_v31 = vrot.slane %v2482_v39, 4  ;;  %v2488_v33 = vrot.slane %v10625_v23, 4  ;;  %v2496_v13 = vor.u32 %v2495_v22, %v2492_v3  ;;  %v2582_v12 = vshrl.u32 %v2446_v37, 16 }
  0x90   : > { %v2884_v44 = vshrl.u32 %v2809_v48, 16  ;;  %v2887_v11 = vshll.u32 %v2809_v48, 16  ;;  %v2511_v5 = vrot.slane %v10633_v62, 4  ;;  %v2519_v19 = vor.u32 %v2518_v43, %v2515_v30 }
  0x91   : > { %v2585_v16 = vshll.u32 %v2446_v37, 16  ;;  %v2605_v6 = vshrl.u32 %v2447_v17, 16  ;;  %v15041_v38 = vmov 0  ;;  %v2506_v52 = vrot.slane %v2505_v25, 4  ;;  %v10666_v37 = vld [vmem:[#allocation2 + $0x40] sm:$0x8] }
  0x92   : > { %v15042_v38 = vsel %vm10646_vm1, 4294967295, %v15041_v38  ;;  %v2608_v39 = vshll.u32 %v2447_v17, 16  ;;  %v2628_v59 = vshrl.u32 %v2448_v58, 16  ;;  %v2631_v15 = vshll.u32 %v2448_v58, 16  ;;  %15044 = vst [vmem:[#allocation38_spill] sm:$0xff] %v10666_v37 }
  0x93   : > { %15043 = vst [vmem:[#allocation37_spill] sm:$0xff] %v15042_v38  ;;  %v10652_v22 = vsel %vm1063_vm3, %v10510_v63, 0  ;;  %v2464_v56 = vsel %vm10646_vm1, %v2460_v53, %v10623_v45  ;;  %v2474_v55 = vsel %vm10646_vm1, %v2465_v0, %v2473_v28  ;;  %v2487_v30 = vsel %vm10646_vm1, %v2483_v31, %v10625_v23  ;;  %v10676_v53 = vld [vmem:[#allocation2 + $0x50] sm:$0x8]  ;;  %v10678_v28 = vld [vmem:[#allocation2 + $0x60] sm:$0x8] }
  0x94   : > { %v10664_v43 = vrot.slane %v2582_v12, 5  ;;  %v2886_v63 = vrot.slane %v2884_v44, 6  ;;  %v2889_v48 = vrot.slane %v2887_v11, 7  ;;  %v2497_v25 = vsel %vm10646_vm1, %v2488_v33, %v2496_v13  ;;  %15046 = vst [vmem:[#allocation40_spill] sm:$0xff] %v10676_v53  ;;  %15047 = vst [vmem:[#allocation41_spill] sm:$0xff] %v10678_v28 }
  0x95   : > { %v2520_v45 = vsel %vm10646_vm1, %v2511_v5, %v2519_v19  ;;  %v10672_v0 = vrot.slane %v2585_v16, 6  ;;  %v10674_v17 = vrot.slane %v2605_v6, 5  ;;  %v2510_v23 = vsel %vm10646_vm1, %v2506_v52, %v10633_v62  ;;  %v10700_v6 = vld [vmem:[%s14820_s2] ss:$0 sm:$0xff]  ;;  %v2812_v5 = vld [vmem:[#allocation2 + $0x40] sm:$0xc] }
  0x96   : > { %v10683_v31 = vrot.slane %v2608_v39, 6  ;;  %v10685_v11 = vrot.slane %v2628_v59, 5  ;;  %v10687_v33 = vrot.slane %v2631_v15, 6  ;;  %v2221_v19 = vrot.slane %v10454_v7, 5  ;;  %v10713_v15 = vld [vmem:[%s14821_s3 + $0x1c] sm:$0xf] }
  0x97   : > { %15045 = vst [vmem:[#allocation39_spill] sm:$0xff] %v10674_v17  ;;  %v2890_v44 = vor.u32 %v2889_v48, %v2886_v63  ;;  %v10702_v52 = vcombine.low %v2464_v56, %v2474_v55  ;;  %v10704_v7 = vcombine.low %v2487_v30, %v2497_v25  ;;  %v10706_v39 = vcombine.low %v2510_v23, %v2520_v45  ;;  %v10715_v63 = vld [vmem:[#allocation2 + $0x70] sm:$0x8]  ;;  %v10717_v48 = vld [vmem:[#allocation2 + $0x80] sm:$0x8] }
  0x98   : > { %15048 = vst [vmem:[#allocation42_spill] sm:$0xff] %v10683_v31  ;;  %15049 = vst [vmem:[#allocation43_spill] sm:$0xff] %v10685_v11  ;;  %v8743_v30 = vrot.slane %v10565_v34, 9  ;;  %v8744_v25 = vrot.slane %v10571_v60, 9  ;;  %v2804_v45 = vld [vmem:[#allocation2 + $0x14] sm:$0xf] }
  0x99   : > { %15050 = vst [vmem:[#allocation44_spill] sm:$0xff] %v10687_v33  ;;  %15051 = vst [vmem:[#allocation45_spill] sm:$0xff] %v10715_v63  ;;  %v10725_v23 = vld [vmem:[#allocation2 + $0x24] sm:$0xf]  ;;  %v2223_v62 = vrot.slane %v2221_v19, 4  ;;  %v2224_v12 = vrot.slane %v10486_v54, 5 }
  0x9a   : > { %15052 = vst [vmem:[#allocation46_spill] sm:$0xff] %v10717_v48  ;;  %v2228_v13 = vrot.slane %v10462_v50, 5  ;;  %v10733_v56 = vld [vmem:[%s14821_s3 + $0x20] sm:$0xf]  ;;  %v10738_v59 = vrot.slane %v2890_v44, 4  ;;  %v15054_v50 = vmov 0  ;;  %v10755_v55 = vsel %vm10742_vm9, %v8743_v30, %v2221_v19 }
  0x9b   : > { %v15055_v50 = vsel %vm10742_vm9, 4294967295, %v15054_v50  ;;  %v2231_v54 = vrot.slane %v10488_v27, 5  ;;  %v10749_v58 = vsel %vm1063_vm3, %v10713_v15, 0  ;;  %v3217_v34 = vld [vmem:[#allocation2 + $0x10] sm:$0x8]  ;;  %v3251_v3 = vrot.slane %v2804_v45, 7 }
  0x9c   : > { %15053 = vst [vmem:[#allocation47_spill] sm:$0xff] %v10738_v59  ;;  %15056 = vst [vmem:[#allocation48_spill] sm:$0xff] %v15055_v50  ;;  %v3258_v60 = vrot.slane %v10725_v23, 7  ;;  %v10759_v59 = vsel %vm10742_vm9, %v8744_v25, %v2228_v13  ;;  %v2805_v48 = vld [vmem:[#allocation2 + $0x18] sm:$0x7]  ;;  %v2912_v63 = vshrl.u32 %v2812_v5, 16 }
  0x9d   : > { %15057 = vst [vmem:[#allocation49_spill] sm:$0xff] %v10749_v58  ;;  %15058 = vst [vmem:[#allocation50_spill] sm:$0xff] %v10755_v55  ;;  %v3218_v27 = vld [vmem:[#allocation2 + $0x20] sm:$0x8]  ;;  %v10763_v58 = vsel %vm10742_vm9, %v2223_v62, %v2224_v12  ;;  %v2230_v45 = vrot.slane %v2228_v13, 4  ;;  %v2915_v19 = vshll.u32 %v2812_v5, 16 }
  0x9e   : > { %15059 = vst [vmem:[#allocation51_spill] sm:$0xff] %v10759_v59  ;;  %15060 = vst [vmem:[#allocation52_spill] sm:$0xff] %v10763_v58  ;;  %v2808_v23 = vld [vmem:[#allocation2 + $0x28] sm:$0x7]  ;;  %v8802_v25 = vrot.slane %v3217_v34, 11  ;;  %v2235_v2 = vrot.slane %v10468_v61, 5 }
  0x9f   : > { %v3253_v37 = vrot.slane %v3251_v3, 4  ;;  %v3254_v1 = vrot.slane %v2805_v48, 7  ;;  %v8803_v46 = vrot.slane %v3218_v27, 11  ;;  %v3260_v11 = vrot.slane %v3258_v60, 4 }
  0xa0   : > { %v3261_v33 = vrot.slane %v2808_v23, 7  ;;  %v2238_v5 = vrot.slane %v10496_v36, 5  ;;  %v2237_v27 = vrot.slane %v2235_v2, 4  ;;  %v10784_v36 = vsel %vm10296_vm4, %v8802_v25, %v3251_v3 }
  0xa1   : > { %15063 = vst [vmem:[#allocation55_spill] sm:$0xff] %v10784_v36  ;;  %v10797_v3 = vsel %vm10296_vm4, %v8803_v46, %v3258_v60 }
  0xa2   : > { %15065 = vst [vmem:[#allocation57_spill] sm:$0xff] %v10797_v3 }
 0x10a   : > { %v9452_v16 = vpop.f32.mrf.mxu0 }
 0x10b   : > { %v517_v44 = vadd.f32 %v9452_v16, %v10700_v6  ;;  %v10767_v16 = vsel %vm1063_vm3, %v10733_v56, 0 }
 0x10c   : > { %v508_v28 = vpop.f32.mrf.mxu0  ;;  %15061 = vst [vmem:[#allocation53_spill] sm:$0xff] %v10767_v16  ;;  %v8745_v16 = vrot.slane %v10593_v18, 9 }
 0x10d   : > { %v573_v30 = vmax.f32 %v517_v44, 0.0  ;;  %v509_v8 = vadd.f32 %v10700_v6, %v508_v28  ;;  %v2914_v44 = vrot.slane %v2912_v63, 6  ;;  %v2917_v28 = vrot.slane %v2915_v19, 7 }
 0x10e   : > { %v9453_v53 = vpop.f32.mrf.mxu0  ;;  %v10791_v19 = vsel %vm10296_vm4, %v3253_v37, %v3254_v1  ;;  %v10805_v25 = vsel %vm10742_vm9, %v8745_v16, %v2235_v2 }
 0x10f   : > { %v9170_v12 = vpack.c.bf16 %v573_v30, %v573_v30  ;;  %v571_v62 = vmax.f32 %v509_v8, 0.0  ;;  %v520_v13 = vadd.f32 %v9453_v53, %v10700_v6  ;;  %v10780_v53 = vsel %vm10742_vm9, %v2230_v45, %v2231_v54  ;;  %15064 = vst [vmem:[#allocation56_spill] sm:$0xff] %v10791_v19  ;;  %v2815_v30 = vld [vmem:[#allocation2 + $0x50] sm:$0xc]  ;;  %15067 = vst [vmem:[#allocation59_spill] sm:$0xff] %v10805_v25 }
 0x110   : > { %v511_v17 = vpop.f32.mrf.mxu0  ;;  %15062 = vst [vmem:[#allocation54_spill] sm:$0xff] %v10780_v53  ;;  %v10801_v45 = vsel %vm10296_vm4, %v3260_v11, %v3261_v33  ;;  %v2940_v33 = vshrl.u32 %v2815_v30, 16  ;;  %v2943_v60 = vshll.u32 %v2815_v30, 16  ;;  %v15070_v11 = vrot.slane %v10437_v26, 11 }
 0x111   : > { %655 = vst.msk [vmem:[#allocation2 + $0x44] sm:$0xf] %vm652_vm7, %v9170_v12  ;;  %v9168_v61 = vpack.c.bf16 %v571_v62, %v571_v62  ;;  %v574_v34 = vmax.f32 %v520_v13, 0.0  ;;  %v512_v48 = vadd.f32 %v10700_v6, %v511_v17  ;;  %v10793_v12 = vld [vmem:[#allocation2 + $0x60] sm:$0xc]  ;;  %15066 = vst [vmem:[#allocation58_spill] sm:$0xff] %v10801_v45  ;;  %v10811_v13 = vsel %vm10742_vm9, %v2237_v27, %v2238_v5 }
 0x112   : > { %v9456_v31 = vpop.f32.mrf.mxu0  ;;  %15068 = vst [vmem:[#allocation60_spill] sm:$0xff] %v10811_v13  ;;  %v2968_v2 = vshrl.u32 %v10793_v12, 16  ;;  %v10837_v18 = vrot.slane %v2943_v60, 7 }
 0x113   : > { %653 = vst.msk [vmem:[#allocation2 + $0x34] sm:$0xf] %vm652_vm7, %v9168_v61  ;;  %v9171_v63 = vpack.c.bf16 %v574_v34, %v574_v34  ;;  %v572_v23 = vmax.f32 %v512_v48, 0.0  ;;  %v533_v17 = vadd.f32 %v9456_v31, %v10700_v6  ;;  %v2918_v31 = vor.u32 %v2917_v28, %v2914_v44 }
 0x114   : > { %v524_v54 = vpop.f32.mrf.mxu0  ;;  %v10835_v48 = vrot.slane %v2940_v33, 6 }
 0x115   : > { %656 = vst.msk [vmem:[#allocation2 + $0x48] sm:$0xf] %vm652_vm7, %v9171_v63  ;;  %v9169_v1 = vpack.c.bf16 %v572_v23, %v572_v23  ;;  %v577_v37 = vmax.f32 %v533_v17, 0.0  ;;  %v525_v62 = vadd.f32 %v10700_v6, %v524_v54  ;;  %v10826_v63 = vrot.slane %v2918_v31, 4 }
 0x116   : > { %v9457_v46 = vpop.f32.mrf.mxu0  ;;  %v10839_v31 = vrot.slane %v2968_v2, 6 }
 0x117   : > { %654 = vst.msk [vmem:[#allocation2 + $0x38] sm:$0xf] %vm652_vm7, %v9169_v1  ;;  %v9174_v16 = vpack.c.bf16 %v577_v37, %v577_v37  ;;  %v575_v44 = vmax.f32 %v525_v62, 0.0  ;;  %v536_v28 = vadd.f32 %v9457_v46, %v10700_v6  ;;  %15069 = vst [vmem:[#allocation61_spill] sm:$0xff] %v10826_v63 }
 0x118   : > { %v527_v34 = vpop.f32.mrf.mxu0  ;;  %v10820_v5 = vld [vmem:[#allocation2 + $0x44] sm:$0xf] }
 0x119   : > { %659 = vst.msk [vmem:[#allocation2 + $0x64] sm:$0xf] %vm652_vm7, %v9174_v16  ;;  %v9172_v17 = vpack.c.bf16 %v575_v44, %v575_v44  ;;  %v578_v30 = vmax.f32 %v536_v28, 0.0  ;;  %v528_v54 = vadd.f32 %v10700_v6, %v527_v34  ;;  %v986_v1 = vrot.slane %v10820_v5, 7  ;;  %v1811_v58 = vld [vmem:[#allocation2 + $0x44] sm:$0xf] }
 0x11a   : > { %v9460_v37 = vpop.f32.mrf.mxu0  ;;  %v10832_v62 = vld [vmem:[#allocation2 + $0x34] sm:$0xf] }
 0x11b   : > { %657 = vst.msk [vmem:[#allocation2 + $0x54] sm:$0xf] %vm652_vm7, %v9172_v17  ;;  %v9175_v16 = vpack.c.bf16 %v578_v30, %v578_v30  ;;  %v576_v44 = vmax.f32 %v528_v54, 0.0  ;;  %v549_v28 = vadd.f32 %v9460_v37, %v10700_v6  ;;  %v979_v34 = vrot.slane %v10832_v62, 7 }
 0x11c   : > { %v540_v27 = vpop.f32.mrf.mxu0  ;;  %v10844_v61 = vld [vmem:[#allocation2 + $0x48] sm:$0x7]  ;;  %v987_v33 = vsel %vm10296_vm4, %v15070_v11, %v986_v1  ;;  %v988_v60 = vrot.slane %v986_v1, 4  ;;  %v15071_v11 = vrot.slane %v10434_v21, 11 }
 0x11d   : > { %660 = vst.msk [vmem:[#allocation2 + $0x68] sm:$0xf] %vm652_vm7, %v9175_v16  ;;  %v9173_v17 = vpack.c.bf16 %v576_v44, %v576_v44  ;;  %v581_v30 = vmax.f32 %v549_v28, 0.0  ;;  %v541_v54 = vadd.f32 %v10700_v6, %v540_v27  ;;  %v10855_v23 = vld [vmem:[#allocation2 + $0x48] sm:$0xf]  ;;  %v981_v2 = vrot.slane %v979_v34, 4 }
 0x11e   : > { %v9461_v46 = vpop.f32.mrf.mxu0  ;;  %v10857_v26 = vld [vmem:[#allocation2 + $0x38] sm:$0x7]  ;;  %v980_v1 = vsel %vm10296_vm4, %v15071_v11, %v979_v34  ;;  %v989_v8 = vrot.slane %v10844_v61, 7  ;;  %v15072_v34 = vshrl.u32 %v10832_v62, 16 }
 0x11f   : > { %v10864_v16 = vld [vmem:[#allocation2 + $0x38] sm:$0xf]  ;;  %658 = vst.msk [vmem:[#allocation2 + $0x58] sm:$0xf] %vm652_vm7, %v9173_v17  ;;  %v9178_v44 = vpack.c.bf16 %v581_v30, %v581_v30  ;;  %v579_v28 = vmax.f32 %v541_v54, 0.0  ;;  %v552_v37 = vadd.f32 %v9461_v46, %v10700_v6  ;;  %v982_v63 = vrot.slane %v10857_v26, 7 }
 0x120   : > { %v543_v21 = vpop.f32.mrf.mxu0  ;;  %v990_v11 = vsel %vm10296_vm4, %v988_v60, %v989_v8  ;;  %v1379_v45 = vrot.slane %v15072_v34, 7  ;;  %v1384_v3 = vshrl.u32 %v10864_v16, 16  ;;  %v1387_v10 = vshll.u32 %v10864_v16, 16 }
 0x121   : > { %663 = vst.msk [vmem:[#allocation2 + $0x84] sm:$0xf] %vm652_vm7, %v9178_v44  ;;  %v9176_v17 = vpack.c.bf16 %v579_v28, %v579_v28  ;;  %v582_v30 = vmax.f32 %v552_v37, 0.0  ;;  %v544_v54 = vadd.f32 %v10700_v6, %v543_v21  ;;  %v983_v46 = vsel %vm10296_vm4, %v981_v2, %v982_v63  ;;  %v10888_v6 = vld [vmem:[#allocation2 + $0x64] sm:$0xf] }
 0x122   : > { %v8655_v27 = vcombine.low %v980_v1, %v983_v46  ;;  %v8656_v13 = vcombine.low %v987_v33, %v990_v11  ;;  %v15073_v8 = vshll.u32 %v10832_v62, 16  ;;  %v1382_v25 = vrot.slane %v1379_v45, 4  ;;  %v10883_v34 = vld [vmem:[#allocation2 + $0x54] sm:$0xf] }
 0x123   : > { %661 = vst.msk [vmem:[#allocation2 + $0x74] sm:$0xf] %vm652_vm7, %v9176_v17  ;;  %v9179_v19 = vpack.c.bf16 %v582_v30, %v582_v30  ;;  %v580_v36 = vmax.f32 %v544_v54, 0.0  ;;  %v1386_v44 = vrot.slane %v1384_v3, 7  ;;  %v15074_v37 = vshrl.u32 %v10820_v5, 16 }
 0x124   : > { %v1380_v60 = vor.u32 %v1379_v45, %v15073_v8  ;;  %9473 = vmatmul.mubr.msk.bf16.gmra.mxu1 %vm1038_vm5, %v8655_v27  ;;  %v1401_v45 = vshrl.u32 %v10855_v23, 16  ;;  %v1404_v33 = vshll.u32 %v10855_v23, 16  ;;  %v993_v2 = vrot.slane %v10883_v34, 7  ;;  %v10897_v1 = vld [vmem:[#allocation2 + $0x68] sm:$0x7] }
 0x125   : > { %v1396_v28 = vrot.slane %v15074_v37, 7  ;;  %664 = vst.msk [vmem:[#allocation2 + $0x88] sm:$0xf] %vm652_vm7, %v9179_v19  ;;  %v9177_v3 = vpack.c.bf16 %v580_v36, %v580_v36  ;;  %9476 = vmatprep.mubr.msk.bf16.mxu1 %vm1038_vm5, %v8656_v13  ;;  %v1389_v21 = vor.u32 %v1387_v10, %v1386_v44  ;;  %v15075_v27 = vshll.u32 %v10820_v5, 16 }
 0x126   : > { %v1381_v63 = vsel %vm10337_vm8, %v10452_v35, %v1380_v60  ;;  %v1403_v30 = vrot.slane %v1401_v45, 7  ;;  %v10903_v35 = vld [vmem:[#allocation2 + $0x58] sm:$0x7]  ;;  %v15076_v54 = vrot.slane %v10444_v47, 11  ;;  %v995_v8 = vrot.slane %v993_v2, 4 }
 0x127   : > { %v1397_v11 = vor.u32 %v1396_v28, %v15075_v27  ;;  %v1399_v17 = vrot.slane %v1396_v28, 4  ;;  %v1000_v60 = vrot.slane %v10888_v6, 7  ;;  %662 = vst.msk [vmem:[#allocation2 + $0x78] sm:$0xf] %vm652_vm7, %v9177_v3  ;;  %v1390_v10 = vsel %vm10337_vm8, %v1382_v25, %v1389_v21  ;;  %v10918_v47 = vld [vmem:[#allocation2 + $0x58] sm:$0xf] }
 0x128   : > { %v994_v46 = vsel %vm10296_vm4, %v15076_v54, %v993_v2  ;;  %v996_v19 = vrot.slane %v10903_v35, 7  ;;  %v1003_v13 = vrot.slane %v10897_v1, 7  ;;  %v8696_v44 = vcombine.low %v1381_v63, %v1390_v10  ;;  %v10929_v27 = vld [vmem:[#allocation2 + $0x68] sm:$0xf] }
 0x129   : > { %v1398_v36 = vsel %vm10337_vm8, %v10456_v40, %v1397_v11  ;;  %v1406_v37 = vor.u32 %v1404_v33, %v1403_v30  ;;  %v15077_v28 = vrot.slane %v10446_v42, 11  ;;  %v1002_v2 = vrot.slane %v1000_v60, 4 }
 0x12a   : > { %v997_v25 = vsel %vm10296_vm4, %v995_v8, %v996_v19  ;;  %v14863_v3 = vshrl.u32 %v10883_v34, 16  ;;  %v14862_v40 = vshll.u32 %v10883_v34, 16  ;;  %v1418_v21 = vshrl.u32 %v10918_v47, 16  ;;  %9509 = vmatmul.mubr.msk.bf16.gmra.mxu0 %vm1038_vm5, %v8696_v44  ;;  %v10937_v30 = vld [vmem:[#allocation2 + $0x74] sm:$0xf] }
 0x12b   : > { %v1001_v45 = vsel %vm10296_vm4, %v15077_v28, %v1000_v60  ;;  %v1407_v42 = vsel %vm10337_vm8, %v1399_v17, %v1406_v37  ;;  %v8657_v63 = vcombine.low %v994_v46, %v997_v25  ;;  %v1004_v33 = vsel %vm10296_vm4, %v1002_v2, %v1003_v13 }
 0x12c   : > { %v1421_v11 = vshll.u32 %v10918_v47, 16  ;;  %v8697_v54 = vcombine.low %v1398_v36, %v1407_v42  ;;  %v8658_v8 = vcombine.low %v1001_v45, %v1004_v33  ;;  %v1413_v60 = vrot.slane %v14863_v3, 7 }
 0x12d   : > { %v1420_v10 = vrot.slane %v1418_v21, 7  ;;  %9477 = vmatmul.mubr.msk.bf16.gmra.mxu1 %vm1038_vm5, %v8657_v63  ;;  %v14861_v19 = vshrl.u32 %v10888_v6, 16  ;;  %v14865_v17 = vshll.u32 %v10888_v6, 16  ;;  %v1435_v46 = vshrl.u32 %v10929_v27, 16 }
 0x12e   : > { %v1438_v13 = vshll.u32 %v10929_v27, 16  ;;  %9512 = vmatprep.mubr.msk.bf16.mxu0 %vm1038_vm5, %v8697_v54  ;;  %9480 = vmatprep.mubr.msk.bf16.mxu1 %vm1038_vm5, %v8658_v8  ;;  %v1414_v36 = vor.u32 %v1413_v60, %v14862_v40  ;;  %v1416_v44 = vrot.slane %v1413_v60, 4  ;;  %v1007_v28 = vrot.slane %v10937_v30, 7  ;;  %v10953_v25 = vld [vmem:[#allocation2 + $0x78] sm:$0x7] }
 0x12f   : > { %v1423_v37 = vor.u32 %v1421_v11, %v1420_v10  ;;  %v1430_v45 = vrot.slane %v14861_v19, 7  ;;  %v1437_v2 = vrot.slane %v1435_v46, 7  ;;  %v14864_v21 = vshrl.u32 %v10937_v30, 16  ;;  %v15078_v11 = vld [vmem:[#allocation14_spill] sm:$0xff]  ;;  %v10966_v10 = vld [vmem:[#allocation2 + $0x78] sm:$0xf] }
 0x130   : > { %v1415_v63 = vsel %vm10337_vm8, %v10472_v9, %v1414_v36  ;;  %v15079_v54 = vrot.slane %v15078_v11, 11  ;;  %v1009_v60 = vrot.slane %v1007_v28, 4  ;;  %v1010_v42 = vrot.slane %v10953_v25, 7 }
 0x131   : > { %v1424_v33 = vsel %vm10337_vm8, %v1416_v44, %v1423_v37  ;;  %v1431_v19 = vor.u32 %v1430_v45, %v14865_v17  ;;  %v1433_v40 = vrot.slane %v1430_v45, 4  ;;  %v1440_v3 = vor.u32 %v1438_v13, %v1437_v2  ;;  %v15080_v37 = vld [vmem:[#allocation13_spill] sm:$0xff] }
 0x132   : > { %v1008_v8 = vsel %vm10296_vm4, %v15079_v54, %v1007_v28  ;;  %v8698_v46 = vcombine.low %v1415_v63, %v1424_v33  ;;  %v1447_v9 = vrot.slane %v14864_v21, 7  ;;  %v1452_v36 = vshrl.u32 %v10966_v10, 16 }
 0x133   : > { %v1455_v44 = vshll.u32 %v10966_v10, 16  ;;  %v1432_v28 = vsel %vm10337_vm8, %v15080_v37, %v1431_v19  ;;  %v1441_v63 = vsel %vm10337_vm8, %v1433_v40, %v1440_v3  ;;  %v15081_v13 = vshrl.u32 %v10832_v62, 16  ;;  %v1808_v3 = vld [vmem:[#allocation2 + $0x34] sm:$0xf]  ;;  %v15084_v40 = vld [vmem:[#allocation16_spill] sm:$0xff] }
 0x134   : > { %9513 = vmatmul.mubr.msk.bf16.gmra.mxu0 %vm1038_vm5, %v8698_v46  ;;  %v15082_v2 = vshll.u32 %v10832_v62, 16  ;;  %v8699_v11 = vcombine.low %v1432_v28, %v1441_v63  ;;  %v1011_v54 = vsel %vm10296_vm4, %v1009_v60, %v1010_v42  ;;  %v15083_v21 = vshll.u32 %v10937_v30, 16  ;;  %v15087_v63 = vld [vmem:[#allocation12_spill] sm:$0xff] }
 0x135   : > { %v792_v45 = vrot.slane %v15081_v13, 6  ;;  %v1450_v17 = vrot.slane %v1447_v9, 4  ;;  %v8659_v53 = vcombine.low %v1008_v8, %v1011_v54  ;;  %v1454_v59 = vrot.slane %v1452_v36, 7  ;;  %v10999_v8 = vld [vmem:[#allocation2 + $0x38] sm:$0xf]  ;;  %v15089_v54 = vld [vmem:[#allocation9_spill] sm:$0xff] }
 0x136   : > { %v795_v33 = vrot.slane %v15082_v2, 7  ;;  %v1448_v46 = vor.u32 %v1447_v9, %v15083_v21  ;;  %v800_v37 = vshrl.u32 %v10857_v26, 16  ;;  %9516 = vmatprep.mubr.msk.bf16.mxu0 %vm1038_vm5, %v8699_v11  ;;  %v803_v28 = vshll.u32 %v10857_v26, 16 }
 0x137   : > { %v15085_v42 = vshrl.u32 %v10820_v5, 16  ;;  %v15086_v21 = vshll.u32 %v10820_v5, 16  ;;  %9481 = vmatmul.mubr.msk.bf16.gmra.mxu1 %vm1038_vm5, %v8659_v53  ;;  %v1457_v36 = vor.u32 %v1455_v44, %v1454_v59  ;;  %v1899_v53 = vshrl.u32 %v1808_v3, 16 }
 0x138   : > { %v796_v19 = vor.u32 %v795_v33, %v792_v45  ;;  %v1449_v13 = vsel %vm10337_vm8, %v15084_v40, %v1448_v46  ;;  %v802_v11 = vrot.slane %v800_v37, 6  ;;  %9486 = vmatprep.mubr.msk.bf16.mxu1 %vm1038_vm5, %v15089_v54  ;;  %v805_v26 = vrot.slane %v803_v28, 7  ;;  %v15090_v37 = vld [vmem:[#allocation15_spill] sm:$0xff] }
 0x139   : > { %v820_v60 = vrot.slane %v15085_v42, 6  ;;  %v823_v9 = vrot.slane %v15086_v21, 7  ;;  %v828_v40 = vshrl.u32 %v10844_v61, 16  ;;  %v831_v42 = vshll.u32 %v10844_v61, 16  ;;  %v11015_v61 = vld [vmem:[#allocation2 + $0x48] sm:$0xf] }
 0x13a   : > { %v797_v2 = vsel %vm10407_vm11, %v15087_v63, %v796_v19  ;;  %v798_v33 = vrot.slane %v796_v19, 4  ;;  %v1458_v21 = vsel %vm10337_vm8, %v1450_v17, %v1457_v36  ;;  %v1902_v59 = vshll.u32 %v1808_v3, 16 }
 0x13b   : > { %v824_v46 = vor.u32 %v823_v9, %v820_v60  ;;  %v14874_v44 = vshll.u32 %v10999_v8, 16  ;;  %v8700_v63 = vcombine.low %v1449_v13, %v1458_v21  ;;  %v806_v19 = vor.u32 %v805_v26, %v802_v11  ;;  %v15091_v11 = vld [vmem:[#allocation24_spill] sm:$0xff] }
 0x13c   : > { %v830_v60 = vrot.slane %v828_v40, 6  ;;  %v833_v9 = vrot.slane %v831_v42, 7  ;;  %v1901_v55 = vrot.slane %v1899_v53, 4  ;;  %v1904_v50 = vrot.slane %v1902_v59, 5 }
 0x13d   : > { %v825_v54 = vsel %vm10407_vm11, %v15090_v37, %v824_v46  ;;  %v826_v28 = vrot.slane %v824_v46, 4  ;;  %9517 = vmatmul.mubr.msk.bf16.gmra.mxu0 %vm1038_vm5, %v8700_v63  ;;  %v807_v17 = vsel %vm10407_vm11, %v798_v33, %v806_v19  ;;  %v1910_v3 = vrot.slane %v14874_v44, 5  ;;  %v15092_v63 = vld [vmem:[#allocation10_spill] sm:$0xff] }
 0x13e   : > { %v14875_v13 = vshrl.u32 %v10999_v8, 16  ;;  %v1923_v36 = vshrl.u32 %v1811_v58, 16  ;;  %9540 = vmatprep.mubr.msk.bf16.mxu0 %vm1038_vm5, %v15091_v11  ;;  %v8671_v26 = vcombine.low %v797_v2, %v807_v17  ;;  %v834_v46 = vor.u32 %v833_v9, %v830_v60 }
 0x13f   : > { %v1905_v40 = vor.u32 %v1904_v50, %v1901_v55  ;;  %v1926_v42 = vshll.u32 %v1811_v58, 16  ;;  %v14872_v59 = vshll.u32 %v11015_v61, 16  ;;  %v14873_v33 = vshrl.u32 %v11015_v61, 16  ;;  %9487 = vmatmul.mubr.msk.bf16.vlgmr.msra.gmra.mxu1 %vm1038_vm5, %v15092_v63  ;;  %v15094_v58 = vld [vmem:[#allocation23_spill] sm:$0xff] }
 0x140   : > { %v1914_v21 = vrot.slane %v14875_v13, 4  ;;  %v1925_v53 = vrot.slane %v1923_v36, 4  ;;  %v835_v19 = vsel %vm10407_vm11, %v826_v28, %v834_v46  ;;  %v15093_v2 = vshrl.u32 %v10883_v34, 16  ;;  %9521 = vmatpush3.bf16.msra.mxu1 %v15094_v58  ;;  %v15095_v50 = vld [vmem:[#allocation11_spill] sm:$0xff]  ;;  %v15102_v13 = vld [vmem:[#allocation28_spill] sm:$0xff] }
 0x141   : > { %v1906_v37 = vrot.slane %v1905_v40, 4  ;;  %v1928_v11 = vrot.slane %v1926_v42, 5  ;;  %9490 = vmatprep.mubr.msk.bf16.mxu1 %vm1038_vm5, %v15095_v50  ;;  %v8672_v60 = vcombine.low %v825_v54, %v835_v19  ;;  %v1934_v17 = vrot.slane %v14872_v59, 5  ;;  %9939 = vmatprep.subr.msk.bf16.mxu1 %vm1063_vm3, %v10617_v14 }
 0x142   : > { %v848_v55 = vrot.slane %v15093_v2, 6  ;;  %v1915_v9 = vor.u32 %v1914_v21, %v1910_v3  ;;  %v1938_v36 = vrot.slane %v14873_v33, 4  ;;  %v15097_v40 = vshll.u32 %v10883_v34, 16 }
 0x143   : > { %v1911_v28 = vsel %vm10525_vm14, %v1906_v37, %v1910_v3  ;;  %v1929_v46 = vor.u32 %v1928_v11, %v1925_v53  ;;  %v856_v2 = vshrl.u32 %v10903_v35, 16  ;;  %v859_v19 = vshll.u32 %v10903_v35, 16  ;;  %v15100_v37 = vld [vmem:[#allocation27_spill] sm:$0xff]  ;;  %v15101_v11 = vld [vmem:[#allocation25_spill] sm:$0xff] }
 0x144   : > { %v851_v42 = vrot.slane %v15097_v40, 7  ;;  %v1916_v54 = vrot.slane %v1915_v9, 4  ;;  %v1939_v21 = vor.u32 %v1938_v36, %v1934_v17  ;;  %v15098_v58 = vshrl.u32 %v10888_v6, 16  ;;  %v1814_v40 = vld [vmem:[#allocation2 + $0x54] sm:$0xf] }
 0x145   : > { %v1930_v59 = vrot.slane %v1929_v46, 4  ;;  %v858_v44 = vrot.slane %v856_v2, 6  ;;  %v15099_v3 = vshll.u32 %v10888_v6, 16  ;;  %9541 = vmatmul.mubr.msk.bf16.vlgmr.msra.gmra.mxu0 %vm1038_vm5, %v15100_v37  ;;  %v861_v36 = vrot.slane %v859_v19, 7 }
 0x146   : > { %v876_v50 = vrot.slane %v15098_v58, 6  ;;  %v852_v33 = vor.u32 %v851_v42, %v848_v55  ;;  %v1921_v14 = vsel %vm10525_vm14, %v1916_v54, %v15101_v11  ;;  %v1940_v9 = vrot.slane %v1939_v21, 4  ;;  %9544 = vmatprep.mubr.msk.bf16.mxu0 %vm1038_vm5, %v15102_v13  ;;  %v15103_v42 = vld [vmem:[#allocation32_spill] sm:$0xff]  ;;  %9575 = vmatpush3.bf16.msra.mxu0 %v10652_v22  ;;  %v15104_v54 = vld [vmem:[#allocation26_spill] sm:$0xff]  ;;  %v1817_v11 = vld [vmem:[#allocation2 + $0x64] sm:$0xf] }
 0x147   : > { %v879_v53 = vrot.slane %v15099_v3, 7  ;;  %v884_v35 = vshrl.u32 %v10897_v1, 16  ;;  %v8730_v55 = vcombine.low %v1911_v28, %v1921_v14  ;;  %v1935_v46 = vsel %vm10525_vm14, %v1930_v59, %v1934_v17  ;;  %v11067_v3 = vld [vmem:[#allocation2 + $0x58] sm:$0xf]  ;;  %9942 = vmatprep.subr.msk.bf16.mxu0 %vm1063_vm3, %v10733_v56  ;;  %9491 = vmatmul.mubr.msk.bf16.gmra.mxu1 %vm1038_vm5, %v8671_v26  ;;  %v15105_v14 = vld [vmem:[#allocation33_spill] sm:$0xff] }
 0x148   : > { %v853_v2 = vsel %vm10407_vm11, %v15103_v42, %v852_v33  ;;  %v854_v58 = vrot.slane %v852_v33, 4  ;;  %v1945_v21 = vsel %vm10525_vm14, %v1940_v9, %v15104_v54  ;;  %v862_v19 = vor.u32 %v861_v36, %v858_v44  ;;  %9494 = vmatprep.mubr.msk.bf16.mxu1 %vm1038_vm5, %v8672_v60 }
 0x149   : > { %v880_v37 = vor.u32 %v879_v53, %v876_v50  ;;  %v886_v13 = vrot.slane %v884_v35, 6  ;;  %v8731_v59 = vcombine.low %v1935_v46, %v1945_v21  ;;  %v887_v17 = vshll.u32 %v10897_v1, 16  ;;  %v11084_v53 = vld [vmem:[#allocation2 + $0x68] sm:$0xf] }
 0x14a   : > { %v1947_v33 = vshrl.u32 %v1814_v40, 16  ;;  %v1950_v28 = vshll.u32 %v1814_v40, 16  ;;  %v863_v22 = vsel %vm10407_vm11, %v854_v58, %v862_v19  ;;  %v14880_v56 = vshll.u32 %v11067_v3, 16 }
 0x14b   : > { %v881_v44 = vsel %vm10407_vm11, %v15105_v14, %v880_v37  ;;  %v882_v50 = vrot.slane %v880_v37, 4  ;;  %v8673_v26 = vcombine.low %v853_v2, %v863_v22  ;;  %v889_v9 = vrot.slane %v887_v17, 7  ;;  %v1820_v22 = vld [vmem:[#allocation2 + $0x74] sm:$0xf] }
 0x14c   : > { %v1949_v1 = vrot.slane %v1947_v33, 4  ;;  %v1952_v36 = vrot.slane %v1950_v28, 5  ;;  %v1958_v35 = vrot.slane %v14880_v56, 5  ;;  %v1960_v60 = vshrl.u32 %v11067_v3, 16 }
 0x14d   : > { %v1971_v40 = vshrl.u32 %v1817_v11, 16  ;;  %v1974_v46 = vshll.u32 %v1817_v11, 16  ;;  %v890_v42 = vor.u32 %v889_v9, %v886_v13  ;;  %v14876_v54 = vshll.u32 %v11084_v53, 16  ;;  %9545 = vmatmul.mubr.msk.bf16.gmra.mxu0 %vm1038_vm5, %v8730_v55 }
 0x14e   : > { %v1953_v58 = vor.u32 %v1952_v36, %v1949_v1  ;;  %v14879_v21 = vshrl.u32 %v11084_v53, 16  ;;  %v1962_v2 = vrot.slane %v1960_v60, 4  ;;  %v15106_v17 = vshrl.u32 %v10937_v30, 16  ;;  %9548 = vmatprep.mubr.msk.bf16.mxu0 %vm1038_vm5, %v8731_v59 }
 0x14f   : > { %v1973_v19 = vrot.slane %v1971_v40, 4  ;;  %v1976_v37 = vrot.slane %v1974_v46, 5  ;;  %v891_v13 = vsel %vm10407_vm11, %v882_v50, %v890_v42  ;;  %v1982_v11 = vrot.slane %v14876_v54, 5  ;;  %9495 = vmatmul.mubr.msk.bf16.gmra.mxu1 %vm1038_vm5, %v8673_v26  ;;  %v15108_v54 = vld [vmem:[#allocation29_spill] sm:$0xff] }
 0x150   : > { %v904_v33 = vrot.slane %v15106_v17, 6  ;;  %v1954_v28 = vrot.slane %v1953_v58, 4  ;;  %v1986_v55 = vrot.slane %v14879_v21, 4  ;;  %v8674_v14 = vcombine.low %v881_v44, %v891_v13 }
 0x151   : > { %v1963_v9 = vor.u32 %v1962_v2, %v1958_v35  ;;  %v1977_v1 = vor.u32 %v1976_v37, %v1973_v19  ;;  %v15107_v36 = vshll.u32 %v10937_v30, 16  ;;  %v912_v46 = vshrl.u32 %v10953_v25, 16 }
 0x152   : > { %v1959_v59 = vsel %vm10525_vm14, %v1954_v28, %v1958_v35  ;;  %v1987_v50 = vor.u32 %v1986_v55, %v1982_v11  ;;  %v915_v42 = vshll.u32 %v10953_v25, 16  ;;  %9498 = vmatprep.mubr.msk.bf16.mxu1 %vm1038_vm5, %v8674_v14  ;;  %v1995_v2 = vshrl.u32 %v1820_v22, 16  ;;  %v15109_v25 = vld [vmem:[#allocation35_spill] sm:$0xff] }
 0x153   : > { %v907_v40 = vrot.slane %v15107_v36, 7  ;;  %v1964_v58 = vrot.slane %v1963_v9, 4  ;;  %v1978_v17 = vrot.slane %v1977_v1, 4  ;;  %v914_v37 = vrot.slane %v912_v46, 6  ;;  %v11111_v36 = vld [vmem:[#allocation2 + $0x78] sm:$0xf] }
 0x154   : > { %v1988_v19 = vrot.slane %v1987_v50, 4  ;;  %v917_v13 = vrot.slane %v915_v42, 7  ;;  %v1998_v26 = vshll.u32 %v1820_v22, 16  ;;  %v15110_v1 = vld [vmem:[#allocation30_spill] sm:$0xff]  ;;  %v1997_v50 = vrot.slane %v1995_v2, 4 }
 0x155   : > { %v908_v44 = vor.u32 %v907_v40, %v904_v33  ;;  %v1969_v35 = vsel %vm10525_vm14, %v1964_v58, %v15108_v54  ;;  %v1983_v28 = vsel %vm10525_vm14, %v1978_v17, %v1982_v11  ;;  %v11121_v33 = vld [vmem:[#allocation2 + $0x34] sm:$0xe]  ;;  %v14877_v54 = vshll.u32 %v11111_v36, 16 }
 0x156   : > { %v8732_v9 = vcombine.low %v1959_v59, %v1969_v35  ;;  %v1993_v40 = vsel %vm10525_vm14, %v1988_v19, %v15110_v1  ;;  %v918_v22 = vor.u32 %v917_v13, %v914_v37  ;;  %v2000_v42 = vrot.slane %v1998_v26, 5  ;;  %v11135_v19 = vld [vmem:[#allocation2 + $0x44] sm:$0xe] }
 0x157   : > { %v909_v55 = vsel %vm10407_vm11, %v15109_v25, %v908_v44  ;;  %v910_v14 = vrot.slane %v908_v44, 4  ;;  %v8733_v46 = vcombine.low %v1983_v28, %v1993_v40  ;;  %v14878_v11 = vshrl.u32 %v11111_v36, 16 }
 0x158   : > { %9549 = vmatmul.mubr.msk.bf16.gmra.mxu0 %vm1038_vm5, %v8732_v9  ;;  %v2522_v17 = vshrl.u32 %v11121_v33, 16  ;;  %v2525_v44 = vshll.u32 %v11121_v33, 16  ;;  %v2001_v37 = vor.u32 %v2000_v42, %v1997_v50  ;;  %v2006_v13 = vrot.slane %v14877_v54, 5  ;;  %v15114_v42 = vld [vmem:[#allocation5_spill] sm:$0xff] }
 0x159   : > { %v919_v58 = vsel %vm10407_vm11, %v910_v14, %v918_v22  ;;  %9552 = vmatprep.mubr.msk.bf16.mxu0 %vm1038_vm5, %v8733_v46  ;;  %v2010_v26 = vrot.slane %v14878_v11, 4  ;;  %v15111_v25 = vshrl.u32 %v10999_v8, 16  ;;  %v15112_v9 = vshll.u32 %v10999_v8, 16  ;;  %v15113_v46 = vld [vmem:[#allocation3_spill] sm:$0xff] }
 0x15a   : > { %v8675_v2 = vcombine.low %v909_v55, %v919_v58  ;;  %v2524_v35 = vrot.slane %v2522_v17, 5  ;;  %v2527_v28 = vrot.slane %v2525_v44, 6  ;;  %v2002_v40 = vrot.slane %v2001_v37, 4  ;;  %v11159_v37 = vld [vmem:[#allocation2 + $0x54] sm:$0xe] }
 0x15b   : > { %v2530_v14 = vrot.slane %v15111_v25, 5  ;;  %v2531_v1 = vrot.slane %v15112_v9, 6  ;;  %v2011_v22 = vor.u32 %v2010_v26, %v2006_v13  ;;  %v2545_v55 = vshrl.u32 %v11135_v19, 16 }
 0x15c   : > { %9499 = vmatmul.mubr.msk.bf16.gmra.mxu1 %vm1038_vm5, %v8675_v2  ;;  %v2548_v50 = vshll.u32 %v11135_v19, 16  ;;  %v15115_v58 = vcombine.low %v15113_v46, %v15114_v42  ;;  %v2528_v17 = vor.u32 %v2527_v28, %v2524_v35  ;;  %v15116_v25 = vshrl.u32 %v11015_v61, 16  ;;  %v15119_v46 = vld [vmem:[#allocation34_spill] sm:$0xff] }
 0x15d   : > { %v11153_v44 = vor.u32 %v2531_v1, %v2530_v14  ;;  %v15117_v9 = vshll.u32 %v11015_v61, 16  ;;  %v2012_v26 = vrot.slane %v2011_v22, 4  ;;  %v2547_v54 = vrot.slane %v2545_v55, 5 }
 0x15e   : > { %9522 = vmatprep.mubr.msk.bf16.mxu1 %vm1038_vm5, %v15115_v58  ;;  %v2553_v59 = vrot.slane %v15116_v25, 5  ;;  %v2550_v11 = vrot.slane %v2548_v50, 6  ;;  %v15118_v21 = vshll.u32 %v10793_v12, 16  ;;  %v2007_v35 = vsel %vm10525_vm14, %v2002_v40, %v2006_v13  ;;  %v10038_v58 = vld [vmem:[#allocation2 + $0x30] sm:$0x8] }
 0x15f   : > { %v2554_v2 = vrot.slane %v15117_v9, 6  ;;  %v2529_v28 = vrot.slane %v2528_v17, 4  ;;  %v2534_v14 = vrot.slane %v11153_v44, 4  ;;  %v2017_v42 = vsel %vm10525_vm14, %v2012_v26, %v15119_v46  ;;  %v11197_v46 = vld [vmem:[#allocation2 + $0x74] sm:$0xe] }
 0x160   : > { %v11163_v56 = vrot.slane %v15118_v21, 7  ;;  %v2568_v12 = vshrl.u32 %v11159_v37, 16  ;;  %v11176_v21 = vld [vmem:[#allocation2 + $0x64] sm:$0xe]  ;;  %v8734_v50 = vcombine.low %v2007_v35, %v2017_v42  ;;  %v2551_v13 = vor.u32 %v2550_v11, %v2547_v54  ;;  %v15122_v42 = vld [vmem:[#allocation6_spill] sm:$0xff] }
 0x161   : > { %v2555_v22 = vor.u32 %v2554_v2, %v2553_v59  ;;  %v3514_v17 = vshrl.u32 %v10038_v58, 16  ;;  %v2533_v25 = vsel %vm10646_vm1, %v2529_v28, %v11153_v44  ;;  %v2571_v59 = vshll.u32 %v11159_v37, 16  ;;  %v15125_v58 = vld [vmem:[#allocation36_spill] sm:$0xff] }
 0x162   : > { %v2570_v9 = vrot.slane %v2568_v12, 5  ;;  %9553 = vmatmul.mubr.msk.bf16.gmra.mxu0 %vm1038_vm5, %v8734_v50  ;;  %v15120_v54 = vor.u32 %v10599_v4, %v10595_v20  ;;  %v2576_v26 = vrot.slane %v1960_v60, 5  ;;  %v15121_v35 = vshll.u32 %v11067_v3, 16 }
 0x163   : > { %v2591_v28 = vshrl.u32 %v11176_v21, 16  ;;  %v15123_v12 = vcombine.low %v10286_v41, %v15122_v42  ;;  %9576 = vmatprep.mubr.msk.bf16.mxu0 %vm1038_vm5, %v10702_v52  ;;  %v2557_v20 = vrot.slane %v2555_v22, 4  ;;  %v2573_v4 = vrot.slane %v2571_v59, 6 }
 0x164   : > { %v2543_v11 = vsel %vm10646_vm1, %v2534_v14, %v15120_v54  ;;  %v2577_v44 = vrot.slane %v15121_v35, 6  ;;  %v2594_v14 = vshll.u32 %v11176_v21, 16  ;;  %v15124_v60 = vshrl.u32 %v11084_v53, 16 }
 0x165   : > { %9523 = vmatmul.mubr.msk.bf16.vlgmr.msra.gmra.mxu1 %vm1038_vm5, %v15123_v12  ;;  %v15126_v54 = vcombine.low %v10348_v32, %v10363_v51  ;;  %v2552_v41 = vrot.slane %v2551_v13, 4  ;;  %v2593_v42 = vrot.slane %v2591_v28, 5  ;;  %v15127_v12 = vshll.u32 %v11084_v53, 16  ;;  %v11225_v28 = vld [vmem:[#allocation2 + $0x38] sm:$0x7] }
 0x166   : > { %v2599_v50 = vrot.slane %v15124_v60, 5  ;;  %9557 = vmatpush3.bf16.msra.mxu1 %v15125_v58  ;;  %v2578_v35 = vor.u32 %v2577_v44, %v2576_v26  ;;  %v2574_v2 = vor.u32 %v2573_v4, %v2570_v9  ;;  %v2596_v59 = vrot.slane %v2594_v14, 6  ;;  %v11220_v58 = vld [vmem:[#allocation2 + $0x34] sm:$0xf] }
 0x167   : > { %9526 = vmatprep.mubr.msk.bf16.mxu1 %vm1038_vm5, %v15126_v54  ;;  %v2600_v52 = vrot.slane %v15127_v12, 6  ;;  %v2614_v60 = vshrl.u32 %v11197_v46, 16  ;;  %9941 = vmatprep.subr.msk.bf16.mxu1 %vm1063_vm3, %v10713_v15  ;;  %v2617_v13 = vshll.u32 %v11197_v46, 16  ;;  %v15128_v26 = vshrl.u32 %v11111_v36, 16 }
 0x168   : > { %v2580_v32 = vrot.slane %v2578_v35, 4  ;;  %v15129_v9 = vor.u32 %v10640_v29, %v10638_v57  ;;  %v2597_v14 = vor.u32 %v2596_v59, %v2593_v42  ;;  %v15130_v15 = vshll.u32 %v11111_v36, 16 }
 0x169   : > { %v2601_v51 = vor.u32 %v2600_v52, %v2599_v50  ;;  %v2622_v44 = vrot.slane %v15128_v26, 5  ;;  %v2616_v54 = vrot.slane %v2614_v60, 5  ;;  %v2556_v50 = vsel %vm10646_vm1, %v2552_v41, %v2555_v22  ;;  %v11245_v41 = vld [vmem:[#allocation2 + $0x44] sm:$0xf]  ;;  %v15135_v60 = vld [vmem:[#allocation42_spill] sm:$0xff] }
 0x16a   : > { %v2566_v4 = vsel %vm10646_vm1, %v2557_v20, %v15129_v9  ;;  %v2623_v12 = vrot.slane %v15130_v15, 6  ;;  %v2619_v40 = vrot.slane %v2617_v13, 6  ;;  %v3265_v26 = vrot.slane %v11220_v58, 7  ;;  %9577 = vmatmul.mubr.msk.bf16.vlgmr.msra.gmra.mxu0 %vm1038_vm5, %v10704_v7  ;;  %v15139_v13 = vld [vmem:[#allocation31_spill] sm:$0xff] }
 0x16b   : > { %v2603_v52 = vrot.slane %v2601_v51, 4  ;;  %v2575_v55 = vrot.slane %v2574_v2, 4  ;;  %v15131_v1 = vor.u32 %v10672_v0, %v10664_v43  ;;  %v3268_v20 = vrot.slane %v11225_v28, 7  ;;  %v11250_v2 = vld [vmem:[%s14821_s3 + $0x28] sm:$0xf]  ;;  %9580 = vmatprep.mubr.msk.bf16.mxu0 %vm1038_vm5, %v10706_v39  ;;  %v15138_v39 = vld [vmem:[#allocation53_spill] sm:$0xff] }
 0x16c   : > { %v2624_v29 = vor.u32 %v2623_v12, %v2622_v44  ;;  %v8772_v42 = vcombine.low %v2533_v25, %v2543_v11  ;;  %v8773_v59 = vcombine.low %v2556_v50, %v2566_v4  ;;  %v2620_v22 = vor.u32 %v2619_v40, %v2616_v54  ;;  %9611 = vmatpush3.bf16.msra.mxu0 %v15138_v39  ;;  %v11289_v54 = vld [vmem:[#allocation2 + $0x54] sm:$0xf]  ;;  %v11325_v39 = vld [vmem:[#allocation2 + $0x68] sm:$0x7] }
 0x16d   : > { %v2589_v57 = vsel %vm10646_vm1, %v2580_v32, %v15131_v1  ;;  %v11252_v43 = vrot.slane %v3514_v17, 11  ;;  %v15133_v0 = vcombine.low %v10832_v62, %v10864_v16  ;;  %v2579_v7 = vsel %vm10646_vm1, %v2575_v55, %v2578_v35  ;;  %v15136_v62 = vld [vmem:[#allocation39_spill] sm:$0xff]  ;;  %9944 = vmatprep.subr.msk.bf16.mxu0 %vm1063_vm3, %v11250_v2 }
 0x16e   : > { %v2598_v1 = vrot.slane %v2597_v14, 4  ;;  %v2626_v40 = vrot.slane %v2624_v29, 4  ;;  %v3267_v25 = vrot.slane %v3265_v26, 4  ;;  %v15134_v11 = vcombine.low %v10820_v5, %v10855_v23  ;;  %v11281_v23 = vld [vmem:[#allocation2 + $0x48] sm:$0x7]  ;;  %v15142_v12 = vld [vmem:[#allocation43_spill] sm:$0xff] }
 0x16f   : > { %15132 = vst [vmem:[#allocation14_spill] sm:$0xff] %v11252_v43  ;;  %9527 = vmatmul.mubr.msk.bf16.gmra.mxu1 %vm1038_vm5, %v15133_v0  ;;  %v11266_v17 = vcombine.low %v2579_v7, %v2589_v57  ;;  %v15137_v16 = vor.u32 %v15135_v60, %v15136_v62  ;;  %v15140_v55 = vrot.slane %v15139_v13, 11  ;;  %v2242_v5 = vrot.slane %v10999_v8, 5  ;;  %v15141_v8 = vld [vmem:[#allocation44_spill] sm:$0xff]  ;;  %v11316_v62 = vld [vmem:[#allocation2 + $0x64] sm:$0xf] }
 0x170   : > { %9530 = vmatprep.mubr.msk.bf16.mxu1 %vm1038_vm5, %v15134_v11  ;;  %v2621_v44 = vrot.slane %v2620_v22, 4  ;;  %v11285_v9 = vsel %vm10296_vm4, %v3267_v25, %v3268_v20  ;;  %v2249_v4 = vrot.slane %v11015_v61, 5  ;;  %v3272_v14 = vrot.slane %v11245_v41, 7  ;;  %v11301_v61 = vld [vmem:[#allocation2 + $0x58] sm:$0x7] }
 0x171   : > { %v2612_v32 = vsel %vm10646_vm1, %v2603_v52, %v15137_v16  ;;  %v11278_v35 = vsel %vm10296_vm4, %v15140_v55, %v3265_v26  ;;  %v2602_v15 = vsel %vm10646_vm1, %v2598_v1, %v2601_v51  ;;  %v15143_v50 = vor.u32 %v15141_v8, %v15142_v12  ;;  %v15144_v1 = vld [vmem:[#allocation18_spill] sm:$0xff]  ;;  %v11327_v13 = vld [vmem:[#allocation2 + $0x74] sm:$0xf] }
 0x172   : > { %v8746_v26 = vrot.slane %v11121_v33, 9  ;;  %v2244_v57 = vrot.slane %v2242_v5, 4  ;;  %v8775_v20 = vcombine.low %v2602_v15, %v2612_v32  ;;  %v2625_v22 = vsel %vm10646_vm1, %v2621_v44, %v2624_v29  ;;  %15147 = vst [vmem:[#allocation13_spill] sm:$0xff] %v11327_v13  ;;  %9581 = vmatmul.mubr.msk.bf16.gmra.mxu0 %vm1038_vm5, %v8772_v42  ;;  %v15148_v44 = vld [vmem:[#allocation19_spill] sm:$0xff] }
 0x173   : > { %v2635_v52 = vsel %vm10646_vm1, %v2626_v40, %v15143_v50  ;;  %v8747_v0 = vrot.slane %v11135_v19, 9  ;;  %v2251_v7 = vrot.slane %v2249_v4, 4  ;;  %v15145_v25 = vrot.slane %v15144_v1, 5  ;;  %9584 = vmatprep.mubr.msk.bf16.mxu0 %vm1038_vm5, %v8773_v59 }
 0x174   : > { %v3275_v33 = vrot.slane %v11281_v23, 7  ;;  %v3279_v60 = vrot.slane %v11289_v54, 7  ;;  %v11318_v16 = vcombine.low %v2625_v22, %v2635_v52  ;;  %v11322_v19 = vsel %vm10742_vm9, %v8746_v26, %v2242_v5  ;;  %v15150_v5 = vld [vmem:[#allocation38_spill] sm:$0xff] }
 0x175   : > { %v11312_v40 = vsel %vm10742_vm9, %v2244_v57, %v15145_v25  ;;  %v3274_v29 = vrot.slane %v3272_v14, 4  ;;  %v3282_v32 = vrot.slane %v11301_v61, 7  ;;  %v11332_v55 = vsel %vm10742_vm9, %v8747_v0, %v2249_v4  ;;  %v11369_v0 = vld [vmem:[#allocation2 + $0x78] sm:$0x7] }
 0x176   : > { %v15149_v15 = vrot.slane %v15148_v44, 5  ;;  %v15151_v12 = vrot.slane %v15150_v5, 11  ;;  %v3281_v52 = vrot.slane %v3279_v60, 4  ;;  %v15152_v42 = vcombine.low %v10883_v34, %v10918_v47  ;;  %15154 = vst [vmem:[#allocation16_spill] sm:$0xff] %v11369_v0  ;;  %v15157_v5 = vld [vmem:[#allocation20_spill] sm:$0xff] }
 0x177   : > { %v11355_v26 = vsel %vm10296_vm4, %v3274_v29, %v3275_v33  ;;  %v2256_v57 = vrot.slane %v11067_v3, 5  ;;  %v15153_v22 = vcombine.low %v10888_v6, %v10929_v27  ;;  %v3286_v47 = vrot.slane %v11316_v62, 7  ;;  %v15163_v33 = vld [vmem:[#allocation41_spill] sm:$0xff] }
 0x178   : > { %v11338_v8 = vsel %vm10742_vm9, %v2251_v7, %v15149_v15  ;;  %v11344_v50 = vsel %vm10296_vm4, %v15151_v12, %v3272_v14  ;;  %9531 = vmatmul.mubr.msk.bf16.gmra.mxu1 %vm1038_vm5, %v15152_v42  ;;  %v2263_v14 = vrot.slane %v11084_v53, 5  ;;  %v11365_v34 = vsel %vm10296_vm4, %v3281_v52, %v3282_v32  ;;  %v15155_v53 = vld [vmem:[#allocation40_spill] sm:$0xff]  ;;  %v11393_v42 = vld [vmem:[#allocation2 + $0x84] sm:$0xf] }
 0x179   : > { %9534 = vmatprep.mubr.msk.bf16.mxu1 %vm1038_vm5, %v15153_v22  ;;  %v3289_v59 = vrot.slane %v11325_v39, 7  ;;  %v3293_v7 = vrot.slane %v11327_v13, 7  ;;  %v15156_v1 = vrot.slane %v15155_v53, 11  ;;  %v8748_v27 = vrot.slane %v11159_v37, 9  ;;  %15159 = vst [vmem:[#allocation12_spill] sm:$0xff] %v11393_v42 }
 0x17a   : > { %v2258_v25 = vrot.slane %v2256_v57, 4  ;;  %v8749_v29 = vrot.slane %v11176_v21, 9  ;;  %v2265_v32 = vrot.slane %v2263_v14, 4  ;;  %v3288_v44 = vrot.slane %v3286_v47, 4  ;;  %v15160_v21 = vld [vmem:[#allocation21_spill] sm:$0xff]  ;;  %9585 = vmatmul.mubr.msk.bf16.gmra.mxu0 %vm1038_vm5, %v11266_v17 }
 0x17b   : > { %v11378_v6 = vsel %vm10296_vm4, %v15156_v1, %v3279_v60  ;;  %v15158_v12 = vrot.slane %v15157_v5, 5  ;;  %v3295_v60 = vrot.slane %v3293_v7, 4  ;;  %v3296_v37 = vrot.slane %v11369_v0, 7  ;;  %9588 = vmatprep.mubr.msk.bf16.mxu0 %vm1038_vm5, %v8775_v20 }
 0x17c   : > { %v11397_v22 = vsel %vm10742_vm9, %v8748_v27, %v2256_v57  ;;  %v15161_v53 = vrot.slane %v15160_v21, 5  ;;  %v11407_v5 = vsel %vm10296_vm4, %v3288_v44, %v3289_v59  ;;  %v11412_v15 = vsel %vm10742_vm9, %v8749_v29, %v2263_v14  ;;  %v15166_v21 = vld [vmem:[#allocation45_spill] sm:$0xff] }
 0x17d   : > { %v11390_v52 = vsel %vm10742_vm9, %v2258_v25, %v15158_v12  ;;  %15162 = vst [vmem:[#allocation9_spill] sm:$0xff] %v11407_v5  ;;  %v2270_v25 = vrot.slane %v11111_v36, 5  ;;  %v2803_v12 = vld [vmem:[#allocation2 + $0x10] sm:$0xc]  ;;  %v15164_v57 = vrot.slane %v15163_v33, 11  ;;  %v11428_v36 = vsel %vm10296_vm4, %v3295_v60, %v3296_v37  ;;  %v15183_v5 = vld [vmem:[#allocation49_spill] sm:$0xff] }
 0x17e   : > { %v11403_v1 = vsel %vm10742_vm9, %v2265_v32, %v15161_v53  ;;  %v15167_v32 = vrot.slane %v15166_v21, 11  ;;  %15169 = vst [vmem:[#allocation10_spill] sm:$0xff] %v11428_v36  ;;  %v8750_v59 = vrot.slane %v11197_v46, 9  ;;  %v11437_v33 = vld [vmem:[#allocation2 + $0x88] sm:$0x7]  ;;  %v15171_v29 = vcombine.low %v10937_v30, %v10966_v10 }
 0x17f   : > { %v11418_v27 = vsel %vm10296_vm4, %v15164_v57, %v3286_v47  ;;  %15170 = vst [vmem:[#allocation23_spill] sm:$0xff] %v11437_v33  ;;  %v2828_v60 = vshrl.u32 %v2803_v12, 16  ;;  %v2831_v37 = vshll.u32 %v2803_v12, 16  ;;  %v15172_v46 = vld [vmem:[#allocation50_spill] sm:$0xff]  ;;  %v15173_v57 = vld [vmem:[#allocation52_spill] sm:$0xff]  ;;  %v2272_v47 = vrot.slane %v2270_v25, 4 }
 0x180   : > { %15165 = vst [vmem:[#allocation15_spill] sm:$0xff] %v11418_v27  ;;  %v11424_v53 = vsel %vm10296_vm4, %v15167_v32, %v3293_v7  ;;  %v3300_v7 = vrot.slane %v11393_v42, 7  ;;  %9535 = vmatmul.mubr.msk.bf16.gmra.mxu1 %vm1038_vm5, %v15171_v29  ;;  %v15174_v21 = vcombine.low %v15172_v46, %v15173_v57  ;;  %v11455_v20 = vsel %vm10742_vm9, %v8750_v59, %v2270_v25  ;;  %v11457_v30 = vld [vmem:[#allocation2 + $0x14] sm:$0xf]  ;;  %v10040_v29 = vld [vmem:[#allocation2 + $0x18] sm:$0x7] }
 0x181   : > { %15168 = vst [vmem:[#allocation24_spill] sm:$0xff] %v11424_v53  ;;  %v14892_v10 = vshrl.u32 %v11457_v30, 16  ;;  %v14894_v32 = vshll.u32 %v11457_v30, 16  ;;  %v2847_v17 = vshrl.u32 %v10040_v29, 16  ;;  %v2806_v44 = vld [vmem:[#allocation2 + $0x20] sm:$0xc] }
 0x182   : > { %9558 = vmatprep.mubr.msk.bf16.mxu1 %vm1038_vm5, %v15174_v21  ;;  %v3303_v12 = vrot.slane %v11437_v33, 7  ;;  %v2830_v14 = vrot.slane %v2828_v60, 6  ;;  %v2833_v46 = vrot.slane %v2831_v37, 7  ;;  %v15175_v57 = vld [vmem:[#allocation46_spill] sm:$0xff]  ;;  %v2850_v63 = vshll.u32 %v10040_v29, 16  ;;  %9589 = vmatmul.mubr.msk.bf16.gmra.mxu0 %vm1038_vm5, %v11318_v16  ;;  %v15177_v29 = vld [vmem:[#allocation51_spill] sm:$0xff] }
 0x183   : > { %v15176_v21 = vrot.slane %v15175_v57, 11  ;;  %v2839_v3 = vrot.slane %v14892_v10, 6  ;;  %v2842_v4 = vrot.slane %v14894_v32, 7  ;;  %v2849_v51 = vrot.slane %v2847_v17, 6  ;;  %v11472_v60 = vld [vmem:[#allocation2 + $0x24] sm:$0xf] }
 0x184   : > { %v2834_v38 = vor.u32 %v2833_v46, %v2830_v14  ;;  %v2856_v25 = vshrl.u32 %v2806_v44, 16  ;;  %v2859_v43 = vshll.u32 %v2806_v44, 16  ;;  %v14897_v37 = vshrl.u32 %v11472_v60, 16  ;;  %v15181_v46 = vld [vmem:[#allocation56_spill] sm:$0xff] }
 0x185   : > { %v11466_v59 = vsel %vm10296_vm4, %v15176_v21, %v3300_v7  ;;  %v2843_v24 = vor.u32 %v2842_v4, %v2839_v3  ;;  %v14901_v57 = vshll.u32 %v11472_v60, 16  ;;  %v10042_v21 = vld [vmem:[#allocation2 + $0x28] sm:$0x7]  ;;  %v3302_v42 = vrot.slane %v3300_v7, 4  ;;  %v8835_v4 = vld [vmem:[%s14821_s3 + $0x24] sm:$0xf] }
 0x186   : > { %v2875_v33 = vshrl.u32 %v10042_v21, 16  ;;  %v2852_v0 = vrot.slane %v2850_v63, 7  ;;  %v2858_v10 = vrot.slane %v2856_v25, 6  ;;  %v2861_v36 = vrot.slane %v2859_v43, 7  ;;  %v15178_v7 = vld [vmem:[#allocation54_spill] sm:$0xff]  ;;  %v15180_v43 = vld [vmem:[#allocation55_spill] sm:$0xff] }
 0x187   : > { %v2835_v14 = vrot.slane %v2834_v38, 4  ;;  %v2845_v17 = vrot.slane %v2843_v24, 4  ;;  %v2867_v3 = vrot.slane %v14897_v37, 6  ;;  %v2870_v44 = vrot.slane %v14901_v57, 7  ;;  %v15184_v37 = vld [vmem:[#allocation59_spill] sm:$0xff]  ;;  %v15185_v27 = vld [vmem:[#allocation60_spill] sm:$0xff] }
 0x188   : > { %v15179_v63 = vcombine.low %v15177_v29, %v15178_v7  ;;  %v15182_v16 = vcombine.low %v15180_v43, %v15181_v46  ;;  %v2853_v38 = vor.u32 %v2852_v0, %v2849_v51  ;;  %v2862_v25 = vor.u32 %v2861_v36, %v2858_v10  ;;  %v15187_v57 = vld [vmem:[#allocation22_spill] sm:$0xff] }
 0x189   : > { %v2877_v32 = vrot.slane %v2875_v33, 6  ;;  %v2878_v53 = vshll.u32 %v10042_v21, 16  ;;  %v15186_v13 = vcombine.low %v15184_v37, %v15185_v27  ;;  %v15188_v29 = vrot.slane %v15187_v57, 5 }
 0x18a   : > { %9559 = vmatmul.mubr.msk.bf16.vlgmr.msra.gmra.mxu1 %vm1038_vm5, %v15179_v63  ;;  %9612 = vmatprep.mubr.msk.bf16.mxu0 %vm1038_vm5, %v15182_v16  ;;  %v2871_v63 = vor.u32 %v2870_v44, %v2867_v3  ;;  %v14909_v43 = vshrl.u32 %v11220_v58, 16  ;;  %v14904_v51 = vshll.u32 %v11220_v58, 16  ;;  %v11508_v0 = vsel %vm10296_vm4, %v3302_v42, %v3303_v12  ;;  %v11528_v44 = vld [vmem:[#allocation2 + $0x28] sm:$0xf]  ;;  %v15189_v16 = vld [vmem:[#allocation57_spill] sm:$0xff] }
 0x18b   : > { %9593 = vmatpush3.bf16.msra.mxu1 %v15183_v5  ;;  %9562 = vmatprep.mubr.msk.bf16.mxu1 %vm1038_vm5, %v15186_v13  ;;  %v11502_v7 = vsel %vm10742_vm9, %v2272_v47, %v15188_v29  ;;  %v2863_v5 = vrot.slane %v2862_v25, 4  ;;  %v2880_v27 = vrot.slane %v2878_v53, 7  ;;  %v2903_v13 = vshrl.u32 %v11225_v28, 16  ;;  %v11521_v53 = vld [vmem:[#allocation2 + $0x18] sm:$0xf] }
 0x18c   : > { %9943 = vmatprep.subr.msk.bf16.mxu1 %vm1063_vm3, %v8835_v4  ;;  %v2844_v36 = vsel %vm10407_vm11, %v2835_v14, %v2843_v24  ;;  %v2873_v47 = vrot.slane %v2871_v63, 4  ;;  %v2895_v33 = vrot.slane %v14909_v43, 6  ;;  %v2898_v10 = vrot.slane %v14904_v51, 7  ;;  %v15208_v43 = vld [vmem:[#allocation10_spill] sm:$0xff] }
 0x18d   : > { %v2854_v42 = vsel %vm10407_vm11, %v2845_v17, %v2853_v38  ;;  %v2881_v12 = vor.u32 %v2880_v27, %v2877_v32  ;;  %v2905_v37 = vrot.slane %v2903_v13, 6  ;;  %v2906_v57 = vshll.u32 %v11225_v28, 16  ;;  %v15190_v38 = vld [vmem:[#allocation58_spill] sm:$0xff] }
 0x18e   : > { %v8759_v21 = vcombine.low %v11455_v20, %v11502_v7  ;;  %v2872_v24 = vsel %vm10407_vm11, %v2863_v5, %v2871_v63  ;;  %v2899_v14 = vor.u32 %v2898_v10, %v2895_v33  ;;  %v3489_v3 = vshrl.u32 %v11521_v53, 16 }
 0x18f   : > { %v2882_v17 = vsel %vm10407_vm11, %v2873_v47, %v2881_v12  ;;  %v2908_v32 = vrot.slane %v2906_v57, 7  ;;  %v3840_v28 = vsel %vm1063_vm3, %v11250_v2, 0  ;;  %v3506_v46 = vshrl.u32 %v11528_v44, 16  ;;  %v11551_v2 = vld [vmem:[%s14821_s3 + $0x30] sm:$0xf] }
 0x190   : > { %v15191_v25 = vcombine.low %v15189_v16, %v15190_v38  ;;  %v8818_v29 = vcombine.low %v11466_v59, %v11508_v0  ;;  %v11541_v63 = vcombine.low %v2844_v36, %v2854_v42  ;;  %v11544_v5 = vsel %vm1063_vm3, %v8835_v4, 0  ;;  %v15194_v47 = vld [vmem:[#allocation47_spill] sm:$0xff]  ;;  %v11567_v12 = vld [vmem:[#allocation2 + $0x38] sm:$0xf]  ;;  %v11582_v16 = vld [vmem:[#allocation2 + $0x48] sm:$0xf] }
 0x191   : > { %v8853_v27 = vcombine.low %v11457_v30, %v11521_v53  ;;  %v15192_v13 = vcombine.low %v11278_v35, %v11285_v9  ;;  %v15193_v36 = vcombine.low %v11322_v19, %v11312_v40  ;;  %v11561_v4 = vcombine.low %v2872_v24, %v2882_v17 }
 0x192   : > { %9613 = vmatmul.mubr.msk.bf16.vlgmr.msra.gmra.mxu0 %vm1038_vm5, %v15191_v25  ;;  %v2900_v33 = vsel %vm10407_vm11, %v15194_v47, %v2899_v14  ;;  %v2909_v10 = vor.u32 %v2908_v32, %v2905_v37  ;;  %v3492_v42 = vshll.u32 %v11521_v53, 16  ;;  %v15195_v35 = vcombine.low %v11332_v55, %v11338_v8 }
 0x193   : > { %9616 = vmatprep.mubr.msk.bf16.mxu0 %vm1038_vm5, %v15192_v13  ;;  %9563 = vmatmul.mubr.msk.bf16.gmra.mxu1 %vm1038_vm5, %v15193_v36  ;;  %v2901_v9 = vrot.slane %v2899_v14, 4  ;;  %v11573_v40 = vrot.slane %v3489_v3, 7  ;;  %v11575_v19 = vrot.slane %v3506_v46, 7  ;;  %v14903_v57 = vshrl.u32 %v11245_v41, 16 }
 0x194   : > { %9566 = vmatprep.mubr.msk.bf16.mxu1 %vm1038_vm5, %v15195_v35  ;;  %9647 = vmatpush3.bf16.msra.mxu0 %v3840_v28  ;;  %v3509_v24 = vshll.u32 %v11528_v44, 16  ;;  %v14902_v37 = vshll.u32 %v11245_v41, 16  ;;  %v2931_v17 = vshrl.u32 %v11281_v23, 16  ;;  %v2934_v32 = vshll.u32 %v11281_v23, 16 }
 0x195   : > { %9946 = vmatprep.subr.msk.bf16.mxu0 %vm1063_vm3, %v11551_v2  ;;  %v2910_v55 = vsel %vm10407_vm11, %v2901_v9, %v2909_v10  ;;  %v8854_v8 = vcombine.low %v11472_v60, %v11528_v44  ;;  %v3523_v14 = vshrl.u32 %v11567_v12, 16  ;;  %v2923_v3 = vrot.slane %v14903_v57, 6  ;;  %v11613_v10 = vld [vmem:[#allocation2 + $0x58] sm:$0xf] }
 0x196   : > { %v2926_v28 = vrot.slane %v14902_v37, 7  ;;  %v2933_v23 = vrot.slane %v2931_v17, 6  ;;  %v2936_v46 = vrot.slane %v2934_v32, 7  ;;  %v14907_v38 = vshrl.u32 %v11289_v54, 16 }
 0x197   : > { %v14906_v25 = vshll.u32 %v11289_v54, 16  ;;  %v2959_v13 = vshrl.u32 %v11301_v61, 16  ;;  %v2962_v36 = vshll.u32 %v11301_v61, 16  ;;  %v3540_v47 = vshrl.u32 %v11582_v16, 16 }
 0x198   : > { %v11603_v9 = vor.u32 %v2926_v28, %v2923_v3  ;;  %v2951_v17 = vrot.slane %v14907_v38, 6  ;;  %v15196_v32 = vcombine.low %v11344_v50, %v11355_v26  ;;  %v2937_v37 = vor.u32 %v2936_v46, %v2933_v23 }
 0x199   : > { %v2954_v61 = vrot.slane %v14906_v25, 7  ;;  %v2961_v57 = vrot.slane %v2959_v13, 6  ;;  %v2964_v51 = vrot.slane %v2962_v36, 7  ;;  %v15197_v3 = vcombine.low %v11378_v6, %v11365_v34  ;;  %v15201_v6 = vld [vmem:[#allocation61_spill] sm:$0xff] }
 0x19a   : > { %9617 = vmatmul.mubr.msk.bf16.gmra.mxu0 %vm1038_vm5, %v15196_v32  ;;  %v15198_v28 = vcombine.low %v11397_v22, %v11390_v52  ;;  %v11623_v50 = vcombine.low %v2900_v33, %v2910_v55  ;;  %v11625_v26 = vrot.slane %v3523_v14, 7  ;;  %v15199_v23 = vor.u32 %v10837_v18, %v10835_v48  ;;  %v2821_v14 = vld [vmem:[#allocation2 + $0x70] sm:$0xc]  ;;  %v15205_v13 = vld [vmem:[#allocation9_spill] sm:$0xff] }
 0x19b   : > { %9620 = vmatprep.mubr.msk.bf16.mxu0 %vm1038_vm5, %v15197_v3  ;;  %v15200_v34 = vcombine.low %v11412_v15, %v11403_v1  ;;  %v2928_v52 = vsel %vm10407_vm11, %v15201_v6, %v11603_v9  ;;  %v2929_v22 = vrot.slane %v11603_v9, 4  ;;  %v2955_v33 = vor.u32 %v2954_v61, %v2951_v17 }
 0x19c   : > { %9567 = vmatmul.mubr.msk.bf16.gmra.mxu1 %vm1038_vm5, %v15198_v28  ;;  %v2947_v46 = vrot.slane %v15199_v23, 4  ;;  %v11640_v55 = vrot.slane %v3540_v47, 7  ;;  %v2965_v18 = vor.u32 %v2964_v51, %v2961_v57  ;;  %v3557_v36 = vshrl.u32 %v11613_v10, 16 }
 0x19d   : > { %9570 = vmatprep.mubr.msk.bf16.mxu1 %vm1038_vm5, %v15200_v34  ;;  %v14905_v15 = vshrl.u32 %v11316_v62, 16  ;;  %v2938_v1 = vsel %vm10407_vm11, %v2929_v22, %v2937_v37  ;;  %v2957_v32 = vrot.slane %v2955_v33, 4  ;;  %v14908_v9 = vshll.u32 %v11316_v62, 16  ;;  %v15203_v34 = vld [vmem:[#allocation13_spill] sm:$0xff]  ;;  %v11660_v22 = vld [vmem:[#allocation2 + $0x68] sm:$0xf] }
 0x19e   : > { %v2987_v51 = vshrl.u32 %v11325_v39, 16  ;;  %v2990_v57 = vshll.u32 %v11325_v39, 16  ;;  %v2996_v17 = vshrl.u32 %v2821_v14, 16  ;;  %v15202_v61 = vor.u32 %v11163_v56, %v10839_v31  ;;  %v15204_v39 = vld [vmem:[#allocation15_spill] sm:$0xff] }
 0x19f   : > { %v2979_v47 = vrot.slane %v14905_v15, 6  ;;  %v2982_v37 = vrot.slane %v14908_v9, 7  ;;  %v2999_v23 = vshll.u32 %v2821_v14, 16  ;;  %v3005_v6 = vshrl.u32 %v15203_v34, 16  ;;  %v15207_v9 = vld [vmem:[#allocation24_spill] sm:$0xff] }
 0x1a0   : > { %v2975_v28 = vrot.slane %v15202_v61, 4  ;;  %v2966_v15 = vsel %vm10407_vm11, %v2957_v32, %v2965_v18  ;;  %v2989_v25 = vrot.slane %v2987_v51, 6  ;;  %v2992_v3 = vrot.slane %v2990_v57, 7  ;;  %v15210_v18 = vld [vmem:[#allocation16_spill] sm:$0xff]  ;;  %v2824_v51 = vld [vmem:[#allocation2 + $0x80] sm:$0xc] }
 0x1a1   : > { %v2998_v38 = vrot.slane %v2996_v17, 6  ;;  %v15206_v48 = vcombine.low %v15204_v39, %v15205_v13  ;;  %v2983_v31 = vor.u32 %v2982_v37, %v2979_v47  ;;  %v3001_v56 = vrot.slane %v2999_v23, 7 }
 0x1a2   : > { %v3007_v14 = vrot.slane %v3005_v6, 6  ;;  %v3008_v61 = vshll.u32 %v15203_v34, 16  ;;  %v15209_v35 = vcombine.low %v15207_v9, %v15208_v43  ;;  %v2993_v13 = vor.u32 %v2992_v3, %v2989_v25 }
 0x1a3   : > { %9621 = vmatmul.mubr.msk.bf16.gmra.mxu0 %vm1038_vm5, %v15206_v48  ;;  %v3015_v48 = vshrl.u32 %v15210_v18, 16  ;;  %v3018_v32 = vshll.u32 %v15210_v18, 16  ;;  %v3574_v47 = vshrl.u32 %v11660_v22, 16  ;;  %v8857_v43 = vcombine.low %v11289_v54, %v11613_v10 }
 0x1a4   : > { %9624 = vmatprep.mubr.msk.bf16.mxu0 %vm1038_vm5, %v15209_v35  ;;  %9571 = vmatmul.mubr.msk.bf16.gmra.mxu1 %vm1038_vm5, %v8759_v21  ;;  %v2985_v9 = vrot.slane %v2983_v31, 4  ;;  %v3002_v35 = vor.u32 %v3001_v56, %v2998_v38  ;;  %v3010_v20 = vrot.slane %v3008_v61, 7  ;;  %v2956_v7 = vsel %vm10407_vm11, %v2947_v46, %v2955_v33  ;;  %v11698_v38 = vld [vmem:[#allocation2 + $0x78] sm:$0xf] }
 0x1a5   : > { %9594 = vmatprep.mubr.msk.bf16.mxu1 %vm1038_vm5, %v11541_v63  ;;  %v11690_v21 = vrot.slane %v3557_v36, 7  ;;  %v3017_v25 = vrot.slane %v3015_v48, 6  ;;  %v3020_v3 = vrot.slane %v3018_v32, 7  ;;  %v11692_v57 = vcombine.low %v2928_v52, %v2938_v1 }
 0x1a6   : > { %v11694_v17 = vcombine.low %v2956_v7, %v2966_v15  ;;  %v2994_v63 = vsel %vm10407_vm11, %v2985_v9, %v2993_v13  ;;  %v3011_v37 = vor.u32 %v3010_v20, %v3007_v14  ;;  %v2984_v23 = vsel %vm10407_vm11, %v2975_v28, %v2983_v31  ;;  %v15211_v13 = vld [vmem:[#allocation12_spill] sm:$0xff]  ;;  %v11712_v28 = vld [vmem:[#allocation2 + $0x88] sm:$0xf]  ;;  %v11723_v20 = vld [vmem:[%s14821_s3 + $0x2c] sm:$0xf] }
 0x1a7   : > { %v3003_v39 = vrot.slane %v3002_v35, 4  ;;  %v11702_v46 = vrot.slane %v3574_v47, 7  ;;  %v3577_v33 = vshll.u32 %v11660_v22, 16  ;;  %v11705_v36 = vcombine.low %v2984_v23, %v2994_v63  ;;  %v15212_v47 = vld [vmem:[#allocation23_spill] sm:$0xff] }
 0x1a8   : > { %v3021_v52 = vor.u32 %v3020_v3, %v3017_v25  ;;  %v8858_v15 = vcombine.low %v11316_v62, %v11660_v22  ;;  %v3024_v1 = vshrl.u32 %v2824_v51, 16  ;;  %v3591_v56 = vshrl.u32 %v11698_v38, 16 }
 0x1a9   : > { %v3027_v14 = vshll.u32 %v2824_v51, 16  ;;  %v14911_v18 = vshrl.u32 %v15211_v13, 16  ;;  %v14910_v48 = vshll.u32 %v15211_v13, 16  ;;  %v3013_v31 = vrot.slane %v3011_v37, 4 }
 0x1aa   : > { %v3026_v32 = vrot.slane %v3024_v1, 6  ;;  %v3043_v9 = vshrl.u32 %v15212_v47, 16  ;;  %v3046_v35 = vshll.u32 %v15212_v47, 16  ;;  %v3594_v59 = vshll.u32 %v11698_v38, 16  ;;  %v10043_v1 = vld [vmem:[#allocation2 + $0x10] sm:$0x8] }
 0x1ab   : > { %9625 = vmatmul.mubr.msk.bf16.gmra.mxu0 %vm1038_vm5, %v8818_v29  ;;  %v3029_v0 = vrot.slane %v3027_v14, 7  ;;  %v3035_v29 = vrot.slane %v14911_v18, 6  ;;  %v3038_v7 = vrot.slane %v14910_v48, 7  ;;  %v3608_v23 = vshrl.u32 %v11712_v28, 16 }
 0x1ac   : > { %9595 = vmatmul.mubr.msk.bf16.vlgmr.msra.gmra.mxu1 %vm1038_vm5, %v11561_v4  ;;  %9648 = vmatprep.mubr.msk.bf16.mxu0 %vm1038_vm5, %v8853_v27  ;;  %v3012_v4 = vsel %vm10407_vm11, %v3003_v39, %v3011_v37  ;;  %v3022_v27 = vsel %vm10407_vm11, %v3013_v31, %v3021_v52  ;;  %v3045_v25 = vrot.slane %v3043_v9, 6  ;;  %v3048_v3 = vrot.slane %v3046_v35, 7  ;;  %v10044_v9 = vld [vmem:[#allocation2 + $0x20] sm:$0x8] }
 0x1ad   : > { %9629 = vmatpush3.bf16.msra.mxu1 %v11544_v5  ;;  %9598 = vmatprep.mubr.msk.bf16.mxu1 %vm1038_vm5, %v11623_v50  ;;  %v3030_v51 = vor.u32 %v3029_v0, %v3026_v32  ;;  %v3039_v63 = vor.u32 %v3038_v7, %v3035_v29  ;;  %v3480_v14 = vshrl.u32 %v10043_v1, 16  ;;  %v11746_v5 = vrot.slane %v3591_v56, 7 }
 0x1ae   : > { %9945 = vmatprep.subr.msk.bf16.mxu1 %vm1063_vm3, %v11723_v20  ;;  %v8859_v50 = vcombine.low %v15203_v34, %v11698_v38  ;;  %v3049_v37 = vor.u32 %v3048_v3, %v3045_v25  ;;  %v15213_v39 = vshrl.u32 %v11457_v30, 16  ;;  %v11752_v31 = vcombine.low %v3012_v4, %v3022_v27  ;;  %v11761_v3 = vld [vmem:[#allocation2 + $0x18] sm:$0xf] }
 0x1af   : > { %v8827_v32 = vrot.slane %v3480_v14, 11  ;;  %v3494_v47 = vor.u32 %v3492_v42, %v11573_v40  ;;  %v3497_v35 = vshrl.u32 %v10044_v9, 16  ;;  %v3041_v0 = vrot.slane %v3039_v63, 4  ;;  %v4337_v42 = vld [vmem:[#allocation2 + $0x14] sm:$0xe] }
 0x1b0   : > { %v3484_v52 = vrot.slane %v15213_v39, 7  ;;  %v15214_v56 = vshll.u32 %v11457_v30, 16  ;;  %v15215_v1 = vshrl.u32 %v11472_v60, 16  ;;  %v3031_v39 = vrot.slane %v3030_v51, 4 }
 0x1b1   : > { %v11763_v4 = vrot.slane %v3608_v23, 7  ;;  %v3050_v30 = vsel %vm10407_vm11, %v3041_v0, %v3049_v37  ;;  %v8828_v40 = vrot.slane %v3497_v35, 11  ;;  %v15216_v14 = vshll.u32 %v11472_v60, 16 }
 0x1b2   : > { %v3485_v29 = vor.u32 %v3484_v52, %v15214_v56  ;;  %v3487_v7 = vrot.slane %v3484_v52, 4  ;;  %v3501_v25 = vrot.slane %v15215_v1, 7  ;;  %v3511_v23 = vor.u32 %v3509_v24, %v11575_v19  ;;  %v11779_v52 = vld [vmem:[#allocation2 + $0x1c] sm:$0x1]  ;;  %v11797_v24 = vld [vmem:[%s14821_s3 + $0x38] sm:$0xf] }
 0x1b3   : > { %9649 = vmatmul.mubr.msk.bf16.vlgmr.msra.gmra.mxu0 %vm1038_vm5, %v8854_v8  ;;  %v15217_v9 = vcombine.low %v11220_v58, %v11567_v12  ;;  %v15219_v60 = vshrl.u32 %v11220_v58, 16  ;;  %v15220_v44 = vshll.u32 %v11567_v12, 16  ;;  %v8886_v56 = vrot.slane %v4337_v42, 9  ;;  %v11806_v1 = vld [vmem:[#allocation2 + $0x28] sm:$0xf] }
 0x1b4   : > { %v3502_v51 = vor.u32 %v3501_v25, %v15216_v14  ;;  %9599 = vmatmul.mubr.msk.bf16.gmra.mxu1 %vm1038_vm5, %v11692_v57  ;;  %v3486_v37 = vsel %vm10337_vm8, %v8827_v32, %v3485_v29  ;;  %v3504_v35 = vrot.slane %v3501_v25, 4  ;;  %v3495_v57 = vsel %vm10337_vm8, %v3487_v7, %v3494_v47 }
 0x1b5   : > { %9652 = vmatprep.mubr.msk.bf16.mxu0 %vm1038_vm5, %v15217_v9  ;;  %v3518_v0 = vrot.slane %v15219_v60, 7  ;;  %v3528_v19 = vor.u32 %v15220_v44, %v11625_v26  ;;  %9602 = vmatprep.mubr.msk.bf16.mxu1 %vm1038_vm5, %v11694_v17  ;;  %v4476_v32 = vsel %vm1063_vm3, %v11551_v2, 0  ;;  %v4371_v29 = vrot.slane %v11761_v3, 5  ;;  %v4338_v9 = vld [vmem:[#allocation2 + $0x24] sm:$0xe] }
 0x1b6   : > { %v3040_v12 = vsel %vm10407_vm11, %v3031_v39, %v3039_v63  ;;  %v15221_v26 = vshll.u32 %v11220_v58, 16  ;;  %9683 = vmatpush3.bf16.msra.mxu0 %v4476_v32  ;;  %v4374_v17 = vrot.slane %v11779_v52, 5  ;;  %v3503_v47 = vsel %vm10337_vm8, %v8828_v40, %v3502_v51  ;;  %v11821_v63 = vld [vmem:[#allocation2 + $0x2c] sm:$0x1] }
 0x1b7   : > { %v3521_v14 = vrot.slane %v3518_v0, 4  ;;  %v3512_v2 = vsel %vm10337_vm8, %v3504_v35, %v3511_v23  ;;  %v11819_v7 = vsel %vm1063_vm3, %v11723_v20, 0  ;;  %v4373_v42 = vrot.slane %v4371_v29, 4  ;;  %9948 = vmatprep.subr.msk.bf16.mxu0 %vm1063_vm3, %v11797_v24  ;;  %v11832_v23 = vld [vmem:[#allocation2 + $0x38] sm:$0xf]  ;;  %v15222_v20 = vld [vmem:[#allocation14_spill] sm:$0xff] }
 0x1b8   : > { %v3519_v25 = vor.u32 %v3518_v0, %v15221_v26  ;;  %v11825_v58 = vcombine.low %v3040_v12, %v3050_v30  ;;  %v11827_v39 = vcombine.low %v3486_v37, %v3495_v57  ;;  %v4378_v51 = vrot.slane %v11806_v1, 5  ;;  %v11834_v35 = vld [vmem:[#allocation2 + $0x3c] sm:$0x1]  ;;  %v4339_v12 = vld [vmem:[#allocation2 + $0x34] sm:$0xe] }
 0x1b9   : > { %v3529_v40 = vsel %vm10337_vm8, %v3521_v14, %v3528_v19  ;;  %v11841_v0 = vsel %vm10742_vm9, %v8886_v56, %v4371_v29  ;;  %v11845_v30 = vsel %vm10742_vm9, %v4373_v42, %v4374_v17  ;;  %v8887_v37 = vrot.slane %v4338_v9, 9 }
 0x1ba   : > { %v3520_v60 = vsel %vm10337_vm8, %v15222_v20, %v3519_v25  ;;  %v11847_v44 = vcombine.low %v3503_v47, %v3512_v2  ;;  %v4381_v57 = vrot.slane %v11821_v63, 5  ;;  %v4623_v32 = vshrl.u32 %v4338_v9, 16  ;;  %v10045_v47 = vld [vmem:[#allocation2 + $0x40] sm:$0x8] }
 0x1bb   : > { %v11849_v19 = vcombine.low %v3520_v60, %v3529_v40  ;;  %v15223_v26 = vcombine.low %v11245_v41, %v11582_v16  ;;  %v4380_v56 = vrot.slane %v4378_v51, 4  ;;  %v4626_v29 = vshll.u32 %v4338_v9, 16 }
 0x1bc   : > { %v4385_v25 = vrot.slane %v11832_v23, 5  ;;  %v4388_v14 = vrot.slane %v11834_v35, 5  ;;  %9603 = vmatmul.mubr.msk.bf16.gmra.mxu1 %vm1038_vm5, %v11705_v36  ;;  %v3531_v2 = vshrl.u32 %v10045_v47, 16  ;;  %v15224_v42 = vshrl.u32 %v11245_v41, 16 }
 0x1bd   : > { %9653 = vmatmul.mubr.msk.bf16.gmra.mxu0 %vm1038_vm5, %v15223_v26  ;;  %v15225_v40 = vshll.u32 %v11582_v16, 16  ;;  %9606 = vmatprep.mubr.msk.bf16.mxu1 %vm1038_vm5, %v11752_v31  ;;  %v8888_v36 = vrot.slane %v4339_v12, 9  ;;  %v10046_v26 = vld [vmem:[#allocation2 + $0x50] sm:$0x8]  ;;  %v15226_v47 = vshll.u32 %v11245_v41, 16  ;;  %v15227_v17 = vshrl.u32 %v11289_v54, 16 }
 0x1be   : > { %9656 = vmatprep.mubr.msk.bf16.mxu0 %vm1038_vm5, %v8857_v43  ;;  %v3535_v9 = vrot.slane %v15224_v42, 7  ;;  %v11875_v43 = vsel %vm10742_vm9, %v8887_v37, %v4378_v51  ;;  %v4387_v60 = vrot.slane %v4385_v25, 4  ;;  %v3548_v48 = vshrl.u32 %v10046_v26, 16  ;;  %v11904_v26 = vld [vmem:[#allocation2 + $0x58] sm:$0xf] }
 0x1bf   : > { %v3545_v20 = vor.u32 %v15225_v40, %v11640_v55  ;;  %v8830_v27 = vrot.slane %v3531_v2, 11  ;;  %v3552_v16 = vrot.slane %v15227_v17, 7  ;;  %v11881_v55 = vld [vmem:[#allocation2 + $0x48] sm:$0xf]  ;;  %v11885_v31 = vsel %vm10742_vm9, %v4380_v56, %v4381_v57  ;;  %v4340_v2 = vld [vmem:[#allocation2 + $0x44] sm:$0xe] }
 0x1c0   : > { %v3536_v18 = vor.u32 %v3535_v9, %v15226_v47  ;;  %v3538_v42 = vrot.slane %v3535_v9, 4  ;;  %v11887_v51 = vrot.slane %v4623_v32, 5  ;;  %v11891_v37 = vsel %vm10742_vm9, %v4387_v60, %v4388_v14  ;;  %v11902_v32 = vld [vmem:[#allocation2 + $0x4c] sm:$0x1]  ;;  %v11913_v60 = vld [vmem:[#allocation2 + $0x5c] sm:$0x1] }
 0x1c1   : > { %v15228_v41 = vshll.u32 %v11613_v10, 16  ;;  %v11896_v9 = vrot.slane %v4626_v29, 6  ;;  %v8831_v40 = vrot.slane %v3548_v48, 11  ;;  %v15229_v57 = vshll.u32 %v11289_v54, 16 }
 0x1c2   : > { %v3546_v17 = vsel %vm10337_vm8, %v3538_v42, %v3545_v20  ;;  %v11908_v14 = vsel %vm10742_vm9, %v8888_v36, %v4385_v25  ;;  %v3537_v10 = vsel %vm10337_vm8, %v8830_v27, %v3536_v18  ;;  %v4392_v29 = vrot.slane %v11881_v55, 5  ;;  %v4341_v42 = vld [vmem:[#allocation2 + $0x54] sm:$0xe] }
 0x1c3   : > { %v3562_v12 = vor.u32 %v15228_v41, %v11690_v21  ;;  %v3553_v56 = vor.u32 %v3552_v16, %v15229_v57  ;;  %v3555_v21 = vrot.slane %v3552_v16, 4  ;;  %v11919_v20 = vcombine.low %v3537_v10, %v3546_v17 }
 0x1c4   : > { %v8889_v47 = vrot.slane %v4340_v2, 9  ;;  %v4395_v27 = vrot.slane %v11902_v32, 5  ;;  %v4669_v25 = vshrl.u32 %v4340_v2, 16  ;;  %v4399_v36 = vrot.slane %v11904_v26, 5  ;;  %9607 = vmatmul.mubr.msk.bf16.gmra.mxu1 %vm1038_vm5, %v11825_v58 }
 0x1c5   : > { %9657 = vmatmul.mubr.msk.bf16.gmra.mxu0 %vm1038_vm5, %v8858_v15  ;;  %v3563_v18 = vsel %vm10337_vm8, %v3555_v21, %v3562_v12  ;;  %v3554_v16 = vsel %vm10337_vm8, %v8831_v40, %v3553_v56  ;;  %v4394_v15 = vrot.slane %v4392_v29, 4  ;;  %v4672_v41 = vshll.u32 %v4340_v2, 16  ;;  %9630 = vmatprep.mubr.msk.bf16.mxu1 %vm1038_vm5, %v11827_v39  ;;  %v10048_v56 = vld [vmem:[#allocation2 + $0x70] sm:$0x8]  ;;  %v11951_v39 = vld [vmem:[#allocation2 + $0x68] sm:$0xf] }
 0x1c6   : > { %9660 = vmatprep.mubr.msk.bf16.mxu0 %vm1038_vm5, %v8859_v50  ;;  %v4402_v12 = vrot.slane %v11913_v60, 5  ;;  %v11942_v17 = vsel %vm10742_vm9, %v8889_v47, %v4392_v29  ;;  %v8890_v57 = vrot.slane %v4341_v42, 9  ;;  %v4401_v10 = vrot.slane %v4399_v36, 4  ;;  %v10047_v50 = vld [vmem:[#allocation2 + $0x60] sm:$0x8] }
 0x1c7   : > { %v3565_v21 = vshrl.u32 %v10047_v50, 16  ;;  %v11944_v48 = vcombine.low %v3554_v16, %v3563_v18  ;;  %v15230_v58 = vshrl.u32 %v11316_v62, 16  ;;  %v3579_v2 = vor.u32 %v3577_v33, %v11702_v46  ;;  %v11960_v18 = vld [vmem:[#allocation2 + $0x64] sm:$0xe]  ;;  %v11972_v50 = vld [vmem:[#allocation2 + $0x6c] sm:$0x1] }
 0x1c8   : > { %v3582_v54 = vshrl.u32 %v10048_v56, 16  ;;  %v11953_v53 = vrot.slane %v4669_v25, 5  ;;  %v3586_v47 = vrot.slane %v3005_v6, 7  ;;  %v3596_v42 = vor.u32 %v3594_v59, %v11746_v5 }
 0x1c9   : > { %v3569_v40 = vrot.slane %v15230_v58, 7  ;;  %v8832_v29 = vrot.slane %v3565_v21, 11  ;;  %v11964_v22 = vsel %vm10742_vm9, %v4394_v15, %v4395_v27  ;;  %v11968_v46 = vsel %vm10742_vm9, %v4401_v10, %v4402_v12  ;;  %v11986_v12 = vld [vmem:[#allocation2 + $0x78] sm:$0xf]  ;;  %v12004_v10 = vld [vmem:[%s14821_s3 + $0x34] sm:$0xf] }
 0x1ca   : > { %v15231_v33 = vshll.u32 %v11316_v62, 16  ;;  %v8833_v6 = vrot.slane %v3582_v54, 11  ;;  %v3587_v38 = vor.u32 %v3586_v47, %v3008_v61  ;;  %v3589_v59 = vrot.slane %v3586_v47, 4  ;;  %v11988_v54 = vld [vmem:[#allocation2 + $0x7c] sm:$0x1] }
 0x1cb   : > { %v3572_v16 = vrot.slane %v3569_v40, 4  ;;  %v4406_v5 = vrot.slane %v11951_v39, 5  ;;  %v11977_v21 = vrot.slane %v4672_v41, 6  ;;  %v11981_v27 = vsel %vm10742_vm9, %v8890_v57, %v4399_v36  ;;  %v4343_v47 = vld [vmem:[#allocation2 + $0x74] sm:$0xe] }
 0x1cc   : > { %v3570_v25 = vor.u32 %v3569_v40, %v15231_v33  ;;  %v4715_v15 = vshrl.u32 %v11960_v18, 16  ;;  %v15232_v34 = vcombine.low %v15211_v13, %v11712_v28  ;;  %v8898_v61 = vcombine.low %v11942_v17, %v11964_v22  ;;  %9631 = vmatmul.mubr.msk.bf16.vlgmr.msra.gmra.mxu1 %vm1038_vm5, %v11847_v44  ;;  %v3961_v17 = vld [vmem:[#allocation2 + $0x34] sm:$0xf] }
 0x1cd   : > { %v3580_v62 = vsel %vm10337_vm8, %v3572_v16, %v3579_v2  ;;  %v3597_v41 = vsel %vm10337_vm8, %v3589_v59, %v3596_v42  ;;  %v4409_v57 = vrot.slane %v11972_v50, 5  ;;  %v15233_v58 = vcombine.low %v11841_v0, %v11845_v30  ;;  %9665 = vmatpush3.bf16.msra.mxu1 %v11819_v7  ;;  %9634 = vmatprep.mubr.msk.bf16.mxu1 %vm1038_vm5, %v11849_v19  ;;  %v10049_v42 = vld [vmem:[#allocation2 + $0x80] sm:$0x8] }
 0x1ce   : > { %9661 = vmatmul.mubr.msk.bf16.gmra.mxu0 %vm1038_vm5, %v15232_v34  ;;  %v3571_v36 = vsel %vm10337_vm8, %v8832_v29, %v3570_v25  ;;  %v8891_v56 = vrot.slane %v11960_v18, 9  ;;  %v4408_v29 = vrot.slane %v4406_v5, 4  ;;  %v3588_v44 = vsel %vm10337_vm8, %v8833_v6, %v3587_v38  ;;  %v12036_v6 = vld [vmem:[#allocation2 + $0x8c] sm:$0x1]  ;;  %9947 = vmatprep.subr.msk.bf16.mxu1 %vm1063_vm3, %v12004_v10 }
 0x1cf   : > { %9684 = vmatprep.mubr.msk.bf16.mxu0 %vm1038_vm5, %v15233_v58  ;;  %v12014_v2 = vcombine.low %v3571_v36, %v3580_v62  ;;  %v4413_v0 = vrot.slane %v11986_v12, 5  ;;  %v4416_v30 = vrot.slane %v11988_v54, 5  ;;  %v3599_v33 = vshrl.u32 %v10049_v42, 16  ;;  %v12034_v62 = vld [vmem:[#allocation2 + $0x88] sm:$0xf] }
 0x1d0   : > { %v12024_v25 = vcombine.low %v3588_v44, %v3597_v41  ;;  %v12028_v16 = vsel %vm10742_vm9, %v8891_v56, %v4406_v5  ;;  %v12030_v7 = vrot.slane %v4715_v15, 5  ;;  %v15234_v19 = vshrl.u32 %v15211_v13, 16  ;;  %v9464_v41 = vpop.f32.mrf.mxu0  ;;  %v12047_v58 = vld [vmem:[#allocation2 + $0x84] sm:$0xe] }
 0x1d1   : > { %v12042_v38 = vsel %vm10742_vm9, %v4408_v29, %v4409_v57  ;;  %v4415_v34 = vrot.slane %v4413_v0, 4  ;;  %v8834_v36 = vrot.slane %v3599_v33, 11  ;;  %v15235_v5 = vshll.u32 %v11712_v28, 16  ;;  %v12055_v57 = vld [vmem:[%s14820_s2] ss:$0 sm:$0xff] }
 0x1d2   : > { %v3603_v59 = vrot.slane %v15234_v19, 7  ;;  %v8892_v44 = vrot.slane %v4343_v47, 9  ;;  %v15236_v42 = vshll.u32 %v15211_v13, 16  ;;  %v565_v29 = vadd.f32 %v12055_v57, %v9464_v41  ;;  %v3955_v47 = vld [vmem:[#allocation2 + $0x14] sm:$0xf] }
 0x1d3   : > { %v3613_v15 = vor.u32 %v15235_v5, %v11763_v4  ;;  %v12060_v28 = vsel %vm10742_vm9, %v4415_v34, %v4416_v30  ;;  %v4420_v33 = vrot.slane %v12034_v62, 5  ;;  %v4423_v5 = vrot.slane %v12036_v6, 5 }
 0x1d4   : > { %v3604_v19 = vor.u32 %v3603_v59, %v15236_v42  ;;  %v3606_v4 = vrot.slane %v3603_v59, 4  ;;  %v12068_v42 = vsel %vm10742_vm9, %v8892_v44, %v4413_v0  ;;  %v585_v56 = vmax.f32 %v565_v29, 0.0  ;;  %v556_v0 = vpop.f32.mrf.mxu0  ;;  %9635 = vmatmul.mubr.msk.bf16.gmra.mxu1 %vm1038_vm5, %v11919_v20 }
 0x1d5   : > { %v8893_v41 = vrot.slane %v12047_v58, 9  ;;  %v15237_v30 = vcombine.low %v11875_v43, %v11885_v31  ;;  %v4422_v40 = vrot.slane %v4420_v33, 4  ;;  %v15238_v44 = vcombine.low %v11908_v14, %v11891_v37  ;;  %9638 = vmatprep.mubr.msk.bf16.mxu1 %vm1038_vm5, %v11944_v48 }
 0x1d6   : > { %v3605_v34 = vsel %vm10337_vm8, %v8834_v36, %v3604_v19  ;;  %v3614_v13 = vsel %vm10337_vm8, %v3606_v4, %v3613_v15  ;;  %v9182_v43 = vpack.c.bf16 %v585_v56, %v585_v56  ;;  %v557_v36 = vadd.f32 %v12055_v57, %v556_v0  ;;  %v3958_v56 = vld [vmem:[#allocation2 + $0x24] sm:$0xf] }
 0x1d7   : > { %9685 = vmatmul.mubr.msk.bf16.vlgmr.msra.gmra.mxu0 %vm1038_vm5, %v15237_v30  ;;  %v12089_v31 = vsel %vm10742_vm9, %v8893_v41, %v4420_v33  ;;  %v3980_v19 = vshrl.u32 %v3955_v47, 16  ;;  %v12096_v15 = vsel %vm10742_vm9, %v4422_v40, %v4423_v5  ;;  %v3983_v37 = vshll.u32 %v3955_v47, 16  ;;  %v9465_v30 = vpop.f32.mrf.mxu0 }
 0x1d8   : > { %9688 = vmatprep.mubr.msk.bf16.mxu0 %vm1038_vm5, %v15238_v44  ;;  %v14912_v14 = vshll.u32 %v11761_v3, 16  ;;  %v14913_v20 = vshrl.u32 %v11761_v3, 16  ;;  %v12100_v29 = vcombine.low %v3605_v34, %v3614_v13  ;;  %667 = vst.msk [vmem:[#allocation2 + $0xa4] sm:$0xf] %vm652_vm7, %v9182_v43  ;;  %v583_v33 = vmax.f32 %v557_v36, 0.0 }
 0x1d9   : > { %v3982_v41 = vrot.slane %v3980_v19, 4  ;;  %v3985_v48 = vrot.slane %v3983_v37, 5  ;;  %v3999_v47 = vshll.u32 %v11779_v52, 16  ;;  %v568_v13 = vadd.f32 %v12055_v57, %v9465_v30 }
 0x1da   : > { %v3991_v40 = vrot.slane %v14912_v14, 5  ;;  %v3995_v5 = vrot.slane %v14913_v20, 4  ;;  %v9180_v0 = vpack.c.bf16 %v583_v33, %v583_v33  ;;  %v4004_v34 = vshrl.u32 %v3958_v56, 16 }
 0x1db   : > { %v4007_v44 = vshll.u32 %v3958_v56, 16  ;;  %v3986_v43 = vor.u32 %v3985_v48, %v3982_v41  ;;  %v4001_v4 = vrot.slane %v3999_v47, 5  ;;  %v4013_v36 = vshll.u32 %v11806_v1, 16 }
 0x1dc   : > { %v3996_v59 = vor.u32 %v3995_v5, %v3991_v40  ;;  %665 = vst.msk [vmem:[#allocation2 + $0x94] sm:$0xf] %vm652_vm7, %v9180_v0  ;;  %v586_v19 = vmax.f32 %v568_v13, 0.0  ;;  %v4006_v37 = vrot.slane %v4004_v34, 4  ;;  %v4017_v20 = vshrl.u32 %v11806_v1, 16  ;;  %9639 = vmatmul.mubr.msk.bf16.gmra.mxu1 %vm1038_vm5, %v12014_v2 }
 0x1dd   : > { %v4009_v14 = vrot.slane %v4007_v44, 5  ;;  %v3987_v52 = vrot.slane %v3986_v43, 4  ;;  %v4015_v56 = vrot.slane %v4013_v36, 5  ;;  %v4023_v41 = vshll.u32 %v11821_v63, 16  ;;  %9642 = vmatprep.mubr.msk.bf16.mxu1 %vm1038_vm5, %v12024_v25  ;;  %v4950_v34 = vld [vmem:[#allocation2 + $0x20] sm:$0xc] }
 0x1de   : > { %v3997_v33 = vrot.slane %v3996_v59, 4  ;;  %v15239_v48 = vcombine.low %v11981_v27, %v11968_v46  ;;  %v9183_v5 = vpack.c.bf16 %v586_v19, %v586_v19  ;;  %v4019_v47 = vrot.slane %v4017_v20, 4 }
 0x1df   : > { %9689 = vmatmul.mubr.msk.bf16.gmra.mxu0 %vm1038_vm5, %v8898_v61  ;;  %v4010_v1 = vor.u32 %v4009_v14, %v4006_v37  ;;  %v4631_v30 = vrot.slane %v4017_v20, 5  ;;  %v3992_v61 = vsel %vm10525_vm14, %v3987_v52, %v3991_v40  ;;  %v4025_v46 = vrot.slane %v4023_v41, 5  ;;  %v559_v41 = vpop.f32.mrf.mxu0 }
 0x1e0   : > { %9692 = vmatprep.mubr.msk.bf16.mxu0 %vm1038_vm5, %v15239_v48  ;;  %v4002_v63 = vsel %vm10525_vm14, %v3997_v33, %v4001_v4  ;;  %v4632_v27 = vrot.slane %v4013_v36, 6  ;;  %668 = vst.msk [vmem:[#allocation2 + $0xa8] sm:$0xf] %vm652_vm7, %v9183_v5  ;;  %v4020_v0 = vor.u32 %v4019_v47, %v4015_v56  ;;  %v12134_v14 = vsel %vm1063_vm3, %v12004_v10, 0  ;;  %v12146_v10 = vld [vmem:[%s14821_s3 + $0x40] sm:$0xf] }
 0x1e1   : > { %v8870_v59 = vcombine.low %v3992_v61, %v4002_v63  ;;  %v4011_v2 = vrot.slane %v4010_v1, 4  ;;  %v4028_v25 = vshrl.u32 %v3961_v17, 16  ;;  %v4031_v13 = vshll.u32 %v3961_v17, 16  ;;  %v4952_v47 = vld [vmem:[#allocation2 + $0x28] sm:$0x7] }
 0x1e2   : > { %v12136_v20 = vor.u32 %v4632_v27, %v4631_v30  ;;  %v14921_v40 = vshll.u32 %v11832_v23, 16  ;;  %v4021_v44 = vrot.slane %v4020_v0, 4  ;;  %v14924_v43 = vshrl.u32 %v11832_v23, 16 }
 0x1e3   : > { %v4016_v4 = vsel %vm10525_vm14, %v4011_v2, %v4015_v56  ;;  %v4047_v36 = vshll.u32 %v11834_v35, 16  ;;  %v4030_v19 = vrot.slane %v4028_v25, 4  ;;  %v4033_v37 = vrot.slane %v4031_v13, 5  ;;  %v12152_v56 = vld [vmem:[#allocation2 + $0x24] sm:$0xf] }
 0x1e4   : > { %v4039_v52 = vrot.slane %v14921_v40, 5  ;;  %v5249_v33 = vsel %vm1063_vm3, %v11797_v24, 0  ;;  %v4026_v48 = vsel %vm10525_vm14, %v4021_v44, %v4025_v46  ;;  %v4043_v35 = vrot.slane %v14924_v43, 4  ;;  %v12163_v24 = vpop.f32.mrf.mxu1  ;;  %9643 = vmatmul.mubr.msk.bf16.gmra.mxu1 %vm1038_vm5, %v12100_v29  ;;  %v12176_v44 = vld [vmem:[#allocation2 + $0x34] sm:$0xf] }
 0x1e5   : > { %v4049_v5 = vrot.slane %v4047_v36, 5  ;;  %9719 = vmatpush3.bf16.msra.mxu0 %v5249_v33  ;;  %v560_v1 = vadd.f32 %v12055_v57, %v559_v41  ;;  %v15241_v30 = vcombine.low %v12028_v16, %v12042_v38  ;;  %v8871_v17 = vcombine.low %v4016_v4, %v4026_v48  ;;  %9666 = vmatprep.mubr.msk.bf16.mxu1 %vm1038_vm5, %v8870_v59  ;;  %v4953_v4 = vld [vmem:[#allocation2 + $0x30] sm:$0xc]  ;;  %v12186_v48 = vpop.f32.mrf.mxu0  ;;  %v4961_v43 = vld [vmem:[#allocation2 + $0x58] sm:$0x7] }
 0x1e6   : > { %v4034_v61 = vor.u32 %v4033_v37, %v4030_v19  ;;  %v4975_v63 = vshrl.u32 %v4950_v34, 16  ;;  %v4978_v27 = vshll.u32 %v4950_v34, 16  ;;  %9950 = vmatprep.subr.msk.bf16.mxu0 %vm1063_vm3, %v12146_v10  ;;  %v15242_v46 = vcombine.low %v12068_v42, %v12060_v28  ;;  %v12182_v19 = vpop.f32.mrf.mxu1  ;;  %15243 = vst [vmem:[#allocation11_spill] sm:$0xff] %v12186_v48 }
 0x1e7   : > { %9693 = vmatmul.mubr.msk.bf16.gmra.mxu0 %vm1038_vm5, %v15241_v30  ;;  %v4044_v16 = vor.u32 %v4043_v35, %v4039_v52  ;;  %v584_v38 = vmax.f32 %v560_v1, 0.0  ;;  %v14919_v57 = vshrl.u32 %v12152_v56, 16  ;;  %v14917_v2 = vshll.u32 %v12152_v56, 16  ;;  %v4955_v30 = vld [vmem:[#allocation2 + $0x38] sm:$0x7] }
 0x1e8   : > { %9696 = vmatprep.mubr.msk.bf16.mxu0 %vm1038_vm5, %v15242_v46  ;;  %v4035_v0 = vrot.slane %v4034_v61, 4  ;;  %v4977_v25 = vrot.slane %v4975_v63, 6  ;;  %v4980_v13 = vrot.slane %v4978_v27, 7  ;;  %v4994_v34 = vshrl.u32 %v4952_v47, 16 }
 0x1e9   : > { %v4045_v28 = vrot.slane %v4044_v16, 4  ;;  %v9181_v42 = vpack.c.bf16 %v584_v38, %v584_v38  ;;  %v4986_v29 = vrot.slane %v14919_v57, 6  ;;  %v4989_v36 = vrot.slane %v14917_v2, 7 }
 0x1ea   : > { %v4040_v59 = vsel %vm10525_vm14, %v4035_v0, %v4039_v52  ;;  %v4981_v37 = vor.u32 %v4980_v13, %v4977_v25  ;;  %v4996_v33 = vrot.slane %v4994_v34, 6  ;;  %v4997_v41 = vshll.u32 %v4952_v47, 16  ;;  %v4956_v52 = vld [vmem:[#allocation2 + $0x40] sm:$0xc]  ;;  %v12193_v34 = vld [vmem:[#allocation2 + $0x44] sm:$0xf] }
 0x1eb   : > { %v4050_v35 = vsel %vm10525_vm14, %v4045_v28, %v4049_v5  ;;  %666 = vst.msk [vmem:[#allocation2 + $0x98] sm:$0xf] %vm652_vm7, %v9181_v42  ;;  %v4990_v1 = vor.u32 %v4989_v36, %v4986_v29  ;;  %v5003_v61 = vshrl.u32 %v4953_v4, 16  ;;  %v5006_v63 = vshll.u32 %v4953_v4, 16  ;;  %v12199_v28 = vpop.f32.mrf.mxu1 }
 0x1ec   : > { %v8872_v27 = vcombine.low %v4040_v59, %v4050_v35  ;;  %v4982_v46 = vrot.slane %v4981_v37, 4  ;;  %v4999_v16 = vrot.slane %v4997_v41, 7  ;;  %v14916_v38 = vshrl.u32 %v12176_v44, 16  ;;  %v12205_v59 = vpop.f32.mrf.mxu0  ;;  %v12210_v37 = vld [vmem:[%s14821_s3 + $0x3c] sm:$0xf]  ;;  %9667 = vmatmul.mubr.msk.bf16.vlgmr.msra.gmra.mxu1 %vm1038_vm5, %v8871_v17 }
 0x1ed   : > { %v4992_v0 = vrot.slane %v4990_v1, 4  ;;  %v5005_v25 = vrot.slane %v5003_v61, 6  ;;  %v5008_v47 = vrot.slane %v5006_v63, 7  ;;  %v14915_v13 = vshll.u32 %v12176_v44, 16  ;;  %15245 = vst [vmem:[#allocation27_spill] sm:$0xff] %v12205_v59  ;;  %9701 = vmatpush3.bf16.msra.mxu1 %v12134_v14 }
 0x1ee   : > { %v15244_v5 = vcombine.low %v12089_v31, %v12096_v15  ;;  %v4991_v4 = vsel %vm10407_vm11, %v4982_v46, %v4990_v1  ;;  %v5000_v42 = vor.u32 %v4999_v16, %v4996_v33  ;;  %v5014_v29 = vrot.slane %v14916_v38, 6  ;;  %9670 = vmatprep.mubr.msk.bf16.mxu1 %vm1038_vm5, %v8872_v27  ;;  %v4958_v61 = vld [vmem:[#allocation2 + $0x48] sm:$0x7]  ;;  %9949 = vmatprep.subr.msk.bf16.mxu1 %vm1063_vm3, %v12210_v37 }
 0x1ef   : > { %v5022_v36 = vshrl.u32 %v4955_v30, 16  ;;  %v5009_v31 = vor.u32 %v5008_v47, %v5005_v25  ;;  %v5017_v15 = vrot.slane %v14915_v13, 7  ;;  %v5025_v41 = vshll.u32 %v4955_v30, 16  ;;  %v12222_v30 = vpop.f32.mrf.mxu1  ;;  %v4964_v59 = vld [vmem:[#allocation2 + $0x68] sm:$0x7] }
 0x1f0   : > { %9697 = vmatmul.mubr.msk.bf16.gmra.mxu0 %vm1038_vm5, %v15244_v5  ;;  %v5031_v35 = vshrl.u32 %v4956_v52, 16  ;;  %v5001_v33 = vsel %vm10407_vm11, %v4992_v0, %v5000_v42  ;;  %v5034_v63 = vshll.u32 %v4956_v52, 16  ;;  %v14914_v46 = vshrl.u32 %v12193_v34, 16  ;;  %v3964_v5 = vld [vmem:[#allocation2 + $0x44] sm:$0xf]  ;;  %v12227_v52 = vpop.f32.mrf.mxu0 }
 0x1f1   : > { %v5024_v1 = vrot.slane %v5022_v36, 6  ;;  %v8929_v16 = vcombine.low %v4991_v4, %v5001_v33  ;;  %v5010_v17 = vrot.slane %v5009_v31, 4  ;;  %v5018_v25 = vor.u32 %v5017_v15, %v5014_v29  ;;  %15246 = vst [vmem:[#allocation25_spill] sm:$0xff] %v12227_v52  ;;  %v12234_v33 = vpop.f32.mrf.mxu1 }
 0x1f2   : > { %v5027_v47 = vrot.slane %v5025_v41, 7  ;;  %v5033_v14 = vrot.slane %v5031_v35, 6  ;;  %v5036_v27 = vrot.slane %v5034_v63, 7  ;;  %v5042_v0 = vrot.slane %v14914_v46, 6 }
 0x1f3   : > { %v14918_v42 = vshll.u32 %v12193_v34, 16  ;;  %9720 = vmatprep.mubr.msk.bf16.mxu0 %vm1038_vm5, %v8929_v16  ;;  %v5019_v4 = vsel %vm10407_vm11, %v5010_v17, %v5018_v25  ;;  %v5020_v29 = vrot.slane %v5018_v25, 4  ;;  %v5050_v31 = vshrl.u32 %v4958_v61, 16 }
 0x1f4   : > { %v5028_v36 = vor.u32 %v5027_v47, %v5024_v1  ;;  %v5037_v15 = vor.u32 %v5036_v27, %v5033_v14  ;;  %v5053_v35 = vshll.u32 %v4958_v61, 16  ;;  %v4052_v63 = vshrl.u32 %v3964_v5, 16  ;;  %v3967_v47 = vld [vmem:[#allocation2 + $0x54] sm:$0xf]  ;;  %v12239_v14 = vpop.f32.mrf.mxu1  ;;  %v12241_v27 = vpop.f32.mrf.mxu0 }
 0x1f5   : > { %v5045_v41 = vrot.slane %v14918_v42, 7  ;;  %v5052_v13 = vrot.slane %v5050_v31, 6  ;;  %v4055_v38 = vshll.u32 %v3964_v5, 16  ;;  %v14920_v16 = vshll.u32 %v11881_v55, 16  ;;  %15247 = vst [vmem:[#allocation28_spill] sm:$0xff] %v12241_v27 }
 0x1f6   : > { %v5029_v46 = vsel %vm10407_vm11, %v5020_v29, %v5028_v36  ;;  %v5038_v17 = vrot.slane %v5037_v15, 4  ;;  %v5055_v1 = vrot.slane %v5053_v35, 7  ;;  %v4054_v61 = vrot.slane %v4052_v63, 4  ;;  %v12252_v31 = vpop.f32.mrf.mxu1 }
 0x1f7   : > { %v8930_v2 = vcombine.low %v5019_v4, %v5029_v46  ;;  %v5046_v25 = vor.u32 %v5045_v41, %v5042_v0  ;;  %v4057_v42 = vrot.slane %v4055_v38, 5  ;;  %v4063_v57 = vrot.slane %v14920_v16, 5  ;;  %15249 = vst [vmem:[#allocation32_spill] sm:$0xff] %v12252_v31 }
 0x1f8   : > { %v14922_v29 = vshrl.u32 %v11881_v55, 16  ;;  %v15248_v5 = vshll.u32 %v11960_v18, 16  ;;  %v5056_v0 = vor.u32 %v5055_v1, %v5052_v13  ;;  %v4071_v4 = vshll.u32 %v11902_v32, 16  ;;  %v12261_v13 = vpop.f32.mrf.mxu0  ;;  %v4959_v32 = vld [vmem:[#allocation2 + $0x50] sm:$0xc]  ;;  %v12263_v1 = vpop.f32.mrf.mxu1 }
 0x1f9   : > { %9721 = vmatmul.mubr.msk.bf16.vlgmr.msra.gmra.mxu0 %vm1038_vm5, %v8930_v2  ;;  %v5048_v46 = vrot.slane %v5046_v25, 4  ;;  %v5047_v38 = vsel %vm10407_vm11, %v5038_v17, %v5046_v25  ;;  %v4058_v15 = vor.u32 %v4057_v42, %v4054_v61  ;;  %v4076_v35 = vshrl.u32 %v3967_v47, 16  ;;  %15250 = vst [vmem:[#allocation26_spill] sm:$0xff] %v12261_v13  ;;  %15251 = vst [vmem:[#allocation33_spill] sm:$0xff] %v12263_v1  ;;  %v12265_v25 = vld [vmem:[#allocation2 + $0x54] sm:$0xf] }
 0x1fa   : > { %v12248_v36 = vrot.slane %v15248_v5, 6  ;;  %v4067_v41 = vrot.slane %v14922_v29, 4  ;;  %v4073_v63 = vrot.slane %v4071_v4, 5  ;;  %v4079_v5 = vshll.u32 %v3967_v47, 16  ;;  %v12273_v4 = vpop.f32.mrf.mxu1 }
 0x1fb   : > { %v5057_v18 = vsel %vm10407_vm11, %v5048_v46, %v5056_v0  ;;  %v14923_v2 = vshll.u32 %v11904_v26, 16  ;;  %v4059_v40 = vrot.slane %v4058_v15, 4  ;;  %v4078_v42 = vrot.slane %v4076_v35, 4  ;;  %v12271_v0 = vpop.f32.mrf.mxu0  ;;  %15253 = vst [vmem:[#allocation35_spill] sm:$0xff] %v12273_v4 }
 0x1fc   : > { %v8931_v16 = vcombine.low %v5047_v38, %v5057_v18  ;;  %v4068_v17 = vor.u32 %v4067_v41, %v4063_v57  ;;  %v4081_v61 = vrot.slane %v4079_v5, 5  ;;  %v14926_v46 = vshrl.u32 %v11904_v26, 16  ;;  %15252 = vst [vmem:[#allocation29_spill] sm:$0xff] %v12271_v0  ;;  %v12283_v27 = vpop.f32.mrf.mxu1 }
 0x1fd   : > { %v4087_v29 = vrot.slane %v14923_v2, 5  ;;  %v4095_v47 = vshll.u32 %v11913_v60, 16  ;;  %v4064_v38 = vsel %vm10525_vm14, %v4059_v40, %v4063_v57  ;;  %v5059_v41 = vshrl.u32 %v4959_v32, 16  ;;  %v12281_v11 = vpop.f32.mrf.mxu0  ;;  %15255 = vst [vmem:[#allocation3_spill] sm:$0xff] %v12283_v27 }
 0x1fe   : > { %9724 = vmatprep.mubr.msk.bf16.mxu0 %vm1038_vm5, %v8931_v16  ;;  %v4069_v15 = vrot.slane %v4068_v17, 4  ;;  %v5062_v35 = vshll.u32 %v4959_v32, 16  ;;  %v4082_v18 = vor.u32 %v4081_v61, %v4078_v42  ;;  %v4091_v5 = vrot.slane %v14926_v46, 4  ;;  %15254 = vst [vmem:[#allocation30_spill] sm:$0xff] %v12281_v11  ;;  %v4962_v32 = vld [vmem:[#allocation2 + $0x60] sm:$0xc]  ;;  %v12292_v13 = vpop.f32.mrf.mxu1 }
 0x1ff   : > { %v4097_v2 = vrot.slane %v4095_v47, 5  ;;  %v14927_v60 = vshrl.u32 %v12265_v25, 16  ;;  %v5061_v0 = vrot.slane %v5059_v41, 6  ;;  %v14928_v57 = vshll.u32 %v12265_v25, 16  ;;  %v12290_v46 = vpop.f32.mrf.mxu0  ;;  %15257 = vst [vmem:[#allocation34_spill] sm:$0xff] %v12292_v13 }
 0x200   : > { %v4074_v16 = vsel %vm10525_vm14, %v4069_v15, %v4073_v63  ;;  %v5064_v40 = vrot.slane %v5062_v35, 7  ;;  %v4083_v42 = vrot.slane %v4082_v18, 4  ;;  %v4092_v61 = vor.u32 %v4091_v5, %v4087_v29  ;;  %15256 = vst [vmem:[#allocation5_spill] sm:$0xff] %v12290_v46  ;;  %v12296_v41 = vld [vmem:[#allocation2 + $0x64] sm:$0xf] }
 0x201   : > { %v8873_v17 = vcombine.low %v4064_v38, %v4074_v16  ;;  %v5070_v47 = vrot.slane %v14927_v60, 6  ;;  %v5073_v52 = vrot.slane %v14928_v57, 7  ;;  %v5078_v63 = vshrl.u32 %v4961_v43, 16  ;;  %v12301_v16 = vpop.f32.mrf.mxu0  ;;  %v12303_v60 = vpop.f32.mrf.mxu1 }
 0x202   : > { %v5065_v11 = vor.u32 %v5064_v40, %v5061_v0  ;;  %v5081_v15 = vshll.u32 %v4961_v43, 16  ;;  %v4088_v38 = vsel %vm10525_vm14, %v4083_v42, %v4087_v29  ;;  %v4093_v35 = vrot.slane %v4092_v61, 4  ;;  %15258 = vst [vmem:[#allocation6_spill] sm:$0xff] %v12301_v16  ;;  %15259 = vst [vmem:[#allocation36_spill] sm:$0xff] %v12303_v60  ;;  %v3970_v29 = vld [vmem:[#allocation2 + $0x64] sm:$0xf] }
 0x203   : > { %9671 = vmatmul.mubr.msk.bf16.gmra.mxu1 %vm1038_vm5, %v8873_v17  ;;  %v5087_v18 = vshrl.u32 %v4962_v32, 16  ;;  %v5090_v5 = vshll.u32 %v4962_v32, 16  ;;  %v5074_v40 = vor.u32 %v5073_v52, %v5070_v47  ;;  %v5080_v46 = vrot.slane %v5078_v63, 6  ;;  %v12308_v42 = vpop.f32.mrf.mxu0 }
 0x204   : > { %v5066_v0 = vrot.slane %v5065_v11, 4  ;;  %v5083_v57 = vrot.slane %v5081_v15, 7  ;;  %v4098_v43 = vsel %vm10525_vm14, %v4093_v35, %v4097_v2  ;;  %v14931_v48 = vshrl.u32 %v12296_v41, 16  ;;  %15260 = vst [vmem:[#allocation42_spill] sm:$0xff] %v12308_v42  ;;  %v12315_v15 = vpop.f32.mrf.mxu1 }
 0x205   : > { %v5089_v49 = vrot.slane %v5087_v18, 6  ;;  %v5092_v17 = vrot.slane %v5090_v5, 7  ;;  %v8874_v32 = vcombine.low %v4088_v38, %v4098_v43  ;;  %v5076_v16 = vrot.slane %v5074_v40, 4  ;;  %15261 = vst [vmem:[#allocation39_spill] sm:$0xff] %v12315_v15  ;;  %v12317_v35 = vpop.f32.mrf.mxu0 }
 0x206   : > { %v5075_v61 = vsel %vm10407_vm11, %v5066_v0, %v5074_v40  ;;  %v5084_v11 = vor.u32 %v5083_v57, %v5080_v46  ;;  %v5098_v47 = vrot.slane %v14931_v48, 6  ;;  %v14932_v63 = vshll.u32 %v12296_v41, 16  ;;  %15262 = vst [vmem:[#allocation53_spill] sm:$0xff] %v12317_v35  ;;  %v3973_v46 = vld [vmem:[#allocation2 + $0x74] sm:$0xf] }
 0x207   : > { %v5093_v52 = vor.u32 %v5092_v17, %v5089_v49  ;;  %v5106_v2 = vshrl.u32 %v4964_v59, 16  ;;  %9674 = vmatprep.mubr.msk.bf16.mxu1 %vm1038_vm5, %v8874_v32  ;;  %v5109_v18 = vshll.u32 %v4964_v59, 16  ;;  %v4100_v5 = vshrl.u32 %v3970_v29, 16  ;;  %v12324_v17 = vpop.f32.mrf.mxu1  ;;  %v12326_v48 = vpop.f32.mrf.mxu0 }
 0x208   : > { %v5085_v38 = vsel %vm10407_vm11, %v5076_v16, %v5084_v11  ;;  %v4103_v0 = vshll.u32 %v3970_v29, 16  ;;  %v5101_v40 = vrot.slane %v14932_v63, 7  ;;  %15263 = vst [vmem:[#allocation31_spill] sm:$0xff] %v12324_v17  ;;  %15264 = vst [vmem:[#allocation44_spill] sm:$0xff] %v12326_v48  ;;  %v14933_v15 = vshll.u32 %v11951_v39, 16 }
 0x209   : > { %v8932_v49 = vcombine.low %v5075_v61, %v5085_v38  ;;  %v5094_v57 = vrot.slane %v5093_v52, 4  ;;  %v5108_v43 = vrot.slane %v5106_v2, 6  ;;  %v5111_v35 = vrot.slane %v5109_v18, 7  ;;  %v12332_v11 = vpop.f32.mrf.mxu1 }
 0x20a   : > { %v4102_v42 = vrot.slane %v4100_v5, 4  ;;  %v4105_v32 = vrot.slane %v4103_v0, 5  ;;  %v5102_v59 = vor.u32 %v5101_v40, %v5098_v47  ;;  %v14934_v16 = vshrl.u32 %v11951_v39, 16  ;;  %15265 = vst [vmem:[#allocation43_spill] sm:$0xff] %v12332_v11  ;;  %v12337_v5 = vpop.f32.mrf.mxu0 }
 0x20b   : > { %9725 = vmatmul.mubr.msk.bf16.gmra.mxu0 %vm1038_vm5, %v8932_v49  ;;  %v4119_v29 = vshll.u32 %v11972_v50, 16  ;;  %v4124_v61 = vshrl.u32 %v3973_v46, 16  ;;  %v5112_v2 = vor.u32 %v5111_v35, %v5108_v43  ;;  %v4111_v18 = vrot.slane %v14933_v15, 5  ;;  %15266 = vst [vmem:[#allocation18_spill] sm:$0xff] %v12337_v5  ;;  %v12343_v40 = vpop.f32.mrf.mxu1  ;;  %v4965_v35 = vld [vmem:[#allocation2 + $0x70] sm:$0xc] }
 0x20c   : > { %v4106_v38 = vor.u32 %v4105_v32, %v4102_v42  ;;  %v5103_v0 = vsel %vm10407_vm11, %v5094_v57, %v5102_v59  ;;  %v5104_v47 = vrot.slane %v5102_v59, 4  ;;  %v4115_v49 = vrot.slane %v14934_v16, 4  ;;  %15267 = vst [vmem:[#allocation19_spill] sm:$0xff] %v12343_v40  ;;  %v12346_v43 = vpop.f32.mrf.mxu0  ;;  %v12352_v16 = vld [vmem:[#allocation2 + $0x74] sm:$0xf] }
 0x20d   : > { %v4121_v50 = vrot.slane %v4119_v29, 5  ;;  %v4126_v48 = vrot.slane %v4124_v61, 4  ;;  %v4127_v52 = vshll.u32 %v3973_v46, 16  ;;  %v14935_v42 = vshll.u32 %v11986_v12, 16  ;;  %15268 = vst [vmem:[#allocation38_spill] sm:$0xff] %v12346_v43  ;;  %15269 = vst [vmem:[#allocation40_spill] sm:$0xff] %v12352_v16  ;;  %v12354_v29 = vpop.f32.mrf.mxu1 }
 0x20e   : > { %v4107_v63 = vrot.slane %v4106_v38, 4  ;;  %v5113_v32 = vsel %vm10407_vm11, %v5104_v47, %v5112_v2  ;;  %v4116_v15 = vor.u32 %v4115_v49, %v4111_v18  ;;  %v14936_v57 = vshrl.u32 %v11986_v12, 16  ;;  %v4967_v5 = vld [vmem:[#allocation2 + $0x78] sm:$0x7]  ;;  %v12360_v40 = vpop.f32.mrf.mxu0 }
 0x20f   : > { %v4143_v59 = vshll.u32 %v11988_v54, 16  ;;  %v8933_v38 = vcombine.low %v5103_v0, %v5113_v32  ;;  %v4129_v61 = vrot.slane %v4127_v52, 5  ;;  %v4135_v43 = vrot.slane %v14935_v42, 5  ;;  %15270 = vst [vmem:[#allocation20_spill] sm:$0xff] %v12360_v40  ;;  %v12364_v11 = vpop.f32.mrf.mxu1 }
 0x210   : > { %v4112_v46 = vsel %vm10525_vm14, %v4107_v63, %v4111_v18  ;;  %v4117_v2 = vrot.slane %v4116_v15, 4  ;;  %v4139_v47 = vrot.slane %v14936_v57, 4  ;;  %v5115_v49 = vshrl.u32 %v4965_v35, 16  ;;  %v12369_v18 = vpop.f32.mrf.mxu0 }
 0x211   : > { %v4145_v54 = vrot.slane %v4143_v59, 5  ;;  %9728 = vmatprep.mubr.msk.bf16.mxu0 %vm1038_vm5, %v8933_v38  ;;  %v4130_v0 = vor.u32 %v4129_v61, %v4126_v48  ;;  %v5118_v32 = vshll.u32 %v4965_v35, 16  ;;  %v14937_v63 = vshrl.u32 %v12352_v16, 16  ;;  %15271 = vst [vmem:[#allocation21_spill] sm:$0xff] %v12369_v18  ;;  %v4968_v59 = vld [vmem:[#allocation2 + $0x80] sm:$0xc]  ;;  %v12373_v17 = vpop.f32.mrf.mxu1 }
 0x212   : > { %v4122_v15 = vsel %vm10525_vm14, %v4117_v2, %v4121_v50  ;;  %v4140_v42 = vor.u32 %v4139_v47, %v4135_v43  ;;  %v5117_v40 = vrot.slane %v5115_v49, 6  ;;  %v5134_v57 = vshrl.u32 %v4967_v5, 16  ;;  %v12377_v35 = vld [vmem:[#allocation2 + $0x84] sm:$0xf]  ;;  %v12379_v61 = vpop.f32.mrf.mxu0 }
 0x213   : > { %v8875_v60 = vcombine.low %v4112_v46, %v4122_v15  ;;  %v4131_v13 = vrot.slane %v4130_v0, 4  ;;  %v5120_v38 = vrot.slane %v5118_v32, 7  ;;  %v5126_v48 = vrot.slane %v14937_v63, 6  ;;  %15272 = vst [vmem:[#allocation41_spill] sm:$0xff] %v12377_v35  ;;  %15273 = vst [vmem:[#allocation45_spill] sm:$0xff] %v12379_v61  ;;  %v12383_v49 = vpop.f32.mrf.mxu1 }
 0x214   : > { %v4141_v52 = vrot.slane %v4140_v42, 4  ;;  %v15274_v18 = vshll.u32 %v12352_v16, 16  ;;  %v5136_v2 = vrot.slane %v5134_v57, 6  ;;  %v5137_v47 = vshll.u32 %v4967_v5, 16  ;;  %v12388_v63 = vpop.f32.mrf.mxu0 }
 0x215   : > { %9675 = vmatmul.mubr.msk.bf16.gmra.mxu1 %vm1038_vm5, %v8875_v60  ;;  %v4136_v46 = vsel %vm10525_vm14, %v4131_v13, %v4135_v43  ;;  %v5121_v0 = vor.u32 %v5120_v38, %v5117_v40  ;;  %v5143_v32 = vshrl.u32 %v4968_v59, 16  ;;  %v5146_v15 = vshll.u32 %v4968_v59, 16  ;;  %15275 = vst [vmem:[#allocation50_spill] sm:$0xff] %v12388_v63  ;;  %v12393_v57 = vpop.f32.mrf.mxu1  ;;  %v3976_v13 = vld [vmem:[#allocation2 + $0x84] sm:$0xf] }
 0x216   : > { %v5129_v50 = vrot.slane %v15274_v18, 7  ;;  %v4146_v42 = vsel %vm10525_vm14, %v4141_v52, %v4145_v54  ;;  %v5139_v27 = vrot.slane %v5137_v47, 7  ;;  %v4970_v18 = vld [vmem:[#allocation2 + $0x88] sm:$0x7]  ;;  %v14938_v5 = vshrl.u32 %v12377_v35, 16  ;;  %v12395_v40 = vpop.f32.mrf.mxu0 }
 0x217   : > { %v8876_v4 = vcombine.low %v4136_v46, %v4146_v42  ;;  %v5122_v60 = vrot.slane %v5121_v0, 4  ;;  %v5145_v1 = vrot.slane %v5143_v32, 6  ;;  %v5148_v31 = vrot.slane %v5146_v15, 7  ;;  %15276 = vst [vmem:[#allocation52_spill] sm:$0xff] %v12395_v40  ;;  %v12400_v52 = vpop.f32.mrf.mxu1  ;;  %v4971_v42 = vld [vmem:[#allocation2 + $0x90] sm:$0xc] }
 0x218   : > { %v5130_v61 = vor.u32 %v5129_v50, %v5126_v48  ;;  %v5140_v59 = vor.u32 %v5139_v27, %v5136_v2  ;;  %v5154_v38 = vrot.slane %v14938_v5, 6  ;;  %v14939_v54 = vshll.u32 %v12377_v35, 16  ;;  %15277 = vst [vmem:[#allocation46_spill] sm:$0xff] %v12400_v52  ;;  %v12405_v0 = vpop.f32.mrf.mxu0 }
 0x219   : > { %9678 = vmatprep.mubr.msk.bf16.mxu1 %vm1038_vm5, %v8876_v4  ;;  %v5149_v50 = vor.u32 %v5148_v31, %v5145_v1  ;;  %v5162_v47 = vshrl.u32 %v4970_v18, 16  ;;  %v5165_v46 = vshll.u32 %v4970_v18, 16  ;;  %15278 = vst [vmem:[#allocation51_spill] sm:$0xff] %v12405_v0  ;;  %v4148_v32 = vshrl.u32 %v3976_v13, 16  ;;  %v12411_v5 = vpop.f32.mrf.mxu1 }
 0x21a   : > { %v5132_v43 = vrot.slane %v5130_v61, 4  ;;  %v5131_v48 = vsel %vm10407_vm11, %v5122_v60, %v5130_v61  ;;  %v5157_v2 = vrot.slane %v14939_v54, 7  ;;  %v4151_v15 = vshll.u32 %v3976_v13, 16  ;;  %15279 = vst [vmem:[#allocation54_spill] sm:$0xff] %v12411_v5  ;;  %v12413_v31 = vpop.f32.mrf.mxu0 }
 0x21b   : > { %v5150_v40 = vrot.slane %v5149_v50, 4  ;;  %v5164_v63 = vrot.slane %v5162_v47, 6  ;;  %v5167_v61 = vrot.slane %v5165_v46, 7  ;;  %15280 = vst [vmem:[#allocation55_spill] sm:$0xff] %v12413_v31  ;;  %v4150_v18 = vrot.slane %v4148_v32, 4 }
 0x21c   : > { %v5141_v27 = vsel %vm10407_vm11, %v5132_v43, %v5140_v59  ;;  %v5158_v1 = vor.u32 %v5157_v2, %v5154_v38  ;;  %v4153_v60 = vrot.slane %v4151_v15, 5  ;;  %v14940_v0 = vshll.u32 %v12034_v62, 16  ;;  %v12416_v43 = vpop.f32.mrf.mxu1  ;;  %v12423_v47 = vpop.f32.mrf.mxu0  ;;  %v4973_v32 = vld [vmem:[#allocation2 + $0x98] sm:$0x7] }
 0x21d   : > { %v8934_v4 = vcombine.low %v5131_v48, %v5141_v27  ;;  %15281 = vst [vmem:[#allocation56_spill] sm:$0xff] %v12416_v43  ;;  %v5168_v59 = vor.u32 %v5167_v61, %v5164_v63  ;;  %v14943_v13 = vshrl.u32 %v12034_v62, 16  ;;  %v4167_v54 = vshll.u32 %v12036_v6, 16  ;;  %v12421_v48 = vld [vmem:[#allocation2 + $0x94] sm:$0xf]  ;;  %15283 = vst [vmem:[#allocation59_spill] sm:$0xff] %v12423_v47 }
 0x21e   : > { %15282 = vst [vmem:[#allocation49_spill] sm:$0xff] %v12421_v48  ;;  %v5171_v50 = vshrl.u32 %v4971_v42, 16  ;;  %v5160_v46 = vrot.slane %v5158_v1, 4  ;;  %v4154_v27 = vor.u32 %v4153_v60, %v4150_v18  ;;  %v4159_v2 = vrot.slane %v14940_v0, 5  ;;  %v12428_v15 = vpop.f32.mrf.mxu1  ;;  %v12434_v31 = vpop.f32.mrf.mxu0 }
 0x21f   : > { %9729 = vmatmul.mubr.msk.bf16.gmra.mxu0 %vm1038_vm5, %v8934_v4  ;;  %15284 = vst [vmem:[#allocation60_spill] sm:$0xff] %v12428_v15  ;;  %v5159_v63 = vsel %vm10407_vm11, %v5150_v40, %v5158_v1  ;;  %v4163_v6 = vrot.slane %v14943_v13, 4  ;;  %v4169_v4 = vrot.slane %v4167_v54, 5  ;;  %15285 = vst [vmem:[#allocation22_spill] sm:$0xff] %v12434_v31  ;;  %v5174_v60 = vshll.u32 %v4971_v42, 16 }
 0x220   : > { %v5173_v61 = vrot.slane %v5171_v50, 6  ;;  %v5169_v38 = vsel %vm10407_vm11, %v5160_v46, %v5168_v59  ;;  %v4155_v18 = vrot.slane %v4154_v27, 4  ;;  %v14944_v0 = vshrl.u32 %v12421_v48, 16  ;;  %v12439_v47 = vpop.f32.mrf.mxu1  ;;  %v12442_v43 = vpop.f32.mrf.mxu0 }
 0x221   : > { %15286 = vst [vmem:[#allocation57_spill] sm:$0xff] %v12439_v47  ;;  %v8935_v15 = vcombine.low %v5159_v63, %v5169_v38  ;;  %v4164_v35 = vor.u32 %v4163_v6, %v4159_v2  ;;  %v14947_v40 = vshll.u32 %v12421_v48, 16  ;;  %v5190_v1 = vshrl.u32 %v4973_v32, 16  ;;  %15287 = vst [vmem:[#allocation58_spill] sm:$0xff] %v12442_v43  ;;  %v10051_v6 = vld [vmem:[#allocation2 + $0x14] sm:$0xe] }
 0x222   : > { %v4160_v54 = vsel %vm10525_vm14, %v4155_v18, %v4159_v2  ;;  %v5176_v50 = vrot.slane %v5174_v60, 7  ;;  %v5182_v59 = vrot.slane %v14944_v0, 6  ;;  %v5193_v46 = vshll.u32 %v4973_v32, 16  ;;  %v12448_v42 = vpop.f32.mrf.mxu1  ;;  %v4591_v47 = vld [vmem:[#allocation2 + $0x1c] sm:$0x3]  ;;  %v12455_v0 = vpop.f32.mrf.mxu0 }
 0x223   : > { %15288 = vst [vmem:[#allocation47_spill] sm:$0xff] %v12448_v42  ;;  %9732 = vmatprep.mubr.msk.bf16.mxu0 %vm1038_vm5, %v8935_v15  ;;  %v4165_v27 = vrot.slane %v4164_v35, 4  ;;  %v5185_v38 = vrot.slane %v14947_v40, 7  ;;  %v5192_v63 = vrot.slane %v5190_v1, 6  ;;  %v4600_v13 = vshrl.u32 %v10051_v6, 16  ;;  %15290 = vst [vmem:[#allocation61_spill] sm:$0xff] %v12455_v0 }
 0x224   : > { %v5177_v43 = vor.u32 %v5176_v50, %v5173_v61  ;;  %v5195_v31 = vrot.slane %v5193_v46, 7  ;;  %v4603_v2 = vshll.u32 %v10051_v6, 16  ;;  %v15289_v18 = vshrl.u32 %v11761_v3, 16  ;;  %v12457_v32 = vpop.f32.mrf.mxu1  ;;  %v12463_v6 = vpop.f32.mrf.mxu0 }
 0x225   : > { %15291 = vst [vmem:[#allocation13_spill] sm:$0xff] %v12457_v32  ;;  %v4170_v35 = vsel %vm10525_vm14, %v4165_v27, %v4169_v4  ;;  %v5186_v15 = vor.u32 %v5185_v38, %v5182_v59  ;;  %v4602_v48 = vrot.slane %v4600_v13, 5  ;;  %v15292_v1 = vshll.u32 %v11761_v3, 16  ;;  %15293 = vst [vmem:[#allocation15_spill] sm:$0xff] %v12463_v6  ;;  %v5620_v6 = vld [vmem:[#allocation2 + $0x48] sm:$0xf] }
 0x226   : > { %v4608_v60 = vrot.slane %v15289_v18, 5  ;;  %v8877_v42 = vcombine.low %v4160_v54, %v4170_v35  ;;  %v5178_v61 = vrot.slane %v5177_v43, 4  ;;  %v5196_v50 = vor.u32 %v5195_v31, %v5192_v63  ;;  %v12465_v52 = vpop.f32.mrf.mxu1  ;;  %v4592_v31 = vld [vmem:[#allocation2 + $0x2c] sm:$0x3]  ;;  %v12476_v54 = vpop.f32.mrf.mxu0 }
 0x227   : > { %v4609_v40 = vrot.slane %v15292_v1, 6  ;;  %v4605_v46 = vrot.slane %v4603_v2, 6  ;;  %v5188_v5 = vrot.slane %v5186_v15, 4  ;;  %v4614_v16 = vshrl.u32 %v4591_v47, 16  ;;  %15294 = vst [vmem:[#allocation9_spill] sm:$0xff] %v12465_v52  ;;  %15296 = vst [vmem:[#allocation24_spill] sm:$0xff] %v12476_v54 }
 0x228   : > { %v4617_v0 = vshll.u32 %v4591_v47, 16  ;;  %v15295_v32 = vshrl.u32 %v12047_v58, 16  ;;  %9679 = vmatmul.mubr.msk.bf16.gmra.mxu1 %vm1038_vm5, %v8877_v42  ;;  %v5187_v3 = vsel %vm10407_vm11, %v5178_v61, %v5186_v15  ;;  %v4629_v13 = vor.u32 %v11896_v9, %v11887_v51  ;;  %v12480_v38 = vpop.f32.mrf.mxu1  ;;  %v4593_v1 = vld [vmem:[#allocation2 + $0x3c] sm:$0x3]  ;;  %v10052_v61 = vld [vmem:[#allocation2 + $0x34] sm:$0xe] }
 0x229   : > { %v4610_v18 = vor.u32 %v4609_v40, %v4608_v60  ;;  %v4606_v43 = vor.u32 %v4605_v46, %v4602_v48  ;;  %v5197_v47 = vsel %vm10407_vm11, %v5188_v5, %v5196_v50  ;;  %v4616_v59 = vrot.slane %v4614_v16, 5  ;;  %15297 = vst [vmem:[#allocation10_spill] sm:$0xff] %v12480_v38 }
 0x22a   : > { %v12469_v4 = vrot.slane %v15295_v32, 5  ;;  %v4619_v27 = vrot.slane %v4617_v0, 6  ;;  %v15298_v42 = vshll.u32 %v12047_v58, 16  ;;  %v8936_v2 = vcombine.low %v5187_v3, %v5197_v47  ;;  %v12486_v32 = vpop.f32.mrf.mxu0  ;;  %v12489_v5 = vpop.f32.mrf.mxu1 }
 0x22b   : > { %v4612_v40 = vrot.slane %v4610_v18, 4  ;;  %v4607_v48 = vrot.slane %v4606_v43, 4  ;;  %v4630_v60 = vrot.slane %v4629_v13, 4  ;;  %15299 = vst [vmem:[#allocation16_spill] sm:$0xff] %v12486_v32  ;;  %v4635_v9 = vrot.slane %v12136_v20, 4  ;;  %15300 = vst [vmem:[#allocation12_spill] sm:$0xff] %v12489_v5 }
 0x22c   : > { %v12484_v63 = vrot.slane %v15298_v42, 6  ;;  %v4620_v51 = vor.u32 %v4619_v27, %v4616_v59  ;;  %v4637_v35 = vshrl.u32 %v4592_v31, 16  ;;  %v4640_v15 = vshll.u32 %v4592_v31, 16  ;;  %9733 = vmatmul.mubr.msk.bf16.gmra.mxu0 %vm1038_vm5, %v8936_v2  ;;  %v12501_v59 = vld [vmem:[#allocation2 + $0x20] sm:$0x8]  ;;  %v12503_v27 = vpop.f32.mrf.mxu1 }
 0x22d   : > { %v4611_v0 = vsel %vm10646_vm1, %v4607_v48, %v4610_v18  ;;  %v4634_v58 = vsel %vm10646_vm1, %v4630_v60, %v12136_v20  ;;  %v4646_v50 = vshrl.u32 %v10052_v61, 16  ;;  %v4649_v46 = vshll.u32 %v10052_v61, 16  ;;  %15303 = vst [vmem:[#allocation23_spill] sm:$0xff] %v12503_v27  ;;  %v12507_v60 = vpop.f32.mrf.mxu0  ;;  %v12569_v5 = vld [vmem:[#allocation2 + $0x40] sm:$0x8] }
 0x22e   : > { %v4621_v3 = vsel %vm10646_vm1, %v4612_v40, %v4620_v51  ;;  %v4639_v43 = vrot.slane %v4637_v35, 5  ;;  %v4642_v31 = vrot.slane %v4640_v15, 6  ;;  %v15302_v13 = vshrl.u32 %v11832_v23, 16  ;;  %15305 = vst [vmem:[#allocation14_spill] sm:$0xff] %v12507_v60  ;;  %v12512_v40 = vld [vmem:[%s14821_s3 + $0x48] sm:$0xf] }
 0x22f   : > { %v8912_v18 = vcombine.low %v4611_v0, %v4621_v3  ;;  %v4648_v42 = vrot.slane %v4646_v50, 5  ;;  %v4651_v2 = vrot.slane %v4649_v46, 6  ;;  %v15304_v20 = vshll.u32 %v11832_v23, 16  ;;  %v5618_v3 = vld [vmem:[#allocation2 + $0x28] sm:$0xf] }
 0x230   : > { %v4654_v47 = vrot.slane %v15302_v13, 5  ;;  %v4643_v51 = vor.u32 %v4642_v31, %v4639_v43  ;;  %v4660_v35 = vshrl.u32 %v4593_v1, 16  ;;  %v4663_v15 = vshll.u32 %v4593_v1, 16  ;;  %v12516_v13 = vpop.f32.mrf.mxu1  ;;  %v12524_v43 = vpop.f32.mrf.mxu0 }
 0x231   : > { %v4655_v48 = vrot.slane %v15304_v20, 6  ;;  %v5813_v61 = vsel %vm1063_vm3, %v12146_v10, 0  ;;  %v15306_v0 = vshll.u32 %v11881_v55, 16  ;;  %9702 = vmatprep.mubr.msk.bf16.mxu1 %vm1038_vm5, %v8912_v18  ;;  %v4652_v23 = vor.u32 %v4651_v2, %v4648_v42  ;;  %15307 = vst [vmem:[#allocation37_spill] sm:$0xff] %v12524_v43  ;;  %v5619_v43 = vld [vmem:[#allocation2 + $0x38] sm:$0xf] }
 0x232   : > { %9755 = vmatpush3.bf16.msra.mxu0 %v5813_v61  ;;  %v5627_v20 = vshrl.u32 %v12501_v59, 16  ;;  %v4644_v1 = vsel %vm10646_vm1, %v4635_v9, %v4643_v51  ;;  %v4662_v10 = vrot.slane %v4660_v35, 5  ;;  %v4665_v31 = vrot.slane %v4663_v15, 6  ;;  %v12532_v18 = vpop.f32.mrf.mxu1  ;;  %v12536_v61 = vld [vmem:[#allocation2 + $0x30] sm:$0x8] }
 0x233   : > { %v12520_v50 = vrot.slane %v15306_v0, 6  ;;  %v4656_v46 = vor.u32 %v4655_v48, %v4654_v47  ;;  %v15308_v45 = vshrl.u32 %v12152_v56, 16  ;;  %9952 = vmatprep.subr.msk.bf16.mxu0 %vm1063_vm3, %v12512_v40  ;;  %v8913_v47 = vcombine.low %v4634_v58, %v4644_v1  ;;  %v12538_v0 = vpop.f32.mrf.mxu0  ;;  %v12545_v58 = vld [vmem:[%s14821_s3 + $0x44] sm:$0xf] }
 0x234   : > { %v5503_v42 = vsel %vm1063_vm3, %v12210_v37, 0  ;;  %v4653_v2 = vrot.slane %v4652_v23, 4  ;;  %15309 = vst [vmem:[#allocation62_spill] sm:$0xff] %v12538_v0  ;;  %v4666_v9 = vor.u32 %v4665_v31, %v4662_v10  ;;  %v8970_v51 = vrot.slane %v5627_v20, 11  ;;  %v12547_v1 = vpop.f32.mrf.mxu1 }
 0x235   : > { %v5631_v60 = vrot.slane %v15308_v45, 7  ;;  %v4658_v48 = vrot.slane %v4656_v46, 4  ;;  %v15310_v35 = vshll.u32 %v12152_v56, 16  ;;  %v5636_v15 = vshrl.u32 %v5618_v3, 16  ;;  %9703 = vmatmul.mubr.msk.bf16.vlgmr.msra.gmra.mxu1 %vm1038_vm5, %v8913_v47  ;;  %v12555_v31 = vpop.f32.mrf.mxu0 }
 0x236   : > { %v15311_v37 = vshll.u32 %v11951_v39, 16  ;;  %v5639_v20 = vshll.u32 %v5618_v3, 16  ;;  %v5644_v56 = vshrl.u32 %v12536_v61, 16  ;;  %15312 = vst [vmem:[#allocation63_spill] sm:$0xff] %v12555_v31  ;;  %9737 = vmatpush3.bf16.msra.mxu1 %v5503_v42  ;;  %v15313_v54 = vshrl.u32 %v12176_v44, 16  ;;  %v12563_v27 = vpop.f32.mrf.mxu1 }
 0x237   : > { %v5632_v45 = vor.u32 %v5631_v60, %v15310_v35  ;;  %v5634_v10 = vrot.slane %v5631_v60, 4  ;;  %v4657_v35 = vsel %vm10646_vm1, %v4653_v2, %v4656_v46  ;;  %v4667_v0 = vsel %vm10646_vm1, %v4658_v48, %v4666_v9  ;;  %15314 = vst [vmem:[#allocation64_spill] sm:$0xff] %v12563_v27  ;;  %9951 = vmatprep.subr.msk.bf16.mxu1 %vm1063_vm3, %v12545_v58  ;;  %v12573_v46 = vpop.f32.mrf.mxu0 }
 0x238   : > { %v12551_v23 = vrot.slane %v15311_v37, 6  ;;  %v5638_v32 = vrot.slane %v5636_v15, 7  ;;  %v5648_v37 = vrot.slane %v15313_v54, 7  ;;  %v15315_v60 = vshll.u32 %v12034_v62, 16  ;;  %15316 = vst [vmem:[#allocation65_spill] sm:$0xff] %v12573_v46 }
 0x239   : > { %v8914_v47 = vcombine.low %v4657_v35, %v4667_v0  ;;  %v8971_v31 = vrot.slane %v5644_v56, 11  ;;  %v5653_v42 = vshrl.u32 %v5619_v43, 16  ;;  %v5633_v54 = vsel %vm10337_vm8, %v8970_v51, %v5632_v45  ;;  %v12585_v46 = vpop.f32.mrf.mxu0 }
 0x23a   : > { %v12567_v3 = vrot.slane %v15315_v60, 6  ;;  %v5641_v2 = vor.u32 %v5639_v20, %v5638_v32  ;;  %v15317_v48 = vshll.u32 %v12176_v44, 16  ;;  %v5661_v15 = vshrl.u32 %v12569_v5, 16  ;;  %v12580_v60 = vpop.f32.mrf.mxu1  ;;  %15320 = vst [vmem:[#allocation67_spill] sm:$0xff] %v12585_v46  ;;  %v4594_v20 = vld [vmem:[#allocation2 + $0x4c] sm:$0x3] }
 0x23b   : > { %15318 = vst [vmem:[#allocation66_spill] sm:$0xff] %v12580_v60  ;;  %9706 = vmatprep.mubr.msk.bf16.mxu1 %vm1038_vm5, %v8914_v47  ;;  %v5655_v0 = vrot.slane %v5653_v42, 7  ;;  %v5656_v56 = vshll.u32 %v5619_v43, 16  ;;  %v15319_v35 = vshrl.u32 %v12193_v34, 16  ;;  %v5670_v38 = vshrl.u32 %v5620_v6, 16  ;;  %v12595_v52 = vpop.f32.mrf.mxu0 }
 0x23c   : > { %v5649_v9 = vor.u32 %v5648_v37, %v15317_v48  ;;  %v5642_v32 = vsel %vm10337_vm8, %v5634_v10, %v5641_v2  ;;  %v5651_v51 = vrot.slane %v5648_v37, 4  ;;  %v8972_v44 = vrot.slane %v5661_v15, 11  ;;  %v12589_v48 = vpop.f32.mrf.mxu1  ;;  %15322 = vst [vmem:[#allocation68_spill] sm:$0xff] %v12595_v52  ;;  %v15357_v52 = vld [vmem:[#allocation56_spill] sm:$0xff] }
 0x23d   : > { %v5665_v27 = vrot.slane %v15319_v35, 7  ;;  %v5673_v45 = vshll.u32 %v5620_v6, 16  ;;  %v8979_v60 = vcombine.low %v5633_v54, %v5642_v32  ;;  %v5658_v43 = vor.u32 %v5656_v56, %v5655_v0  ;;  %v10053_v32 = vld [vmem:[#allocation2 + $0x54] sm:$0xe] }
 0x23e   : > { %v5650_v47 = vsel %vm10337_vm8, %v8971_v31, %v5649_v9  ;;  %v15321_v42 = vshll.u32 %v12193_v34, 16  ;;  %v5672_v22 = vrot.slane %v5670_v38, 7  ;;  %v4675_v10 = vor.u32 %v11977_v21, %v11953_v53  ;;  %v12601_v2 = vpop.f32.mrf.mxu1 }
 0x23f   : > { %v5668_v46 = vrot.slane %v5665_v27, 4  ;;  %v15323_v6 = vshrl.u32 %v11881_v55, 16  ;;  %9756 = vmatprep.mubr.msk.bf16.mxu0 %vm1038_vm5, %v8979_v60  ;;  %v5659_v31 = vsel %vm10337_vm8, %v5651_v51, %v5658_v43  ;;  %v4683_v54 = vshrl.u32 %v4594_v20, 16  ;;  %v4595_v60 = vld [vmem:[#allocation2 + $0x5c] sm:$0x3] }
 0x240   : > { %v5666_v35 = vor.u32 %v5665_v27, %v15321_v42  ;;  %v4686_v9 = vshll.u32 %v4594_v20, 16  ;;  %v12608_v27 = vpop.f32.mrf.mxu0  ;;  %v8980_v38 = vcombine.low %v5650_v47, %v5659_v31  ;;  %v5675_v15 = vor.u32 %v5673_v45, %v5672_v22  ;;  %v12611_v21 = vpop.f32.mrf.mxu1  ;;  %v12624_v31 = vld [vmem:[#allocation2 + $0x50] sm:$0x8] }
 0x241   : > { %v4677_v37 = vrot.slane %v15323_v6, 5  ;;  %15324 = vst [vmem:[#allocation69_spill] sm:$0xff] %v12608_v27  ;;  %v4676_v53 = vrot.slane %v4675_v10, 4  ;;  %v4685_v0 = vrot.slane %v4683_v54, 5  ;;  %v4692_v42 = vshrl.u32 %v10053_v32, 16 }
 0x242   : > { %v5667_v34 = vsel %vm10337_vm8, %v8972_v44, %v5666_v35  ;;  %v4688_v56 = vrot.slane %v4686_v9, 6  ;;  %v4695_v51 = vshll.u32 %v10053_v32, 16  ;;  %v12613_v43 = vpop.f32.mrf.mxu0  ;;  %9757 = vmatmul.mubr.msk.bf16.vlgmr.msra.gmra.mxu0 %vm1038_vm5, %v8980_v38  ;;  %v5676_v44 = vsel %vm10337_vm8, %v5668_v46, %v5675_v15  ;;  %v12622_v47 = vpop.f32.mrf.mxu1 }
 0x243   : > { %v4679_v55 = vor.u32 %v12520_v50, %v4677_v37  ;;  %15325 = vst [vmem:[#allocation70_spill] sm:$0xff] %v12613_v43  ;;  %v15326_v50 = vshrl.u32 %v11904_v26, 16  ;;  %v8981_v35 = vcombine.low %v5667_v34, %v5676_v44  ;;  %v4694_v6 = vrot.slane %v4692_v42, 5  ;;  %v12646_v44 = vld [vmem:[#allocation2 + $0x60] sm:$0x8] }
 0x244   : > { %v4689_v10 = vor.u32 %v4688_v56, %v4685_v0  ;;  %v4697_v37 = vrot.slane %v4695_v51, 6  ;;  %v12626_v54 = vpop.f32.mrf.mxu0  ;;  %v12630_v46 = vadd.f32 %v12354_v29, %v12163_v24  ;;  %v15328_v9 = vshll.u32 %v11904_v26, 16  ;;  %v12634_v32 = vpop.f32.mrf.mxu1 }
 0x245   : > { %v4680_v22 = vsel %vm10646_vm1, %v4676_v53, %v4679_v55  ;;  %v4681_v45 = vrot.slane %v4679_v55, 4  ;;  %v4700_v20 = vrot.slane %v15326_v50, 5  ;;  %15327 = vst [vmem:[#allocation71_spill] sm:$0xff] %v12626_v54  ;;  %v4706_v15 = vshrl.u32 %v4595_v60, 16  ;;  %v5621_v55 = vld [vmem:[#allocation2 + $0x58] sm:$0xf]  ;;  %9760 = vmatprep.mubr.msk.bf16.mxu0 %vm1038_vm5, %v8981_v35 }
 0x246   : > { %v4701_v38 = vrot.slane %v15328_v9, 6  ;;  %v4709_v53 = vshll.u32 %v4595_v60, 16  ;;  %v12638_v34 = vadd.f32 %v12364_v11, %v12182_v19  ;;  %v4698_v56 = vor.u32 %v4697_v37, %v4694_v6  ;;  %v12644_v29 = vpop.f32.mrf.mxu0  ;;  %v12648_v50 = vpop.f32.mrf.mxu1  ;;  %v5622_v6 = vld [vmem:[#allocation2 + $0x68] sm:$0xf] }
 0x247   : > { %v4690_v0 = vsel %vm10646_vm1, %v4681_v45, %v4689_v10  ;;  %v5678_v24 = vshrl.u32 %v12624_v31, 16  ;;  %15329 = vst [vmem:[#allocation72_spill] sm:$0xff] %v12644_v29  ;;  %v4708_v60 = vrot.slane %v4706_v15, 5  ;;  %v12652_v19 = vadd.f32 %v12373_v17, %v12199_v28 }
 0x248   : > { %v8915_v26 = vcombine.low %v4680_v22, %v4690_v0  ;;  %v4702_v42 = vor.u32 %v4701_v38, %v4700_v20  ;;  %v4711_v51 = vrot.slane %v4709_v53, 6  ;;  %v4699_v11 = vrot.slane %v4698_v56, 4  ;;  %v12656_v37 = vpop.f32.mrf.mxu0  ;;  %v12660_v15 = vpop.f32.mrf.mxu1 }
 0x249   : > { %v15330_v45 = vshrl.u32 %v12265_v25, 16  ;;  %v5687_v10 = vshrl.u32 %v5621_v55, 16  ;;  %15331 = vst [vmem:[#allocation73_spill] sm:$0xff] %v12656_v37  ;;  %v8973_v9 = vrot.slane %v5678_v24, 11  ;;  %v5695_v38 = vshrl.u32 %v12646_v44, 16 }
 0x24a   : > { %9707 = vmatmul.mubr.msk.bf16.gmra.mxu1 %vm1038_vm5, %v8915_v26  ;;  %v4704_v22 = vrot.slane %v4702_v42, 4  ;;  %v4712_v20 = vor.u32 %v4711_v51, %v4708_v60  ;;  %v4703_v28 = vsel %vm10646_vm1, %v4699_v11, %v4702_v42  ;;  %v15332_v17 = vshll.u32 %v12265_v25, 16  ;;  %v12672_v29 = vpop.f32.mrf.mxu1 }
 0x24b   : > { %v5682_v35 = vrot.slane %v15330_v45, 7  ;;  %v5689_v0 = vrot.slane %v5687_v10, 7  ;;  %v5690_v56 = vshll.u32 %v5621_v55, 16  ;;  %v12666_v45 = vpop.f32.mrf.mxu0  ;;  %v8974_v37 = vrot.slane %v5695_v38, 11  ;;  %v4596_v55 = vld [vmem:[#allocation2 + $0x6c] sm:$0x3] }
 0x24c   : > { %15333 = vst [vmem:[#allocation74_spill] sm:$0xff] %v12666_v45  ;;  %v4713_v26 = vsel %vm10646_vm1, %v4704_v22, %v4712_v20  ;;  %v15334_v24 = vshrl.u32 %v12296_v41, 16  ;;  %v5704_v51 = vshrl.u32 %v5622_v6, 16  ;;  %v12676_v42 = vadd.f32 %v12383_v49, %v12222_v30  ;;  %v12684_v54 = vpop.f32.mrf.mxu1 }
 0x24d   : > { %v5683_v53 = vor.u32 %v5682_v35, %v15332_v17  ;;  %v8916_v25 = vcombine.low %v4703_v28, %v4713_v26  ;;  %v5685_v11 = vrot.slane %v5682_v35, 4  ;;  %v5692_v10 = vor.u32 %v5690_v56, %v5689_v0  ;;  %v12678_v17 = vpop.f32.mrf.mxu0 }
 0x24e   : > { %v5699_v60 = vrot.slane %v15334_v24, 7  ;;  %15335 = vst [vmem:[#allocation75_spill] sm:$0xff] %v12678_v17  ;;  %v15336_v20 = vshll.u32 %v12296_v41, 16  ;;  %v5706_v24 = vrot.slane %v5704_v51, 7  ;;  %v5707_v45 = vshll.u32 %v5622_v6, 16  ;;  %v12697_v26 = vpop.f32.mrf.mxu1 }
 0x24f   : > { %v5684_v22 = vsel %vm10337_vm8, %v8973_v9, %v5683_v53  ;;  %9710 = vmatprep.mubr.msk.bf16.mxu1 %vm1038_vm5, %v8916_v25  ;;  %v5693_v30 = vsel %vm10337_vm8, %v5685_v11, %v5692_v10  ;;  %v4721_v35 = vor.u32 %v12248_v36, %v12030_v7  ;;  %v15337_v28 = vshrl.u32 %v11951_v39, 16  ;;  %v12693_v9 = vpop.f32.mrf.mxu0  ;;  %v4597_v11 = vld [vmem:[#allocation2 + $0x7c] sm:$0x3]  ;;  %v10054_v10 = vld [vmem:[#allocation2 + $0x74] sm:$0xe] }
 0x250   : > { %v5700_v38 = vor.u32 %v5699_v60, %v15336_v20  ;;  %v5702_v49 = vrot.slane %v5699_v60, 4  ;;  %15338 = vst [vmem:[#allocation76_spill] sm:$0xff] %v12693_v9  ;;  %v8982_v41 = vcombine.low %v5684_v22, %v5693_v30  ;;  %v5709_v53 = vor.u32 %v5707_v45, %v5706_v24  ;;  %v15352_v9 = vld [vmem:[#allocation54_spill] sm:$0xff] }
 0x251   : > { %v4723_v0 = vrot.slane %v15337_v28, 5  ;;  %v4729_v56 = vshrl.u32 %v4596_v55, 16  ;;  %v4722_v51 = vrot.slane %v4721_v35, 4  ;;  %v4732_v60 = vshll.u32 %v4596_v55, 16  ;;  %v12700_v36 = vpop.f32.mrf.mxu0 }
 0x252   : > { %v5701_v6 = vsel %vm10337_vm8, %v8974_v37, %v5700_v38  ;;  %v4738_v7 = vshrl.u32 %v10054_v10, 16  ;;  %15339 = vst [vmem:[#allocation77_spill] sm:$0xff] %v12700_v36  ;;  %9761 = vmatmul.mubr.msk.bf16.gmra.mxu0 %vm1038_vm5, %v8982_v41  ;;  %v5710_v39 = vsel %vm10337_vm8, %v5702_v49, %v5709_v53  ;;  %v4741_v37 = vshll.u32 %v10054_v10, 16  ;;  %v12707_v38 = vpop.f32.mrf.mxu1 }
 0x253   : > { %v4725_v25 = vor.u32 %v12551_v23, %v4723_v0  ;;  %v4731_v22 = vrot.slane %v4729_v56, 5  ;;  %v15340_v45 = vshrl.u32 %v11986_v12, 16  ;;  %15341 = vst [vmem:[#allocation78_spill] sm:$0xff] %v12707_v38  ;;  %v8983_v24 = vcombine.low %v5701_v6, %v5710_v39  ;;  %v12711_v35 = vpop.f32.mrf.mxu0  ;;  %v5623_v56 = vld [vmem:[#allocation2 + $0x78] sm:$0xf]  ;;  %v15345_v6 = vld [vmem:[#allocation46_spill] sm:$0xff] }
 0x254   : > { %v4734_v30 = vrot.slane %v4732_v60, 6  ;;  %15342 = vst [vmem:[#allocation79_spill] sm:$0xff] %v12711_v35  ;;  %v4740_v28 = vrot.slane %v4738_v7, 5  ;;  %v4743_v0 = vrot.slane %v4741_v37, 6  ;;  %v15343_v41 = vshll.u32 %v11986_v12, 16  ;;  %v12715_v10 = vpop.f32.mrf.mxu1 }
 0x255   : > { %v4746_v20 = vrot.slane %v15340_v45, 5  ;;  %v4726_v23 = vsel %vm10646_vm1, %v4722_v51, %v4725_v25  ;;  %v4727_v55 = vrot.slane %v4725_v25, 4  ;;  %v4752_v53 = vshrl.u32 %v4597_v11, 16  ;;  %15344 = vst [vmem:[#allocation80_spill] sm:$0xff] %v12715_v10  ;;  %9764 = vmatprep.mubr.msk.bf16.mxu0 %vm1038_vm5, %v8983_v24  ;;  %v12726_v7 = vld [vmem:[#allocation2 + $0x70] sm:$0x8]  ;;  %v12728_v12 = vpop.f32.mrf.mxu0 }
 0x256   : > { %v4747_v49 = vrot.slane %v15343_v41, 6  ;;  %v12719_v45 = vadd.f32 %v12393_v57, %v12234_v33  ;;  %v12723_v51 = vadd.f32 %v15345_v6, %v12239_v14  ;;  %v4735_v25 = vor.u32 %v4734_v30, %v4731_v22  ;;  %15346 = vst [vmem:[#allocation46_spill] sm:$0xff] %v12728_v12  ;;  %v12731_v36 = vpop.f32.mrf.mxu1  ;;  %v15348_v57 = vld [vmem:[#allocation40_spill] sm:$0xff] }
 0x257   : > { %v4755_v60 = vshll.u32 %v4597_v11, 16  ;;  %v4744_v39 = vor.u32 %v4743_v0, %v4740_v28  ;;  %v4754_v41 = vrot.slane %v4752_v53, 5  ;;  %v5712_v35 = vshrl.u32 %v12726_v7, 16  ;;  %15347 = vst [vmem:[#allocation81_spill] sm:$0xff] %v12731_v36  ;;  %v12737_v11 = vpop.f32.mrf.mxu0  ;;  %v15351_v30 = vld [vmem:[#allocation32_spill] sm:$0xff] }
 0x258   : > { %v4748_v37 = vor.u32 %v4747_v49, %v4746_v20  ;;  %v4736_v33 = vsel %vm10646_vm1, %v4727_v55, %v4735_v25  ;;  %v15349_v6 = vshrl.u32 %v15348_v57, 16  ;;  %v5721_v22 = vshrl.u32 %v5623_v56, 16  ;;  %15350 = vst [vmem:[#allocation40_spill] sm:$0xff] %v12737_v11  ;;  %v5624_v49 = vld [vmem:[#allocation2 + $0x88] sm:$0xf]  ;;  %v12743_v53 = vpop.f32.mrf.mxu1  ;;  %v15356_v11 = vld [vmem:[#allocation33_spill] sm:$0xff] }
 0x259   : > { %v4757_v14 = vrot.slane %v4755_v60, 6  ;;  %v12741_v12 = vadd.f32 %v15352_v9, %v15351_v30  ;;  %v8917_v20 = vcombine.low %v4726_v23, %v4736_v33  ;;  %v4745_v28 = vrot.slane %v4744_v39, 4  ;;  %15353 = vst [vmem:[#allocation32_spill] sm:$0xff] %v12743_v53  ;;  %v12749_v27 = vpop.f32.mrf.mxu0  ;;  %v15358_v33 = vld [vmem:[#allocation41_spill] sm:$0xff]  ;;  %v4598_v36 = vld [vmem:[#allocation2 + $0x8c] sm:$0x3] }
 0x25a   : > { %v5716_v24 = vrot.slane %v15349_v6, 7  ;;  %v4750_v0 = vrot.slane %v4748_v37, 4  ;;  %v8975_v43 = vrot.slane %v5712_v35, 11  ;;  %v15354_v55 = vshll.u32 %v15348_v57, 16  ;;  %v12747_v6 = vld [vmem:[#allocation2 + $0x80] sm:$0x8] }
 0x25b   : > { %v4758_v17 = vor.u32 %v4757_v14, %v4754_v41  ;;  %v5723_v60 = vrot.slane %v5721_v22, 7  ;;  %15355 = vst [vmem:[#allocation54_spill] sm:$0xff] %v12749_v27  ;;  %v12753_v9 = vadd.f32 %v15357_v52, %v15356_v11  ;;  %9711 = vmatmul.mubr.msk.bf16.gmra.mxu1 %vm1038_vm5, %v8917_v20  ;;  %v5724_v23 = vshll.u32 %v5623_v56, 16  ;;  %v12759_v14 = vpop.f32.mrf.mxu1  ;;  %v12765_v52 = vpop.f32.mrf.mxu0  ;;  %v15365_v10 = vld [vmem:[#allocation60_spill] sm:$0xff] }
 0x25c   : > { %v5717_v25 = vor.u32 %v5716_v24, %v15354_v55  ;;  %v5729_v39 = vshrl.u32 %v12747_v6, 16  ;;  %v15359_v41 = vshrl.u32 %v15358_v33, 16  ;;  %15360 = vst [vmem:[#allocation33_spill] sm:$0xff] %v12759_v14  ;;  %v4749_v57 = vsel %vm10646_vm1, %v4745_v28, %v4748_v37  ;;  %15361 = vst [vmem:[#allocation56_spill] sm:$0xff] %v12765_v52  ;;  %v15364_v14 = vld [vmem:[#allocation35_spill] sm:$0xff] }
 0x25d   : > { %v4759_v22 = vsel %vm10646_vm1, %v4750_v0, %v4758_v17  ;;  %v5719_v30 = vrot.slane %v5716_v24, 4  ;;  %v5738_v55 = vshrl.u32 %v5624_v49, 16  ;;  %v5726_v20 = vor.u32 %v5724_v23, %v5723_v60  ;;  %v12777_v28 = vpop.f32.mrf.mxu0 }
 0x25e   : > { %v5733_v35 = vrot.slane %v15359_v41, 7  ;;  %v8918_v11 = vcombine.low %v4749_v57, %v4759_v22  ;;  %v8976_v56 = vrot.slane %v5729_v39, 11  ;;  %v15362_v27 = vshll.u32 %v15358_v33, 16  ;;  %v12769_v41 = vpop.f32.mrf.mxu1  ;;  %15366 = vst [vmem:[#allocation35_spill] sm:$0xff] %v12777_v28  ;;  %v12786_v39 = vld [vmem:[#allocation2 + $0x90] sm:$0x8] }
 0x25f   : > { %15363 = vst [vmem:[#allocation41_spill] sm:$0xff] %v12769_v41  ;;  %v12773_v38 = vadd.f32 %v15365_v10, %v15364_v14  ;;  %v5718_v17 = vsel %vm10337_vm8, %v8975_v43, %v5717_v25  ;;  %v5740_v37 = vrot.slane %v5738_v55, 7  ;;  %v5741_v24 = vshll.u32 %v5624_v49, 16  ;;  %v12790_v57 = vpop.f32.mrf.mxu0  ;;  %v15370_v22 = vld [vmem:[#allocation3_spill] sm:$0xff]  ;;  %v15371_v55 = vld [vmem:[#allocation57_spill] sm:$0xff] }
 0x260   : > { %v5734_v53 = vor.u32 %v5733_v35, %v15362_v27  ;;  %9714 = vmatprep.mubr.msk.bf16.mxu1 %vm1038_vm5, %v8918_v11  ;;  %v5727_v0 = vsel %vm10337_vm8, %v5719_v30, %v5726_v20  ;;  %v5736_v27 = vrot.slane %v5733_v35, 4  ;;  %v4767_v60 = vor.u32 %v12484_v63, %v12469_v4  ;;  %v12788_v33 = vpop.f32.mrf.mxu1  ;;  %15369 = vst [vmem:[#allocation82_spill] sm:$0xff] %v12790_v57  ;;  %v15372_v35 = vld [vmem:[#allocation34_spill] sm:$0xff]  ;;  %v15373_v11 = vld [vmem:[#allocation47_spill] sm:$0xff]  ;;  %v5625_v20 = vld [vmem:[#allocation2 + $0x98] sm:$0xf] }
 0x261   : > { %v15367_v23 = vshrl.u32 %v12034_v62, 16  ;;  %15368 = vst [vmem:[#allocation60_spill] sm:$0xff] %v12788_v33  ;;  %v8984_v43 = vcombine.low %v5718_v17, %v5727_v0  ;;  %v5743_v49 = vor.u32 %v5741_v24, %v5740_v37  ;;  %v4775_v25 = vshrl.u32 %v4598_v36, 16 }
 0x262   : > { %v4778_v14 = vshll.u32 %v4598_v36, 16  ;;  %v12794_v30 = vadd.f32 %v15371_v55, %v15370_v22  ;;  %v12798_v4 = vadd.f32 %v15373_v11, %v15372_v35  ;;  %v5735_v62 = vsel %vm10337_vm8, %v8976_v56, %v5734_v53  ;;  %v12803_v17 = vpop.f32.mrf.mxu1  ;;  %v15376_v53 = vld [vmem:[#allocation49_spill] sm:$0xff] }
 0x263   : > { %v4769_v10 = vrot.slane %v15367_v23, 5  ;;  %15374 = vst [vmem:[#allocation3_spill] sm:$0xff] %v12803_v17  ;;  %9765 = vmatmul.mubr.msk.bf16.gmra.mxu0 %vm1038_vm5, %v8984_v43  ;;  %v5744_v36 = vsel %vm10337_vm8, %v5736_v27, %v5743_v49  ;;  %v4777_v37 = vrot.slane %v4775_v25, 5  ;;  %v5746_v0 = vshrl.u32 %v12786_v39, 16  ;;  %v12809_v23 = vpop.f32.mrf.mxu0 }
 0x264   : > { %v4780_v24 = vrot.slane %v4778_v14, 6  ;;  %15375 = vst [vmem:[#allocation57_spill] sm:$0xff] %v12809_v23  ;;  %v8985_v22 = vcombine.low %v5735_v62, %v5744_v36  ;;  %v4768_v55 = vrot.slane %v4767_v60, 4  ;;  %v15377_v56 = vshrl.u32 %v15376_v53, 16  ;;  %v12841_v23 = vld [vmem:[#allocation2 + $0x34] sm:$0xf] }
 0x265   : > { %v4771_v63 = vor.u32 %v12567_v3, %v4769_v10  ;;  %v12813_v10 = vpop.f32.mrf.mxu1  ;;  %v8977_v57 = vrot.slane %v5746_v0, 11  ;;  %v5755_v43 = vshrl.u32 %v5625_v20, 16  ;;  %v5758_v28 = vshll.u32 %v5625_v20, 16  ;;  %v12815_v52 = vpop.f32.mrf.mxu0  ;;  %v12827_v20 = vld [vmem:[#allocation2 + $0x24] sm:$0xf] }
 0x266   : > { %v5750_v3 = vrot.slane %v15377_v56, 7  ;;  %15378 = vst [vmem:[#allocation34_spill] sm:$0xff] %v12813_v10  ;;  %v4781_v11 = vor.u32 %v4780_v24, %v4777_v37  ;;  %15379 = vst [vmem:[#allocation47_spill] sm:$0xff] %v12815_v52  ;;  %9768 = vmatprep.mubr.msk.bf16.mxu0 %vm1038_vm5, %v8985_v22  ;;  %v15380_v49 = vshll.u32 %v15376_v53, 16  ;;  %v8945_v14 = vrot.slane %v12501_v59, 11  ;;  %v15383_v59 = vld [vmem:[#allocation11_spill] sm:$0xff] }
 0x267   : > { %v4773_v35 = vrot.slane %v4771_v63, 4  ;;  %v4772_v27 = vsel %vm10646_vm1, %v4768_v55, %v4771_v63  ;;  %v12823_v62 = vpop.f32.mrf.mxu1  ;;  %v5757_v37 = vrot.slane %v5755_v43, 7  ;;  %v5398_v24 = vrot.slane %v12827_v20, 7  ;;  %v10056_v0 = vld [vmem:[#allocation2 + $0x28] sm:$0x7]  ;;  %v12830_v56 = vpop.f32.mrf.mxu0 }
 0x268   : > { %v5751_v60 = vor.u32 %v5750_v3, %v15380_v49  ;;  %v5753_v25 = vrot.slane %v5750_v3, 4  ;;  %15381 = vst [vmem:[#allocation49_spill] sm:$0xff] %v12823_v62  ;;  %v5401_v22 = vrot.slane %v10056_v0, 7  ;;  %15382 = vst [vmem:[#allocation83_spill] sm:$0xff] %v12830_v56  ;;  %v1611_v53 = vadd.f32 %v15383_v59, %v12630_v46  ;;  %v10058_v46 = vld [vmem:[#allocation2 + $0x38] sm:$0x7] }
 0x269   : > { %v4782_v36 = vsel %vm10646_vm1, %v4773_v35, %v4781_v11  ;;  %v8946_v3 = vrot.slane %v12536_v61, 11  ;;  %v12837_v49 = vpop.f32.mrf.mxu1  ;;  %v5760_v35 = vor.u32 %v5758_v28, %v5757_v37  ;;  %v5399_v43 = vsel %vm10296_vm4, %v8945_v14, %v5398_v24  ;;  %v6102_v14 = vld [vmem:[#allocation2 + $0x24] sm:$0xf]  ;;  %v6110_v62 = vld [vmem:[#allocation2 + $0x4c] sm:$0x1] }
 0x26a   : > { %v8919_v63 = vcombine.low %v4772_v27, %v4782_v36  ;;  %v5752_v55 = vsel %vm10337_vm8, %v8977_v57, %v5751_v60  ;;  %15384 = vst [vmem:[#allocation11_spill] sm:$0xff] %v12837_v49  ;;  %v5400_v52 = vrot.slane %v5398_v24, 4  ;;  %v5405_v0 = vrot.slane %v12841_v23, 7  ;;  %v12844_v27 = vpop.f32.mrf.mxu0  ;;  %v15615_v11 = vld [vmem:[#allocation54_spill] sm:$0xff] }
 0x26b   : > { %15386 = vst [vmem:[#allocation4_spill] sm:$0xff] %v12844_v27  ;;  %v12848_v57 = vadd.f32 %v12516_v13, %v1611_v53  ;;  %v5408_v61 = vrot.slane %v10058_v46, 7  ;;  %v5987_v28 = vsel %vm1063_vm3, %v12545_v58, 0  ;;  %v8947_v60 = vrot.slane %v12569_v5, 11  ;;  %v12853_v36 = vpop.f32.mrf.mxu1  ;;  %v12863_v58 = vld [vmem:[#allocation2 + $0x44] sm:$0xf] }
 0x26c   : > { %9715 = vmatmul.mubr.msk.bf16.gmra.mxu1 %vm1038_vm5, %v8919_v63  ;;  %15387 = vst [vmem:[#allocation84_spill] sm:$0xff] %v12853_v36  ;;  %v5761_v37 = vsel %vm10337_vm8, %v5753_v25, %v5760_v35  ;;  %v5402_v24 = vsel %vm10296_vm4, %v5400_v52, %v5401_v22  ;;  %v5406_v13 = vsel %vm10296_vm4, %v8946_v3, %v5405_v0  ;;  %v5407_v63 = vrot.slane %v5405_v0, 4  ;;  %v12861_v59 = vpop.f32.mrf.mxu0  ;;  %v10060_v27 = vld [vmem:[#allocation2 + $0x48] sm:$0x7]  ;;  %v15390_v3 = vld [vmem:[#allocation27_spill] sm:$0xff] }
 0x26d   : > { %15388 = vst [vmem:[#allocation85_spill] sm:$0xff] %v12861_v59  ;;  %v8986_v53 = vcombine.low %v5752_v55, %v5761_v37  ;;  %v8954_v46 = vcombine.low %v5399_v43, %v5402_v24  ;;  %v5412_v5 = vrot.slane %v12863_v58, 7  ;;  %v5415_v56 = vrot.slane %v10060_v27, 7  ;;  %v12866_v36 = vld [vmem:[#allocation2 + $0x28] sm:$0xf]  ;;  %v12868_v25 = vpop.f32.mrf.mxu1 }
 0x26e   : > { %15389 = vst [vmem:[#allocation86_spill] sm:$0xff] %v12868_v25  ;;  %v5409_v52 = vsel %vm10296_vm4, %v5407_v63, %v5408_v61  ;;  %v6369_v22 = vsel %vm1063_vm3, %v12512_v40, 0  ;;  %v1609_v55 = vadd.f32 %v15390_v3, %v12638_v34  ;;  %v6104_v35 = vld [vmem:[#allocation2 + $0x2c] sm:$0x1]  ;;  %v6127_v43 = vshrl.u32 %v6102_v14, 16  ;;  %v12881_v27 = vpop.f32.mrf.mxu0 }
 0x26f   : > { %v12879_v0 = vld [vmem:[%s14821_s3 + $0x50] sm:$0xf]  ;;  %15391 = vst [vmem:[#allocation27_spill] sm:$0xff] %v12881_v27  ;;  %9769 = vmatmul.mubr.msk.bf16.gmra.mxu0 %vm1038_vm5, %v8986_v53  ;;  %9738 = vmatprep.mubr.msk.bf16.mxu1 %vm1038_vm5, %v8954_v46  ;;  %v8955_v61 = vcombine.low %v5406_v13, %v5409_v52  ;;  %v5413_v40 = vsel %vm10296_vm4, %v8947_v60, %v5412_v5  ;;  %v5414_v37 = vrot.slane %v5412_v5, 4  ;;  %v6130_v24 = vshll.u32 %v6102_v14, 16  ;;  %v12887_v63 = vpop.f32.mrf.mxu1  ;;  %v15394_v14 = vld [vmem:[#allocation25_spill] sm:$0xff] }
 0x270   : > { %v6105_v34 = vld [vmem:[#allocation2 + $0x34] sm:$0xf]  ;;  %15392 = vst [vmem:[#allocation87_spill] sm:$0xff] %v12887_v63  ;;  %9791 = vmatpush3.bf16.msra.mxu0 %v6369_v22  ;;  %v12890_v3 = vadd.f32 %v12532_v18, %v1609_v55  ;;  %v6129_v8 = vrot.slane %v6127_v43, 4  ;;  %v14953_v27 = vshll.u32 %v12866_v36, 16  ;;  %v14954_v53 = vshrl.u32 %v12866_v36, 16  ;;  %v12894_v59 = vpop.f32.mrf.mxu0 }
 0x271   : > { %15393 = vst [vmem:[#allocation88_spill] sm:$0xff] %v12894_v59  ;;  %v5416_v13 = vsel %vm10296_vm4, %v5414_v37, %v5415_v56  ;;  %v6132_v60 = vrot.slane %v6130_v24, 5  ;;  %v6146_v46 = vshll.u32 %v6104_v35, 16  ;;  %v1612_v5 = vadd.f32 %v15394_v14, %v12652_v19  ;;  %v12900_v52 = vld [vmem:[#allocation2 + $0x38] sm:$0xf]  ;;  %9954 = vmatprep.subr.msk.bf16.mxu0 %vm1063_vm3, %v12879_v0  ;;  %v12904_v18 = vpop.f32.mrf.mxu1 }
 0x272   : > { %v6108_v22 = vld [vmem:[#allocation2 + $0x44] sm:$0xf]  ;;  %15395 = vst [vmem:[#allocation25_spill] sm:$0xff] %v12904_v18  ;;  %v8956_v55 = vcombine.low %v5413_v40, %v5416_v13  ;;  %v6138_v43 = vrot.slane %v14953_v27, 5  ;;  %v6142_v56 = vrot.slane %v14954_v53, 4  ;;  %v6151_v37 = vshrl.u32 %v6105_v34, 16  ;;  %v12915_v35 = vpop.f32.mrf.mxu0 }
 0x273   : > { %v12913_v19 = vld [vmem:[%s14821_s3 + $0x4c] sm:$0xf]  ;;  %15396 = vst [vmem:[#allocation89_spill] sm:$0xff] %v12915_v35  ;;  %v6133_v24 = vor.u32 %v6132_v60, %v6129_v8  ;;  %v6148_v14 = vrot.slane %v6146_v46, 5  ;;  %v12919_v40 = vadd.f32 %v12547_v1, %v1612_v5  ;;  %v6154_v13 = vshll.u32 %v6105_v34, 16  ;;  %v12921_v27 = vpop.f32.mrf.mxu1 }
 0x274   : > { %9739 = vmatmul.mubr.msk.bf16.vlgmr.msra.gmra.mxu1 %vm1038_vm5, %v8955_v61  ;;  %15397 = vst [vmem:[#allocation90_spill] sm:$0xff] %v12921_v27  ;;  %v6143_v53 = vor.u32 %v6142_v56, %v6138_v43  ;;  %v6107_v59 = vld [vmem:[#allocation2 + $0x3c] sm:$0x1]  ;;  %v6153_v18 = vrot.slane %v6151_v37, 4  ;;  %v14955_v63 = vshll.u32 %v12900_v52, 16  ;;  %v14956_v35 = vshrl.u32 %v12900_v52, 16  ;;  %v12926_v25 = vpop.f32.mrf.mxu0 }
 0x275   : > { %9773 = vmatpush3.bf16.msra.mxu1 %v5987_v28  ;;  %9742 = vmatprep.mubr.msk.bf16.mxu1 %vm1038_vm5, %v8956_v55  ;;  %15398 = vst [vmem:[#allocation91_spill] sm:$0xff] %v12926_v25  ;;  %v6134_v8 = vrot.slane %v6133_v24, 4  ;;  %v6156_v61 = vrot.slane %v6154_v13, 5  ;;  %v6170_v60 = vshll.u32 %v6107_v59, 16  ;;  %v12928_v1 = vld [vmem:[#allocation2 + $0x48] sm:$0xf]  ;;  %v12932_v28 = vpop.f32.mrf.mxu1 }
 0x276   : > { %v6175_v34 = vshrl.u32 %v6108_v22, 16  ;;  %9953 = vmatprep.subr.msk.bf16.mxu1 %vm1063_vm3, %v12913_v19  ;;  %15399 = vst [vmem:[#allocation92_spill] sm:$0xff] %v12932_v28  ;;  %v6144_v46 = vrot.slane %v6143_v53, 4  ;;  %v6162_v5 = vrot.slane %v14955_v63, 5  ;;  %v6166_v55 = vrot.slane %v14956_v35, 4  ;;  %v12938_v37 = vpop.f32.mrf.mxu0 }
 0x277   : > { %v6178_v56 = vshll.u32 %v6108_v22, 16  ;;  %15400 = vst [vmem:[#allocation93_spill] sm:$0xff] %v12938_v37  ;;  %v6139_v59 = vsel %vm10525_vm14, %v6134_v8, %v6138_v43  ;;  %v6157_v13 = vor.u32 %v6156_v61, %v6153_v18  ;;  %v6172_v25 = vrot.slane %v6170_v60, 5  ;;  %v12942_v49 = vpop.f32.mrf.mxu1  ;;  %v15405_v8 = vld [vmem:[#allocation36_spill] sm:$0xff]  ;;  %v15406_v61 = vld [vmem:[#allocation13_spill] sm:$0xff] }
 0x278   : > { %v6177_v27 = vrot.slane %v6175_v34, 4  ;;  %15402 = vst [vmem:[#allocation17_spill] sm:$0xff] %v12942_v49  ;;  %v6149_v53 = vsel %vm10525_vm14, %v6144_v46, %v6148_v14  ;;  %v6167_v28 = vor.u32 %v6166_v55, %v6162_v5  ;;  %v14957_v10 = vshll.u32 %v12928_v1, 16  ;;  %v12947_v35 = vpop.f32.mrf.mxu0 }
 0x279   : > { %v6180_v63 = vrot.slane %v6178_v56, 5  ;;  %15403 = vst [vmem:[#allocation94_spill] sm:$0xff] %v12947_v35  ;;  %v9013_v22 = vcombine.low %v6139_v59, %v6149_v53  ;;  %v6158_v37 = vrot.slane %v6157_v13, 4  ;;  %v14958_v17 = vshrl.u32 %v12928_v1, 16  ;;  %v12950_v18 = vpop.f32.mrf.mxu1  ;;  %v15408_v56 = vld [vmem:[#allocation39_spill] sm:$0xff]  ;;  %v15409_v35 = vld [vmem:[#allocation9_spill] sm:$0xff] }
 0x27a   : > { %v6194_v43 = vshll.u32 %v6110_v62, 16  ;;  %15404 = vst [vmem:[#allocation95_spill] sm:$0xff] %v12950_v18  ;;  %v12954_v60 = vadd.f32 %v15406_v61, %v15405_v8  ;;  %v6168_v34 = vrot.slane %v6167_v28, 4  ;;  %v6186_v46 = vrot.slane %v14957_v10, 5  ;;  %v12958_v55 = vpop.f32.mrf.mxu0  ;;  %v15410_v28 = vld [vmem:[#allocation26_spill] sm:$0xff] }
 0x27b   : > { %v6181_v14 = vor.u32 %v6180_v63, %v6177_v27  ;;  %15407 = vst [vmem:[#allocation36_spill] sm:$0xff] %v12958_v55  ;;  %v12962_v59 = vadd.f32 %v15409_v35, %v15408_v56  ;;  %9792 = vmatprep.mubr.msk.bf16.mxu0 %vm1038_vm5, %v9013_v22  ;;  %v6163_v62 = vsel %vm10525_vm14, %v6158_v37, %v6162_v5  ;;  %v6190_v13 = vrot.slane %v14958_v17, 4  ;;  %v12971_v63 = vpop.f32.mrf.mxu1  ;;  %v15413_v5 = vld [vmem:[#allocation66_spill] sm:$0xff]  ;;  %v12981_v17 = vld [vmem:[#allocation2 + $0x54] sm:$0xf] }
 0x27c   : > { %v1615_v27 = vadd.f32 %v15410_v28, %v12719_v45  ;;  %15411 = vst [vmem:[#allocation13_spill] sm:$0xff] %v12971_v63  ;;  %v6173_v53 = vsel %vm10525_vm14, %v6168_v34, %v6172_v25  ;;  %v6196_v61 = vrot.slane %v6194_v43, 5  ;;  %v8948_v35 = vrot.slane %v12624_v31, 11  ;;  %v12976_v56 = vpop.f32.mrf.mxu0  ;;  %v10062_v34 = vld [vmem:[#allocation2 + $0x58] sm:$0x7] }
 0x27d   : > { %v6182_v8 = vrot.slane %v6181_v14, 4  ;;  %15412 = vst [vmem:[#allocation39_spill] sm:$0xff] %v12976_v56  ;;  %v9014_v22 = vcombine.low %v6163_v62, %v6173_v53  ;;  %v6191_v10 = vor.u32 %v6190_v13, %v6186_v46  ;;  %v5419_v45 = vrot.slane %v12981_v17, 7  ;;  %v12984_v28 = vpop.f32.mrf.mxu1  ;;  %v12989_v14 = vld [vmem:[#allocation2 + $0x64] sm:$0xf] }
 0x27e   : > { %v12979_v37 = vadd.f32 %v15413_v5, %v1615_v27  ;;  %15414 = vst [vmem:[#allocation9_spill] sm:$0xff] %v12984_v28  ;;  %v5422_v43 = vrot.slane %v10062_v34, 7  ;;  %v8949_v31 = vrot.slane %v12646_v44, 11  ;;  %v5426_v62 = vrot.slane %v12989_v14, 7  ;;  %v6111_v13 = vld [vmem:[#allocation2 + $0x54] sm:$0xf]  ;;  %v12992_v27 = vpop.f32.mrf.mxu0 }
 0x27f   : > { %v6187_v25 = vsel %vm10525_vm14, %v6182_v8, %v6186_v46  ;;  %15415 = vst [vmem:[#allocation26_spill] sm:$0xff] %v12992_v27  ;;  %9793 = vmatmul.mubr.msk.bf16.vlgmr.msra.gmra.mxu0 %vm1038_vm5, %v9014_v22  ;;  %v6192_v53 = vrot.slane %v6191_v10, 4  ;;  %v5420_v5 = vsel %vm10296_vm4, %v8948_v35, %v5419_v45  ;;  %v5421_v56 = vrot.slane %v5419_v45, 4  ;;  %v10064_v55 = vld [vmem:[#allocation2 + $0x68] sm:$0x7]  ;;  %v12997_v8 = vpop.f32.mrf.mxu1  ;;  %v15417_v28 = vld [vmem:[#allocation29_spill] sm:$0xff] }
 0x280   : > { %v5429_v46 = vrot.slane %v10064_v55, 7  ;;  %15416 = vst [vmem:[#allocation66_spill] sm:$0xff] %v12997_v8  ;;  %v5427_v44 = vsel %vm10296_vm4, %v8949_v31, %v5426_v62  ;;  %v5428_v34 = vrot.slane %v5426_v62, 4  ;;  %v1613_v63 = vadd.f32 %v15417_v28, %v12723_v51  ;;  %v15418_v27 = vld [vmem:[#allocation30_spill] sm:$0xff]  ;;  %v13005_v22 = vpop.f32.mrf.mxu0  ;;  %v13011_v35 = vld [vmem:[#allocation2 + $0x58] sm:$0xf] }
 0x281   : > { %v1616_v18 = vadd.f32 %v15418_v27, %v12741_v12  ;;  %15419 = vst [vmem:[#allocation29_spill] sm:$0xff] %v13005_v22  ;;  %v6197_v10 = vsel %vm10525_vm14, %v6192_v53, %v6196_v61  ;;  %v5423_v55 = vsel %vm10296_vm4, %v5421_v56, %v5422_v43  ;;  %v6199_v45 = vshrl.u32 %v6111_v13, 16  ;;  %v6114_v31 = vld [vmem:[#allocation2 + $0x64] sm:$0xf]  ;;  %v13013_v62 = vpop.f32.mrf.mxu1  ;;  %v13020_v27 = vld [vmem:[#allocation2 + $0x68] sm:$0xf] }
 0x282   : > { %v6202_v8 = vshll.u32 %v6111_v13, 16  ;;  %15420 = vst [vmem:[#allocation30_spill] sm:$0xff] %v13013_v62  ;;  %v9015_v49 = vcombine.low %v6187_v25, %v6197_v10  ;;  %v8957_v51 = vcombine.low %v5420_v5, %v5423_v55  ;;  %v5430_v12 = vsel %vm10296_vm4, %v5428_v34, %v5429_v46  ;;  %v13022_v61 = vpop.f32.mrf.mxu0  ;;  %v6113_v13 = vld [vmem:[#allocation2 + $0x5c] sm:$0x1]  ;;  %v15428_v10 = vld [vmem:[#allocation10_spill] sm:$0xff] }
 0x283   : > { %v13018_v28 = vadd.f32 %v12589_v48, %v1613_v63  ;;  %15422 = vst [vmem:[#allocation97_spill] sm:$0xff] %v13022_v61  ;;  %v8958_v56 = vcombine.low %v5427_v44, %v5430_v12  ;;  %v13025_v43 = vadd.f32 %v12601_v2, %v1616_v18  ;;  %v6201_v53 = vrot.slane %v6199_v45, 4  ;;  %v13027_v62 = vpop.f32.mrf.mxu1 }
 0x284   : > { %v6204_v22 = vrot.slane %v6202_v8, 5  ;;  %15424 = vst [vmem:[#allocation99_spill] sm:$0xff] %v13027_v62  ;;  %9796 = vmatprep.mubr.msk.bf16.mxu0 %vm1038_vm5, %v9015_v49  ;;  %9743 = vmatmul.mubr.msk.bf16.gmra.mxu1 %vm1038_vm5, %v8957_v51  ;;  %v14959_v48 = vshll.u32 %v13011_v35, 16  ;;  %v14960_v63 = vshrl.u32 %v13011_v35, 16  ;;  %v6218_v25 = vshll.u32 %v6113_v13, 16  ;;  %v13033_v46 = vpop.f32.mrf.mxu0  ;;  %v15427_v49 = vld [vmem:[#allocation31_spill] sm:$0xff] }
 0x285   : > { %15421 = vst [vmem:[#allocation96_spill] sm:$0xff] %v13018_v28  ;;  %15423 = vst [vmem:[#allocation98_spill] sm:$0xff] %v13025_v43  ;;  %v6223_v5 = vshrl.u32 %v6114_v31, 16  ;;  %9746 = vmatprep.mubr.msk.bf16.mxu1 %vm1038_vm5, %v8958_v56  ;;  %v6226_v18 = vshll.u32 %v6114_v31, 16  ;;  %v14961_v8 = vshll.u32 %v13020_v27, 16  ;;  %v14962_v44 = vshrl.u32 %v13020_v27, 16  ;;  %v13038_v34 = vpop.f32.mrf.mxu1 }
 0x286   : > { %15425 = vst [vmem:[#allocation100_spill] sm:$0xff] %v13033_v46  ;;  %v6205_v2 = vor.u32 %v6204_v22, %v6201_v53  ;;  %15426 = vst [vmem:[#allocation101_spill] sm:$0xff] %v13038_v34  ;;  %v13042_v55 = vadd.f32 %v15428_v10, %v15427_v49  ;;  %v6210_v45 = vrot.slane %v14959_v48, 5  ;;  %v6214_v51 = vrot.slane %v14960_v63, 4  ;;  %v13048_v56 = vpop.f32.mrf.mxu0  ;;  %v13050_v31 = vld [vmem:[#allocation2 + $0x6c] sm:$0x1] }
 0x287   : > { %v6225_v12 = vrot.slane %v6223_v5, 4  ;;  %15429 = vst [vmem:[#allocation31_spill] sm:$0xff] %v13048_v56  ;;  %15430 = vst [vmem:[#allocation10_spill] sm:$0xff] %v13050_v31  ;;  %v6228_v13 = vrot.slane %v6226_v18, 5  ;;  %v6234_v53 = vrot.slane %v14961_v8, 5  ;;  %v6238_v49 = vrot.slane %v14962_v44, 4  ;;  %v13056_v10 = vpop.f32.mrf.mxu1 }
 0x288   : > { %v6206_v22 = vrot.slane %v6205_v2, 4  ;;  %15431 = vst [vmem:[#allocation102_spill] sm:$0xff] %v13056_v10  ;;  %v15432_v46 = vld [vmem:[#allocation43_spill] sm:$0xff]  ;;  %v15433_v48 = vld [vmem:[#allocation12_spill] sm:$0xff]  ;;  %v6215_v63 = vor.u32 %v6214_v51, %v6210_v45  ;;  %v6220_v5 = vrot.slane %v6218_v25, 5  ;;  %v6242_v56 = vshll.u32 %v13050_v31, 16  ;;  %v13063_v2 = vpop.f32.mrf.mxu0 }
 0x289   : > { %v13060_v61 = vadd.f32 %v15433_v48, %v15432_v46  ;;  %15434 = vst [vmem:[#allocation43_spill] sm:$0xff] %v13063_v2  ;;  %v15435_v34 = vld [vmem:[#allocation19_spill] sm:$0xff]  ;;  %v15437_v8 = vld [vmem:[#allocation28_spill] sm:$0xff]  ;;  %v6229_v44 = vor.u32 %v6228_v13, %v6225_v12  ;;  %v6239_v43 = vor.u32 %v6238_v49, %v6234_v53  ;;  %v13071_v10 = vpop.f32.mrf.mxu1  ;;  %v8950_v51 = vrot.slane %v12726_v7, 11 }
 0x28a   : > { %v15436_v18 = vld [vmem:[#allocation23_spill] sm:$0xff]  ;;  %v1610_v33 = vadd.f32 %v15437_v8, %v12676_v42  ;;  %15438 = vst [vmem:[#allocation12_spill] sm:$0xff] %v13071_v10  ;;  %v6211_v48 = vsel %vm10525_vm14, %v6206_v22, %v6210_v45  ;;  %v6216_v46 = vrot.slane %v6215_v63, 4  ;;  %v6244_v25 = vrot.slane %v6242_v56, 5  ;;  %v13076_v31 = vpop.f32.mrf.mxu0  ;;  %v10066_v42 = vld [vmem:[#allocation2 + $0x78] sm:$0x7] }
 0x28b   : > { %v13067_v62 = vadd.f32 %v15436_v18, %v15435_v34  ;;  %15439 = vst [vmem:[#allocation19_spill] sm:$0xff] %v13076_v31  ;;  %v6230_v2 = vrot.slane %v6229_v44, 4  ;;  %v6240_v28 = vrot.slane %v6239_v43, 4  ;;  %v13078_v34 = vld [vmem:[#allocation2 + $0x74] sm:$0xf]  ;;  %v5436_v8 = vrot.slane %v10066_v42, 7  ;;  %v13081_v12 = vpop.f32.mrf.mxu1 }
 0x28c   : > { %15440 = vst [vmem:[#allocation23_spill] sm:$0xff] %v13078_v34  ;;  %v5433_v18 = vrot.slane %v13078_v34, 7  ;;  %15441 = vst [vmem:[#allocation28_spill] sm:$0xff] %v13081_v12  ;;  %v6221_v13 = vsel %vm10525_vm14, %v6216_v46, %v6220_v5  ;;  %v8951_v63 = vrot.slane %v12747_v6, 11  ;;  %v13086_v45 = vld [vmem:[#allocation2 + $0x84] sm:$0xf]  ;;  %v13089_v22 = vpop.f32.mrf.mxu0 }
 0x28d   : > { %15442 = vst [vmem:[#allocation103_spill] sm:$0xff] %v13086_v45  ;;  %v5440_v7 = vrot.slane %v13086_v45, 7  ;;  %v10068_v56 = vld [vmem:[#allocation2 + $0x88] sm:$0x7]  ;;  %v6117_v43 = vld [vmem:[#allocation2 + $0x74] sm:$0xf]  ;;  %v9016_v42 = vcombine.low %v6211_v48, %v6221_v13  ;;  %v6235_v12 = vsel %vm10525_vm14, %v6230_v2, %v6234_v53  ;;  %v6245_v5 = vsel %vm10525_vm14, %v6240_v28, %v6244_v25  ;;  %v13100_v46 = vpop.f32.mrf.mxu1 }
 0x28e   : > { %v5443_v44 = vrot.slane %v10068_v56, 7  ;;  %15443 = vst [vmem:[#allocation104_spill] sm:$0xff] %v13089_v22  ;;  %v15444_v49 = vld [vmem:[#allocation64_spill] sm:$0xff]  ;;  %v9017_v10 = vcombine.low %v6235_v12, %v6245_v5  ;;  %v15445_v56 = vld [vmem:[#allocation5_spill] sm:$0xff]  ;;  %v5435_v34 = vrot.slane %v5433_v18, 4  ;;  %v13104_v41 = vpop.f32.mrf.mxu0  ;;  %v6247_v53 = vshrl.u32 %v6117_v43, 16 }
 0x28f   : > { %v13092_v31 = vadd.f32 %v15444_v49, %v1610_v33  ;;  %v13098_v6 = vld [vmem:[#allocation2 + $0x78] sm:$0xf]  ;;  %v1614_v45 = vadd.f32 %v15445_v56, %v12753_v9  ;;  %v5442_v22 = vrot.slane %v5440_v7, 4  ;;  %15446 = vst [vmem:[#allocation64_spill] sm:$0xff] %v13104_v41  ;;  %9797 = vmatmul.mubr.msk.bf16.gmra.mxu0 %vm1038_vm5, %v9016_v42  ;;  %v5434_v33 = vsel %vm10296_vm4, %v8950_v51, %v5433_v18  ;;  %v13111_v48 = vpop.f32.mrf.mxu1  ;;  %v6120_v51 = vld [vmem:[#allocation2 + $0x84] sm:$0xf] }
 0x290   : > { %v5441_v28 = vsel %vm10296_vm4, %v8951_v63, %v5440_v7  ;;  %v6250_v2 = vshll.u32 %v6117_v43, 16  ;;  %9800 = vmatprep.mubr.msk.bf16.mxu0 %vm1038_vm5, %v9017_v10  ;;  %v5437_v9 = vsel %vm10296_vm4, %v5435_v34, %v5436_v8  ;;  %v14966_v12 = vshll.u32 %v13098_v6, 16  ;;  %v13120_v18 = vld [vmem:[#allocation2 + $0x88] sm:$0xf]  ;;  %v13122_v63 = vpop.f32.mrf.mxu0 }
 0x291   : > { %v5444_v25 = vsel %vm10296_vm4, %v5442_v22, %v5443_v44  ;;  %v14967_v13 = vshrl.u32 %v13098_v6, 16  ;;  %15447 = vst [vmem:[#allocation5_spill] sm:$0xff] %v13122_v63  ;;  %v13125_v7 = vadd.f32 %v12611_v21, %v1614_v45  ;;  %v15448_v10 = vld [vmem:[#allocation6_spill] sm:$0xff]  ;;  %v8959_v49 = vcombine.low %v5434_v33, %v5437_v9  ;;  %v13129_v8 = vpop.f32.mrf.mxu1  ;;  %v13131_v44 = vld [vmem:[#allocation2 + $0x7c] sm:$0x1] }
 0x292   : > { %v1619_v43 = vadd.f32 %v15448_v10, %v12773_v38  ;;  %v8960_v34 = vcombine.low %v5441_v28, %v5444_v25  ;;  %15449 = vst [vmem:[#allocation6_spill] sm:$0xff] %v13129_v8  ;;  %v6249_v22 = vrot.slane %v6247_v53, 4  ;;  %v6252_v42 = vrot.slane %v6250_v2, 5  ;;  %v13137_v63 = vpop.f32.mrf.mxu0  ;;  %v13141_v38 = vld [vmem:[#allocation2 + $0x8c] sm:$0x1] }
 0x293   : > { %v6258_v5 = vrot.slane %v14966_v12, 5  ;;  %v6262_v56 = vrot.slane %v14967_v13, 4  ;;  %15450 = vst [vmem:[#allocation105_spill] sm:$0xff] %v13137_v63  ;;  %9747 = vmatmul.mubr.msk.bf16.gmra.mxu1 %vm1038_vm5, %v8959_v49  ;;  %v6266_v21 = vshll.u32 %v13131_v44, 16  ;;  %v6271_v45 = vshrl.u32 %v6120_v51, 16  ;;  %v13144_v53 = vpop.f32.mrf.mxu1 }
 0x294   : > { %v6274_v33 = vshll.u32 %v6120_v51, 16  ;;  %v14968_v28 = vshll.u32 %v13120_v18, 16  ;;  %15451 = vst [vmem:[#allocation106_spill] sm:$0xff] %v13144_v53  ;;  %9750 = vmatprep.mubr.msk.bf16.mxu1 %vm1038_vm5, %v8960_v34  ;;  %v6253_v2 = vor.u32 %v6252_v42, %v6249_v22  ;;  %v14969_v25 = vshrl.u32 %v13120_v18, 16  ;;  %v13149_v12 = vpop.f32.mrf.mxu0 }
 0x295   : > { %v6263_v9 = vor.u32 %v6262_v56, %v6258_v5  ;;  %v6290_v10 = vshll.u32 %v13141_v38, 16  ;;  %15452 = vst [vmem:[#allocation107_spill] sm:$0xff] %v13149_v12  ;;  %v6268_v49 = vrot.slane %v6266_v21, 5  ;;  %v6273_v13 = vrot.slane %v6271_v45, 4  ;;  %v13153_v41 = vpop.f32.mrf.mxu1  ;;  %v15455_v12 = vld [vmem:[#allocation42_spill] sm:$0xff] }
 0x296   : > { %v6276_v63 = vrot.slane %v6274_v33, 5  ;;  %v6282_v51 = vrot.slane %v14968_v28, 5  ;;  %15453 = vst [vmem:[#allocation108_spill] sm:$0xff] %v13153_v41  ;;  %v13156_v53 = vadd.f32 %v12622_v47, %v1619_v43  ;;  %v6254_v34 = vrot.slane %v6253_v2, 4  ;;  %v13160_v56 = vpop.f32.mrf.mxu0 }
 0x297   : > { %v6264_v22 = vrot.slane %v6263_v9, 4  ;;  %v6286_v42 = vrot.slane %v14969_v25, 4  ;;  %15454 = vst [vmem:[#allocation109_spill] sm:$0xff] %v13160_v56  ;;  %v1617_v21 = vadd.f32 %v15455_v12, %v12794_v30  ;;  %v6292_v33 = vrot.slane %v6290_v10, 5  ;;  %v13165_v28 = vpop.f32.mrf.mxu1  ;;  %v13171_v9 = vld [vmem:[#allocation2 + $0x94] sm:$0xf] }
 0x298   : > { %v6277_v45 = vor.u32 %v6276_v63, %v6273_v13  ;;  %v8952_v8 = vrot.slane %v12786_v39, 11  ;;  %15456 = vst [vmem:[#allocation42_spill] sm:$0xff] %v13165_v28  ;;  %v6259_v47 = vsel %vm10525_vm14, %v6254_v34, %v6258_v5  ;;  %v5447_v25 = vrot.slane %v13171_v9, 7  ;;  %v6123_v56 = vld [vmem:[#allocation2 + $0x94] sm:$0xf]  ;;  %v13174_v41 = vpop.f32.mrf.mxu0  ;;  %v15458_v39 = vld [vmem:[#allocation53_spill] sm:$0xff] }
 0x299   : > { %v6269_v43 = vsel %vm10525_vm14, %v6264_v22, %v6268_v49  ;;  %v6287_v2 = vor.u32 %v6286_v42, %v6282_v51  ;;  %15457 = vst [vmem:[#allocation110_spill] sm:$0xff] %v13174_v41  ;;  %v13177_v30 = vadd.f32 %v12634_v32, %v1617_v21  ;;  %v1620_v12 = vadd.f32 %v15458_v39, %v12798_v4  ;;  %v13181_v5 = vld [vmem:[#allocation2 + $0x98] sm:$0xf]  ;;  %v13183_v10 = vpop.f32.mrf.mxu1 }
 0x29a   : > { %v9018_v13 = vcombine.low %v6259_v47, %v6269_v43  ;;  %v6278_v63 = vrot.slane %v6277_v45, 4  ;;  %v5448_v34 = vsel %vm10296_vm4, %v8952_v8, %v5447_v25  ;;  %v5449_v22 = vrot.slane %v5447_v25, 4  ;;  %v10070_v42 = vld [vmem:[#allocation2 + $0x98] sm:$0x7]  ;;  %v13187_v41 = vpop.f32.mrf.mxu0 }
 0x29b   : > { %v6288_v49 = vrot.slane %v6287_v2, 4  ;;  %v5450_v28 = vrot.slane %v10070_v42, 7  ;;  %15459 = vst [vmem:[#allocation53_spill] sm:$0xff] %v13187_v41  ;;  %v13190_v32 = vadd.f32 %v12648_v50, %v1620_v12  ;;  %v15460_v21 = vld [vmem:[#allocation44_spill] sm:$0xff]  ;;  %v6295_v47 = vshrl.u32 %v6123_v56, 16  ;;  %v13197_v43 = vpop.f32.mrf.mxu1  ;;  %v15464_v42 = vld [vmem:[#allocation38_spill] sm:$0xff] }
 0x29c   : > { %9801 = vmatmul.mubr.msk.bf16.gmra.mxu0 %vm1038_vm5, %v9018_v13  ;;  %v6283_v4 = vsel %vm10525_vm14, %v6278_v63, %v6282_v51  ;;  %v1618_v45 = vadd.f32 %v15460_v21, %v12954_v60  ;;  %15461 = vst [vmem:[#allocation44_spill] sm:$0xff] %v13197_v43  ;;  %v13203_v2 = vld [vmem:[#allocation2 + $0x9c] sm:$0x1]  ;;  %v6298_v50 = vshll.u32 %v6123_v56, 16  ;;  %v14970_v39 = vshll.u32 %v13181_v5, 16  ;;  %v13206_v12 = vpop.f32.mrf.mxu0  ;;  %v15463_v13 = vld [vmem:[#allocation18_spill] sm:$0xff] }
 0x29d   : > { %v6293_v8 = vsel %vm10525_vm14, %v6288_v49, %v6292_v33  ;;  %v5451_v25 = vsel %vm10296_vm4, %v5449_v22, %v5450_v28  ;;  %15462 = vst [vmem:[#allocation111_spill] sm:$0xff] %v13206_v12  ;;  %v1623_v60 = vadd.f32 %v15463_v13, %v12962_v59  ;;  %v1621_v21 = vadd.f32 %v15464_v42, %v13042_v55  ;;  %v13212_v41 = vpop.f32.mrf.mxu1  ;;  %v15467_v59 = vld [vmem:[#allocation20_spill] sm:$0xff]  ;;  %v13238_v13 = vld [vmem:[#allocation2 + $0x24] sm:$0xe]  ;;  %v13471_v43 = vld [vmem:[#allocation2 + $0x94] sm:$0xe] }
 0x29e   : > { %v9019_v51 = vcombine.low %v6283_v4, %v6293_v8  ;;  %v8961_v63 = vcombine.low %v5448_v34, %v5451_v25  ;;  %15465 = vst [vmem:[#allocation18_spill] sm:$0xff] %v13212_v41  ;;  %v6297_v33 = vrot.slane %v6295_v47, 4  ;;  %v6300_v49 = vrot.slane %v6298_v50, 5  ;;  %v13217_v22 = vpop.f32.mrf.mxu0  ;;  %v10071_v47 = vld [vmem:[#allocation2 + $0x28] sm:$0xf] }
 0x29f   : > { %v6306_v28 = vrot.slane %v14970_v39, 5  ;;  %v14971_v56 = vshrl.u32 %v13181_v5, 16  ;;  %15466 = vst [vmem:[#allocation38_spill] sm:$0xff] %v13217_v22  ;;  %v13221_v4 = vadd.f32 %v12660_v15, %v1618_v45  ;;  %v1624_v55 = vadd.f32 %v15467_v59, %v13060_v61  ;;  %v13228_v25 = vpop.f32.mrf.mxu1 }
 0x2a0   : > { %9804 = vmatprep.mubr.msk.bf16.mxu0 %vm1038_vm5, %v9019_v51  ;;  %9751 = vmatmul.mubr.msk.bf16.gmra.mxu1 %vm1038_vm5, %v8961_v63  ;;  %v6314_v34 = vshll.u32 %v13203_v2, 16  ;;  %v8996_v8 = vcombine.low %v12827_v20, %v10071_v47  ;;  %15468 = vst [vmem:[#allocation20_spill] sm:$0xff] %v13228_v25  ;;  %v13231_v50 = vadd.f32 %v12672_v29, %v1623_v60  ;;  %v13240_v61 = vpop.f32.mrf.mxu0  ;;  %v15470_v20 = vld [vmem:[#allocation21_spill] sm:$0xff]  ;;  %v10072_v60 = vld [vmem:[#allocation2 + $0x38] sm:$0xf]  ;;  %v6981_v47 = vsel %vm1063_vm3, %v12879_v0, 0 }
 0x2a1   : > { %v13234_v51 = vadd.f32 %v12684_v54, %v1621_v21  ;;  %v6301_v15 = vor.u32 %v6300_v49, %v6297_v33  ;;  %v6310_v45 = vrot.slane %v14971_v56, 4  ;;  %15469 = vst [vmem:[#allocation112_spill] sm:$0xff] %v13240_v61  ;;  %v13243_v63 = vadd.f32 %v12697_v26, %v1624_v55  ;;  %v15471_v29 = vld [vmem:[#allocation45_spill] sm:$0xff]  ;;  %v6738_v33 = vld [vmem:[#allocation2 + $0x2c] sm:$0x3]  ;;  %v13258_v26 = vpop.f32.mrf.mxu1  ;;  %9827 = vmatpush3.bf16.msra.mxu0 %v6981_v47 }
 0x2a2   : > { %v1622_v42 = vadd.f32 %v15470_v20, %v13067_v62  ;;  %9774 = vmatprep.mubr.msk.bf16.mxu1 %vm1038_vm5, %v8996_v8  ;;  %v13250_v54 = vadd.f32 %v15471_v29, %v12848_v57  ;;  %v8997_v21 = vcombine.low %v12841_v23, %v10072_v60  ;;  %v13256_v49 = vld [vmem:[%s14821_s3 + $0x58] sm:$0xf]  ;;  %15472 = vst [vmem:[#allocation21_spill] sm:$0xff] %v13258_v26  ;;  %v6316_v62 = vrot.slane %v6314_v34, 5  ;;  %v13262_v8 = vpop.f32.mrf.mxu0  ;;  %v13270_v56 = vld [vmem:[#allocation2 + $0x34] sm:$0xe] }
 0x2a3   : > { %v6302_v59 = vrot.slane %v6301_v15, 4  ;;  %v6311_v55 = vor.u32 %v6310_v45, %v6306_v28  ;;  %15473 = vst [vmem:[#allocation45_spill] sm:$0xff] %v13262_v8  ;;  %v6747_v57 = vshrl.u32 %v13238_v13, 16  ;;  %v6750_v23 = vshll.u32 %v13238_v13, 16  ;;  %v13272_v15 = vpop.f32.mrf.mxu1  ;;  %9956 = vmatprep.subr.msk.bf16.mxu0 %vm1063_vm3, %v13256_v49 }
 0x2a4   : > { %v15474_v20 = vshrl.u32 %v12866_v36, 16  ;;  %v15475_v60 = vshll.u32 %v12866_v36, 16  ;;  %15476 = vst [vmem:[#allocation113_spill] sm:$0xff] %v13272_v15  ;;  %v6623_v45 = vsel %vm1063_vm3, %v12913_v19, 0  ;;  %v6761_v47 = vshrl.u32 %v6738_v33, 16  ;;  %v13280_v12 = vpop.f32.mrf.mxu0 }
 0x2a5   : > { %v6307_v0 = vsel %vm10525_vm14, %v6302_v59, %v6306_v28  ;;  %v6312_v34 = vrot.slane %v6311_v55, 4  ;;  %15477 = vst [vmem:[#allocation114_spill] sm:$0xff] %v13280_v12  ;;  %v6752_v36 = vrot.slane %v6750_v23, 6  ;;  %v6764_v8 = vshll.u32 %v6738_v33, 16  ;;  %v13282_v61 = vpop.f32.mrf.mxu1  ;;  %v10073_v28 = vld [vmem:[#allocation2 + $0x48] sm:$0xf] }
 0x2a6   : > { %v6755_v29 = vrot.slane %v15474_v20, 5  ;;  %v6756_v39 = vrot.slane %v15475_v60, 6  ;;  %v6749_v20 = vrot.slane %v6747_v57, 5  ;;  %15478 = vst [vmem:[#allocation115_spill] sm:$0xff] %v13282_v61  ;;  %v8998_v59 = vcombine.low %v12863_v58, %v10073_v28  ;;  %v6739_v19 = vld [vmem:[#allocation2 + $0x3c] sm:$0x3]  ;;  %v13293_v57 = vpop.f32.mrf.mxu0 }
 0x2a7   : > { %v6317_v22 = vsel %vm10525_vm14, %v6312_v34, %v6316_v62  ;;  %v6763_v55 = vrot.slane %v6761_v47, 5  ;;  %v6770_v15 = vshrl.u32 %v13270_v56, 16  ;;  %v13291_v12 = vld [vmem:[%s14821_s3 + $0x54] sm:$0xf]  ;;  %15479 = vst [vmem:[#allocation116_spill] sm:$0xff] %v13293_v57  ;;  %v6766_v62 = vrot.slane %v6764_v8, 6  ;;  %v13298_v58 = vpop.f32.mrf.mxu1 }
 0x2a8   : > { %v6757_v60 = vor.u32 %v6756_v39, %v6755_v29  ;;  %v9020_v39 = vcombine.low %v6307_v0, %v6317_v22  ;;  %9775 = vmatmul.mubr.msk.bf16.vlgmr.msra.gmra.mxu1 %vm1038_vm5, %v8997_v21  ;;  %v6753_v33 = vor.u32 %v6752_v36, %v6749_v20  ;;  %v13296_v23 = vld [vmem:[#allocation2 + $0x44] sm:$0xe]  ;;  %15480 = vst [vmem:[#allocation117_spill] sm:$0xff] %v13298_v58  ;;  %v15481_v29 = vld [vmem:[#allocation78_spill] sm:$0xff]  ;;  %v6773_v28 = vshll.u32 %v13270_v56, 16  ;;  %v13307_v21 = vpop.f32.mrf.mxu0 }
 0x2a9   : > { %v13301_v34 = vadd.f32 %v15481_v29, %v1622_v42  ;;  %9809 = vmatpush3.bf16.msra.mxu1 %v6623_v45  ;;  %9778 = vmatprep.mubr.msk.bf16.mxu1 %vm1038_vm5, %v8998_v59  ;;  %v6772_v47 = vrot.slane %v6770_v15, 5  ;;  %v15482_v22 = vshrl.u32 %v12900_v52, 16  ;;  %15483 = vst [vmem:[#allocation78_spill] sm:$0xff] %v13307_v21  ;;  %v6767_v20 = vor.u32 %v6766_v62, %v6763_v55  ;;  %v13314_v45 = vpop.f32.mrf.mxu1  ;;  %v6740_v62 = vld [vmem:[#allocation2 + $0x4c] sm:$0x3] }
 0x2aa   : > { %v6759_v24 = vrot.slane %v6757_v60, 4  ;;  %9805 = vmatmul.mubr.msk.bf16.gmra.mxu0 %vm1038_vm5, %v9020_v39  ;;  %v6754_v8 = vrot.slane %v6753_v33, 4  ;;  %v15484_v36 = vshll.u32 %v12900_v52, 16  ;;  %v6784_v42 = vshrl.u32 %v6739_v19, 16  ;;  %9955 = vmatprep.subr.msk.bf16.mxu1 %vm1063_vm3, %v13291_v12  ;;  %15485 = vst [vmem:[#allocation118_spill] sm:$0xff] %v13314_v45  ;;  %v13318_v21 = vpop.f32.mrf.mxu0 }
 0x2ab   : > { %v6778_v0 = vrot.slane %v15482_v22, 5  ;;  %v6775_v15 = vrot.slane %v6773_v28, 6  ;;  %v6787_v59 = vshll.u32 %v6739_v19, 16  ;;  %v6793_v29 = vshrl.u32 %v13296_v23, 16  ;;  %15486 = vst [vmem:[#allocation119_spill] sm:$0xff] %v13318_v21 }
 0x2ac   : > { %v6779_v57 = vrot.slane %v15484_v36, 6  ;;  %v6796_v22 = vshll.u32 %v13296_v23, 16  ;;  %v6758_v55 = vsel %vm10646_vm1, %v6754_v8, %v6757_v60  ;;  %v6768_v52 = vsel %vm10646_vm1, %v6759_v24, %v6767_v20  ;;  %v13324_v36 = vpop.f32.mrf.mxu1  ;;  %v13326_v61 = vpop.f32.mrf.mxu0 }
 0x2ad   : > { %v6786_v33 = vrot.slane %v6784_v42, 5  ;;  %15487 = vst [vmem:[#allocation120_spill] sm:$0xff] %v13324_v36  ;;  %v9055_v45 = vcombine.low %v6758_v55, %v6768_v52  ;;  %v6776_v28 = vor.u32 %v6775_v15, %v6772_v47  ;;  %v6789_v19 = vrot.slane %v6787_v59, 6  ;;  %15488 = vst [vmem:[#allocation121_spill] sm:$0xff] %v13326_v61  ;;  %v15493_v15 = vld [vmem:[#allocation50_spill] sm:$0xff]  ;;  %v15536_v36 = vld [vmem:[#allocation49_spill] sm:$0xff] }
 0x2ae   : > { %v6780_v39 = vor.u32 %v6779_v57, %v6778_v0  ;;  %v6795_v58 = vrot.slane %v6793_v29, 5  ;;  %v6798_v25 = vrot.slane %v6796_v22, 6  ;;  %v15489_v21 = vshrl.u32 %v12928_v1, 16  ;;  %v13332_v24 = vpop.f32.mrf.mxu1  ;;  %v13335_v42 = vpop.f32.mrf.mxu0  ;;  %v15494_v29 = vld [vmem:[#allocation52_spill] sm:$0xff] }
 0x2af   : > { %v15490_v60 = vshll.u32 %v12928_v1, 16  ;;  %15491 = vst [vmem:[#allocation122_spill] sm:$0xff] %v13332_v24  ;;  %9828 = vmatprep.mubr.msk.bf16.mxu0 %vm1038_vm5, %v9055_v45  ;;  %v6777_v57 = vrot.slane %v6776_v28, 4  ;;  %v6790_v0 = vor.u32 %v6789_v19, %v6786_v33  ;;  %v6807_v20 = vshrl.u32 %v6740_v62, 16  ;;  %15492 = vst [vmem:[#allocation123_spill] sm:$0xff] %v13335_v42 }
 0x2b0   : > { %v6782_v26 = vrot.slane %v6780_v39, 4  ;;  %v6801_v41 = vrot.slane %v15489_v21, 5  ;;  %v6810_v47 = vshll.u32 %v6740_v62, 16  ;;  %v2168_v59 = vadd.f32 %v15493_v15, %v12890_v3  ;;  %v13345_v28 = vld [vmem:[#allocation2 + $0x54] sm:$0xe]  ;;  %v13347_v62 = vpop.f32.mrf.mxu0  ;;  %v13349_v19 = vpop.f32.mrf.mxu1  ;;  %v15497_v3 = vld [vmem:[#allocation80_spill] sm:$0xff] }
 0x2b1   : > { %v6802_v8 = vrot.slane %v15490_v60, 6  ;;  %v2171_v22 = vadd.f32 %v15494_v29, %v12919_v40  ;;  %v6799_v21 = vor.u32 %v6798_v25, %v6795_v58  ;;  %v6781_v1 = vsel %vm10646_vm1, %v6777_v57, %v6780_v39  ;;  %15495 = vst [vmem:[#allocation50_spill] sm:$0xff] %v13347_v62  ;;  %15496 = vst [vmem:[#allocation52_spill] sm:$0xff] %v13349_v19  ;;  %v15498_v58 = vld [vmem:[#allocation81_spill] sm:$0xff]  ;;  %v15501_v15 = vld [vmem:[#allocation51_spill] sm:$0xff] }
 0x2b2   : > { %v6791_v45 = vsel %vm10646_vm1, %v6782_v26, %v6790_v0  ;;  %v6809_v52 = vrot.slane %v6807_v20, 5  ;;  %v6812_v33 = vrot.slane %v6810_v47, 6  ;;  %v13353_v60 = vadd.f32 %v15497_v3, %v13250_v54  ;;  %v10074_v0 = vld [vmem:[#allocation2 + $0x58] sm:$0xf]  ;;  %v13362_v47 = vpop.f32.mrf.mxu0 }
 0x2b3   : > { %v6803_v55 = vor.u32 %v6802_v8, %v6801_v41  ;;  %v9056_v40 = vcombine.low %v6781_v1, %v6791_v45  ;;  %v6800_v41 = vrot.slane %v6799_v21, 4  ;;  %v13356_v39 = vadd.f32 %v15498_v58, %v2168_v59  ;;  %v15499_v8 = vld [vmem:[#allocation32_spill] sm:$0xff]  ;;  %15500 = vst [vmem:[#allocation80_spill] sm:$0xff] %v13362_v47  ;;  %v10075_v21 = vld [vmem:[#allocation2 + $0x68] sm:$0xf]  ;;  %v15506_v58 = vld [vmem:[#allocation33_spill] sm:$0xff] }
 0x2b4   : > { %v13359_v26 = vadd.f32 %v15499_v8, %v2171_v22  ;;  %v6813_v57 = vor.u32 %v6812_v33, %v6809_v52  ;;  %v8999_v20 = vcombine.low %v12981_v17, %v10074_v0  ;;  %v2169_v29 = vadd.f32 %v15501_v15, %v13092_v31  ;;  %v6741_v1 = vld [vmem:[#allocation2 + $0x5c] sm:$0x3]  ;;  %v13379_v31 = vld [vmem:[#allocation2 + $0x64] sm:$0xe] }
 0x2b5   : > { %v6805_v25 = vrot.slane %v6803_v55, 4  ;;  %9829 = vmatmul.mubr.msk.bf16.vlgmr.msra.gmra.mxu0 %vm1038_vm5, %v9056_v40  ;;  %v6804_v54 = vsel %vm10646_vm1, %v6800_v41, %v6803_v55  ;;  %v9000_v59 = vcombine.low %v12989_v14, %v10075_v21  ;;  %v6816_v22 = vshrl.u32 %v13345_v28, 16  ;;  %v13381_v40 = vpop.f32.mrf.mxu1  ;;  %v13383_v14 = vpop.f32.mrf.mxu0  ;;  %v15512_v47 = vld [vmem:[#allocation41_spill] sm:$0xff] }
 0x2b6   : > { %9779 = vmatmul.mubr.msk.bf16.gmra.mxu1 %vm1038_vm5, %v8999_v20  ;;  %v6819_v17 = vshll.u32 %v13345_v28, 16  ;;  %v15502_v52 = vshrl.u32 %v13011_v35, 16  ;;  %v15503_v55 = vshll.u32 %v13011_v35, 16  ;;  %15504 = vst [vmem:[#allocation81_spill] sm:$0xff] %v13381_v40  ;;  %15505 = vst [vmem:[#allocation32_spill] sm:$0xff] %v13383_v14  ;;  %v13386_v8 = vadd.f32 %v15506_v58, %v2169_v29 }
 0x2b7   : > { %v6814_v45 = vsel %vm10646_vm1, %v6805_v25, %v6813_v57  ;;  %v15507_v25 = vld [vmem:[#allocation55_spill] sm:$0xff]  ;;  %9782 = vmatprep.mubr.msk.bf16.mxu1 %vm1038_vm5, %v9000_v59  ;;  %v6818_v0 = vrot.slane %v6816_v22, 5  ;;  %v6830_v35 = vshrl.u32 %v6741_v1, 16  ;;  %v6833_v21 = vshll.u32 %v6741_v1, 16  ;;  %v13400_v1 = vpop.f32.mrf.mxu1 }
 0x2b8   : > { %v6824_v33 = vrot.slane %v15502_v52, 5  ;;  %v6825_v3 = vrot.slane %v15503_v55, 6  ;;  %v9057_v41 = vcombine.low %v6804_v54, %v6814_v45  ;;  %v2174_v57 = vadd.f32 %v15507_v25, %v12979_v37  ;;  %v6742_v52 = vld [vmem:[#allocation2 + $0x6c] sm:$0x3]  ;;  %v13398_v25 = vpop.f32.mrf.mxu0  ;;  %15511 = vst [vmem:[#allocation33_spill] sm:$0xff] %v13400_v1 }
 0x2b9   : > { %v6821_v20 = vrot.slane %v6819_v17, 6  ;;  %v6839_v55 = vshrl.u32 %v13379_v31, 16  ;;  %v6842_v54 = vshll.u32 %v13379_v31, 16  ;;  %v15508_v29 = vshrl.u32 %v13020_v27, 16  ;;  %15510 = vst [vmem:[#allocation51_spill] sm:$0xff] %v13398_v25  ;;  %v15515_v25 = vld [vmem:[#allocation98_spill] sm:$0xff] }
 0x2ba   : > { %v6826_v15 = vor.u32 %v6825_v3, %v6824_v33  ;;  %9832 = vmatprep.mubr.msk.bf16.mxu0 %vm1038_vm5, %v9057_v41  ;;  %v15509_v58 = vshll.u32 %v13020_v27, 16  ;;  %v6832_v17 = vrot.slane %v6830_v35, 5  ;;  %v6835_v33 = vrot.slane %v6833_v21, 6  ;;  %v15513_v27 = vld [vmem:[#allocation96_spill] sm:$0xff]  ;;  %v13409_v24 = vpop.f32.mrf.mxu0 }
 0x2bb   : > { %v6847_v45 = vrot.slane %v15508_v29, 5  ;;  %v6822_v59 = vor.u32 %v6821_v20, %v6818_v0  ;;  %v6841_v3 = vrot.slane %v6839_v55, 5  ;;  %v6844_v41 = vrot.slane %v6842_v54, 6  ;;  %v15516_v0 = vld [vmem:[#allocation22_spill] sm:$0xff]  ;;  %15517 = vst [vmem:[#allocation55_spill] sm:$0xff] %v13409_v24  ;;  %v15534_v24 = vld [vmem:[#allocation15_spill] sm:$0xff] }
 0x2bc   : > { %v6848_v37 = vrot.slane %v15509_v58, 6  ;;  %v6828_v22 = vrot.slane %v6826_v15, 4  ;;  %v6853_v61 = vshrl.u32 %v6742_v52, 16  ;;  %v13403_v62 = vadd.f32 %v15512_v47, %v2174_v57  ;;  %v15514_v58 = vld [vmem:[#allocation59_spill] sm:$0xff] }
 0x2bd   : > { %v6823_v42 = vrot.slane %v6822_v59, 4  ;;  %v6836_v29 = vor.u32 %v6835_v33, %v6832_v17  ;;  %v6856_v40 = vshll.u32 %v6742_v52, 16  ;;  %v2172_v19 = vadd.f32 %v15514_v58, %v15513_v27  ;;  %v13417_v52 = vpop.f32.mrf.mxu1  ;;  %v10076_v33 = vld [vmem:[#allocation2 + $0x78] sm:$0xf]  ;;  %v15523_v27 = vld [vmem:[#allocation103_spill] sm:$0xff] }
 0x2be   : > { %v6849_v14 = vor.u32 %v6848_v37, %v6847_v45  ;;  %v2175_v20 = vadd.f32 %v15516_v0, %v15515_v25  ;;  %v6845_v35 = vor.u32 %v6844_v41, %v6841_v3  ;;  %v6855_v21 = vrot.slane %v6853_v61, 5  ;;  %v13415_v45 = vld [vmem:[#allocation2 + $0x74] sm:$0xe]  ;;  %15518 = vst [vmem:[#allocation41_spill] sm:$0xff] %v13417_v52  ;;  %v15519_v37 = vld [vmem:[#allocation60_spill] sm:$0xff] }
 0x2bf   : > { %v6827_v55 = vsel %vm10646_vm1, %v6823_v42, %v6826_v15  ;;  %v6837_v47 = vsel %vm10646_vm1, %v6828_v22, %v6836_v29  ;;  %v6858_v54 = vrot.slane %v6856_v40, 6  ;;  %v13420_v59 = vadd.f32 %v15519_v37, %v2172_v19  ;;  %v15520_v25 = vld [vmem:[#allocation3_spill] sm:$0xff]  ;;  %v15522_v22 = vld [vmem:[#allocation58_spill] sm:$0xff]  ;;  %v6743_v0 = vld [vmem:[#allocation2 + $0x7c] sm:$0x3] }
 0x2c0   : > { %v6851_v57 = vrot.slane %v6849_v14, 4  ;;  %v13423_v17 = vadd.f32 %v15520_v25, %v2175_v20  ;;  %v9058_v61 = vcombine.low %v6827_v55, %v6837_v47  ;;  %v15521_v3 = vld [vmem:[#allocation23_spill] sm:$0xff]  ;;  %v6846_v42 = vrot.slane %v6845_v35, 4  ;;  %v10077_v40 = vld [vmem:[#allocation2 + $0x88] sm:$0xf]  ;;  %v15524_v19 = vld [vmem:[#allocation61_spill] sm:$0xff] }
 0x2c1   : > { %v9001_v41 = vcombine.low %v15521_v3, %v10076_v33  ;;  %v6859_v15 = vor.u32 %v6858_v54, %v6855_v21  ;;  %v2173_v29 = vadd.f32 %v15522_v22, %v13125_v7  ;;  %v9002_v58 = vcombine.low %v15523_v27, %v10077_v40  ;;  %v13437_v47 = vld [vmem:[#allocation2 + $0x84] sm:$0xe]  ;;  %v13439_v7 = vpop.f32.mrf.mxu0 }
 0x2c2   : > { %9833 = vmatmul.mubr.msk.bf16.gmra.mxu0 %vm1038_vm5, %v9058_v61  ;;  %v2178_v37 = vadd.f32 %v15524_v19, %v13156_v53  ;;  %v6862_v20 = vshrl.u32 %v13415_v45, 16  ;;  %v6865_v55 = vshll.u32 %v13415_v45, 16  ;;  %v15525_v35 = vshrl.u32 %v13098_v6, 16  ;;  %15526 = vst [vmem:[#allocation96_spill] sm:$0xff] %v13439_v7  ;;  %v15527_v53 = vld [vmem:[#allocation34_spill] sm:$0xff] }
 0x2c3   : > { %9783 = vmatmul.mubr.msk.bf16.gmra.mxu1 %vm1038_vm5, %v9001_v41  ;;  %v6850_v54 = vsel %vm10646_vm1, %v6846_v42, %v6849_v14  ;;  %v6860_v25 = vsel %vm10646_vm1, %v6851_v57, %v6859_v15  ;;  %v13446_v61 = vadd.f32 %v15527_v53, %v2173_v29  ;;  %v15528_v33 = vshll.u32 %v13098_v6, 16  ;;  %v13451_v41 = vpop.f32.mrf.mxu1  ;;  %v6744_v14 = vld [vmem:[#allocation2 + $0x8c] sm:$0x3] }
 0x2c4   : > { %v6870_v21 = vrot.slane %v15525_v35, 5  ;;  %9786 = vmatprep.mubr.msk.bf16.mxu1 %vm1038_vm5, %v9002_v58  ;;  %15529 = vst [vmem:[#allocation59_spill] sm:$0xff] %v13451_v41  ;;  %v9059_v22 = vcombine.low %v6850_v54, %v6860_v25  ;;  %v6864_v40 = vrot.slane %v6862_v20, 5  ;;  %v6867_v27 = vrot.slane %v6865_v55, 6  ;;  %v13460_v20 = vpop.f32.mrf.mxu0 }
 0x2c5   : > { %v6871_v3 = vrot.slane %v15528_v33, 6  ;;  %v6876_v19 = vshrl.u32 %v6743_v0, 16  ;;  %v6879_v7 = vshll.u32 %v6743_v0, 16  ;;  %v6885_v42 = vshrl.u32 %v13437_v47, 16  ;;  %15532 = vst [vmem:[#allocation98_spill] sm:$0xff] %v13460_v20 }
 0x2c6   : > { %v6888_v57 = vshll.u32 %v13437_v47, 16  ;;  %9836 = vmatprep.mubr.msk.bf16.mxu0 %vm1038_vm5, %v9059_v22  ;;  %v6868_v15 = vor.u32 %v6867_v27, %v6864_v40  ;;  %v15530_v58 = vshrl.u32 %v13120_v18, 16  ;;  %v15531_v33 = vshll.u32 %v13120_v18, 16 }
 0x2c7   : > { %v6872_v35 = vor.u32 %v6871_v3, %v6870_v21  ;;  %v6878_v29 = vrot.slane %v6876_v19, 5  ;;  %v6881_v21 = vrot.slane %v6879_v7, 6  ;;  %v6887_v0 = vrot.slane %v6885_v42, 5  ;;  %v13462_v3 = vpop.f32.mrf.mxu1  ;;  %v15535_v19 = vld [vmem:[#allocation24_spill] sm:$0xff] }
 0x2c8   : > { %v6893_v53 = vrot.slane %v15530_v58, 5  ;;  %v6894_v54 = vrot.slane %v15531_v33, 6  ;;  %v6890_v25 = vrot.slane %v6888_v57, 6  ;;  %15533 = vst [vmem:[#allocation22_spill] sm:$0xff] %v13462_v3  ;;  %v2176_v41 = vadd.f32 %v15534_v24, %v13177_v30  ;;  %v13473_v3 = vpop.f32.mrf.mxu0  ;;  %v15538_v30 = vld [vmem:[#allocation11_spill] sm:$0xff] }
 0x2c9   : > { %v6874_v55 = vrot.slane %v6872_v35, 4  ;;  %v6899_v40 = vshrl.u32 %v6744_v14, 16  ;;  %v6902_v27 = vshll.u32 %v6744_v14, 16  ;;  %v2179_v58 = vadd.f32 %v15535_v19, %v13190_v32  ;;  %15537 = vst [vmem:[#allocation60_spill] sm:$0xff] %v13473_v3  ;;  %v15539_v14 = vld [vmem:[#allocation84_spill] sm:$0xff] }
 0x2ca   : > { %v6895_v22 = vor.u32 %v6894_v54, %v6893_v53  ;;  %v6869_v52 = vrot.slane %v6868_v15, 4  ;;  %v6882_v1 = vor.u32 %v6881_v21, %v6878_v29  ;;  %v6891_v33 = vor.u32 %v6890_v25, %v6887_v0  ;;  %v10078_v21 = vld [vmem:[#allocation2 + $0x98] sm:$0xf]  ;;  %v6745_v19 = vld [vmem:[#allocation2 + $0x9c] sm:$0x3] }
 0x2cb   : > { %v13469_v20 = vadd.f32 %v15536_v36, %v2178_v37  ;;  %v6901_v42 = vrot.slane %v6899_v40, 5  ;;  %v6904_v57 = vrot.slane %v6902_v27, 6  ;;  %v13476_v24 = vadd.f32 %v15538_v30, %v2176_v41  ;;  %v13485_v37 = vpop.f32.mrf.mxu1  ;;  %v15541_v41 = vld [vmem:[#allocation16_spill] sm:$0xff]  ;;  %v15542_v40 = vld [vmem:[#allocation14_spill] sm:$0xff] }
 0x2cc   : > { %v6897_v7 = vrot.slane %v6895_v22, 4  ;;  %v13479_v53 = vadd.f32 %v15539_v14, %v2179_v58  ;;  %v6873_v32 = vsel %vm10646_vm1, %v6869_v52, %v6872_v35  ;;  %v6883_v36 = vsel %vm10646_vm1, %v6874_v55, %v6882_v1  ;;  %15540 = vst [vmem:[#allocation3_spill] sm:$0xff] %v13485_v37  ;;  %v15546_v14 = vld [vmem:[#allocation86_spill] sm:$0xff] }
 0x2cd   : > { %v9060_v15 = vcombine.low %v6873_v32, %v6883_v36  ;;  %v6892_v29 = vrot.slane %v6891_v33, 4  ;;  %v6905_v54 = vor.u32 %v6904_v57, %v6901_v42  ;;  %v9003_v0 = vcombine.low %v13171_v9, %v10078_v21  ;;  %v13504_v33 = vld [vmem:[#allocation2 + $0x34] sm:$0xf]  ;;  %v13506_v42 = vld [vmem:[#allocation2 + $0x38] sm:$0x7]  ;;  %v13508_v57 = vpop.f32.mrf.mxu0  ;;  %v13513_v36 = vpop.f32.mrf.mxu1 }
 0x2ce   : > { %v2177_v25 = vadd.f32 %v15541_v41, %v13221_v4  ;;  %v2182_v27 = vadd.f32 %v15542_v40, %v13231_v50  ;;  %v6908_v52 = vshrl.u32 %v13471_v43, 16  ;;  %v6911_v35 = vshll.u32 %v13471_v43, 16  ;;  %15545 = vst [vmem:[#allocation23_spill] sm:$0xff] %v13508_v57  ;;  %15547 = vst [vmem:[#allocation58_spill] sm:$0xff] %v13513_v36  ;;  %v13518_v41 = vld [vmem:[#allocation2 + $0x30] sm:$0x8] }
 0x2cf   : > { %9837 = vmatmul.mubr.msk.bf16.gmra.mxu0 %vm1038_vm5, %v9060_v15  ;;  %v6896_v1 = vsel %vm10646_vm1, %v6892_v29, %v6895_v22  ;;  %v6906_v55 = vsel %vm10646_vm1, %v6897_v7, %v6905_v54  ;;  %9787 = vmatmul.mubr.msk.bf16.gmra.mxu1 %vm1038_vm5, %v9003_v0  ;;  %v15543_v9 = vshrl.u32 %v13181_v5, 16  ;;  %v15544_v50 = vshll.u32 %v13181_v5, 16  ;;  %v15548_v15 = vld [vmem:[#allocation87_spill] sm:$0xff]  ;;  %15549 = vst [vmem:[#allocation103_spill] sm:$0xff] %v13518_v41  ;;  %v15550_v40 = vld [vmem:[#allocation37_spill] sm:$0xff] }
 0x2d0   : > { %v9061_v30 = vcombine.low %v6896_v1, %v6906_v55  ;;  %v13511_v22 = vadd.f32 %v15546_v14, %v2177_v25  ;;  %v6910_v32 = vrot.slane %v6908_v52, 5  ;;  %v6913_v7 = vrot.slane %v6911_v35, 6  ;;  %v10079_v57 = vld [vmem:[#allocation2 + $0x28] sm:$0xf] }
 0x2d1   : > { %v6916_v4 = vrot.slane %v15543_v9, 5  ;;  %v6917_v58 = vrot.slane %v15544_v50, 6  ;;  %v13516_v29 = vadd.f32 %v15548_v15, %v2182_v27  ;;  %v6922_v21 = vshrl.u32 %v6745_v19, 16 }
 0x2d2   : > { %v6925_v0 = vshll.u32 %v6745_v19, 16  ;;  %9840 = vmatprep.mubr.msk.bf16.mxu0 %vm1038_vm5, %v9061_v30  ;;  %v2180_v1 = vadd.f32 %v15550_v40, %v13234_v51  ;;  %v6914_v55 = vor.u32 %v6913_v7, %v6910_v32  ;;  %v7544_v25 = vrot.slane %v13504_v33, 7  ;;  %v15552_v19 = vld [vmem:[#allocation62_spill] sm:$0xff]  ;;  %v13531_v51 = vpop.f32.mrf.mxu1  ;;  %v15554_v32 = vld [vmem:[#allocation25_spill] sm:$0xff] }
 0x2d3   : > { %v6918_v54 = vor.u32 %v6917_v58, %v6916_v4  ;;  %v7547_v52 = vrot.slane %v13506_v42, 7  ;;  %v6924_v9 = vrot.slane %v6922_v21, 5  ;;  %v9029_v27 = vrot.slane %v13238_v13, 9  ;;  %v13526_v4 = vpop.f32.mrf.mxu0  ;;  %15553 = vst [vmem:[#allocation34_spill] sm:$0xff] %v13531_v51  ;;  %v15556_v51 = vld [vmem:[#allocation90_spill] sm:$0xff] }
 0x2d4   : > { %v6927_v50 = vrot.slane %v6925_v0, 6  ;;  %15551 = vst [vmem:[#allocation61_spill] sm:$0xff] %v13526_v4  ;;  %v2183_v58 = vadd.f32 %v15552_v19, %v13243_v63  ;;  %v6915_v14 = vrot.slane %v6914_v55, 4  ;;  %v9088_v30 = vrot.slane %v13518_v41, 11  ;;  %v10080_v0 = vld [vmem:[#allocation2 + $0x2c] sm:$0x1]  ;;  %v13560_v16 = vpop.f32.mrf.mxu1 }
 0x2d5   : > { %v6920_v35 = vrot.slane %v6918_v54, 4  ;;  %v7546_v15 = vrot.slane %v7544_v25, 4  ;;  %v13534_v7 = vadd.f32 %v15554_v32, %v2180_v1  ;;  %v6518_v21 = vrot.slane %v10079_v57, 5  ;;  %v15555_v55 = vld [vmem:[#allocation63_spill] sm:$0xff]  ;;  %v10081_v4 = vld [vmem:[#allocation2 + $0x38] sm:$0xf]  ;;  %v13549_v32 = vpop.f32.mrf.mxu0 }
 0x2d6   : > { %v6928_v40 = vor.u32 %v6927_v50, %v6924_v9  ;;  %v6521_v3 = vrot.slane %v10080_v0, 5  ;;  %v6919_v13 = vsel %vm10646_vm1, %v6915_v14, %v6918_v54  ;;  %v2181_v19 = vadd.f32 %v15555_v55, %v13301_v34  ;;  %15558 = vst [vmem:[#allocation15_spill] sm:$0xff] %v13549_v32  ;;  %v15559_v14 = vld [vmem:[#allocation92_spill] sm:$0xff]  ;;  %15561 = vst [vmem:[#allocation49_spill] sm:$0xff] %v13560_v16  ;;  %v13565_v0 = vld [vmem:[#allocation2 + $0x48] sm:$0x7] }
 0x2d7   : > { %v7548_v63 = vsel %vm10296_vm4, %v7546_v15, %v7547_v52  ;;  %v6525_v36 = vrot.slane %v10081_v4, 5  ;;  %v13543_v37 = vadd.f32 %v15556_v51, %v2183_v58  ;;  %v6519_v9 = vsel %vm10742_vm9, %v9029_v27, %v6518_v21  ;;  %v13556_v15 = vld [vmem:[#allocation2 + $0x44] sm:$0xf]  ;;  %v13558_v58 = vld [vmem:[#allocation2 + $0x40] sm:$0x8]  ;;  %v15570_v16 = vld [vmem:[#allocation95_spill] sm:$0xff] }
 0x2d8   : > { %v6929_v1 = vsel %vm10646_vm1, %v6920_v35, %v6928_v40  ;;  %v6520_v50 = vrot.slane %v6518_v21, 4  ;;  %v7545_v52 = vsel %vm10296_vm4, %v9088_v30, %v7544_v25  ;;  %v13554_v34 = vadd.f32 %v15559_v14, %v2181_v19  ;;  %15560 = vst [vmem:[#allocation24_spill] sm:$0xff] %v13558_v58  ;;  %v10082_v40 = vld [vmem:[#allocation2 + $0x3c] sm:$0x1]  ;;  %v13570_v25 = vld [vmem:[%s14821_s3 + $0x60] sm:$0xf]  ;;  %v13587_v14 = vpop.f32.mrf.mxu0 }
 0x2d9   : > { %v9062_v54 = vcombine.low %v6919_v13, %v6929_v1  ;;  %v6527_v4 = vrot.slane %v6525_v36, 4  ;;  %v9097_v35 = vcombine.low %v7545_v52, %v7548_v63  ;;  %v9030_v51 = vrot.slane %v13270_v56, 9  ;;  %v10083_v13 = vld [vmem:[#allocation2 + $0x48] sm:$0xf]  ;;  %v10084_v63 = vld [vmem:[#allocation2 + $0x4c] sm:$0x1] }
 0x2da   : > { %v6522_v27 = vsel %vm10742_vm9, %v6520_v50, %v6521_v3  ;;  %v6528_v21 = vrot.slane %v10082_v40, 5  ;;  %v6532_v55 = vrot.slane %v10083_v13, 5  ;;  %v6535_v19 = vrot.slane %v10084_v63, 5  ;;  %v13575_v56 = vld [vmem:[#allocation2 + $0x50] sm:$0x8]  ;;  %15563 = vst [vmem:[#allocation84_spill] sm:$0xff] %v13587_v14 }
 0x2db   : > { %9841 = vmatmul.mubr.msk.bf16.gmra.mxu0 %vm1038_vm5, %v9062_v54  ;;  %v9038_v30 = vcombine.low %v6519_v9, %v6522_v27  ;;  %v7649_v3 = vsel %vm1063_vm3, %v13256_v49, 0  ;;  %15562 = vst [vmem:[#allocation11_spill] sm:$0xff] %v13575_v56  ;;  %v6526_v1 = vsel %vm10742_vm9, %v9030_v51, %v6525_v36  ;;  %v7395_v9 = vsel %vm1063_vm3, %v13291_v12, 0  ;;  %v13585_v52 = vld [vmem:[#allocation2 + $0x54] sm:$0xf]  ;;  %v13596_v12 = vpop.f32.mrf.mxu1  ;;  %v15568_v14 = vld [vmem:[#allocation68_spill] sm:$0xff] }
 0x2dc   : > { %9864 = vmatprep.mubr.msk.bf16.mxu0 %vm1038_vm5, %v9097_v35  ;;  %v6529_v50 = vsel %vm10742_vm9, %v6527_v4, %v6528_v21  ;;  %v9031_v54 = vrot.slane %v13296_v23, 9  ;;  %9863 = vmatpush3.bf16.msra.mxu0 %v7649_v3  ;;  %v6534_v35 = vrot.slane %v6532_v55, 4  ;;  %v9089_v27 = vrot.slane %v13558_v58, 11  ;;  %v13592_v51 = vld [vmem:[#allocation2 + $0x58] sm:$0x7]  ;;  %15564 = vst [vmem:[#allocation16_spill] sm:$0xff] %v13596_v12 }
 0x2dd   : > { %9810 = vmatprep.mubr.msk.bf16.mxu1 %vm1038_vm5, %v9038_v30  ;;  %v9039_v49 = vcombine.low %v6526_v1, %v6529_v50  ;;  %v7551_v36 = vrot.slane %v13556_v15, 7  ;;  %9958 = vmatprep.subr.msk.bf16.mxu0 %vm1063_vm3, %v13570_v25  ;;  %v15565_v23 = vld [vmem:[#allocation65_spill] sm:$0xff]  ;;  %v15566_v40 = vld [vmem:[#allocation67_spill] sm:$0xff]  ;;  %v7554_v30 = vrot.slane %v13565_v0, 7  ;;  %v9090_v13 = vrot.slane %v13575_v56, 11 }
 0x2de   : > { %v2788_v4 = vadd.f32 %v15565_v23, %v13353_v60  ;;  %v2786_v21 = vadd.f32 %v15566_v40, %v13356_v39  ;;  %v13607_v63 = vld [vmem:[%s14821_s3 + $0x5c] sm:$0xf]  ;;  %v6533_v3 = vsel %vm10742_vm9, %v9031_v54, %v6532_v55  ;;  %v6536_v60 = vsel %vm10742_vm9, %v6534_v35, %v6535_v19  ;;  %v15567_v50 = vld [vmem:[#allocation17_spill] sm:$0xff]  ;;  %v13660_v56 = vld [vmem:[#allocation2 + $0x74] sm:$0xf] }
 0x2df   : > { %9811 = vmatmul.mubr.msk.bf16.vlgmr.msra.gmra.mxu1 %vm1038_vm5, %v9039_v49  ;;  %v7553_v1 = vrot.slane %v7551_v36, 4  ;;  %v7558_v39 = vrot.slane %v13585_v52, 7  ;;  %v9040_v40 = vcombine.low %v6533_v3, %v6536_v60  ;;  %v2789_v32 = vadd.f32 %v15568_v14, %v13359_v26  ;;  %v13621_v49 = vpop.f32.mrf.mxu0  ;;  %v15572_v26 = vld [vmem:[#allocation13_spill] sm:$0xff] }
 0x2e0   : > { %v13616_v23 = vadd.f32 %v15567_v50, %v2788_v4  ;;  %9845 = vmatpush3.bf16.msra.mxu1 %v7395_v9  ;;  %v7561_v12 = vrot.slane %v13592_v51, 7  ;;  %15569 = vst [vmem:[#allocation14_spill] sm:$0xff] %v13621_v49  ;;  %v13624_v55 = vadd.f32 %v15570_v16, %v2786_v21  ;;  %v7552_v19 = vsel %vm10296_vm4, %v9089_v27, %v7551_v36  ;;  %v13632_v9 = vpop.f32.mrf.mxu1  ;;  %v10085_v21 = vld [vmem:[#allocation2 + $0x58] sm:$0xf]  ;;  %v13640_v36 = vld [vmem:[#allocation2 + $0x64] sm:$0xf] }
 0x2e1   : > { %v7555_v54 = vsel %vm10296_vm4, %v7553_v1, %v7554_v30  ;;  %v7560_v35 = vrot.slane %v7558_v39, 4  ;;  %9957 = vmatprep.subr.msk.bf16.mxu1 %vm1063_vm3, %v13607_v63  ;;  %15571 = vst [vmem:[#allocation86_spill] sm:$0xff] %v13632_v9  ;;  %9814 = vmatprep.mubr.msk.bf16.mxu1 %vm1038_vm5, %v9040_v40  ;;  %v13636_v14 = vadd.f32 %v15572_v26, %v2789_v32  ;;  %v6539_v27 = vrot.slane %v10085_v21, 5  ;;  %v13642_v30 = vld [vmem:[#allocation2 + $0x60] sm:$0x8]  ;;  %v15575_v21 = vld [vmem:[#allocation10_spill] sm:$0xff]  ;;  %v13653_v9 = vpop.f32.mrf.mxu0 }
 0x2e2   : > { %v9098_v4 = vcombine.low %v7552_v19, %v7555_v54  ;;  %v7559_v16 = vsel %vm10296_vm4, %v9090_v13, %v7558_v39  ;;  %15573 = vst [vmem:[#allocation87_spill] sm:$0xff] %v13642_v30  ;;  %v9032_v60 = vrot.slane %v13345_v28, 9  ;;  %v10086_v1 = vld [vmem:[#allocation2 + $0x5c] sm:$0x1]  ;;  %v10087_v40 = vld [vmem:[#allocation2 + $0x68] sm:$0xf] }
 0x2e3   : > { %v7562_v3 = vsel %vm10296_vm4, %v7560_v35, %v7561_v12  ;;  %v6542_v50 = vrot.slane %v10086_v1, 5  ;;  %v6546_v32 = vrot.slane %v10087_v40, 5  ;;  %v13647_v26 = vld [vmem:[#allocation2 + $0x68] sm:$0x7]  ;;  %v15574_v39 = vld [vmem:[#allocation69_spill] sm:$0xff]  ;;  %v6541_v54 = vrot.slane %v6539_v27, 4  ;;  %v13686_v41 = vpop.f32.mrf.mxu0 }
 0x2e4   : > { %9865 = vmatmul.mubr.msk.bf16.vlgmr.msra.gmra.mxu0 %vm1038_vm5, %v9098_v4  ;;  %v9099_v13 = vcombine.low %v7559_v16, %v7562_v3  ;;  %v2787_v19 = vadd.f32 %v15574_v39, %v13386_v8  ;;  %v6549_v49 = vrot.slane %v15575_v21, 5  ;;  %15576 = vst [vmem:[#allocation37_spill] sm:$0xff] %v13653_v9  ;;  %v15577_v12 = vld [vmem:[#allocation70_spill] sm:$0xff]  ;;  %v6540_v35 = vsel %vm10742_vm9, %v9032_v60, %v6539_v27  ;;  %v13662_v4 = vld [vmem:[#allocation2 + $0x78] sm:$0x7]  ;;  %v13664_v16 = vpop.f32.mrf.mxu1  ;;  %v15604_v57 = vld [vmem:[#allocation77_spill] sm:$0xff] }
 0x2e5   : > { %v2792_v28 = vadd.f32 %v15577_v12, %v13403_v62  ;;  %v9033_v1 = vrot.slane %v13379_v31, 9  ;;  %v6548_v40 = vrot.slane %v6546_v32, 4  ;;  %15578 = vst [vmem:[#allocation62_spill] sm:$0xff] %v13664_v16  ;;  %v6543_v8 = vsel %vm10742_vm9, %v6541_v54, %v6542_v50  ;;  %v13672_v60 = vld [vmem:[#allocation2 + $0x70] sm:$0x8]  ;;  %v15579_v31 = vld [vmem:[#allocation9_spill] sm:$0xff] }
 0x2e6   : > { %9868 = vmatprep.mubr.msk.bf16.mxu0 %vm1038_vm5, %v9099_v13  ;;  %v9091_v3 = vrot.slane %v13642_v30, 11  ;;  %v7565_v62 = vrot.slane %v13640_v36, 7  ;;  %v7568_v27 = vrot.slane %v13647_v26, 7  ;;  %v13675_v39 = vadd.f32 %v15579_v31, %v2787_v19  ;;  %v15580_v9 = vld [vmem:[#allocation66_spill] sm:$0xff]  ;;  %v15581_v16 = vld [vmem:[#allocation71_spill] sm:$0xff]  ;;  %15582 = vst [vmem:[#allocation25_spill] sm:$0xff] %v13686_v41 }
 0x2e7   : > { %v9041_v21 = vcombine.low %v6540_v35, %v6543_v8  ;;  %v6547_v12 = vsel %vm10742_vm9, %v9033_v1, %v6546_v32  ;;  %v6550_v13 = vsel %vm10742_vm9, %v6548_v40, %v6549_v49  ;;  %v13682_v50 = vadd.f32 %v15580_v9, %v2792_v28  ;;  %v15583_v19 = vld [vmem:[#allocation72_spill] sm:$0xff]  ;;  %v13694_v9 = vpop.f32.mrf.mxu1  ;;  %v15586_v31 = vld [vmem:[#allocation99_spill] sm:$0xff] }
 0x2e8   : > { %v9042_v54 = vcombine.low %v6547_v12, %v6550_v13  ;;  %v2790_v30 = vadd.f32 %v15581_v16, %v13420_v59  ;;  %v7567_v58 = vrot.slane %v7565_v62, 4  ;;  %v2793_v35 = vadd.f32 %v15583_v19, %v13423_v17  ;;  %15584 = vst [vmem:[#allocation63_spill] sm:$0xff] %v13694_v9  ;;  %v15585_v16 = vld [vmem:[#allocation30_spill] sm:$0xff]  ;;  %v15597_v9 = vld [vmem:[#allocation12_spill] sm:$0xff] }
 0x2e9   : > { %9815 = vmatmul.mubr.msk.bf16.gmra.mxu1 %vm1038_vm5, %v9041_v21  ;;  %v9092_v32 = vrot.slane %v13672_v60, 11  ;;  %v7572_v1 = vrot.slane %v13660_v56, 7  ;;  %v7575_v49 = vrot.slane %v13662_v4, 7  ;;  %v7566_v59 = vsel %vm10296_vm4, %v9091_v3, %v7565_v62  ;;  %v15588_v3 = vld [vmem:[#allocation74_spill] sm:$0xff] }
 0x2ea   : > { %9818 = vmatprep.mubr.msk.bf16.mxu1 %vm1038_vm5, %v9042_v54  ;;  %v7569_v28 = vsel %vm10296_vm4, %v7567_v58, %v7568_v27  ;;  %v6553_v40 = vrot.slane %v13098_v6, 5  ;;  %v6556_v17 = vrot.slane %v13131_v44, 5  ;;  %v13704_v8 = vadd.f32 %v15585_v16, %v2790_v30  ;;  %v15587_v54 = vld [vmem:[#allocation73_spill] sm:$0xff]  ;;  %v13718_v30 = vpop.f32.mrf.mxu0  ;;  %v13731_v16 = vpop.f32.mrf.mxu1 }
 0x2eb   : > { %v13707_v21 = vadd.f32 %v15586_v31, %v2793_v35  ;;  %v9100_v12 = vcombine.low %v7566_v59, %v7569_v28  ;;  %v7574_v13 = vrot.slane %v7572_v1, 4  ;;  %v2791_v19 = vadd.f32 %v15587_v54, %v13446_v61  ;;  %v13714_v6 = vld [vmem:[#allocation2 + $0x84] sm:$0xf]  ;;  %v13716_v44 = vld [vmem:[#allocation2 + $0x80] sm:$0x8]  ;;  %15589 = vst [vmem:[#allocation90_spill] sm:$0xff] %v13718_v30 }
 0x2ec   : > { %v2796_v62 = vadd.f32 %v15588_v3, %v13469_v20  ;;  %v9034_v58 = vrot.slane %v13415_v45, 9  ;;  %v6555_v27 = vrot.slane %v6553_v40, 4  ;;  %v7573_v35 = vsel %vm10296_vm4, %v9092_v32, %v7572_v1  ;;  %v13727_v45 = vld [vmem:[#allocation2 + $0x88] sm:$0x7]  ;;  %v13729_v28 = vld [vmem:[#allocation2 + $0x90] sm:$0x8] }
 0x2ed   : > { %9869 = vmatmul.mubr.msk.bf16.gmra.mxu0 %vm1038_vm5, %v9100_v12  ;;  %v7576_v61 = vsel %vm10296_vm4, %v7574_v13, %v7575_v49  ;;  %v6560_v59 = vrot.slane %v13120_v18, 5  ;;  %v6563_v20 = vrot.slane %v13141_v38, 5  ;;  %15590 = vst [vmem:[#allocation48_spill] sm:$0xff] %v13731_v16  ;;  %v15591_v54 = vld [vmem:[#allocation101_spill] sm:$0xff]  ;;  %v13740_v49 = vld [vmem:[#allocation2 + $0x94] sm:$0xf] }
 0x2ee   : > { %v9101_v31 = vcombine.low %v7573_v35, %v7576_v61  ;;  %v13734_v3 = vadd.f32 %v15591_v54, %v2791_v19  ;;  %v6554_v32 = vsel %vm10742_vm9, %v9034_v58, %v6553_v40  ;;  %v6557_v1 = vsel %vm10742_vm9, %v6555_v27, %v6556_v17  ;;  %v13742_v18 = vld [vmem:[#allocation2 + $0x98] sm:$0x7]  ;;  %v15592_v30 = vld [vmem:[#allocation75_spill] sm:$0xff]  ;;  %v13752_v27 = vpop.f32.mrf.mxu0  ;;  %v15595_v54 = vld [vmem:[#allocation102_spill] sm:$0xff] }
 0x2ef   : > { %v9043_v38 = vcombine.low %v6554_v32, %v6557_v1  ;;  %v9035_v12 = vrot.slane %v13437_v47, 9  ;;  %v6562_v13 = vrot.slane %v6560_v59, 4  ;;  %v2794_v35 = vadd.f32 %v15592_v30, %v13476_v24  ;;  %15593 = vst [vmem:[#allocation92_spill] sm:$0xff] %v13752_v27  ;;  %v15596_v27 = vld [vmem:[#allocation76_spill] sm:$0xff]  ;;  %v7096_v16 = vld [vmem:[#allocation2 + $0x30] sm:$0xc] }
 0x2f0   : > { %9872 = vmatprep.mubr.msk.bf16.mxu0 %vm1038_vm5, %v9101_v31  ;;  %v9093_v19 = vrot.slane %v13716_v44, 11  ;;  %v7579_v40 = vrot.slane %v13714_v6, 7  ;;  %v7582_v58 = vrot.slane %v13727_v45, 7  ;;  %v9094_v17 = vrot.slane %v13729_v28, 11  ;;  %v13761_v31 = vpop.f32.mrf.mxu1 }
 0x2f1   : > { %9819 = vmatmul.mubr.msk.bf16.gmra.mxu1 %vm1038_vm5, %v9043_v38  ;;  %v6561_v47 = vsel %vm10742_vm9, %v9035_v12, %v6560_v59  ;;  %v6564_v24 = vsel %vm10742_vm9, %v6562_v13, %v6563_v20  ;;  %v7586_v30 = vrot.slane %v13740_v49, 7  ;;  %v7589_v61 = vrot.slane %v13742_v18, 7  ;;  %15594 = vst [vmem:[#allocation65_spill] sm:$0xff] %v13761_v31 }
 0x2f2   : > { %v13764_v32 = vadd.f32 %v15595_v54, %v2796_v62  ;;  %v9044_v1 = vcombine.low %v6561_v47, %v6564_v24  ;;  %v2797_v41 = vadd.f32 %v15596_v27, %v13479_v53  ;;  %v7581_v38 = vrot.slane %v7579_v40, 4 }
 0x2f3   : > { %v13769_v59 = vadd.f32 %v15597_v9, %v2794_v35  ;;  %v7587_v20 = vsel %vm10296_vm4, %v9094_v17, %v7586_v30  ;;  %v7588_v12 = vrot.slane %v7586_v30, 4  ;;  %v9036_v13 = vrot.slane %v13471_v43, 9  ;;  %v13781_v9 = vpop.f32.mrf.mxu0  ;;  %v13785_v30 = vpop.f32.mrf.mxu1 }
 0x2f4   : > { %9822 = vmatprep.mubr.msk.bf16.mxu1 %vm1038_vm5, %v9044_v1  ;;  %v7580_v62 = vsel %vm10296_vm4, %v9093_v19, %v7579_v40  ;;  %v7583_v47 = vsel %vm10296_vm4, %v7581_v38, %v7582_v58  ;;  %v6567_v53 = vrot.slane %v13181_v5, 5  ;;  %v6570_v27 = vrot.slane %v13203_v2, 5  ;;  %15598 = vst [vmem:[#allocation67_spill] sm:$0xff] %v13781_v9  ;;  %15599 = vst [vmem:[#allocation17_spill] sm:$0xff] %v13785_v30 }
 0x2f5   : > { %v9102_v35 = vcombine.low %v7580_v62, %v7583_v47  ;;  %v7590_v17 = vsel %vm10296_vm4, %v7588_v12, %v7589_v61  ;;  %v7121_v24 = vshrl.u32 %v7096_v16, 16  ;;  %v7124_v43 = vshll.u32 %v7096_v16, 16  ;;  %v13793_v61 = vld [vmem:[#allocation2 + $0xa0] sm:$0x8]  ;;  %v13795_v16 = vpop.f32.mrf.mxu1  ;;  %v15602_v12 = vld [vmem:[#allocation28_spill] sm:$0xff] }
 0x2f6   : > { %v9103_v54 = vcombine.low %v7587_v20, %v7590_v17  ;;  %v6568_v19 = vsel %vm10742_vm9, %v9036_v13, %v6567_v53  ;;  %v6569_v40 = vrot.slane %v6567_v53, 4  ;;  %v14976_v58 = vshrl.u32 %v13504_v33, 16  ;;  %15600 = vst [vmem:[#allocation68_spill] sm:$0xff] %v13793_v61  ;;  %15601 = vst [vmem:[#allocation95_spill] sm:$0xff] %v13795_v16  ;;  %v13806_v53 = vld [vmem:[#allocation2 + $0xa4] sm:$0xf]  ;;  %v13810_v17 = vpop.f32.mrf.mxu0 }
 0x2f7   : > { %9873 = vmatmul.mubr.msk.bf16.gmra.mxu0 %vm1038_vm5, %v9102_v35  ;;  %v7123_v5 = vrot.slane %v7121_v24, 6  ;;  %v7126_v2 = vrot.slane %v7124_v43, 7  ;;  %v14977_v1 = vshll.u32 %v13504_v33, 16  ;;  %v7140_v38 = vshrl.u32 %v13506_v42, 16  ;;  %v13808_v35 = vld [vmem:[#allocation2 + $0xa8] sm:$0x7]  ;;  %v13819_v9 = vpop.f32.mrf.mxu1 }
 0x2f8   : > { %v13798_v20 = vadd.f32 %v15602_v12, %v2797_v41  ;;  %9876 = vmatprep.mubr.msk.bf16.mxu0 %vm1038_vm5, %v9103_v54  ;;  %v6571_v13 = vsel %vm10742_vm9, %v6569_v40, %v6570_v27  ;;  %v7132_v62 = vrot.slane %v14976_v58, 6  ;;  %v7143_v47 = vshll.u32 %v13506_v42, 16  ;;  %15603 = vst [vmem:[#allocation13_spill] sm:$0xff] %v13810_v17  ;;  %v15605_v40 = vld [vmem:[#allocation79_spill] sm:$0xff]  ;;  %15606 = vst [vmem:[#allocation69_spill] sm:$0xff] %v13819_v9 }
 0x2f9   : > { %v9045_v24 = vcombine.low %v6568_v19, %v6571_v13  ;;  %v7127_v43 = vor.u32 %v7126_v2, %v7123_v5  ;;  %v7135_v41 = vrot.slane %v14977_v1, 7  ;;  %v7142_v54 = vrot.slane %v7140_v38, 6  ;;  %v13824_v38 = vld [vmem:[#allocation2 + $0x38] sm:$0xf]  ;;  %v7099_v1 = vld [vmem:[#allocation2 + $0x40] sm:$0xc] }
 0x2fa   : > { %v2795_v27 = vadd.f32 %v15604_v57, %v13511_v22  ;;  %v2800_v12 = vadd.f32 %v15605_v40, %v13516_v29  ;;  %v7145_v58 = vrot.slane %v7143_v47, 7  ;;  %v9095_v42 = vrot.slane %v13793_v61, 11  ;;  %v15607_v29 = vld [vmem:[#allocation46_spill] sm:$0xff]  ;;  %v15608_v57 = vld [vmem:[#allocation40_spill] sm:$0xff]  ;;  %v15669_v61 = vld [vmem:[#allocation93_spill] sm:$0xff] }
 0x2fb   : > { %9823 = vmatmul.mubr.msk.bf16.gmra.mxu1 %vm1038_vm5, %v9045_v24  ;;  %v7128_v17 = vrot.slane %v7127_v43, 4  ;;  %v7136_v19 = vor.u32 %v7135_v41, %v7132_v62  ;;  %v7593_v5 = vrot.slane %v13806_v53, 7  ;;  %v7596_v2 = vrot.slane %v13808_v35, 7  ;;  %v13833_v24 = vpop.f32.mrf.mxu0 }
 0x2fc   : > { %v13827_v22 = vadd.f32 %v13100_v46, %v2795_v27  ;;  %v7146_v13 = vor.u32 %v7145_v58, %v7142_v54  ;;  %v2798_v47 = vadd.f32 %v15607_v29, %v13534_v7  ;;  %v2801_v40 = vadd.f32 %v15608_v57, %v13543_v37  ;;  %15609 = vst [vmem:[#allocation10_spill] sm:$0xff] %v13833_v24  ;;  %v15611_v54 = vld [vmem:[#allocation6_spill] sm:$0xff]  ;;  %v13849_v57 = vpop.f32.mrf.mxu1  ;;  %v7102_v24 = vld [vmem:[#allocation2 + $0x50] sm:$0xc] }
 0x2fd   : > { %v13836_v62 = vadd.f32 %v13111_v48, %v2800_v12  ;;  %v7138_v43 = vrot.slane %v7136_v19, 4  ;;  %v7594_v41 = vsel %vm10296_vm4, %v9095_v42, %v7593_v5  ;;  %v7595_v9 = vrot.slane %v7593_v5, 4  ;;  %v15612_v7 = vld [vmem:[#allocation106_spill] sm:$0xff]  ;;  %15613 = vst [vmem:[#allocation70_spill] sm:$0xff] %v13849_v57 }
 0x2fe   : > { %v7137_v58 = vsel %vm10407_vm11, %v7128_v17, %v7136_v19  ;;  %v13843_v27 = vadd.f32 %v15611_v54, %v2798_v47  ;;  %v13846_v29 = vadd.f32 %v15612_v7, %v2801_v40  ;;  %v7782_v37 = vshrl.u32 %v13824_v38, 16  ;;  %v13858_v54 = vpop.f32.mrf.mxu0 }
 0x2ff   : > { %v7147_v48 = vsel %vm10407_vm11, %v7138_v43, %v7146_v13  ;;  %v7597_v12 = vsel %vm10296_vm4, %v7595_v9, %v7596_v2  ;;  %v7149_v42 = vshrl.u32 %v7099_v1, 16  ;;  %v7152_v5 = vshll.u32 %v7099_v1, 16  ;;  %15614 = vst [vmem:[#allocation9_spill] sm:$0xff] %v13858_v54 }
 0x300   : > { %v9072_v17 = vcombine.low %v7137_v58, %v7147_v48  ;;  %v9104_v19 = vcombine.low %v7594_v41, %v7597_v12  ;;  %v9139_v40 = vcombine.low %v13504_v33, %v13824_v38  ;;  %v14978_v16 = vshrl.u32 %v13556_v15, 16  ;;  %v13868_v41 = vpop.f32.mrf.mxu1 }
 0x301   : > { %v7151_v7 = vrot.slane %v7149_v42, 6  ;;  %v7154_v57 = vrot.slane %v7152_v5, 7  ;;  %v14979_v13 = vshll.u32 %v13556_v15, 16  ;;  %v2799_v9 = vadd.f32 %v15615_v11, %v13554_v34  ;;  %15616 = vst [vmem:[#allocation66_spill] sm:$0xff] %v13868_v41  ;;  %v13876_v11 = vpop.f32.mrf.mxu0 }
 0x302   : > { %9846 = vmatprep.mubr.msk.bf16.mxu1 %vm1038_vm5, %v9072_v17  ;;  %9877 = vmatmul.mubr.msk.bf16.gmra.mxu0 %vm1038_vm5, %v9104_v19  ;;  %v7168_v1 = vshrl.u32 %v13565_v0, 16  ;;  %v7171_v2 = vshll.u32 %v13565_v0, 16  ;;  %v7177_v43 = vshrl.u32 %v7102_v24, 16  ;;  %v7160_v48 = vrot.slane %v14978_v16, 6  ;;  %15617 = vst [vmem:[#allocation71_spill] sm:$0xff] %v13876_v11 }
 0x303   : > { %9900 = vmatprep.mubr.msk.bf16.mxu0 %vm1038_vm5, %v9139_v40  ;;  %v7155_v58 = vor.u32 %v7154_v57, %v7151_v7  ;;  %v7163_v12 = vrot.slane %v14979_v13, 7  ;;  %v7180_v42 = vshll.u32 %v7102_v24, 16  ;;  %v14981_v19 = vshrl.u32 %v13585_v52, 16 }
 0x304   : > { %v7170_v5 = vrot.slane %v7168_v1, 6  ;;  %v7173_v17 = vrot.slane %v7171_v2, 7  ;;  %v7179_v34 = vrot.slane %v7177_v43, 6  ;;  %v14980_v40 = vshll.u32 %v13585_v52, 16  ;;  %v13883_v1 = vpop.f32.mrf.mxu1  ;;  %v15619_v2 = vld [vmem:[#allocation56_spill] sm:$0xff] }
 0x305   : > { %v7156_v0 = vrot.slane %v7155_v58, 4  ;;  %v7164_v47 = vor.u32 %v7163_v12, %v7160_v48  ;;  %v7182_v54 = vrot.slane %v7180_v42, 7  ;;  %v7188_v7 = vrot.slane %v14981_v19, 6  ;;  %15618 = vst [vmem:[#allocation72_spill] sm:$0xff] %v13883_v1  ;;  %v13889_v48 = vld [vmem:[#allocation2 + $0x48] sm:$0xf] }
 0x306   : > { %v7174_v57 = vor.u32 %v7173_v17, %v7170_v5  ;;  %v7196_v16 = vshrl.u32 %v13592_v51, 16  ;;  %v7199_v24 = vshll.u32 %v13592_v51, 16  ;;  %v3457_v43 = vadd.f32 %v15619_v2, %v13616_v23  ;;  %v13895_v17 = vpop.f32.mrf.mxu0  ;;  %v13904_v1 = vld [vmem:[#allocation2 + $0x58] sm:$0xf] }
 0x307   : > { %v7166_v13 = vrot.slane %v7164_v47, 4  ;;  %v7183_v11 = vor.u32 %v7182_v54, %v7179_v34  ;;  %v7191_v58 = vrot.slane %v14980_v40, 7  ;;  %v7959_v12 = vsel %vm1063_vm3, %v13607_v63, 0  ;;  %15620 = vst [vmem:[#allocation30_spill] sm:$0xff] %v13895_v17  ;;  %v15621_v63 = vld [vmem:[#allocation35_spill] sm:$0xff] }
 0x308   : > { %v7198_v42 = vrot.slane %v7196_v16, 6  ;;  %v7201_v5 = vrot.slane %v7199_v24, 7  ;;  %v8133_v51 = vsel %vm1063_vm3, %v13570_v25, 0  ;;  %v7165_v23 = vsel %vm10407_vm11, %v7156_v0, %v7164_v47  ;;  %v13906_v25 = vpop.f32.mrf.mxu1  ;;  %v15623_v47 = vld [vmem:[#allocation108_spill] sm:$0xff] }
 0x309   : > { %v7175_v54 = vsel %vm10407_vm11, %v7166_v13, %v7174_v57  ;;  %v7184_v34 = vrot.slane %v7183_v11, 4  ;;  %v7192_v2 = vor.u32 %v7191_v58, %v7188_v7  ;;  %9899 = vmatpush3.bf16.msra.mxu0 %v8133_v51  ;;  %v3455_v16 = vadd.f32 %v15621_v63, %v13624_v55  ;;  %15622 = vst [vmem:[#allocation99_spill] sm:$0xff] %v13906_v25  ;;  %v15624_v11 = vld [vmem:[#allocation82_spill] sm:$0xff]  ;;  %v7105_v7 = vld [vmem:[#allocation2 + $0x60] sm:$0xc]  ;;  %v15627_v51 = vld [vmem:[#allocation44_spill] sm:$0xff] }
 0x30a   : > { %v9073_v40 = vcombine.low %v7165_v23, %v7175_v54  ;;  %v7202_v19 = vor.u32 %v7201_v5, %v7198_v42  ;;  %v7799_v24 = vshrl.u32 %v13889_v48, 16  ;;  %v13908_v17 = vrot.slane %v7782_v37, 7  ;;  %v15625_v58 = vld [vmem:[#allocation42_spill] sm:$0xff]  ;;  %v7108_v63 = vld [vmem:[#allocation2 + $0x70] sm:$0xc] }
 0x30b   : > { %v13911_v0 = vadd.f32 %v15623_v47, %v2799_v9  ;;  %v7194_v13 = vrot.slane %v7192_v2, 4  ;;  %v3458_v57 = vadd.f32 %v15624_v11, %v13636_v14  ;;  %v13916_v42 = vadd.f32 %v15625_v58, %v3457_v43  ;;  %v13926_v9 = vpop.f32.mrf.mxu0 }
 0x30c   : > { %9847 = vmatmul.mubr.msk.bf16.vlgmr.msra.gmra.mxu1 %vm1038_vm5, %v9073_v40  ;;  %v7193_v55 = vsel %vm10407_vm11, %v7184_v34, %v7192_v2  ;;  %v13922_v5 = vadd.f32 %v13183_v10, %v3455_v16  ;;  %v9140_v37 = vcombine.low %v13556_v15, %v13889_v48  ;;  %15626 = vst [vmem:[#allocation73_spill] sm:$0xff] %v13926_v9  ;;  %v13936_v10 = vrot.slane %v7799_v24, 7 }
 0x30d   : > { %9881 = vmatpush3.bf16.msra.mxu1 %v7959_v12  ;;  %v7203_v14 = vsel %vm10407_vm11, %v7194_v13, %v7202_v19  ;;  %v13931_v43 = vadd.f32 %v15627_v51, %v3458_v57  ;;  %v9141_v23 = vcombine.low %v13585_v52, %v13904_v1  ;;  %v7205_v34 = vshrl.u32 %v7105_v7, 16  ;;  %v13939_v12 = vpop.f32.mrf.mxu1  ;;  %v13941_v16 = vpop.f32.mrf.mxu0 }
 0x30e   : > { %v9074_v54 = vcombine.low %v7193_v55, %v7203_v14  ;;  %9901 = vmatmul.mubr.msk.bf16.vlgmr.msra.gmra.mxu0 %vm1038_vm5, %v9140_v37  ;;  %v7208_v2 = vshll.u32 %v7105_v7, 16  ;;  %15628 = vst [vmem:[#allocation74_spill] sm:$0xff] %v13939_v12  ;;  %15629 = vst [vmem:[#allocation101_spill] sm:$0xff] %v13941_v16  ;;  %v7816_v19 = vshrl.u32 %v13904_v1, 16  ;;  %v14982_v13 = vshrl.u32 %v13640_v36, 16 }
 0x30f   : > { %9904 = vmatprep.mubr.msk.bf16.mxu0 %vm1038_vm5, %v9141_v23  ;;  %v14983_v24 = vshll.u32 %v13640_v36, 16  ;;  %v7207_v11 = vrot.slane %v7205_v34, 6  ;;  %v7224_v7 = vshrl.u32 %v13647_v26, 16  ;;  %v7227_v58 = vshll.u32 %v13647_v26, 16  ;;  %v13958_v34 = vpop.f32.mrf.mxu0 }
 0x310   : > { %9850 = vmatprep.mubr.msk.bf16.mxu1 %vm1038_vm5, %v9074_v54  ;;  %v7210_v57 = vrot.slane %v7208_v2, 7  ;;  %v7216_v55 = vrot.slane %v14982_v13, 6  ;;  %v7233_v14 = vshrl.u32 %v7108_v63, 16  ;;  %v7236_v51 = vshll.u32 %v7108_v63, 16  ;;  %v13956_v54 = vpop.f32.mrf.mxu1  ;;  %15631 = vst [vmem:[#allocation102_spill] sm:$0xff] %v13958_v34 }
 0x311   : > { %v7219_v37 = vrot.slane %v14983_v24, 7  ;;  %v7226_v47 = vrot.slane %v7224_v7, 6  ;;  %v7229_v40 = vrot.slane %v7227_v58, 7  ;;  %v14985_v16 = vshrl.u32 %v13660_v56, 16  ;;  %15630 = vst [vmem:[#allocation75_spill] sm:$0xff] %v13956_v54 }
 0x312   : > { %v7211_v23 = vor.u32 %v7210_v57, %v7207_v11  ;;  %v7235_v9 = vrot.slane %v7233_v14, 6  ;;  %v7238_v26 = vrot.slane %v7236_v51, 7  ;;  %v14984_v12 = vshll.u32 %v13660_v56, 16  ;;  %v13967_v34 = vld [vmem:[#allocation2 + $0x68] sm:$0xf]  ;;  %v15633_v14 = vld [vmem:[#allocation47_spill] sm:$0xff] }
 0x313   : > { %v7220_v2 = vor.u32 %v7219_v37, %v7216_v55  ;;  %v7230_v25 = vor.u32 %v7229_v40, %v7226_v47  ;;  %v7244_v24 = vrot.slane %v14985_v16, 6  ;;  %v7252_v63 = vshrl.u32 %v13662_v4, 16  ;;  %v15632_v55 = vld [vmem:[#allocation57_spill] sm:$0xff] }
 0x314   : > { %v7212_v13 = vrot.slane %v7211_v23, 4  ;;  %v7239_v57 = vor.u32 %v7238_v26, %v7235_v9  ;;  %v7247_v7 = vrot.slane %v14984_v12, 7  ;;  %v7255_v58 = vshll.u32 %v13662_v4, 16  ;;  %v13975_v23 = vpop.f32.mrf.mxu1  ;;  %v13977_v9 = vpop.f32.mrf.mxu0 }
 0x315   : > { %v7222_v11 = vrot.slane %v7220_v2, 4  ;;  %v3456_v37 = vadd.f32 %v15632_v55, %v13675_v39  ;;  %v3461_v40 = vadd.f32 %v15633_v14, %v13682_v50  ;;  %v7254_v51 = vrot.slane %v7252_v63, 6  ;;  %15634 = vst [vmem:[#allocation76_spill] sm:$0xff] %v13975_v23  ;;  %15635 = vst [vmem:[#allocation12_spill] sm:$0xff] %v13977_v9  ;;  %v15636_v39 = vld [vmem:[#allocation83_spill] sm:$0xff]  ;;  %v15637_v50 = vld [vmem:[#allocation4_spill] sm:$0xff] }
 0x316   : > { %v7221_v47 = vsel %vm10407_vm11, %v7212_v13, %v7220_v2  ;;  %v7240_v4 = vrot.slane %v7239_v57, 4  ;;  %v7248_v12 = vor.u32 %v7247_v7, %v7244_v24  ;;  %v7257_v16 = vrot.slane %v7255_v58, 7  ;;  %v13986_v2 = vld [vmem:[#allocation2 + $0x78] sm:$0xf]  ;;  %v15638_v9 = vld [vmem:[#allocation18_spill] sm:$0xff] }
 0x317   : > { %v7231_v26 = vsel %vm10407_vm11, %v7222_v11, %v7230_v25  ;;  %v3459_v55 = vadd.f32 %v15636_v39, %v13704_v8  ;;  %v3462_v14 = vadd.f32 %v15637_v50, %v13707_v21  ;;  %v7833_v13 = vshrl.u32 %v13967_v34, 16  ;;  %v7111_v24 = vld [vmem:[#allocation2 + $0x80] sm:$0xc]  ;;  %v15639_v57 = vld [vmem:[#allocation20_spill] sm:$0xff] }
 0x318   : > { %v9075_v54 = vcombine.low %v7221_v47, %v7231_v26  ;;  %v13988_v63 = vrot.slane %v7816_v19, 7  ;;  %v13991_v23 = vadd.f32 %v15638_v9, %v3456_v37  ;;  %v7250_v25 = vrot.slane %v7248_v12, 4  ;;  %v15640_v8 = vld [vmem:[#allocation21_spill] sm:$0xff]  ;;  %v14005_v26 = vpop.f32.mrf.mxu1  ;;  %v14007_v37 = vpop.f32.mrf.mxu0 }
 0x319   : > { %v7258_v11 = vor.u32 %v7257_v16, %v7254_v51  ;;  %v13994_v7 = vadd.f32 %v15639_v57, %v3461_v40  ;;  %v13998_v58 = vadd.f32 %v15640_v8, %v3459_v55  ;;  %v15641_v21 = vld [vmem:[#allocation113_spill] sm:$0xff]  ;;  %v9142_v19 = vcombine.low %v13640_v36, %v13967_v34  ;;  %15642 = vst [vmem:[#allocation28_spill] sm:$0xff] %v14005_v26 }
 0x31a   : > { %9851 = vmatmul.mubr.msk.bf16.gmra.mxu1 %vm1038_vm5, %v9075_v54  ;;  %v14001_v47 = vadd.f32 %v15641_v21, %v3462_v14  ;;  %15643 = vst [vmem:[#allocation77_spill] sm:$0xff] %v14007_v37  ;;  %v7249_v16 = vsel %vm10407_vm11, %v7240_v4, %v7248_v12  ;;  %v9143_v51 = vcombine.low %v13660_v56, %v13986_v2  ;;  %v14016_v39 = vrot.slane %v7833_v13, 7  ;;  %v7114_v14 = vld [vmem:[#allocation2 + $0x90] sm:$0xc] }
 0x31b   : > { %v7259_v40 = vsel %vm10407_vm11, %v7250_v25, %v7258_v11  ;;  %9905 = vmatmul.mubr.msk.bf16.gmra.mxu0 %vm1038_vm5, %v9142_v19  ;;  %v7261_v55 = vshrl.u32 %v7111_v24, 16  ;;  %v7264_v50 = vshll.u32 %v7111_v24, 16  ;;  %v7850_v57 = vshrl.u32 %v13986_v2, 16  ;;  %v14024_v11 = vpop.f32.mrf.mxu0  ;;  %v14029_v19 = vpop.f32.mrf.mxu1 }
 0x31c   : > { %v9076_v9 = vcombine.low %v7249_v16, %v7259_v40  ;;  %9908 = vmatprep.mubr.msk.bf16.mxu0 %vm1038_vm5, %v9143_v51  ;;  %v14986_v4 = vshrl.u32 %v13714_v6, 16  ;;  %v14987_v25 = vshll.u32 %v13714_v6, 16  ;;  %15644 = vst [vmem:[#allocation79_spill] sm:$0xff] %v14024_v11  ;;  %v7280_v21 = vshrl.u32 %v13727_v45, 16  ;;  %15645 = vst [vmem:[#allocation46_spill] sm:$0xff] %v14029_v19 }
 0x31d   : > { %v7263_v13 = vrot.slane %v7261_v55, 6  ;;  %v7266_v8 = vrot.slane %v7264_v50, 7  ;;  %v7283_v24 = vshll.u32 %v13727_v45, 16  ;;  %v7289_v51 = vshrl.u32 %v7114_v14, 16  ;;  %v14037_v41 = vpop.f32.mrf.mxu0 }
 0x31e   : > { %9854 = vmatprep.mubr.msk.bf16.mxu1 %vm1038_vm5, %v9076_v9  ;;  %v7272_v16 = vrot.slane %v14986_v4, 6  ;;  %v7275_v40 = vrot.slane %v14987_v25, 7  ;;  %v7292_v12 = vshll.u32 %v7114_v14, 16  ;;  %v7282_v11 = vrot.slane %v7280_v21, 6  ;;  %15646 = vst [vmem:[#allocation40_spill] sm:$0xff] %v14037_v41  ;;  %v14042_v14 = vpop.f32.mrf.mxu1 }
 0x31f   : > { %v7267_v54 = vor.u32 %v7266_v8, %v7263_v13  ;;  %v7285_v37 = vrot.slane %v7283_v24, 7  ;;  %v14988_v9 = vshrl.u32 %v13740_v49, 16  ;;  %v7291_v50 = vrot.slane %v7289_v51, 6  ;;  %15647 = vst [vmem:[#allocation8_spill] sm:$0xff] %v14042_v14  ;;  %v14047_v24 = vld [vmem:[#allocation2 + $0x88] sm:$0xf]  ;;  %v14059_v41 = vpop.f32.mrf.mxu0 }
 0x320   : > { %v7276_v55 = vor.u32 %v7275_v40, %v7272_v16  ;;  %v7294_v26 = vrot.slane %v7292_v12, 7  ;;  %v14989_v45 = vshll.u32 %v13740_v49, 16  ;;  %v7308_v25 = vshrl.u32 %v13742_v18, 16  ;;  %v15648_v16 = vld [vmem:[#allocation85_spill] sm:$0xff]  ;;  %15651 = vst [vmem:[#allocation106_spill] sm:$0xff] %v14059_v41 }
 0x321   : > { %v7268_v19 = vrot.slane %v7267_v54, 4  ;;  %v7286_v30 = vor.u32 %v7285_v37, %v7282_v11  ;;  %v7300_v4 = vrot.slane %v14988_v9, 6  ;;  %v7311_v12 = vshll.u32 %v13742_v18, 16  ;;  %v15649_v37 = vld [vmem:[#allocation27_spill] sm:$0xff]  ;;  %v14055_v9 = vpop.f32.mrf.mxu1 }
 0x322   : > { %v7278_v13 = vrot.slane %v7276_v55, 4  ;;  %v7295_v8 = vor.u32 %v7294_v26, %v7291_v50  ;;  %v7303_v21 = vrot.slane %v14989_v45, 7  ;;  %v3460_v54 = vadd.f32 %v15648_v16, %v13734_v3  ;;  %15650 = vst [vmem:[#allocation6_spill] sm:$0xff] %v14055_v9  ;;  %v15652_v16 = vld [vmem:[#allocation88_spill] sm:$0xff] }
 0x323   : > { %v3465_v11 = vadd.f32 %v15649_v37, %v13764_v32  ;;  %v7277_v40 = vsel %vm10407_vm11, %v7268_v19, %v7276_v55  ;;  %v7310_v51 = vrot.slane %v7308_v25, 6  ;;  %v7313_v18 = vrot.slane %v7311_v12, 7 }
 0x324   : > { %v7287_v26 = vsel %vm10407_vm11, %v7278_v13, %v7286_v30  ;;  %v7296_v50 = vrot.slane %v7295_v8, 4  ;;  %v7304_v45 = vor.u32 %v7303_v21, %v7300_v4  ;;  %v14061_v14 = vrot.slane %v7850_v57, 7  ;;  %v15653_v30 = vld [vmem:[#allocation89_spill] sm:$0xff]  ;;  %v15654_v8 = vld [vmem:[#allocation115_spill] sm:$0xff] }
 0x325   : > { %v9077_v3 = vcombine.low %v7277_v40, %v7287_v26  ;;  %v3463_v32 = vadd.f32 %v15652_v16, %v13769_v59  ;;  %v7867_v37 = vshrl.u32 %v14047_v24, 16  ;;  %v7314_v55 = vor.u32 %v7313_v18, %v7310_v51  ;;  %v7117_v4 = vld [vmem:[#allocation2 + $0xa0] sm:$0xc]  ;;  %v15656_v59 = vld [vmem:[#allocation118_spill] sm:$0xff]  ;;  %v14084_v51 = vpop.f32.mrf.mxu1 }
 0x326   : > { %v7305_v25 = vsel %vm10407_vm11, %v7296_v50, %v7304_v45  ;;  %v7306_v19 = vrot.slane %v7304_v45, 4  ;;  %v3466_v13 = vadd.f32 %v15653_v30, %v13798_v20  ;;  %v14071_v21 = vadd.f32 %v15654_v8, %v3460_v54  ;;  %v15655_v57 = vld [vmem:[#allocation117_spill] sm:$0xff]  ;;  %v14082_v45 = vld [vmem:[#allocation2 + $0x98] sm:$0xf]  ;;  %15657 = vst [vmem:[#allocation54_spill] sm:$0xff] %v14084_v51 }
 0x327   : > { %v14074_v12 = vadd.f32 %v15655_v57, %v3465_v11  ;;  %9855 = vmatmul.mubr.msk.bf16.gmra.mxu1 %vm1038_vm5, %v9077_v3  ;;  %v14078_v40 = vadd.f32 %v15656_v59, %v3463_v32  ;;  %v9144_v26 = vcombine.low %v13714_v6, %v14047_v24  ;;  %v15658_v54 = vld [vmem:[#allocation120_spill] sm:$0xff]  ;;  %v9145_v18 = vcombine.low %v13740_v49, %v14082_v45  ;;  %v14094_v3 = vpop.f32.mrf.mxu0 }
 0x328   : > { %v7315_v20 = vsel %vm10407_vm11, %v7306_v19, %v7314_v55  ;;  %v14089_v50 = vadd.f32 %v15658_v54, %v3466_v13  ;;  %15660 = vst [vmem:[#allocation35_spill] sm:$0xff] %v14094_v3  ;;  %v14096_v32 = vrot.slane %v7867_v37, 7  ;;  %v7317_v30 = vshrl.u32 %v7117_v4, 16  ;;  %v15661_v19 = vld [vmem:[#allocation91_spill] sm:$0xff] }
 0x329   : > { %v9078_v16 = vcombine.low %v7305_v25, %v7315_v20  ;;  %9909 = vmatmul.mubr.msk.bf16.gmra.mxu0 %vm1038_vm5, %v9144_v26  ;;  %v7320_v8 = vshll.u32 %v7117_v4, 16  ;;  %v7884_v57 = vshrl.u32 %v14082_v45, 16  ;;  %v3464_v55 = vadd.f32 %v15661_v19, %v13827_v22  ;;  %v14105_v54 = vpop.f32.mrf.mxu0  ;;  %v14110_v20 = vpop.f32.mrf.mxu1  ;;  %v15664_v19 = vld [vmem:[#allocation103_spill] sm:$0xff] }
 0x32a   : > { %15659 = vst [vmem:[#allocation56_spill] sm:$0xff] %v14089_v50  ;;  %9912 = vmatprep.mubr.msk.bf16.mxu0 %vm1038_vm5, %v9145_v18  ;;  %v14990_v13 = vshrl.u32 %v13806_v53, 16  ;;  %v14991_v59 = vshll.u32 %v13806_v53, 16  ;;  %15662 = vst [vmem:[#allocation108_spill] sm:$0xff] %v14105_v54  ;;  %v7319_v37 = vrot.slane %v7317_v30, 6  ;;  %v7336_v26 = vshrl.u32 %v13808_v35, 16 }
 0x32b   : > { %9858 = vmatprep.mubr.msk.bf16.mxu1 %vm1038_vm5, %v9078_v16  ;;  %v7322_v25 = vrot.slane %v7320_v8, 7  ;;  %v7339_v4 = vshll.u32 %v13808_v35, 16  ;;  %15663 = vst [vmem:[#allocation82_spill] sm:$0xff] %v14110_v20  ;;  %v7773_v11 = vshrl.u32 %v15664_v19, 16  ;;  %v15665_v54 = vshrl.u32 %v13504_v33, 16  ;;  %v14119_v16 = vpop.f32.mrf.mxu0 }
 0x32c   : > { %v7328_v18 = vrot.slane %v14990_v13, 6  ;;  %v7331_v22 = vrot.slane %v14991_v59, 7  ;;  %15666 = vst [vmem:[#allocation42_spill] sm:$0xff] %v14119_v16  ;;  %v7338_v8 = vrot.slane %v7336_v26, 6  ;;  %v15667_v35 = vshll.u32 %v13824_v38, 16 }
 0x32d   : > { %v7777_v3 = vrot.slane %v15665_v54, 7  ;;  %v7323_v30 = vor.u32 %v7322_v25, %v7319_v37  ;;  %v7341_v41 = vrot.slane %v7339_v4, 7  ;;  %v9113_v9 = vrot.slane %v7773_v11, 11  ;;  %v14129_v37 = vld [vmem:[#allocation2 + $0xa8] sm:$0xf]  ;;  %v14131_v25 = vpop.f32.mrf.mxu1  ;;  %v14133_v26 = vpop.f32.mrf.mxu0  ;;  %v15672_v4 = vld [vmem:[#allocation52_spill] sm:$0xff] }
 0x32e   : > { %v7787_v20 = vor.u32 %v15667_v35, %v13908_v17  ;;  %v7332_v51 = vor.u32 %v7331_v22, %v7328_v18  ;;  %v15668_v13 = vshll.u32 %v13504_v33, 16  ;;  %v7887_v19 = vshll.u32 %v14082_v45, 16  ;;  %v15670_v17 = vld [vmem:[#allocation122_spill] sm:$0xff]  ;;  %v15674_v22 = vld [vmem:[#allocation36_spill] sm:$0xff]  ;;  %v15675_v35 = vld [vmem:[#allocation81_spill] sm:$0xff] }
 0x32f   : > { %v7780_v59 = vrot.slane %v7777_v3, 4  ;;  %v3469_v54 = vadd.f32 %v15669_v61, %v13836_v62  ;;  %v7324_v50 = vrot.slane %v7323_v30, 4  ;;  %v7342_v16 = vor.u32 %v7341_v41, %v7338_v8  ;;  %v15673_v62 = vld [vmem:[#allocation94_spill] sm:$0xff]  ;;  %v14151_v30 = vpop.f32.mrf.mxu1 }
 0x330   : > { %v7778_v31 = vor.u32 %v7777_v3, %v15668_v13  ;;  %v14135_v38 = vrot.slane %v7884_v57, 7  ;;  %v14138_v11 = vadd.f32 %v15670_v17, %v3464_v55  ;;  %v7334_v33 = vrot.slane %v7332_v51, 4  ;;  %v15717_v45 = vld [vmem:[#allocation62_spill] sm:$0xff] }
 0x331   : > { %v7788_v13 = vsel %vm10337_vm8, %v7780_v59, %v7787_v20  ;;  %v14143_v18 = vadd.f32 %v15672_v4, %v3469_v54  ;;  %v7333_v61 = vsel %vm10407_vm11, %v7324_v50, %v7332_v51  ;;  %v3467_v41 = vadd.f32 %v15673_v62, %v13843_v27  ;;  %v15676_v54 = vld [vmem:[#allocation24_spill] sm:$0xff]  ;;  %v14164_v17 = vpop.f32.mrf.mxu1  ;;  %v14166_v4 = vpop.f32.mrf.mxu0 }
 0x332   : > { %v3470_v57 = vadd.f32 %v15674_v22, %v13846_v29  ;;  %v7343_v55 = vsel %vm10407_vm11, %v7334_v33, %v7342_v16  ;;  %v7779_v59 = vsel %vm10337_vm8, %v9113_v9, %v7778_v31  ;;  %v7901_v20 = vshrl.u32 %v14129_v37, 16  ;;  %v15679_v33 = vld [vmem:[#allocation11_spill] sm:$0xff] }
 0x333   : > { %v9146_v8 = vcombine.low %v13806_v53, %v14129_v37  ;;  %v9079_v51 = vcombine.low %v7333_v61, %v7343_v55  ;;  %v9122_v50 = vcombine.low %v7779_v59, %v7788_v13  ;;  %v14161_v27 = vadd.f32 %v15675_v35, %v3467_v41  ;;  %v15681_v41 = vld [vmem:[#allocation39_spill] sm:$0xff]  ;;  %v15682_v55 = vld [vmem:[#allocation26_spill] sm:$0xff] }
 0x334   : > { %v7790_v29 = vshrl.u32 %v15676_v54, 16  ;;  %v15677_v31 = vshrl.u32 %v13556_v15, 16  ;;  %v15678_v9 = vshll.u32 %v13889_v48, 16  ;;  %v7807_v13 = vshrl.u32 %v15679_v33, 16  ;;  %v14185_v48 = vpop.f32.mrf.mxu1 }
 0x335   : > { %9913 = vmatmul.mubr.msk.bf16.gmra.mxu0 %vm1038_vm5, %v9146_v8  ;;  %v15680_v61 = vshrl.u32 %v13585_v52, 16  ;;  %9859 = vmatmul.mubr.msk.bf16.gmra.mxu1 %vm1038_vm5, %v9079_v51  ;;  %v3468_v22 = vadd.f32 %v15681_v41, %v13911_v0  ;;  %v3941_v59 = vadd.f32 %v15682_v55, %v13916_v42  ;;  %v15683_v35 = vshll.u32 %v13904_v1, 16  ;;  %v15687_v55 = vld [vmem:[#allocation41_spill] sm:$0xff] }
 0x336   : > { %v7794_v46 = vrot.slane %v15677_v31, 7  ;;  %v7804_v16 = vor.u32 %v15678_v9, %v13936_v10  ;;  %v9114_v8 = vrot.slane %v7790_v29, 11  ;;  %9882 = vmatprep.mubr.msk.bf16.mxu1 %vm1038_vm5, %v9122_v50  ;;  %v15684_v10 = vshll.u32 %v13556_v15, 16  ;;  %v14198_v29 = vpop.f32.mrf.mxu0  ;;  %v15688_v15 = vld [vmem:[#allocation59_spill] sm:$0xff] }
 0x337   : > { %v7811_v62 = vrot.slane %v15680_v61, 7  ;;  %v7821_v54 = vor.u32 %v15683_v35, %v13988_v63  ;;  %v9115_v51 = vrot.slane %v7807_v13, 11  ;;  %v15685_v33 = vshll.u32 %v13585_v52, 16  ;;  %v15686_v61 = vld [vmem:[#allocation33_spill] sm:$0xff]  ;;  %v14210_v13 = vpop.f32.mrf.mxu1 }
 0x338   : > { %v7795_v31 = vor.u32 %v7794_v46, %v15684_v10  ;;  %v7797_v9 = vrot.slane %v7794_v46, 4  ;;  %v14193_v41 = vadd.f32 %v15686_v61, %v3470_v57  ;;  %v14195_v42 = vrot.slane %v7901_v20, 7  ;;  %v15689_v46 = vld [vmem:[#allocation29_spill] sm:$0xff] }
 0x339   : > { %v7812_v0 = vor.u32 %v7811_v62, %v15685_v33  ;;  %v7904_v1 = vshll.u32 %v14129_v37, 16  ;;  %v7814_v63 = vrot.slane %v7811_v62, 4  ;;  %v14201_v50 = vadd.f32 %v15687_v55, %v3468_v22  ;;  %v15690_v22 = vld [vmem:[#allocation97_spill] sm:$0xff]  ;;  %v15693_v55 = vld [vmem:[#allocation87_spill] sm:$0xff] }
 0x33a   : > { %v14204_v35 = vadd.f32 %v15688_v15, %v3941_v59  ;;  %v7805_v52 = vsel %vm10337_vm8, %v7797_v9, %v7804_v16  ;;  %v3939_v57 = vadd.f32 %v15689_v46, %v13922_v5  ;;  %v7796_v20 = vsel %vm10337_vm8, %v9114_v8, %v7795_v31  ;;  %v15691_v59 = vld [vmem:[#allocation100_spill] sm:$0xff]  ;;  %v15692_v5 = vld [vmem:[#allocation31_spill] sm:$0xff]  ;;  %v14233_v46 = vpop.f32.mrf.mxu0 }
 0x33b   : > { %v7822_v62 = vsel %vm10337_vm8, %v7814_v63, %v7821_v54  ;;  %v3942_v10 = vadd.f32 %v15690_v22, %v13931_v43  ;;  %v3940_v33 = vadd.f32 %v15691_v59, %v13991_v23  ;;  %v9123_v61 = vcombine.low %v7796_v20, %v7805_v52  ;;  %v15698_v22 = vld [vmem:[#allocation43_spill] sm:$0xff] }
 0x33c   : > { %v7813_v16 = vsel %vm10337_vm8, %v9115_v51, %v7812_v0  ;;  %v3945_v9 = vadd.f32 %v15692_v5, %v13994_v7  ;;  %v7824_v15 = vshrl.u32 %v15693_v55, 16  ;;  %v15694_v8 = vshrl.u32 %v13640_v36, 16  ;;  %v14240_v5 = vpop.f32.mrf.mxu1 }
 0x33d   : > { %v15695_v54 = vshll.u32 %v13967_v34, 16  ;;  %v7841_v43 = vshrl.u32 %v13672_v60, 16  ;;  %v15696_v23 = vshrl.u32 %v13660_v56, 16  ;;  %v9124_v51 = vcombine.low %v7813_v16, %v7822_v62  ;;  %9883 = vmatmul.mubr.msk.bf16.vlgmr.msra.gmra.mxu1 %vm1038_vm5, %v9123_v61  ;;  %v15701_v16 = vld [vmem:[#allocation22_spill] sm:$0xff] }
 0x33e   : > { %v7828_v31 = vrot.slane %v15694_v8, 7  ;;  %v9116_v0 = vrot.slane %v7824_v15, 11  ;;  %v15697_v7 = vshll.u32 %v13986_v2, 16  ;;  %v3943_v59 = vadd.f32 %v15698_v22, %v13998_v58  ;;  %v15703_v58 = vld [vmem:[#allocation58_spill] sm:$0xff] }
 0x33f   : > { %v7838_v63 = vor.u32 %v15695_v54, %v14016_v39  ;;  %v7845_v52 = vrot.slane %v15696_v23, 7  ;;  %v15699_v60 = vshll.u32 %v13640_v36, 16  ;;  %v9117_v55 = vrot.slane %v7841_v43, 11  ;;  %9886 = vmatprep.mubr.msk.bf16.mxu1 %vm1038_vm5, %v9124_v51  ;;  %v15704_v23 = vld [vmem:[#allocation34_spill] sm:$0xff]  ;;  %v15706_v51 = vld [vmem:[#allocation19_spill] sm:$0xff] }
 0x340   : > { %v7855_v20 = vor.u32 %v15697_v7, %v14061_v14  ;;  %v7831_v39 = vrot.slane %v7828_v31, 4  ;;  %v15700_v8 = vshll.u32 %v13660_v56, 16  ;;  %v14249_v2 = vadd.f32 %v15701_v16, %v3939_v57  ;;  %v15702_v14 = vld [vmem:[#allocation3_spill] sm:$0xff]  ;;  %v15705_v56 = vld [vmem:[#allocation49_spill] sm:$0xff]  ;;  %v14267_v7 = vpop.f32.mrf.mxu0 }
 0x341   : > { %v7829_v34 = vor.u32 %v7828_v31, %v15699_v60  ;;  %v14252_v15 = vadd.f32 %v15702_v14, %v3942_v10  ;;  %v14255_v54 = vadd.f32 %v15703_v58, %v3940_v33  ;;  %v7848_v61 = vrot.slane %v7845_v52, 4 }
 0x342   : > { %v7846_v62 = vor.u32 %v7845_v52, %v15700_v8  ;;  %v14258_v36 = vadd.f32 %v15704_v23, %v3945_v9  ;;  %v7839_v31 = vsel %vm10337_vm8, %v7831_v39, %v7838_v63  ;;  %v14263_v43 = vadd.f32 %v15705_v56, %v3943_v59  ;;  %v15707_v9 = vld [vmem:[#allocation104_spill] sm:$0xff]  ;;  %v14276_v63 = vpop.f32.mrf.mxu1  ;;  %v14295_v23 = vpop.f32.mrf.mxu0 }
 0x343   : > { %v3946_v57 = vadd.f32 %v15706_v51, %v14001_v47  ;;  %v7830_v10 = vsel %vm10337_vm8, %v9116_v0, %v7829_v34  ;;  %v7856_v33 = vsel %vm10337_vm8, %v7848_v61, %v7855_v20  ;;  %v3944_v52 = vadd.f32 %v15707_v9, %v14071_v21  ;;  %v15708_v47 = vld [vmem:[#allocation64_spill] sm:$0xff]  ;;  %v15716_v9 = vld [vmem:[#allocation86_spill] sm:$0xff] }
 0x344   : > { %v7858_v22 = vshrl.u32 %v13716_v44, 16  ;;  %v9125_v59 = vcombine.low %v7830_v10, %v7839_v31  ;;  %v7847_v60 = vsel %vm10337_vm8, %v9117_v55, %v7846_v62  ;;  %v3949_v39 = vadd.f32 %v15708_v47, %v14074_v12  ;;  %v14301_v10 = vpop.f32.mrf.mxu1 }
 0x345   : > { %v15709_v8 = vshrl.u32 %v13714_v6, 16  ;;  %v15710_v20 = vshll.u32 %v14047_v24, 16  ;;  %v7875_v21 = vshrl.u32 %v13729_v28, 16  ;;  %v15711_v44 = vshrl.u32 %v13740_v49, 16  ;;  %v15714_v28 = vld [vmem:[#allocation5_spill] sm:$0xff] }
 0x346   : > { %v9118_v34 = vrot.slane %v7858_v22, 11  ;;  %v9126_v58 = vcombine.low %v7847_v60, %v7856_v33  ;;  %v15712_v61 = vshll.u32 %v13714_v6, 16  ;;  %v7889_v12 = vor.u32 %v7887_v19, %v14135_v38  ;;  %9887 = vmatmul.mubr.msk.bf16.gmra.mxu1 %vm1038_vm5, %v9125_v59  ;;  %v15715_v6 = vld [vmem:[#allocation16_spill] sm:$0xff]  ;;  %v15719_v60 = vld [vmem:[#allocation105_spill] sm:$0xff]  ;;  %v15721_v59 = vld [vmem:[#allocation107_spill] sm:$0xff] }
 0x347   : > { %v7862_v0 = vrot.slane %v15709_v8, 7  ;;  %v7872_v16 = vor.u32 %v15710_v20, %v14096_v32  ;;  %v7879_v14 = vrot.slane %v15711_v44, 7  ;;  %v9119_v31 = vrot.slane %v7875_v21, 11  ;;  %v15718_v38 = vld [vmem:[#allocation56_spill] sm:$0xff]  ;;  %v15720_v8 = vld [vmem:[#allocation63_spill] sm:$0xff] }
 0x348   : > { %v15713_v24 = vshll.u32 %v13740_v49, 16  ;;  %v3947_v51 = vadd.f32 %v15714_v28, %v14078_v40  ;;  %v4328_v33 = vadd.f32 %v15715_v6, %v3946_v57  ;;  %v4326_v22 = vadd.f32 %v15716_v9, %v3944_v52  ;;  %9890 = vmatprep.mubr.msk.bf16.mxu1 %vm1038_vm5, %v9126_v58  ;;  %v15722_v20 = vld [vmem:[#allocation68_spill] sm:$0xff] }
 0x349   : > { %v7863_v55 = vor.u32 %v7862_v0, %v15712_v61  ;;  %v7865_v62 = vrot.slane %v7862_v0, 4  ;;  %v7882_v56 = vrot.slane %v7879_v14, 4  ;;  %v4331_v19 = vadd.f32 %v15717_v45, %v3949_v39  ;;  %v15724_v58 = vld [vmem:[#allocation48_spill] sm:$0xff]  ;;  %v15725_v61 = vld [vmem:[#allocation109_spill] sm:$0xff] }
 0x34a   : > { %v7880_v32 = vor.u32 %v7879_v14, %v15713_v24  ;;  %v3950_v47 = vadd.f32 %v15719_v60, %v15718_v38  ;;  %v4329_v0 = vadd.f32 %v15720_v8, %v3947_v51  ;;  %v3948_v57 = vadd.f32 %v15721_v59, %v14138_v11  ;;  %v15728_v51 = vld [vmem:[#allocation53_spill] sm:$0xff] }
 0x34b   : > { %v7864_v49 = vsel %vm10337_vm8, %v9118_v34, %v7863_v55  ;;  %v7873_v40 = vsel %vm10337_vm8, %v7865_v62, %v7872_v16  ;;  %v7890_v39 = vsel %vm10337_vm8, %v7882_v56, %v7889_v12  ;;  %v7892_v21 = vshrl.u32 %v15722_v20, 16  ;;  %v14324_v34 = vpop.f32.mrf.mxu0  ;;  %v15726_v62 = vld [vmem:[#allocation110_spill] sm:$0xff]  ;;  %v14334_v12 = vpop.f32.mrf.mxu1  ;;  %v15730_v60 = vld [vmem:[#allocation17_spill] sm:$0xff] }
 0x34c   : > { %v7881_v52 = vsel %vm10337_vm8, %v9119_v31, %v7880_v32  ;;  %v15723_v44 = vshrl.u32 %v13806_v53, 16  ;;  %v4332_v16 = vadd.f32 %v15724_v58, %v3950_v47  ;;  %v3953_v55 = vadd.f32 %v15725_v61, %v14143_v18  ;;  %v15729_v18 = vld [vmem:[#allocation65_spill] sm:$0xff] }
 0x34d   : > { %v7906_v11 = vor.u32 %v7904_v1, %v14195_v42  ;;  %v3951_v31 = vadd.f32 %v15726_v62, %v14161_v27  ;;  %v9120_v24 = vrot.slane %v7892_v21, 11  ;;  %v15727_v32 = vshll.u32 %v13806_v53, 16  ;;  %v15731_v27 = vld [vmem:[#allocation95_spill] sm:$0xff]  ;;  %v15732_v47 = vld [vmem:[#allocation69_spill] sm:$0xff]  ;;  %v15733_v53 = vld [vmem:[#allocation38_spill] sm:$0xff]  ;;  %v14348_v20 = vpop.f32.mrf.mxu0  ;;  %v5555_v21 = vpop.f32.mrf.mxu1 }
 0x34e   : > { %v7896_v14 = vrot.slane %v15723_v44, 7  ;;  %v3954_v6 = vadd.f32 %v15728_v51, %v14193_v41  ;;  %v9127_v9 = vcombine.low %v7864_v49, %v7873_v40  ;;  %v9128_v45 = vcombine.low %v7881_v52, %v7890_v39  ;;  %v15734_v49 = vld [vmem:[#allocation112_spill] sm:$0xff] }
 0x34f   : > { %v4330_v38 = vadd.f32 %v15729_v18, %v3948_v57  ;;  %v4335_v37 = vadd.f32 %v15730_v60, %v3953_v55  ;;  %v4333_v1 = vadd.f32 %v15731_v27, %v3951_v31  ;;  %v4577_v59 = vadd.f32 %v15733_v53, %v14204_v35  ;;  %v15735_v57 = vld [vmem:[#allocation45_spill] sm:$0xff]  ;;  %v15736_v39 = vld [vmem:[#allocation116_spill] sm:$0xff]  ;;  %v15738_v35 = vld [vmem:[#allocation114_spill] sm:$0xff] }
 0x350   : > { %v7897_v56 = vor.u32 %v7896_v14, %v15727_v32  ;;  %v7899_v28 = vrot.slane %v7896_v14, 4  ;;  %v4336_v8 = vadd.f32 %v15732_v47, %v3954_v6  ;;  %v4575_v40 = vadd.f32 %v15734_v49, %v14249_v2  ;;  %9891 = vmatmul.mubr.msk.bf16.gmra.mxu1 %vm1038_vm5, %v9127_v9  ;;  %v15737_v14 = vld [vmem:[#allocation66_spill] sm:$0xff]  ;;  %v15741_v2 = vld [vmem:[#allocation72_spill] sm:$0xff]  ;;  %v15743_v32 = vld [vmem:[#allocation75_spill] sm:$0xff]  ;;  %v14374_v47 = vpop.f32.mrf.mxu0 }
 0x351   : > { %v4578_v52 = vadd.f32 %v15735_v57, %v14252_v15  ;;  %v4581_v44 = vadd.f32 %v15736_v39, %v14258_v36  ;;  %v4935_v58 = vadd.f32 %v15737_v14, %v4577_v59  ;;  %v4576_v61 = vadd.f32 %v15738_v35, %v14255_v54  ;;  %v15739_v55 = vld [vmem:[#allocation78_spill] sm:$0xff]  ;;  %9894 = vmatprep.mubr.msk.bf16.mxu1 %vm1038_vm5, %v9128_v45  ;;  %v15742_v15 = vld [vmem:[#allocation99_spill] sm:$0xff]  ;;  %v15745_v51 = vld [vmem:[#allocation76_spill] sm:$0xff] }
 0x352   : > { %v7898_v42 = vsel %vm10337_vm8, %v9120_v24, %v7897_v56  ;;  %v7907_v41 = vsel %vm10337_vm8, %v7899_v28, %v7906_v11  ;;  %v4579_v3 = vadd.f32 %v15739_v55, %v14263_v43  ;;  %v15740_v11 = vld [vmem:[#allocation119_spill] sm:$0xff]  ;;  %v4933_v31 = vadd.f32 %v15741_v2, %v4575_v40  ;;  %v15746_v9 = vld [vmem:[#allocation28_spill] sm:$0xff]  ;;  %v15747_v54 = vld [vmem:[#allocation50_spill] sm:$0xff] }
 0x353   : > { %v4582_v62 = vadd.f32 %v15740_v11, %v4328_v33  ;;  %v4936_v24 = vadd.f32 %v15742_v15, %v4578_v52  ;;  %v4939_v36 = vadd.f32 %v15743_v32, %v4581_v44  ;;  %v15744_v56 = vld [vmem:[#allocation123_spill] sm:$0xff]  ;;  %v4583_v60 = vadd.f32 %v15747_v54, %v4329_v0  ;;  %v15748_v27 = vld [vmem:[#allocation80_spill] sm:$0xff]  ;;  %v9745_v33 = vpop.f32.mrf.mxu1  ;;  %v15749_v45 = vld [vmem:[#allocation74_spill] sm:$0xff]  ;;  %v14391_v54 = vpop.f32.mrf.mxu0 }
 0x354   : > { %v4585_v28 = vadd.f32 %v15744_v56, %v4331_v19  ;;  %v4937_v6 = vadd.f32 %v15745_v51, %v4579_v3  ;;  %v4586_v43 = vadd.f32 %v15748_v27, %v4332_v16  ;;  %v4934_v53 = vadd.f32 %v15749_v45, %v4576_v61  ;;  %v15750_v59 = vld [vmem:[#allocation121_spill] sm:$0xff]  ;;  %v15751_v40 = vld [vmem:[#allocation8_spill] sm:$0xff]  ;;  %v15752_v52 = vld [vmem:[#allocation51_spill] sm:$0xff] }
 0x355   : > { %v4940_v18 = vadd.f32 %v15746_v9, %v4582_v62  ;;  %v4580_v49 = vadd.f32 %v15750_v59, %v4326_v22  ;;  %v4589_v39 = vadd.f32 %v15752_v52, %v4335_v37  ;;  %v15753_v19 = vld [vmem:[#allocation6_spill] sm:$0xff]  ;;  %v15755_v55 = vld [vmem:[#allocation55_spill] sm:$0xff]  ;;  %v15756_v0 = vld [vmem:[#allocation96_spill] sm:$0xff]  ;;  %v9129_v16 = vcombine.low %v7898_v42, %v7907_v41  ;;  %v14406_v59 = vpop.f32.mrf.mxu0 }
 0x356   : > { %v4943_v57 = vadd.f32 %v15751_v40, %v4585_v28  ;;  %v4941_v44 = vadd.f32 %v15753_v19, %v4583_v60  ;;  %v15754_v14 = vld [vmem:[#allocation54_spill] sm:$0xff]  ;;  %v4587_v3 = vadd.f32 %v15755_v55, %v4333_v1  ;;  %v4590_v11 = vadd.f32 %v15756_v0, %v4336_v8  ;;  %v15758_v61 = vld [vmem:[#allocation60_spill] sm:$0xff]  ;;  %v15759_v37 = vld [vmem:[#allocation23_spill] sm:$0xff]  ;;  %v5558_v1 = vpop.f32.mrf.mxu1 }
 0x357   : > { %v4944_v35 = vadd.f32 %v15754_v14, %v4586_v43  ;;  %v15757_v62 = vld [vmem:[#allocation46_spill] sm:$0xff]  ;;  %v4947_v15 = vadd.f32 %v14131_v25, %v4589_v39  ;;  %v5350_v32 = vadd.f32 %v15758_v61, %v4935_v58  ;;  %v5348_v28 = vadd.f32 %v15759_v37, %v4933_v31  ;;  %v15760_v51 = vld [vmem:[#allocation61_spill] sm:$0xff]  ;;  %v15761_v60 = vld [vmem:[#allocation32_spill] sm:$0xff] }
 0x358   : > { %v4938_v2 = vadd.f32 %v15757_v62, %v4580_v49  ;;  %v4945_v22 = vadd.f32 %v14151_v30, %v4587_v3  ;;  %v4948_v56 = vadd.f32 %v14164_v17, %v4590_v11  ;;  %v5351_v9 = vadd.f32 %v15760_v51, %v4936_v24  ;;  %v15762_v41 = vld [vmem:[#allocation15_spill] sm:$0xff]  ;;  %v15763_v25 = vld [vmem:[#allocation84_spill] sm:$0xff]  ;;  %9895 = vmatmul.mubr.msk.bf16.gmra.mxu1 %vm1038_vm5, %v9129_v16  ;;  %v15764_v58 = vld [vmem:[#allocation14_spill] sm:$0xff]  ;;  %v9748_v39 = vpop.f32.mrf.mxu1 }
 0x359   : > { %v4584_v8 = vadd.f32 %v15761_v60, %v4330_v38  ;;  %v5604_v42 = vadd.f32 %v14210_v13, %v5350_v32  ;;  %v5349_v27 = vadd.f32 %v15762_v41, %v4934_v53  ;;  %v5354_v43 = vadd.f32 %v15763_v25, %v4939_v36  ;;  %v15765_v24 = vld [vmem:[#allocation37_spill] sm:$0xff]  ;;  %v15767_v49 = vld [vmem:[#allocation90_spill] sm:$0xff]  ;;  %v15769_v55 = vld [vmem:[#allocation92_spill] sm:$0xff] }
 0x35a   : > { %v14399_v30 = vadd.f32 %v14240_v5, %v5348_v28  ;;  %v14402_v17 = vadd.f32 %v14276_v63, %v5351_v9  ;;  %v5352_v31 = vadd.f32 %v15764_v58, %v4937_v6  ;;  %v5355_v45 = vadd.f32 %v15765_v24, %v4940_v18  ;;  %v15766_v36 = vld [vmem:[#allocation25_spill] sm:$0xff]  ;;  %v14414_v63 = vpop.f32.mrf.mxu0  ;;  %v15768_v19 = vld [vmem:[#allocation82_spill] sm:$0xff]  ;;  %v5571_v0 = vpop.f32.mrf.mxu1  ;;  %v15771_v16 = vld [vmem:[#allocation67_spill] sm:$0xff] }
 0x35b   : > { %v14409_v13 = vadd.f32 %v14301_v10, %v5349_v27  ;;  %v5608_v38 = vadd.f32 %v14334_v12, %v5354_v43  ;;  %v5353_v53 = vadd.f32 %v15766_v36, %v4938_v2  ;;  %v5358_v40 = vadd.f32 %v15767_v49, %v4943_v57  ;;  %v15770_v10 = vld [vmem:[#allocation111_spill] sm:$0xff]  ;;  %v15774_v37 = vld [vmem:[#allocation40_spill] sm:$0xff]  ;;  %v15775_v51 = vld [vmem:[#allocation106_spill] sm:$0xff] }
 0x35c   : > { %v5606_v5 = vadd.f32 %v5555_v21, %v5352_v31  ;;  %v5609_v52 = vadd.f32 %v9745_v33, %v5355_v45  ;;  %v4942_v6 = vadd.f32 %v15768_v19, %v4584_v8  ;;  %v5356_v3 = vadd.f32 %v15769_v55, %v4941_v44  ;;  %v14421_v2 = vpop.f32.mrf.mxu0  ;;  %v9749_v21 = vpop.f32.mrf.mxu1  ;;  %v15772_v33 = vld [vmem:[#allocation77_spill] sm:$0xff]  ;;  %v15773_v61 = vld [vmem:[#allocation79_spill] sm:$0xff]  ;;  %v15779_v25 = vld [vmem:[#allocation70_spill] sm:$0xff] }
 0x35d   : > { %v5607_v14 = vadd.f32 %v5558_v1, %v5353_v53  ;;  %v5612_v18 = vadd.f32 %v9748_v39, %v5358_v40  ;;  %v3952_v11 = vadd.f32 %v15770_v10, %v14201_v50  ;;  %v5359_v62 = vadd.f32 %v15771_v16, %v4944_v35  ;;  %v15776_v1 = vld [vmem:[#allocation13_spill] sm:$0xff]  ;;  %v15777_v60 = vld [vmem:[#allocation35_spill] sm:$0xff]  ;;  %v15778_v35 = vld [vmem:[#allocation108_spill] sm:$0xff] }
 0x35e   : > { %v5610_v12 = vadd.f32 %v5571_v0, %v5356_v3  ;;  %v5918_v57 = vadd.f32 %v15772_v33, %v5608_v38  ;;  %v14425_v32 = vadd.f32 %v15773_v61, %v5606_v5  ;;  %v14428_v28 = vadd.f32 %v15774_v37, %v5609_v52  ;;  %v5574_v27 = vpop.f32.mrf.mxu1  ;;  %v15780_v31 = vld [vmem:[#allocation42_spill] sm:$0xff]  ;;  %v14444_v45 = vpop.f32.mrf.mxu0  ;;  %v15784_v0 = vld [vmem:[#allocation71_spill] sm:$0xff] }
 0x35f   : > { %v14431_v44 = vadd.f32 %v15775_v51, %v5607_v14  ;;  %v5613_v9 = vadd.f32 %v9749_v21, %v5359_v62  ;;  %v5357_v50 = vadd.f32 %v15776_v1, %v4942_v6  ;;  %v14435_v8 = vadd.f32 %v15777_v60, %v5612_v18  ;;  %v15781_v53 = vld [vmem:[#allocation98_spill] sm:$0xff]  ;;  %v15783_v6 = vld [vmem:[#allocation9_spill] sm:$0xff] }
 0x360   : > { %v14438_v41 = vadd.f32 %v15778_v35, %v5610_v12  ;;  %v4334_v43 = vadd.f32 %v15779_v25, %v3952_v11  ;;  %v14449_v36 = vpop.f32.mrf.mxu0  ;;  %v15782_v40 = vld [vmem:[#allocation10_spill] sm:$0xff]  ;;  %v9752_v52 = vpop.f32.mrf.mxu1  ;;  %v5360_v14 = vadd.f32 %v15783_v6, %v4945_v22  ;;  %v5363_v10 = vadd.f32 %v15784_v0, %v4948_v56  ;;  %v15786_v56 = vld [vmem:[#allocation73_spill] sm:$0xff] }
 0x361   : > { %v5611_v58 = vadd.f32 %v5574_v27, %v5357_v50  ;;  %v14442_v24 = vadd.f32 %v15780_v31, %v5613_v9  ;;  %v5362_v5 = vadd.f32 %v15782_v40, %v4947_v15  ;;  %v15785_v16 = vld [vmem:[#allocation30_spill] sm:$0xff]  ;;  %v5914_v61 = vadd.f32 %v15786_v56, %v5604_v42  ;;  %v15787_v9 = vld [vmem:[#allocation101_spill] sm:$0xff] }
 0x362   : > { %v4588_v49 = vadd.f32 %v15781_v53, %v4334_v43  ;;  %v14455_v18 = vpop.f32.mrf.mxu0  ;;  %v5587_v55 = vpop.f32.mrf.mxu1  ;;  %v5912_v1 = vadd.f32 %v15787_v9, %v14399_v30  ;;  %v15788_v25 = vld [vmem:[#allocation102_spill] sm:$0xff]  ;;  %v15789_v53 = vld [vmem:[#allocation12_spill] sm:$0xff] }
 0x363   : > { %v14447_v38 = vadd.f32 %v14133_v26, %v5611_v58  ;;  %v5616_v19 = vadd.f32 %v9752_v52, %v5362_v5  ;;  %v5614_v3 = vadd.f32 %v5587_v55, %v5360_v14  ;;  %v5915_v43 = vadd.f32 %v15788_v25, %v14402_v17 }
 0x364   : > { %v4946_v39 = vadd.f32 %v14185_v48, %v4588_v49  ;;  %v9753_v11 = vpop.f32.mrf.mxu1  ;;  %v8295_v48 = vld [vmem:[%s14823_s5] sm:$0xf]  ;;  %v6440_v22 = vpop.f32.mrf.mxu0  ;;  %v5913_v49 = vadd.f32 %v15789_v53, %v14409_v13 }
 0x365   : > { %v14459_v26 = vadd.f32 %v14166_v4, %v5616_v19  ;;  %v5617_v12 = vadd.f32 %v9753_v11, %v5363_v10  ;;  %v14463_v15 = vadd.f32 %v14198_v29, %v5614_v3  ;;  %9959 = vmatprep.subr.msk.bf16.mxu1 %vm1063_vm3, %v8295_v48  ;;  %v8328_v37 = vsel %vm1063_vm3, %v8295_v48, 0 }
 0x366   : > { %v5361_v62 = vadd.f32 %v15785_v16, %v4946_v39  ;;  %v5590_v21 = vpop.f32.mrf.mxu1  ;;  %9917 = vmatpush3.bf16.msra.mxu1 %v8328_v37 }
 0x367   : > { %v14471_v4 = vadd.f32 %v14233_v46, %v5617_v12 }
 0x368   : > { %v5615_v33 = vadd.f32 %v5590_v21, %v5361_v62  ;;  %v9776_v51 = vpop.f32.mrf.mxu1 }
 0x369   : > { %v6088_v29 = vadd.f32 %v9776_v51, %v5914_v61 }
 0x36a   : > { %v5925_v50 = vadd.f32 %v14267_v7, %v5615_v33  ;;  %v9806_v60 = vpop.f32.mrf.mxu0  ;;  %v6023_v35 = vpop.f32.mrf.mxu1 }
 0x36b   : > { %v6086_v27 = vadd.f32 %v6023_v35, %v5912_v1  ;;  %v14480_v42 = vadd.f32 %v14295_v23, %v6088_v29 }
 0x36c   : > { %v6453_v46 = vpop.f32.mrf.mxu0  ;;  %v9777_v58 = vpop.f32.mrf.mxu1 }
 0x36d   : > { %v6089_v31 = vadd.f32 %v9777_v58, %v5915_v43  ;;  %v14485_v40 = vadd.f32 %v14324_v34, %v6086_v27 }
 0x36e   : > { %v9807_v30 = vpop.f32.mrf.mxu0  ;;  %v6026_v7 = vpop.f32.mrf.mxu1 }
 0x36f   : > { %v6087_v5 = vadd.f32 %v6026_v7, %v5913_v49  ;;  %v14488_v52 = vadd.f32 %v14348_v20, %v6089_v31 }
 0x370   : > { %v6456_v39 = vpop.f32.mrf.mxu0 }
 0x371   : > { %v14491_v17 = vadd.f32 %v14374_v47, %v6087_v5 }
 0x375   : > { %v14493_v23 = vpop.f32.mrf.mxu0 }
 0x376   : > { %v9780_v19 = vpop.f32.mrf.mxu1 }
 0x377   : > { %v14495_v6 = vpop.f32.mrf.mxu0  ;;  %v6092_v14 = vadd.f32 %v9780_v19, %v5918_v57 }
 0x378   : > { %v6039_v13 = vpop.f32.mrf.mxu1 }
 0x379   : > { %v14497_v55 = vpop.f32.mrf.mxu0  ;;  %v6090_v34 = vadd.f32 %v6039_v13, %v14425_v32  ;;  %v14501_v3 = vadd.f32 %v14391_v54, %v6092_v14 }
 0x37a   : > { %v9781_v20 = vpop.f32.mrf.mxu1 }
 0x37b   : > { %v6093_v0 = vadd.f32 %v9781_v20, %v14428_v28  ;;  %v14505_v47 = vadd.f32 %v14406_v59, %v6090_v34  ;;  %v14507_v11 = vpop.f32.mrf.mxu0 }
 0x37c   : > { %v6042_v10 = vpop.f32.mrf.mxu1 }
 0x37d   : > { %v6091_v12 = vadd.f32 %v6042_v10, %v14431_v44  ;;  %v14511_v57 = vadd.f32 %v14414_v63, %v6093_v0 }
 0x37f   : > { %v14514_v16 = vadd.f32 %v14421_v2, %v6091_v12 }
 0x382   : > { %v14516_v32 = vpop.f32.mrf.mxu0 }
 0x383   : > { %v9784_v54 = vpop.f32.mrf.mxu1 }
 0x384   : > { %v6096_v62 = vadd.f32 %v9784_v54, %v14435_v8  ;;  %v14519_v28 = vpop.f32.mrf.mxu0 }
 0x385   : > { %v6055_v59 = vpop.f32.mrf.mxu1 }
 0x386   : > { %v6094_v48 = vadd.f32 %v6055_v59, %v14438_v41  ;;  %v6478_v21 = vadd.f32 %v14444_v45, %v6096_v62  ;;  %v14523_v33 = vpop.f32.mrf.mxu0 }
 0x387   : > { %v9785_v44 = vpop.f32.mrf.mxu1 }
 0x388   : > { %v6097_v63 = vadd.f32 %v9785_v44, %v14442_v24  ;;  %v14527_v2 = vadd.f32 %v14449_v36, %v6094_v48  ;;  %v14533_v37 = vpop.f32.mrf.mxu0 }
 0x389   : > { %v6058_v56 = vpop.f32.mrf.mxu1 }
 0x38a   : > { %v6095_v61 = vadd.f32 %v6058_v56, %v14447_v38  ;;  %v14531_v8 = vadd.f32 %v14455_v18, %v6097_v63 }
 0x38c   : > { %v14535_v51 = vadd.f32 %v6440_v22, %v6095_v61 }
 0x38f   : > { %v9838_v41 = vpop.f32.mrf.mxu0  ;;  %v9788_v45 = vpop.f32.mrf.mxu1 }
 0x390   : > { %v6100_v29 = vadd.f32 %v9788_v45, %v14459_v26 }
 0x391   : > { %v14538_v9 = vpop.f32.mrf.mxu0  ;;  %v6071_v24 = vpop.f32.mrf.mxu1 }
 0x392   : > { %v6098_v36 = vadd.f32 %v6071_v24, %v14463_v15  ;;  %v6482_v1 = vadd.f32 %v9806_v60, %v6100_v29 }
 0x393   : > { %v14541_v35 = vpop.f32.mrf.mxu0  ;;  %v9789_v38 = vpop.f32.mrf.mxu1 }
 0x394   : > { %v6101_v18 = vadd.f32 %v9789_v38, %v14471_v4  ;;  %v14544_v27 = vadd.f32 %v6453_v46, %v6098_v36 }
 0x395   : > { %v6074_v25 = vpop.f32.mrf.mxu1  ;;  %v14546_v22 = vpop.f32.mrf.mxu0 }
 0x396   : > { %15790 = vst [vmem:[#allocation44_spill] sm:$0xff] %v14544_v27  ;;  %15791 = vst [vmem:[#allocation57_spill] sm:$0xff] %v14546_v22  ;;  %v6099_v43 = vadd.f32 %v6074_v25, %v5925_v50  ;;  %v14548_v58 = vadd.f32 %v9807_v30, %v6101_v18 }
 0x398   : > { %15792 = vst [vmem:[#allocation47_spill] sm:$0xff] %v14548_v58  ;;  %v14550_v26 = vadd.f32 %v6456_v39, %v6099_v43 }
 0x39a   : > { %15793 = vst [vmem:[#allocation83_spill] sm:$0xff] %v14550_v26 }
 0x39b   : > { %v9842_v31 = vpop.f32.mrf.mxu0 }
 0x39d   : > { %v14552_v53 = vpop.f32.mrf.mxu0 }
 0x39e   : > { %15794 = vst [vmem:[#allocation4_spill] sm:$0xff] %v14552_v53 }
 0x39f   : > { %v9812_v15 = vpop.f32.mrf.mxu1  ;;  %v14554_v60 = vpop.f32.mrf.mxu0 }
 0x3a0   : > { %15795 = vst [vmem:[#allocation18_spill] sm:$0xff] %v14554_v60 }
 0x3a1   : > { %v6659_v49 = vpop.f32.mrf.mxu1  ;;  %v14556_v7 = vpop.f32.mrf.mxu0 }
 0x3a2   : > { %15796 = vst [vmem:[#allocation20_spill] sm:$0xff] %v14556_v7 }
 0x3a3   : > { %v9813_v4 = vpop.f32.mrf.mxu1 }
 0x3a4   : > { %v14558_v46 = vpop.f32.mrf.mxu0 }
 0x3a5   : > { %v6662_v5 = vpop.f32.mrf.mxu1 }
 0x3a6   : > { %v14560_v19 = vpop.f32.mrf.mxu0 }
 0x3a8   : > { %v14562_v30 = vpop.f32.mrf.mxu0 }
 0x3a9   : > { %v9816_v50 = vpop.f32.mrf.mxu1 }
 0x3aa   : > { %v14566_v13 = vpop.f32.mrf.mxu0 }
 0x3ab   : > { %v6675_v39 = vpop.f32.mrf.mxu1 }
 0x3ad   : > { %v14564_v14 = vpop.f32.mrf.mxu1  ;;  %v14570_v0 = vpop.f32.mrf.mxu0 }
 0x3af   : > { %v14568_v34 = vpop.f32.mrf.mxu1  ;;  %v14578_v59 = vpop.f32.mrf.mxu0 }
 0x3b1   : > { %v9820_v20 = vpop.f32.mrf.mxu1  ;;  %v14582_v44 = vpop.f32.mrf.mxu0 }
 0x3b2   : > { %v6732_v10 = vadd.f32 %v9820_v20, %v6478_v21  ;;  %15797 = vst [vmem:[#allocation21_spill] sm:$0xff] %v14582_v44 }
 0x3b3   : > { %v14572_v12 = vpop.f32.mrf.mxu1  ;;  %v14584_v61 = vpop.f32.mrf.mxu0 }
 0x3b4   : > { %v14574_v54 = vadd.f32 %v9838_v41, %v6732_v10  ;;  %15798 = vst [vmem:[#allocation113_spill] sm:$0xff] %v14584_v61 }
 0x3b5   : > { %v14576_v62 = vpop.f32.mrf.mxu1 }
 0x3b7   : > { %v14580_v48 = vpop.f32.mrf.mxu1  ;;  %v14590_v21 = vpop.f32.mrf.mxu0 }
 0x3b8   : > { %15801 = vst [vmem:[#allocation88_spill] sm:$0xff] %v14590_v21 }
 0x3b9   : > { %v14594_v24 = vpop.f32.mrf.mxu0 }
 0x3ba   : > { %15803 = vst [vmem:[#allocation115_spill] sm:$0xff] %v14594_v24 }
 0x3bb   : > { %v9824_v63 = vpop.f32.mrf.mxu1  ;;  %v14598_v38 = vpop.f32.mrf.mxu0 }
 0x3bc   : > { %v6736_v56 = vadd.f32 %v9824_v63, %v6482_v1  ;;  %15805 = vst [vmem:[#allocation118_spill] sm:$0xff] %v14598_v38 }
 0x3bd   : > { %v14588_v29 = vpop.f32.mrf.mxu1  ;;  %v14600_v25 = vpop.f32.mrf.mxu0 }
 0x3be   : > { %v14586_v45 = vadd.f32 %v9842_v31, %v6736_v56  ;;  %15800 = vst [vmem:[#allocation27_spill] sm:$0xff] %v14588_v29  ;;  %15806 = vst [vmem:[#allocation120_spill] sm:$0xff] %v14600_v25  ;;  %v6725_v29 = vadd.f32 %v9813_v4, %v14488_v52  ;;  %v6726_v52 = vadd.f32 %v6675_v39, %v14505_v47 }
 0x3bf   : > { %v14592_v41 = vpop.f32.mrf.mxu1  ;;  %v6727_v47 = vadd.f32 %v14568_v34, %v14514_v16 }
 0x3c0   : > { %15799 = vst [vmem:[#allocation85_spill] sm:$0xff] %v14586_v45  ;;  %15802 = vst [vmem:[#allocation89_spill] sm:$0xff] %v14592_v41 }
 0x3c1   : > { %v14596_v36 = vpop.f32.mrf.mxu1 }
 0x3c2   : > { %15804 = vst [vmem:[#allocation117_spill] sm:$0xff] %v14596_v36  ;;  %v14602_v43 = vpop.f32.mrf.mxu0 }
 0x3c3   : > { %15807 = vst [vmem:[#allocation91_spill] sm:$0xff] %v14602_v43 }
 0x3c4   : > { %v14604_v20 = vpop.f32.mrf.mxu0 }
 0x3c5   : > { %15808 = vst [vmem:[#allocation103_spill] sm:$0xff] %v14604_v20 }
 0x3c6   : > { %v14606_v63 = vpop.f32.mrf.mxu0 }
 0x3c7   : > { %15809 = vst [vmem:[#allocation93_spill] sm:$0xff] %v14606_v63  ;;  %v6724_v63 = vadd.f32 %v9812_v15, %v14480_v42 }
 0x3c8   : > { %v14608_v60 = vpop.f32.mrf.mxu0 }
 0x3c9   : > { %15810 = vst [vmem:[#allocation122_spill] sm:$0xff] %v14608_v60  ;;  %v6722_v60 = vadd.f32 %v6659_v49, %v14485_v40  ;;  %v7082_v27 = vadd.f32 %v14493_v23, %v6724_v63  ;;  %v6728_v40 = vadd.f32 %v9816_v50, %v14501_v3  ;;  %v7083_v49 = vadd.f32 %v14497_v55, %v6725_v29 }
 0x3ca   : > { %v6729_v55 = vadd.f32 %v14564_v14, %v14511_v57  ;;  %v7084_v50 = vadd.f32 %v14519_v28, %v6726_v52  ;;  %v6730_v28 = vadd.f32 %v14572_v12, %v14527_v2 }
 0x3cc   : > { %v9848_v18 = vpop.f32.mrf.mxu1 }
 0x3cd   : > { %v7496_v44 = vadd.f32 %v9848_v18, %v7082_v27 }
 0x3ce   : > { %v7431_v1 = vpop.f32.mrf.mxu1  ;;  %v9902_v53 = vpop.f32.mrf.mxu0 }
 0x3d0   : > { %v9849_v31 = vpop.f32.mrf.mxu1  ;;  %v8169_v38 = vpop.f32.mrf.mxu0 }
 0x3d1   : > { %v7497_v23 = vadd.f32 %v9849_v31, %v7083_v49 }
 0x3d2   : > { %v7434_v10 = vpop.f32.mrf.mxu1  ;;  %v9903_v25 = vpop.f32.mrf.mxu0 }
 0x3d3   : > { %v7751_v29 = vadd.f32 %v14562_v30, %v7497_v23  ;;  %v7085_v30 = vadd.f32 %v14533_v37, %v6727_v47 }
 0x3d4   : > { %v8172_v43 = vpop.f32.mrf.mxu0 }
 0x3da   : > { %v9852_v56 = vpop.f32.mrf.mxu1 }
 0x3db   : > { %v14616_v20 = vpop.f32.mrf.mxu0 }
 0x3dc   : > { %v7447_v7 = vpop.f32.mrf.mxu1  ;;  %15812 = vst [vmem:[#allocation52_spill] sm:$0xff] %v14616_v20  ;;  %v7080_v20 = vadd.f32 %v14495_v6, %v6722_v60 }
 0x3dd   : > { %v14622_v21 = vpop.f32.mrf.mxu0 }
 0x3de   : > { %v9853_v45 = vpop.f32.mrf.mxu1  ;;  %v7494_v15 = vadd.f32 %v7431_v1, %v7080_v20 }
 0x3e0   : > { %v7450_v24 = vpop.f32.mrf.mxu1  ;;  %v7748_v3 = vadd.f32 %v14560_v19, %v7494_v15 }
 0x3e7   : > { %v14610_v36 = vpop.f32.mrf.mxu1 }
 0x3e9   : > { %v14612_v26 = vpop.f32.mrf.mxu1 }
 0x3eb   : > { %v14614_v41 = vpop.f32.mrf.mxu1 }
 0x3ec   : > { %15811 = vst [vmem:[#allocation7_spill] sm:$0xff] %v14614_v41  ;;  %v6723_v41 = vadd.f32 %v6662_v5, %v14491_v17  ;;  %v7750_v17 = vadd.f32 %v14558_v46, %v7496_v44  ;;  %v7086_v5 = vadd.f32 %v14516_v32, %v6728_v40  ;;  %v14658_v32 = vld [vmem:[%s14822_s4] ss:$0 sm:$0xff]  ;;  %v7499_v40 = vadd.f32 %v7450_v24, %v7085_v30 }
 0x3ed   : > { %v14618_v58 = vpop.f32.mrf.mxu1 }
 0x3ee   : > { %15813 = vst [vmem:[#allocation94_spill] sm:$0xff] %v14618_v58  ;;  %v14632_v58 = vpop.f32.mrf.mxu0  ;;  %v7081_v63 = vadd.f32 %v14507_v11, %v6723_v41  ;;  %v7500_v39 = vadd.f32 %v9852_v56, %v7086_v5  ;;  %v7498_v41 = vadd.f32 %v7447_v7, %v7084_v50  ;;  %v7087_v7 = vadd.f32 %v14523_v33, %v6729_v55  ;;  %v15816_v5 = vld [vmem:[#allocation113_spill] sm:$0xff]  ;;  %v15818_v55 = vld [vmem:[#allocation27_spill] sm:$0xff] }
 0x3f0   : > { %v14643_v27 = vpop.f32.mrf.mxu0  ;;  %v7495_v60 = vadd.f32 %v7434_v10, %v7081_v63  ;;  %v7501_v56 = vadd.f32 %v9853_v45, %v7087_v7  ;;  %v7752_v2 = vadd.f32 %v14578_v59, %v7498_v41  ;;  %v15825_v7 = vld [vmem:[#allocation117_spill] sm:$0xff] }
 0x3f2   : > { %v14653_v1 = vpop.f32.mrf.mxu0  ;;  %v7749_v16 = vadd.f32 %v14566_v13, %v7495_v60  ;;  %v15815_v60 = vld [vmem:[#allocation21_spill] sm:$0xff] }
 0x3f3   : > { %v15819_v50 = vld [vmem:[#allocation7_spill] sm:$0xff] }
 0x3f4   : > { %v14669_v13 = vpop.f32.mrf.mxu0 }
 0x3f5   : > { %v14624_v22 = vpop.f32.mrf.mxu1 }
 0x3f7   : > { %v14628_v61 = vpop.f32.mrf.mxu1 }
 0x3f9   : > { %v14634_v42 = vpop.f32.mrf.mxu1 }
 0x3fb   : > { %v14639_v4 = vpop.f32.mrf.mxu1 }
 0x3fd   : > { %v9884_v6 = vpop.f32.mrf.mxu1 }
 0x3fe   : > { %v8060_v18 = vadd.f32 %v9884_v6, %v7750_v17  ;;  %v15814_v17 = vld [vmem:[#allocation52_spill] sm:$0xff] }
 0x3ff   : > { %v7995_v11 = vpop.f32.mrf.mxu1 }
 0x400   : > { %v8234_v46 = vadd.f32 %v9902_v53, %v8060_v18  ;;  %v8058_v44 = vadd.f32 %v7995_v11, %v7748_v3  ;;  %v6733_v53 = vadd.f32 %v14576_v62, %v14531_v8  ;;  %v6731_v62 = vadd.f32 %v14580_v48, %v14535_v51  ;;  %v15817_v3 = vld [vmem:[#allocation44_spill] sm:$0xff] }
 0x401   : > { %v9885_v57 = vpop.f32.mrf.mxu1  ;;  %v7755_v51 = vadd.f32 %v15815_v60, %v7501_v56  ;;  %v6734_v47 = vadd.f32 %v15818_v55, %v15817_v3 }
 0x402   : > { %v8232_v19 = vadd.f32 %v8169_v38, %v8058_v44  ;;  %v8061_v14 = vadd.f32 %v9885_v57, %v7751_v29  ;;  %v8257_v31 = vadd.f32 %v14658_v32, %v8234_v46  ;;  %v7754_v38 = vadd.f32 %v14570_v0, %v7500_v39  ;;  %v15820_v46 = vld [vmem:[#allocation57_spill] sm:$0xff]  ;;  %v15821_v57 = vld [vmem:[#allocation88_spill] sm:$0xff] }
 0x403   : > { %v7998_v34 = vpop.f32.mrf.mxu1  ;;  %v7088_v0 = vadd.f32 %v14538_v9, %v6730_v28  ;;  %v7091_v45 = vadd.f32 %v14541_v35, %v6733_v53  ;;  %v7089_v44 = vadd.f32 %v15820_v46, %v6731_v62  ;;  %v15824_v53 = vld [vmem:[#allocation83_spill] sm:$0xff] }
 0x404   : > { %v8235_v20 = vadd.f32 %v9903_v25, %v8061_v14  ;;  %v8059_v10 = vadd.f32 %v7998_v34, %v7749_v16  ;;  %v8255_v8 = vadd.f32 %v14658_v32, %v8232_v19  ;;  %v7504_v25 = vadd.f32 %v14610_v36, %v14574_v54  ;;  %v15822_v14 = vld [vmem:[#allocation47_spill] sm:$0xff]  ;;  %v15823_v16 = vld [vmem:[#allocation89_spill] sm:$0xff] }
 0x405   : > { %v8273_v49 = vmax.f32 %v8257_v31, 0.0  ;;  %v7502_v63 = vadd.f32 %v14612_v26, %v7088_v0  ;;  %v7753_v54 = vadd.f32 %v15816_v5, %v7499_v40  ;;  %v7505_v11 = vadd.f32 %v15819_v50, %v7091_v45  ;;  %v15826_v40 = vld [vmem:[#allocation115_spill] sm:$0xff]  ;;  %v15830_v0 = vld [vmem:[#allocation85_spill] sm:$0xff] }
 0x406   : > { %v9888_v15 = vpop.f32.mrf.mxu1  ;;  %v8258_v33 = vadd.f32 %v14658_v32, %v8235_v20  ;;  %v8233_v12 = vadd.f32 %v8172_v43, %v8059_v10  ;;  %v9911_v43 = vpop.f32.mrf.mxu0  ;;  %v8271_v36 = vmax.f32 %v8255_v8, 0.0  ;;  %v7758_v19 = vadd.f32 %v15821_v57, %v7504_v25 }
 0x407   : > { %v8064_v37 = vadd.f32 %v9888_v15, %v7754_v38  ;;  %v6737_v28 = vadd.f32 %v15823_v16, %v15822_v14  ;;  %v6735_v30 = vadd.f32 %v15825_v7, %v15824_v53  ;;  %v7756_v15 = vadd.f32 %v15826_v40, %v7502_v63  ;;  %v15832_v63 = vld [vmem:[#allocation20_spill] sm:$0xff] }
 0x408   : > { %v8011_v24 = vpop.f32.mrf.mxu1  ;;  %v8274_v52 = vmax.f32 %v8258_v33, 0.0  ;;  %v8256_v59 = vadd.f32 %v14658_v32, %v8233_v12  ;;  %v15828_v33 = vld [vmem:[#allocation4_spill] sm:$0xff]  ;;  %v7508_v45 = vadd.f32 %v14624_v22, %v15830_v0 }
 0x409   : > { %v8062_v23 = vadd.f32 %v8011_v24, %v7752_v2  ;;  %v8238_v6 = vadd.f32 %v15814_v17, %v8064_v37  ;;  %v15827_v2 = vld [vmem:[#allocation94_spill] sm:$0xff]  ;;  %v7092_v12 = vadd.f32 %v15828_v33, %v6734_v47  ;;  %v7093_v17 = vadd.f32 %v15832_v63, %v6735_v30  ;;  %v14739_v63 = vld [vmem:[%s14824_s6] ss:$0 sm:$0xff] }
 0x40a   : > { %v9889_v48 = vpop.f32.mrf.mxu1  ;;  %v8288_v9 = vpack.c.bf16 %v8274_v52, %v8273_v49  ;;  %v8272_v18 = vmax.f32 %v8256_v59, 0.0  ;;  %v7503_v8 = vadd.f32 %v15827_v2, %v7089_v44  ;;  %v15831_v52 = vld [vmem:[#allocation18_spill] sm:$0xff] }
 0x40b   : > { %v8236_v35 = vadd.f32 %v14622_v21, %v8062_v23  ;;  %v8065_v39 = vadd.f32 %v9889_v48, %v7755_v51  ;;  %v8204_v21 = vpop.f32.mrf.mxu0  ;;  %v8261_v34 = vadd.f32 %v14658_v32, %v8238_v6  ;;  %v7095_v59 = vadd.f32 %v15831_v52, %v6737_v28 }
 0x40c   : > { %v8014_v26 = vpop.f32.mrf.mxu1  ;;  %v8287_v29 = vpack.c.bf16 %v8272_v18, %v8271_v36  ;;  %v7506_v48 = vadd.f32 %v14628_v61, %v7092_v12  ;;  %v7507_v44 = vadd.f32 %v14639_v4, %v7093_v17  ;;  %v8429_v17 = vld [vmem:[%s10205_s15 + $0x10] sm:$0xff] }
 0x40d   : > { %v8063_v41 = vadd.f32 %v8014_v26, %v7753_v54  ;;  %v8239_v31 = vadd.f32 %v14632_v58, %v8065_v39  ;;  %v8259_v10 = vadd.f32 %v14658_v32, %v8236_v35  ;;  %v15829_v58 = vld [vmem:[#allocation118_spill] sm:$0xff]  ;;  %v9914_v23 = vpop.f32.mrf.mxu0  ;;  %v8277_v6 = vmax.f32 %v8261_v34, 0.0 }
 0x40e   : > { %9918 = vmatprep.mubr.msk.bf16.mxu1 %vm1038_vm5, %v8287_v29  ;;  %v7759_v25 = vadd.f32 %v15829_v58, %v7505_v11  ;;  %v7509_v22 = vadd.f32 %v14634_v42, %v7095_v59  ;;  %v15834_v11 = vld [vmem:[#allocation91_spill] sm:$0xff] }
 0x40f   : > { %v8237_v38 = vadd.f32 %v14643_v27, %v8063_v41  ;;  %v8262_v37 = vadd.f32 %v14658_v32, %v8239_v31  ;;  %9919 = vmatmul.mubr.msk.bf16.vlgmr.msra.gmra.mxu1 %vm1038_vm5, %v8288_v9  ;;  %v8275_v5 = vmax.f32 %v8259_v10, 0.0  ;;  %v7762_v39 = vadd.f32 %v15834_v11, %v7508_v45  ;;  %v8217_v26 = vpop.f32.mrf.mxu0 }
 0x410   : > { %v9892_v20 = vpop.f32.mrf.mxu1 }
 0x411   : > { %v8068_v56 = vadd.f32 %v9892_v20, %v7758_v19  ;;  %v8260_v27 = vadd.f32 %v14658_v32, %v8237_v38  ;;  %v8278_v60 = vmax.f32 %v8262_v37, 0.0  ;;  %v9915_v4 = vpop.f32.mrf.mxu0 }
 0x412   : > { %v8027_v62 = vpop.f32.mrf.mxu1 }
 0x413   : > { %v8242_v24 = vadd.f32 %v14653_v1, %v8068_v56  ;;  %v8066_v49 = vadd.f32 %v8027_v62, %v7756_v15  ;;  %v8276_v54 = vmax.f32 %v8260_v27, 0.0  ;;  %v8290_v9 = vpack.c.bf16 %v8278_v60, %v8277_v6  ;;  %v15833_v1 = vld [vmem:[#allocation120_spill] sm:$0xff]  ;;  %v15837_v56 = vld [vmem:[#allocation122_spill] sm:$0xff]  ;;  %v8220_v37 = vpop.f32.mrf.mxu0 }
 0x414   : > { %v9893_v51 = vpop.f32.mrf.mxu1  ;;  %v7757_v35 = vadd.f32 %v15833_v1, %v7503_v8  ;;  %v7761_v40 = vadd.f32 %v15837_v56, %v7507_v44  ;;  %v8428_v1 = vld [vmem:[%s10205_s15 + $0x8] sm:$0xff] }
 0x415   : > { %v8069_v36 = vadd.f32 %v9893_v51, %v7759_v25  ;;  %v8240_v18 = vadd.f32 %v14669_v13, %v8066_v49  ;;  %v8289_v55 = vpack.c.bf16 %v8276_v54, %v8275_v5  ;;  %v8265_v47 = vadd.f32 %v14658_v32, %v8242_v24  ;;  %v15835_v13 = vld [vmem:[#allocation103_spill] sm:$0xff]  ;;  %v8427_v51 = vld [vmem:[%s10205_s15] sm:$0xff] }
 0x416   : > { %v8030_v3 = vpop.f32.mrf.mxu1  ;;  %v7760_v41 = vadd.f32 %v15835_v13, %v7506_v48 }
 0x417   : > { %v8243_v50 = vadd.f32 %v9911_v43, %v8069_v36  ;;  %v8067_v46 = vadd.f32 %v8030_v3, %v7757_v35  ;;  %9922 = vmatprep.mubr.msk.bf16.mxu1 %vm1038_vm5, %v8289_v55  ;;  %v8263_v57 = vadd.f32 %v14658_v32, %v8240_v18  ;;  %v15836_v43 = vld [vmem:[#allocation93_spill] sm:$0xff]  ;;  %v8281_v28 = vmax.f32 %v8265_v47, 0.0  ;;  %v8430_v36 = vld [vmem:[%s10205_s15 + $0x18] sm:$0xff]  ;;  %v8433_v47 = vld [vmem:[%s10205_s15 + $0x30] sm:$0xff] }
 0x418   : > { %v9896_v61 = vpop.f32.mrf.mxu1  ;;  %9923 = vmatmul.mubr.msk.bf16.gmra.mxu1 %vm1038_vm5, %v8290_v9  ;;  %v7763_v16 = vadd.f32 %v15836_v43, %v7509_v22 }
 0x419   : > { %v8266_v29 = vadd.f32 %v14658_v32, %v8243_v50  ;;  %v8072_v42 = vadd.f32 %v9896_v61, %v7762_v39  ;;  %v8241_v19 = vadd.f32 %v8204_v21, %v8067_v46  ;;  %v8279_v15 = vmax.f32 %v8263_v57, 0.0  ;;  %v8432_v57 = vld [vmem:[%s10205_s15 + $0x28] sm:$0xff] }
 0x41a   : > { %v8043_v14 = vpop.f32.mrf.mxu1 }
 0x41b   : > { %v8282_v53 = vmax.f32 %v8266_v29, 0.0  ;;  %v8246_v7 = vadd.f32 %v9914_v23, %v8072_v42  ;;  %v8070_v30 = vadd.f32 %v8043_v14, %v7760_v41  ;;  %v8264_v34 = vadd.f32 %v14658_v32, %v8241_v19  ;;  %v8434_v29 = vld [vmem:[%s10205_s15 + $0x38] sm:$0xff] }
 0x41c   : > { %v9897_v31 = vpop.f32.mrf.mxu1 }
 0x41d   : > { %v8292_v20 = vpack.c.bf16 %v8282_v53, %v8281_v28  ;;  %v8244_v10 = vadd.f32 %v8217_v26, %v8070_v30  ;;  %v8073_v38 = vadd.f32 %v9897_v31, %v7763_v16  ;;  %v8280_v21 = vmax.f32 %v8264_v34, 0.0  ;;  %v8431_v26 = vld [vmem:[%s10205_s15 + $0x20] sm:$0xff]  ;;  %v8437_v28 = vld [vmem:[%s10205_s15 + $0x50] sm:$0xff] }
 0x41e   : > { %v8046_v2 = vpop.f32.mrf.mxu1  ;;  %v8269_v8 = vadd.f32 %v14658_v32, %v8246_v7  ;;  %v8435_v30 = vld [vmem:[%s10205_s15 + $0x40] sm:$0xff] }
 0x41f   : > { %v8247_v33 = vadd.f32 %v9915_v4, %v8073_v38  ;;  %v8071_v12 = vadd.f32 %v8046_v2, %v7761_v40  ;;  %v8291_v62 = vpack.c.bf16 %v8280_v21, %v8279_v15  ;;  %v8267_v58 = vadd.f32 %v14658_v32, %v8244_v10  ;;  %v8436_v40 = vld [vmem:[%s10205_s15 + $0x48] sm:$0xff] }
 0x420   : > { %v8285_v45 = vmax.f32 %v8269_v8, 0.0  ;;  %v8441_v8 = vld [vmem:[%s10205_s15 + $0x70] sm:$0xff] }
 0x421   : > { %v8270_v25 = vadd.f32 %v14658_v32, %v8247_v33  ;;  %v8245_v0 = vadd.f32 %v8220_v37, %v8071_v12  ;;  %9926 = vmatprep.mubr.msk.bf16.mxu1 %vm1038_vm5, %v8291_v62  ;;  %v8283_v49 = vmax.f32 %v8267_v58, 0.0  ;;  %v8439_v62 = vld [vmem:[%s10205_s15 + $0x60] sm:$0xff] }
 0x422   : > { %9927 = vmatmul.mubr.msk.bf16.gmra.mxu1 %vm1038_vm5, %v8292_v20  ;;  %v8438_v20 = vld [vmem:[%s10205_s15 + $0x58] sm:$0xff] }
 0x423   : > { %v8286_v27 = vmax.f32 %v8270_v25, 0.0  ;;  %v8268_v24 = vadd.f32 %v14658_v32, %v8245_v0 }
 0x425   : > { %v8294_v52 = vpack.c.bf16 %v8286_v27, %v8285_v45  ;;  %v8284_v59 = vmax.f32 %v8268_v24, 0.0  ;;  %v8442_v45 = vld [vmem:[%s10205_s15 + $0x78] sm:$0xff] }
 0x427   : > { %v8293_v23 = vpack.c.bf16 %v8284_v59, %v8283_v49 }
 0x429   : > { %9930 = vmatprep.mubr.msk.bf16.mxu1 %vm1038_vm5, %v8293_v23 }
 0x42a   : > { %9931 = vmatmul.mubr.msk.bf16.gmra.mxu1 %vm1038_vm5, %v8294_v52  ;;  %v8440_v52 = vld [vmem:[%s10205_s15 + $0x68] sm:$0xff] }
 0x4cf   : > { %v9920_v32 = vpop.f32.mrf.mxu1 }
 0x4d0   : > { %v8373_v6 = vadd.f32 %v9920_v32, %v14739_v63 }
 0x4d1   : > { %v8364_v60 = vpop.f32.mrf.mxu1 }
 0x4d2   : > { %v8445_v48 = vadd.f32 %v8429_v17, %v8373_v6  ;;  %v8365_v5 = vadd.f32 %v14739_v63, %v8364_v60 }
 0x4d3   : > { %v9921_v54 = vpop.f32.mrf.mxu1 }
 0x4d4   : > { %8461 = vst [vmem:[%s10210_s18 + $0x10] sm:$0xff] %v8445_v48  ;;  %v8443_v22 = vadd.f32 %v8427_v51, %v8365_v5  ;;  %v8376_v9 = vadd.f32 %v9921_v54, %v14739_v63 }
 0x4d5   : > { %v8367_v18 = vpop.f32.mrf.mxu1 }
 0x4d6   : > { %8459 = vst [vmem:[%s10210_s18] sm:$0xff] %v8443_v22  ;;  %v8446_v35 = vadd.f32 %v8430_v36, %v8376_v9  ;;  %v8368_v3 = vadd.f32 %v14739_v63, %v8367_v18 }
 0x4d8   : > { %v9924_v55 = vpop.f32.mrf.mxu1  ;;  %8462 = vst [vmem:[%s10210_s18 + $0x18] sm:$0xff] %v8446_v35  ;;  %v8444_v50 = vadd.f32 %v8428_v1, %v8368_v3 }
 0x4d9   : > { %v8389_v11 = vadd.f32 %v9924_v55, %v14739_v63 }
 0x4da   : > { %v8380_v39 = vpop.f32.mrf.mxu1  ;;  %8460 = vst [vmem:[%s10210_s18 + $0x8] sm:$0xff] %v8444_v50 }
 0x4db   : > { %v8449_v46 = vadd.f32 %v8433_v47, %v8389_v11  ;;  %v8381_v61 = vadd.f32 %v14739_v63, %v8380_v39 }
 0x4dc   : > { %v9925_v44 = vpop.f32.mrf.mxu1 }
 0x4dd   : > { %8465 = vst [vmem:[%s10210_s18 + $0x30] sm:$0xff] %v8449_v46  ;;  %v8447_v42 = vadd.f32 %v8431_v26, %v8381_v61  ;;  %v8392_v13 = vadd.f32 %v9925_v44, %v14739_v63 }
 0x4de   : > { %v8383_v41 = vpop.f32.mrf.mxu1 }
 0x4df   : > { %8463 = vst [vmem:[%s10210_s18 + $0x20] sm:$0xff] %v8447_v42  ;;  %v8450_v19 = vadd.f32 %v8434_v29, %v8392_v13  ;;  %v8384_v14 = vadd.f32 %v14739_v63, %v8383_v41 }
 0x4e1   : > { %8466 = vst [vmem:[%s10210_s18 + $0x38] sm:$0xff] %v8450_v19  ;;  %v8448_v43 = vadd.f32 %v8432_v57, %v8384_v14 }
 0x4e2   : > { %v9928_v16 = vpop.f32.mrf.mxu1 }
 0x4e3   : > { %v8405_v53 = vadd.f32 %v9928_v16, %v14739_v63  ;;  %8464 = vst [vmem:[%s10210_s18 + $0x28] sm:$0xff] %v8448_v43 }
 0x4e4   : > { %v8396_v7 = vpop.f32.mrf.mxu1 }
 0x4e5   : > { %v8453_v4 = vadd.f32 %v8437_v28, %v8405_v53  ;;  %v8397_v34 = vadd.f32 %v14739_v63, %v8396_v7 }
 0x4e6   : > { %v9929_v31 = vpop.f32.mrf.mxu1 }
 0x4e7   : > { %8469 = vst [vmem:[%s10210_s18 + $0x50] sm:$0xff] %v8453_v4  ;;  %v8451_v10 = vadd.f32 %v8435_v30, %v8397_v34  ;;  %v8408_v38 = vadd.f32 %v9929_v31, %v14739_v63 }
 0x4e8   : > { %v8399_v56 = vpop.f32.mrf.mxu1 }
 0x4e9   : > { %8467 = vst [vmem:[%s10210_s18 + $0x40] sm:$0xff] %v8451_v10  ;;  %v8454_v15 = vadd.f32 %v8438_v20, %v8408_v38  ;;  %v8400_v21 = vadd.f32 %v14739_v63, %v8399_v56 }
 0x4ea   : > { %v9932_v2 = vpop.f32.mrf.mxu1 }
 0x4eb   : > { %8470 = vst [vmem:[%s10210_s18 + $0x58] sm:$0xff] %v8454_v15  ;;  %v8452_v33 = vadd.f32 %v8436_v40, %v8400_v21  ;;  %v8421_v12 = vadd.f32 %v9932_v2, %v14739_v63 }
 0x4ec   : > { %v8412_v37 = vpop.f32.mrf.mxu1 }
 0x4ed   : > { %8468 = vst [vmem:[%s10210_s18 + $0x48] sm:$0xff] %v8452_v33  ;;  %v8457_v58 = vadd.f32 %v8441_v8, %v8421_v12  ;;  %v8413_v25 = vadd.f32 %v14739_v63, %v8412_v37 }
 0x4ee   : > { %v9933_v0 = vpop.f32.mrf.mxu1 }
 0x4ef   : > { %8473 = vst [vmem:[%s10210_s18 + $0x70] sm:$0xff] %v8457_v58  ;;  %v8455_v27 = vadd.f32 %v8439_v62, %v8413_v25  ;;  %v8424_v24 = vadd.f32 %v9933_v0, %v14739_v63 }
 0x4f0   : > { %v8415_v49 = vpop.f32.mrf.mxu1 }
 0x4f1   : > { %8471 = vst [vmem:[%s10210_s18 + $0x60] sm:$0xff] %v8455_v27  ;;  %v8458_v59 = vadd.f32 %v8442_v45, %v8424_v24  ;;  %v8416_v23 = vadd.f32 %v14739_v63, %v8415_v49  ;;  %8479 = sbr.rel (%p9165_p8) target bundleno = 1279 (0x4ff), region = 56 }
 0x4f3   : > { %8474 = vst [vmem:[%s10210_s18 + $0x78] sm:$0xff] %v8458_v59  ;;  %v8456_v32 = vadd.f32 %v8440_v52, %v8416_v23 }
 0x4f5   : > { %8472 = vst [vmem:[%s10210_s18 + $0x68] sm:$0xff] %v8456_v32 }
 0x4f6   : > { %v8481_v17 = vld [vmem:[#allocation2 + $0x80] sm:$0xf]  ;;  %v8482_v6 = vld [vmem:[#allocation2 + $0x84] sm:$0xf]  ;;  %v8483_v60 = vld [vmem:[#allocation2 + $0x88] sm:$0xf] }
 0x4f7   : > { %8493 = vst.msk [vmem:[#allocation2] sm:$0xf] %vm652_vm7, %v8481_v17  ;;  %8494 = vst.msk [vmem:[#allocation2 + $0x4] sm:$0xf] %vm652_vm7, %v8482_v6  ;;  %v8484_v51 = vld [vmem:[#allocation2 + $0x8c] sm:$0xf] }
 0x4f8   : > { %8495 = vst.msk [vmem:[#allocation2 + $0x8] sm:$0xf] %vm652_vm7, %v8483_v60  ;;  %v8485_v48 = vld [vmem:[#allocation2 + $0x90] sm:$0xf]  ;;  %v8486_v5 = vld [vmem:[#allocation2 + $0x94] sm:$0xf] }
 0x4f9   : > { %8496 = vst.msk [vmem:[#allocation2 + $0xc] sm:$0xf] %vm652_vm7, %v8484_v51  ;;  %8497 = vst.msk [vmem:[#allocation2 + $0x10] sm:$0xf] %vm652_vm7, %v8485_v48  ;;  %v8487_v63 = vld [vmem:[#allocation2 + $0x98] sm:$0xf] }
 0x4fa   : > { %8498 = vst.msk [vmem:[#allocation2 + $0x14] sm:$0xf] %vm652_vm7, %v8486_v5  ;;  %v8488_v54 = vld [vmem:[#allocation2 + $0x9c] sm:$0xf]  ;;  %v8489_v36 = vld [vmem:[#allocation2 + $0xa0] sm:$0xf] }
 0x4fb   : > { %8499 = vst.msk [vmem:[#allocation2 + $0x18] sm:$0xf] %vm652_vm7, %v8487_v63  ;;  %8500 = vst.msk [vmem:[#allocation2 + $0x1c] sm:$0xf] %vm652_vm7, %v8488_v54  ;;  %v8490_v22 = vld [vmem:[#allocation2 + $0xa4] sm:$0xf] }
 0x4fc   : > { %8501 = vst.msk [vmem:[#allocation2 + $0x20] sm:$0xf] %vm652_vm7, %v8489_v36  ;;  %v8491_v9 = vld [vmem:[#allocation2 + $0xa8] sm:$0xf]  ;;  %v8492_v18 = vld [vmem:[#allocation2 + $0xac] sm:$0xf] }
 0x4fd   : > { %8502 = vst.msk [vmem:[#allocation2 + $0x24] sm:$0xf] %vm652_vm7, %v8490_v22  ;;  %8503 = vst.msk [vmem:[#allocation2 + $0x28] sm:$0xf] %vm652_vm7, %v8491_v9 }
 0x4fe   : > { %8504 = vst.msk [vmem:[#allocation2 + $0x2c] sm:$0xf] %vm652_vm7, %v8492_v18 }
 0x4ff PF: > { %s17_s28 = sadd.s32 1, %s10126_s28   ;;  %s15838_s24 = smov %s10118_s26 }
 0x500   : > { %p14_p9 = scmp.ge.s32.totalorder %s17_s28, 6   ;;  %s15839_s25 = smov %s10122_s27 }
 0x501   : > { %s15840_s26 = smov %s15843_s29  ;;  %s15841_s27 = smov %s15847_s30 }
 0x502   :  { %16 = sbr.rel (!%p14_p9) target bundleno = 3 (0x3), region = 114 }

</bundles_post_ra>
